<compile_context>
chip_gen: v7x
topology: tpu7x:2x2x1
jax: 0.10.0
libtpu: 0.0.40
codegen_flags: <defaults>
</compile_context>

<pallas_src>
import functools

import numpy as np

import jax
import jax.numpy as jnp
from jax.experimental import pallas as pl
from jax.experimental.pallas import tpu as pltpu

_EPS = 1e-5
_TK = 512                               # K tile for the GEMM reduction axis


def _pick_vmem_limit():
    # v5e / v6e: 128 MiB physical VMEM -> allow ~96 MiB; v7x: 64 MiB -> ~48 MiB.
    try:
        cap = int(pltpu.get_tpu_info().vmem_capacity_bytes)
    except Exception:                   # interpret mode / unknown target
        cap = 64 * 1024 * 1024
    return max(32 * 1024 * 1024, min(cap * 3 // 4, 100 * 1024 * 1024))


_VMEM_LIMIT = _pick_vmem_limit()


def _round_up(x, m):
    return (x + m - 1) // m * m


def _pad_k(k):
    kp = _round_up(k, 128)
    if kp > _TK:
        kp = _round_up(k, _TK)
    return kp


def _apply_act(y, act):
    if act == "relu":
        return jnp.maximum(y, 0.0)
    if act == "tanh":
        return jnp.tanh(y)
    return y


# ---------------------------------------------------------------------------
# Kernel 1: K-tiled bf16 GEMM with BatchNorm(+act)(+residual) fused in epilogue
# ---------------------------------------------------------------------------

def _gemm_bn_kernel(a_ref, w_ref, p_ref, g_ref, bb_ref, *rest,
                    inv_count, act, has_res):
    if has_res:
        r_ref, o_ref, acc_ref = rest
    else:
        o_ref, acc_ref = rest
    k = pl.program_id(0)

    @pl.when(k == 0)
    def _init():
        acc_ref[...] = jnp.zeros_like(acc_ref)

    # bf16 x bf16 -> f32 accumulation on the MXU (accumulator is VMEM scratch).
    acc_ref[...] += jnp.dot(a_ref[...], w_ref[...],
                            preferred_element_type=jnp.float32)

    @pl.when(k == pl.num_programs(0) - 1)
    def _finalize():
        y = acc_ref[...]
        # Per-column sums over the whole tile.  Padded rows are exactly zero
        # (zero-padded A rows, no conv bias for BN layers), so no masking needed.
        s = jnp.sum(y, axis=0, keepdims=True)                     # (1, Np)
        ss = jnp.sum(y * y, axis=0, keepdims=True)
        # Combine stats across sub-pixel phase column groups (identity for plain
        # convs) and broadcast back to every column of the group.
        s_c = jnp.dot(s, p_ref[...], preferred_element_type=jnp.float32)
        ss_c = jnp.dot(ss, p_ref[...], preferred_element_type=jnp.float32)
        mean = s_c * inv_count
        # NOTE: E[x^2]-E[x]^2 in f32 can cancel for extreme magnitudes (clamped >= 0).
        var = jnp.maximum(ss_c * inv_count - mean * mean, 0.0)
        scale = g_ref[...] / jnp.sqrt(var + _EPS)
        shift = bb_ref[...] - mean * scale
        z = y * scale + shift
        if has_res:
            z = z + r_ref[...].astype(jnp.float32)
        o_ref[...] = _apply_act(z, act).astype(o_ref.dtype)


def gemm_bn_act(a, arrs, *, count, act, residual=None):
    """act(BN((M,K)@(K,N)) [+ residual]) as a single fused Pallas kernel.

    `a` is the im2col patch matrix (bf16-castable); the weight/gamma/beta/phase
    matrices in `arrs` are pre-padded and pre-cast at prepare_params time.
    Returns the padded (Mp, Np) bf16 result.
    """
    wm, g, bb, psum = arrs["wm"], arrs["g"], arrs["beta"], arrs["psum"]
    Kp, Np = wm.shape
    M, K = a.shape
    Mp = _round_up(M, 16)
    tk = min(Kp, _TK)
    num_k = Kp // tk

    # Fused path: whole (Mp, Np) accumulator stays VMEM-resident (true for CycleGAN
    # generator layer shapes).  TODO(synk): add an M-tiled two-pass fallback
    # (stats kernel -> affine kernel) for very large M.
    assert Mp * Np * 4 <= _VMEM_LIMIT // 2, "M tile too large for fused BN epilogue"

    a_p = jnp.pad(a.astype(jnp.bfloat16), ((0, Mp - M), (0, Kp - K)))
    operands = [a_p, wm, psum, g, bb]
    in_specs = [
        pl.BlockSpec((Mp, tk), lambda k: (0, k)),
        pl.BlockSpec((tk, Np), lambda k: (k, 0)),
        pl.BlockSpec((Np, Np), lambda k: (0, 0)),
        pl.BlockSpec((1, Np), lambda k: (0, 0)),
        pl.BlockSpec((1, Np), lambda k: (0, 0)),
    ]
    has_res = residual is not None
    if has_res:
        r_p = jnp.pad(residual.astype(jnp.bfloat16),
                      ((0, Mp - M), (0, Np - residual.shape[1])))
        operands.append(r_p)
        in_specs.append(pl.BlockSpec((Mp, Np), lambda k: (0, 0)))

    kern = functools.partial(_gemm_bn_kernel, inv_count=1.0 / float(count),
                             act=act, has_res=has_res)
    return pl.pallas_call(
        kern,
        out_shape=jax.ShapeDtypeStruct((Mp, Np), jnp.bfloat16),
        grid=(num_k,),
        in_specs=in_specs,
        out_specs=pl.BlockSpec((Mp, Np), lambda k: (0, 0)),
        scratch_shapes=[pltpu.VMEM((Mp, Np), jnp.float32)],
        compiler_params=pltpu.CompilerParams(
            dimension_semantics=("arbitrary",),
            vmem_limit_bytes=_VMEM_LIMIT,
        ),
    )(*operands)


# ---------------------------------------------------------------------------
# Kernel 2: K-tiled bf16 GEMM + bias + activation (final conv, no norm layer)
# ---------------------------------------------------------------------------

def _gemm_bias_kernel(a_ref, w_ref, b_ref, o_ref, acc_ref, *, act):
    k = pl.program_id(0)

    @pl.when(k == 0)
    def _init():
        acc_ref[...] = jnp.zeros_like(acc_ref)

    acc_ref[...] += jnp.dot(a_ref[...], w_ref[...],
                            preferred_element_type=jnp.float32)

    @pl.when(k == pl.num_programs(0) - 1)
    def _finalize():
        o_ref[...] = _apply_act(acc_ref[...] + b_ref[...], act).astype(o_ref.dtype)


def gemm_bias_act(a, arrs, *, act):
    wm, bias = arrs["wm"], arrs["b"]
    Kp, Np = wm.shape
    M, K = a.shape
    Mp = _round_up(M, 16)
    tk = min(Kp, _TK)
    num_k = Kp // tk
    assert Mp * Np * 4 <= _VMEM_LIMIT // 2, "M tile too large for fused epilogue"

    a_p = jnp.pad(a.astype(jnp.bfloat16), ((0, Mp - M), (0, Kp - K)))
    kern = functools.partial(_gemm_bias_kernel, act=act)
    return pl.pallas_call(
        kern,
        out_shape=jax.ShapeDtypeStruct((Mp, Np), jnp.float32),
        grid=(num_k,),
        in_specs=[
            pl.BlockSpec((Mp, tk), lambda k: (0, k)),
            pl.BlockSpec((tk, Np), lambda k: (k, 0)),
            pl.BlockSpec((1, Np), lambda k: (0, 0)),
        ],
        out_specs=pl.BlockSpec((Mp, Np), lambda k: (0, 0)),
        scratch_shapes=[pltpu.VMEM((Mp, Np), jnp.float32)],
        compiler_params=pltpu.CompilerParams(
            dimension_semantics=("arbitrary",),
            vmem_limit_bytes=_VMEM_LIMIT,
        ),
    )(a_p, wm, bias)


# ---------------------------------------------------------------------------
# Glue: padding / patch extraction / pixel interleave (plain JAX, fused by XLA)
# ---------------------------------------------------------------------------

def _im2col(x_nhwc, kh, kw, stride):
    # TODO(synk): patch extraction is still materialized by XLA in HBM; forming
    #             patches on-chip from a VMEM-resident spatial tile (implicit GEMM)
    #             would remove the kh*kw x input re-read for the 3x3/7x7 convs.
    N, H, W, C = x_nhwc.shape
    Ho = (H - kh) // stride + 1
    Wo = (W - kw) // stride + 1
    cols = []
    for i in range(kh):
        for j in range(kw):
            cols.append(
                x_nhwc[:, i:i + stride * (Ho - 1) + 1:stride,
                          j:j + stride * (Wo - 1) + 1:stride, :])
    a = jnp.concatenate(cols, axis=-1).reshape(N * Ho * Wo, kh * kw * C)
    return a, N, Ho, Wo


# ---------------------------------------------------------------------------
# Layers
# ---------------------------------------------------------------------------

def conv_bn_act(x_nhwc, arrs, meta, *, stride=1, pad=0, pad_mode="zero",
                act="none", residual=None):
    """Conv2d (+BN +act +residual), all fused in one Pallas kernel."""
    kh, kw, cout = meta["kh"], meta["kw"], meta["cout"]
    x = x_nhwc
    if pad > 0:
        mode = "reflect" if pad_mode == "reflect" else "constant"
        x = jnp.pad(x, ((0, 0), (pad, pad), (pad, pad), (0, 0)), mode=mode)
    a, Nb, Ho, Wo = _im2col(x, kh, kw, stride)
    M = a.shape[0]

    if not meta["has_bn"]:
        # final conv: bias + tanh fused in the epilogue; f32 network output.
        y = gemm_bias_act(a, arrs, act=act)
    else:
        res_m = residual.reshape(M, cout) if residual is not None else None
        y = gemm_bn_act(a, arrs, count=M, act=act, residual=res_m)
    # TODO(synk): keep the padded lane-dense (Mp, Np) layout between layers
    #             instead of slicing back to NHWC with a <128 channel dim.
    return y[:M, :cout].reshape(Nb, Ho, Wo, cout)


def conv_transpose_bn_act(x_nhwc, arrs, meta, *, act="relu"):
    """ConvTranspose2d(k=3,s=2,p=1,op=1) + BN + act via a 4-phase sub-pixel GEMM.

    out[2m+ry, 2n+rx] only depends on x[m..m+1, n..n+1]; the four phase weight
    matrices are packed side by side into one (4*Cin, 4*Cout) GEMM, so no MACs
    are spent on the zeros of the dilated formulation.  BN statistics across
    the four phases are combined in-kernel via the phase-sum matrix.
    """
    cout = meta["cout"]
    Nb, H, W, C = x_nhwc.shape
    xp = jnp.pad(x_nhwc, ((0, 0), (0, 1), (0, 1), (0, 0)))     # zero row/col for m+1/n+1
    a, _, _, _ = _im2col(xp, 2, 2, 1)                          # (Nb*H*W, 4*Cin)
    M = a.shape[0]

    y = gemm_bn_act(a, arrs, count=4 * M, act=act)             # (Mp, Np) bf16
    y = y[:M, :4 * cout].reshape(Nb, H, W, 2, 2, cout)         # (.., ry, rx, c)
    # TODO(synk): the pixel-shuffle below still materializes lane-sparse tensors
    #             in XLA; strided writes from the kernel epilogue would avoid it.
    y = jnp.transpose(y, (0, 1, 3, 2, 4, 5)).reshape(Nb, 2 * H, 2 * W, cout)
    return y


# ---------------------------------------------------------------------------
# Parameters: raw (PyTorch layout) construction + one-time GEMM-ready packing
# ---------------------------------------------------------------------------

def init_params(key, input_nc=3, output_nc=3, ngf=8, n_blocks=2):
    keys = iter(jax.random.split(key, 256))

    def conv_p(cin, cout, k, bias):
        w = jax.random.normal(next(keys), (cout, cin, k, k), jnp.float32) * 0.05
        bk = next(keys)
        b = (jax.random.normal(bk, (cout,), jnp.float32) * 0.05
             if bias else jnp.zeros((cout,), jnp.float32))
        return {"w": w, "b": b}

    def convT_p(cin, cout, k):
        w = jax.random.normal(next(keys), (cin, cout, k, k), jnp.float32) * 0.05
        return {"w": w, "b": jnp.zeros((cout,), jnp.float32)}

    def bn_p(c):
        return {"g": 1.0 + 0.1 * jax.random.normal(next(keys), (c,), jnp.float32),
                "b": 0.1 * jax.random.normal(next(keys), (c,), jnp.float32)}

    p = {}
    p["stem_conv"] = conv_p(input_nc, ngf, 7, bias=False)       # BatchNorm -> use_bias=False
    p["stem_bn"] = bn_p(ngf)
    for i in range(2):
        mult = 2 ** i
        p[f"down{i}_conv"] = conv_p(ngf * mult, ngf * mult * 2, 3, bias=False)
        p[f"down{i}_bn"] = bn_p(ngf * mult * 2)
    dim = ngf * 4
    for i in range(n_blocks):
        p[f"blk{i}_conv1"] = conv_p(dim, dim, 3, bias=False)
        p[f"blk{i}_bn1"] = bn_p(dim)
        p[f"blk{i}_conv2"] = conv_p(dim, dim, 3, bias=False)
        p[f"blk{i}_bn2"] = bn_p(dim)
    for i in range(2):
        mult = 2 ** (2 - i)
        p[f"up{i}_conv"] = convT_p(ngf * mult, ngf * mult // 2, 3)
        p[f"up{i}_bn"] = bn_p(ngf * mult // 2)
    p["final_conv"] = conv_p(ngf, output_nc, 7, bias=True)      # final conv keeps bias=True
    return p


def _phase_sum_matrix(cout, nphase, np_lanes):
    """P such that (row-sum vector) @ P combines the per-phase per-channel sums
    and broadcasts the combined value back to every phase column of that channel.
    nphase=1 gives the (cout-restricted) identity used by plain convolutions."""
    P = np.zeros((np_lanes, np_lanes), np.float32)
    for ps in range(nphase):
        for pd in range(nphase):
            for c in range(cout):
                P[ps * cout + c, pd * cout + c] = 1.0
    return jnp.asarray(P)


def _prep_conv(w_oihw, b, bn=None):
    cout, cin, kh, kw = w_oihw.shape
    K = kh * kw * cin
    Kp, Np = _pad_k(K), _round_up(cout, 128)
    # TODO(synk): for v6e/v7x pack more real output columns toward 256 lanes
    #             (tap/pixel packing) -- with cout<=32 most MXU lanes multiply padding.
    wm = jnp.transpose(w_oihw, (2, 3, 1, 0)).reshape(K, cout)   # im2col order (ky,kx,cin)
    wm = jnp.pad(wm, ((0, Kp - K), (0, Np - cout))).astype(jnp.bfloat16)
    arrs = {"wm": wm}
    meta = {"kh": int(kh), "kw": int(kw), "cout": int(cout), "has_bn": bn is not None}
    if bn is not None:
        arrs["g"] = jnp.pad(bn["g"].astype(jnp.float32), (0, Np - cout)).reshape(1, Np)
        arrs["beta"] = jnp.pad(bn["b"].astype(jnp.float32), (0, Np - cout)).reshape(1, Np)
        arrs["psum"] = _phase_sum_matrix(cout, 1, Np)
    else:
        arrs["b"] = jnp.pad(b.astype(jnp.float32), (0, Np - cout)).reshape(1, Np)
    return arrs, meta


def _prep_convT(w_iohw, bn):
    # Pack the 4 sub-pixel phase weights (k=3, s=2, p=1, op=1) of a ConvTranspose2d
    # into one (4*Cin, 4*Cout) matrix.  Tap order matches _im2col(kh=kw=2):
    # (dy,dx) = (0,0),(0,1),(1,0),(1,1); phase (column-group) order: ee, eo, oe, oo.
    cin, cout = int(w_iohw.shape[0]), int(w_iohw.shape[1])
    K, n4 = 4 * cin, 4 * cout
    Kp, Np = _pad_k(K), _round_up(n4, 128)

    def g(ky, kx):
        return w_iohw[:, :, ky, kx]                             # (Cin, Cout)

    z = jnp.zeros((cin, cout), w_iohw.dtype)
    rows = [
        [g(1, 1), g(1, 2), g(2, 1), g(2, 2)],                   # tap (0,0)
        [z,       g(1, 0), z,       g(2, 0)],                   # tap (0,1)
        [z,       z,       g(0, 1), g(0, 2)],                   # tap (1,0)
        [z,       z,       z,       g(0, 0)],                   # tap (1,1)
    ]
    wm = jnp.concatenate([jnp.concatenate(r, axis=1) for r in rows], axis=0)
    wm = jnp.pad(wm, ((0, Kp - K), (0, Np - n4))).astype(jnp.bfloat16)
    arrs = {
        "wm": wm,
        "g": jnp.pad(jnp.tile(bn["g"].astype(jnp.float32), 4), (0, Np - n4)).reshape(1, Np),
        "beta": jnp.pad(jnp.tile(bn["b"].astype(jnp.float32), 4), (0, Np - n4)).reshape(1, Np),
        "psum": _phase_sum_matrix(cout, 4, Np),
    }
    meta = {"cout": cout, "has_bn": True, "transpose": True}
    return arrs, meta


def prepare_params(p, n_blocks=2):
    """One-time weight transform / phase packing / padding / bf16 cast.
    Returns (arrays, meta): arrays is a jit-traceable pytree, meta is static Python."""
    arrays, meta = {}, {}

    def add(name, am):
        arrays[name], meta[name] = am

    add("stem", _prep_conv(p["stem_conv"]["w"], p["stem_conv"]["b"], p["stem_bn"]))
    for i in range(2):
        add(f"down{i}", _prep_conv(p[f"down{i}_conv"]["w"], p[f"down{i}_conv"]["b"],
                                   p[f"down{i}_bn"]))
    for i in range(n_blocks):
        add(f"blk{i}_1", _prep_conv(p[f"blk{i}_conv1"]["w"], p[f"blk{i}_conv1"]["b"],
                                    p[f"blk{i}_bn1"]))
        add(f"blk{i}_2", _prep_conv(p[f"blk{i}_conv2"]["w"], p[f"blk{i}_conv2"]["b"],
                                    p[f"blk{i}_bn2"]))
    for i in range(2):
        add(f"up{i}", _prep_convT(p[f"up{i}_conv"]["w"], p[f"up{i}_bn"]))
    add("final", _prep_conv(p["final_conv"]["w"], p["final_conv"]["b"], None))
    return arrays, meta


# ---------------------------------------------------------------------------
# ResnetGenerator forward (NCHW in/out, NHWC bf16 internally)
# ---------------------------------------------------------------------------

def resnet_generator(x_nchw, arrays, *, meta, n_blocks=2):
    x = jnp.transpose(x_nchw, (0, 2, 3, 1)).astype(jnp.bfloat16)

    # stem: ReflectionPad(3) -> Conv7 -> BN -> ReLU
    x = conv_bn_act(x, arrays["stem"], meta["stem"],
                    stride=1, pad=3, pad_mode="reflect", act="relu")

    # downsampling: 2x [Conv3 s2 p1 -> BN -> ReLU]
    for i in range(2):
        x = conv_bn_act(x, arrays[f"down{i}"], meta[f"down{i}"],
                        stride=2, pad=1, pad_mode="zero", act="relu")

    # resnet blocks (reflect padding; this variant has no ReLU inside the block)
    # TODO(synk): Dropout layer not implemented (dropout=0 default -> no-op).
    for i in range(n_blocks):
        res = x
        y = conv_bn_act(x, arrays[f"blk{i}_1"], meta[f"blk{i}_1"],
                        stride=1, pad=1, pad_mode="reflect", act="none")
        x = conv_bn_act(y, arrays[f"blk{i}_2"], meta[f"blk{i}_2"],
                        stride=1, pad=1, pad_mode="reflect", act="none", residual=res)

    # upsampling: 2x [ConvTranspose3 s2 p1 op1 -> BN -> ReLU] (sub-pixel GEMM)
    for i in range(2):
        x = conv_transpose_bn_act(x, arrays[f"up{i}"], meta[f"up{i}"], act="relu")

    # final: ReflectionPad(3) -> Conv7 (bias) -> Tanh (fused in GEMM epilogue, f32 out)
    x = conv_bn_act(x, arrays["final"], meta["final"],
                    stride=1, pad=3, pad_mode="reflect", act="tanh")

    return jnp.transpose(x, (0, 3, 1, 2)).astype(jnp.float32)


if __name__ == "__main__":
    key = jax.random.PRNGKey(0)
    kx, kp = jax.random.split(key)

    # small shapes: batch=2, input_nc=3, output_nc=3, ngf=8, n_blocks=2, 16x16 images
    x = jax.random.normal(kx, (2, 3, 16, 16), jnp.float32)
    raw = init_params(kp, input_nc=3, output_nc=3, ngf=8, n_blocks=2)
    arrays, meta = prepare_params(raw, n_blocks=2)     # one-time pack / pad / bf16

    fwd = jax.jit(functools.partial(resnet_generator, meta=meta, n_blocks=2))
    out = jax.block_until_ready(fwd(x, arrays))

    assert out.shape == (2, 3, 16, 16), out.shape
    assert bool(jnp.all(jnp.isfinite(out)))
    assert bool(jnp.all(jnp.abs(out) <= 1.0 + 1e-6))   # tanh output range
    print("KERNEL_OK")
</pallas_src>

<mosaic_0001>
module attributes {stable_mosaic.version = 11 : i64} {
  func.func @_gemm_bn_kernel(%arg0: i32, %arg1: memref<512x256xbf16, #tpu.memory_space<vmem>>, %arg2: memref<256x128xbf16, #tpu.memory_space<vmem>>, %arg3: memref<128x128xf32, #tpu.memory_space<vmem>>, %arg4: memref<1x128xf32, #tpu.memory_space<vmem>>, %arg5: memref<1x128xf32, #tpu.memory_space<vmem>>, %arg6: memref<512x128xbf16, #tpu.memory_space<vmem>>, %arg7: memref<512x128xf32, #tpu.memory_space<vmem>>) attributes {dimension_semantics = [#tpu.dimension_semantics<arbitrary>], iteration_bounds = array<i64: 1>, scalar_prefetch = 0 : i64, scratch_operands = 1 : i64, tpu.core_type = #tpu.core_type<tc>, window_params = [{transform_indices = @transform_0, window_bounds = array<i64: 512, 256>}, {transform_indices = @transform_1, window_bounds = array<i64: 256, 128>}, {pipeline_mode = #tpu.pipeline_mode<synchronous>, transform_indices = @transform_2, window_bounds = array<i64: 128, 128>}, {pipeline_mode = #tpu.pipeline_mode<synchronous>, transform_indices = @transform_3, window_bounds = array<i64: 1, 128>}, {pipeline_mode = #tpu.pipeline_mode<synchronous>, transform_indices = @transform_4, window_bounds = array<i64: 1, 128>}, {pipeline_mode = #tpu.pipeline_mode<synchronous>, transform_indices = @transform_5, window_bounds = array<i64: 512, 128>}]} {
    %c0_i32 = arith.constant 0 : i32
    %0 = arith.cmpi eq, %arg0, %c0_i32 : i32
    %1 = arith.extui %0 : i1 to i32
    %c0_i32_0 = arith.constant 0 : i32
    %2 = arith.cmpi ne, %1, %c0_i32_0 : i32
    scf.if %2 {
      %cst_10 = arith.constant 0.000000e+00 : f32
      %12 = vector.broadcast %cst_10 : f32 to vector<512x128xf32>
      %c0_11 = arith.constant 0 : index
      %c0_12 = arith.constant 0 : index
      %13 = vector.load %arg7[%c0_11, %c0_12] : memref<512x128xf32, #tpu.memory_space<vmem>>, vector<512x128xf32>
      tpu.vector_store %arg7[%c0_11, %c0_12], %12 {strides = array<i32>} : memref<512x128xf32, #tpu.memory_space<vmem>>, vector<512x128xf32>,
    } else {
    }
    %c0 = arith.constant 0 : index
    %c0_1 = arith.constant 0 : index
    %3 = vector.load %arg7[%c0, %c0_1] : memref<512x128xf32, #tpu.memory_space<vmem>>, vector<512x128xf32>
    %c0_2 = arith.constant 0 : index
    %c0_3 = arith.constant 0 : index
    %4 = vector.load %arg1[%c0_2, %c0_3] : memref<512x256xbf16, #tpu.memory_space<vmem>>, vector<512x256xbf16>
    %c0_4 = arith.constant 0 : index
    %c0_5 = arith.constant 0 : index
    %5 = vector.load %arg2[%c0_4, %c0_5] : memref<256x128xbf16, #tpu.memory_space<vmem>>, vector<256x128xbf16>
    %cst = arith.constant dense<0.000000e+00> : vector<512x128xf32>
    %6 = tpu.matmul %4, %5, %cst {dimension_numbers = #tpu.dot_dimension_numbers<[1], [0], [0], [1], [0, 0, 1, 1], [], []>} : vector<512x256xbf16>, vector<256x128xbf16>, vector<512x128xf32> -> vector<512x128xf32>
    %7 = arith.addf %3, %6 : vector<512x128xf32>
    %c0_6 = arith.constant 0 : index
    %c0_7 = arith.constant 0 : index
    %8 = vector.load %arg7[%c0_6, %c0_7] : memref<512x128xf32, #tpu.memory_space<vmem>>, vector<512x128xf32>
    tpu.vector_store %arg7[%c0_6, %c0_7], %7 {strides = array<i32>} : memref<512x128xf32, #tpu.memory_space<vmem>>, vector<512x128xf32>,
    %c0_i32_8 = arith.constant 0 : i32
    %9 = arith.cmpi eq, %arg0, %c0_i32_8 : i32
    %10 = arith.extui %9 : i1 to i32
    %c0_i32_9 = arith.constant 0 : i32
    %11 = arith.cmpi ne, %10, %c0_i32_9 : i32
    scf.if %11 {
      %c0_10 = arith.constant 0 : index
      %c0_11 = arith.constant 0 : index
      %12 = vector.load %arg7[%c0_10, %c0_11] : memref<512x128xf32, #tpu.memory_space<vmem>>, vector<512x128xf32>
      %cst_12 = arith.constant dense<0.000000e+00> : vector<128xf32>
      %13 = vector.multi_reduction <add>, %12, %cst_12 [0] : vector<512x128xf32> to vector<128xf32>
      %14 = vector.shape_cast %13 : vector<128xf32> to vector<1x128xf32>
      %15 = arith.mulf %12, %12 : vector<512x128xf32>
      %cst_13 = arith.constant dense<0.000000e+00> : vector<128xf32>
      %16 = vector.multi_reduction <add>, %15, %cst_13 [0] : vector<512x128xf32> to vector<128xf32>
      %17 = vector.shape_cast %16 : vector<128xf32> to vector<1x128xf32>
      %c0_14 = arith.constant 0 : index
      %c0_15 = arith.constant 0 : index
      %18 = vector.load %arg3[%c0_14, %c0_15] : memref<128x128xf32, #tpu.memory_space<vmem>>, vector<128x128xf32>
      %cst_16 = arith.constant dense<0.000000e+00> : vector<1x128xf32>
      %19 = tpu.matmul %14, %18, %cst_16 {dimension_numbers = #tpu.dot_dimension_numbers<[1], [0], [0], [1], [0, 0, 1, 1], [], []>} : vector<1x128xf32>, vector<128x128xf32>, vector<1x128xf32> -> vector<1x128xf32>
      %c0_17 = arith.constant 0 : index
      %c0_18 = arith.constant 0 : index
      %20 = vector.load %arg3[%c0_17, %c0_18] : memref<128x128xf32, #tpu.memory_space<vmem>>, vector<128x128xf32>
      %cst_19 = arith.constant dense<0.000000e+00> : vector<1x128xf32>
      %21 = tpu.matmul %17, %20, %cst_19 {dimension_numbers = #tpu.dot_dimension_numbers<[1], [0], [0], [1], [0, 0, 1, 1], [], []>} : vector<1x128xf32>, vector<128x128xf32>, vector<1x128xf32> -> vector<1x128xf32>
      %cst_20 = arith.constant 0.001953125 : f32
      %22 = vector.broadcast %cst_20 : f32 to vector<1x128xf32>
      %23 = arith.mulf %19, %22 : vector<1x128xf32>
      %cst_21 = arith.constant 0.001953125 : f32
      %24 = vector.broadcast %cst_21 : f32 to vector<1x128xf32>
      %25 = arith.mulf %21, %24 : vector<1x128xf32>
      %26 = arith.mulf %23, %23 : vector<1x128xf32>
      %27 = arith.subf %25, %26 : vector<1x128xf32>
      %cst_22 = arith.constant 0.000000e+00 : f32
      %28 = vector.broadcast %cst_22 : f32 to vector<1x128xf32>
      %29 = arith.maximumf %27, %28 : vector<1x128xf32>
      %c0_23 = arith.constant 0 : index
      %c0_24 = arith.constant 0 : index
      %30 = vector.load %arg4[%c0_23, %c0_24] : memref<1x128xf32, #tpu.memory_space<vmem>>, vector<1x128xf32>
      %cst_25 = arith.constant 9.99999974E-6 : f32
      %31 = vector.broadcast %cst_25 : f32 to vector<1x128xf32>
      %32 = arith.addf %29, %31 : vector<1x128xf32>
      %33 = math.sqrt %32 : vector<1x128xf32>
      %34 = arith.divf %30, %33 : vector<1x128xf32>
      %c0_26 = arith.constant 0 : index
      %c0_27 = arith.constant 0 : index
      %35 = vector.load %arg5[%c0_26, %c0_27] : memref<1x128xf32, #tpu.memory_space<vmem>>, vector<1x128xf32>
      %36 = arith.mulf %23, %34 : vector<1x128xf32>
      %37 = arith.subf %35, %36 : vector<1x128xf32>
      %38 = vector.broadcast %34 : vector<1x128xf32> to vector<512x128xf32>
      %39 = arith.mulf %12, %38 : vector<512x128xf32>
      %40 = vector.broadcast %37 : vector<1x128xf32> to vector<512x128xf32>
      %41 = arith.addf %39, %40 : vector<512x128xf32>
      %cst_28 = arith.constant 0.000000e+00 : f32
      %42 = vector.broadcast %cst_28 : f32 to vector<512x128xf32>
      %43 = arith.maximumf %41, %42 : vector<512x128xf32>
      %44 = arith.truncf %43 : vector<512x128xf32> to vector<512x128xbf16>
      %c0_29 = arith.constant 0 : index
      %c0_30 = arith.constant 0 : index
      %45 = vector.load %arg6[%c0_29, %c0_30] : memref<512x128xbf16, #tpu.memory_space<vmem>>, vector<512x128xbf16>
      tpu.vector_store %arg6[%c0_29, %c0_30], %44 {strides = array<i32>} : memref<512x128xbf16, #tpu.memory_space<vmem>>, vector<512x128xbf16>,
    } else {
    }
    return
  }
  func.func @transform_0(%arg0: i32) -> (i32, i32) {
    %c0_i32 = arith.constant 0 : i32
    %c0_i32_0 = arith.constant 0 : i32
    return %c0_i32, %arg0 : i32, i32
  }
  func.func @transform_1(%arg0: i32) -> (i32, i32) {
    %c0_i32 = arith.constant 0 : i32
    %c0_i32_0 = arith.constant 0 : i32
    return %arg0, %c0_i32 : i32, i32
  }
  func.func @transform_2(%arg0: i32) -> (i32, i32) {
    %c0_i32 = arith.constant 0 : i32
    %c0_i32_0 = arith.constant 0 : i32
    %c0_i32_1 = arith.constant 0 : i32
    return %c0_i32, %c0_i32_0 : i32, i32
  }
  func.func @transform_3(%arg0: i32) -> (i32, i32) {
    %c0_i32 = arith.constant 0 : i32
    %c0_i32_0 = arith.constant 0 : i32
    %c0_i32_1 = arith.constant 0 : i32
    return %c0_i32, %c0_i32_0 : i32, i32
  }
  func.func @transform_4(%arg0: i32) -> (i32, i32) {
    %c0_i32 = arith.constant 0 : i32
    %c0_i32_0 = arith.constant 0 : i32
    %c0_i32_1 = arith.constant 0 : i32
    return %c0_i32, %c0_i32_0 : i32, i32
  }
  func.func @transform_5(%arg0: i32) -> (i32, i32) {
    %c0_i32 = arith.constant 0 : i32
    %c0_i32_0 = arith.constant 0 : i32
    %c0_i32_1 = arith.constant 0 : i32
    return %c0_i32, %c0_i32_0 : i32, i32
  }
}

module attributes {stable_mosaic.version = 11 : i64} {
  func.func @_gemm_bn_kernel(%arg0: i32, %arg1: memref<128x128xbf16, #tpu.memory_space<vmem>>, %arg2: memref<128x128xbf16, #tpu.memory_space<vmem>>, %arg3: memref<128x128xf32, #tpu.memory_space<vmem>>, %arg4: memref<1x128xf32, #tpu.memory_space<vmem>>, %arg5: memref<1x128xf32, #tpu.memory_space<vmem>>, %arg6: memref<128x128xbf16, #tpu.memory_space<vmem>>, %arg7: memref<128x128xf32, #tpu.memory_space<vmem>>) attributes {dimension_semantics = [#tpu.dimension_semantics<arbitrary>], iteration_bounds = array<i64: 1>, scalar_prefetch = 0 : i64, scratch_operands = 1 : i64, tpu.core_type = #tpu.core_type<tc>, window_params = [{transform_indices = @transform_0, window_bounds = array<i64: 128, 128>}, {transform_indices = @transform_1, window_bounds = array<i64: 128, 128>}, {pipeline_mode = #tpu.pipeline_mode<synchronous>, transform_indices = @transform_2, window_bounds = array<i64: 128, 128>}, {pipeline_mode = #tpu.pipeline_mode<synchronous>, transform_indices = @transform_3, window_bounds = array<i64: 1, 128>}, {pipeline_mode = #tpu.pipeline_mode<synchronous>, transform_indices = @transform_4, window_bounds = array<i64: 1, 128>}, {pipeline_mode = #tpu.pipeline_mode<synchronous>, transform_indices = @transform_5, window_bounds = array<i64: 128, 128>}]} {
    %c0_i32 = arith.constant 0 : i32
    %0 = arith.cmpi eq, %arg0, %c0_i32 : i32
    %1 = arith.extui %0 : i1 to i32
    %c0_i32_0 = arith.constant 0 : i32
    %2 = arith.cmpi ne, %1, %c0_i32_0 : i32
    scf.if %2 {
      %cst_10 = arith.constant 0.000000e+00 : f32
      %12 = vector.broadcast %cst_10 : f32 to vector<128x128xf32>
      %c0_11 = arith.constant 0 : index
      %c0_12 = arith.constant 0 : index
      %13 = vector.load %arg7[%c0_11, %c0_12] : memref<128x128xf32, #tpu.memory_space<vmem>>, vector<128x128xf32>
      tpu.vector_store %arg7[%c0_11, %c0_12], %12 {strides = array<i32>} : memref<128x128xf32, #tpu.memory_space<vmem>>, vector<128x128xf32>,
    } else {
    }
    %c0 = arith.constant 0 : index
    %c0_1 = arith.constant 0 : index
    %3 = vector.load %arg7[%c0, %c0_1] : memref<128x128xf32, #tpu.memory_space<vmem>>, vector<128x128xf32>
    %c0_2 = arith.constant 0 : index
    %c0_3 = arith.constant 0 : index
    %4 = vector.load %arg1[%c0_2, %c0_3] : memref<128x128xbf16, #tpu.memory_space<vmem>>, vector<128x128xbf16>
    %c0_4 = arith.constant 0 : index
    %c0_5 = arith.constant 0 : index
    %5 = vector.load %arg2[%c0_4, %c0_5] : memref<128x128xbf16, #tpu.memory_space<vmem>>, vector<128x128xbf16>
    %cst = arith.constant dense<0.000000e+00> : vector<128x128xf32>
    %6 = tpu.matmul %4, %5, %cst {dimension_numbers = #tpu.dot_dimension_numbers<[1], [0], [0], [1], [0, 0, 1, 1], [], []>} : vector<128x128xbf16>, vector<128x128xbf16>, vector<128x128xf32> -> vector<128x128xf32>
    %7 = arith.addf %3, %6 : vector<128x128xf32>
    %c0_6 = arith.constant 0 : index
    %c0_7 = arith.constant 0 : index
    %8 = vector.load %arg7[%c0_6, %c0_7] : memref<128x128xf32, #tpu.memory_space<vmem>>, vector<128x128xf32>
    tpu.vector_store %arg7[%c0_6, %c0_7], %7 {strides = array<i32>} : memref<128x128xf32, #tpu.memory_space<vmem>>, vector<128x128xf32>,
    %c0_i32_8 = arith.constant 0 : i32
    %9 = arith.cmpi eq, %arg0, %c0_i32_8 : i32
    %10 = arith.extui %9 : i1 to i32
    %c0_i32_9 = arith.constant 0 : i32
    %11 = arith.cmpi ne, %10, %c0_i32_9 : i32
    scf.if %11 {
      %c0_10 = arith.constant 0 : index
      %c0_11 = arith.constant 0 : index
      %12 = vector.load %arg7[%c0_10, %c0_11] : memref<128x128xf32, #tpu.memory_space<vmem>>, vector<128x128xf32>
      %cst_12 = arith.constant dense<0.000000e+00> : vector<128xf32>
      %13 = vector.multi_reduction <add>, %12, %cst_12 [0] : vector<128x128xf32> to vector<128xf32>
      %14 = vector.shape_cast %13 : vector<128xf32> to vector<1x128xf32>
      %15 = arith.mulf %12, %12 : vector<128x128xf32>
      %cst_13 = arith.constant dense<0.000000e+00> : vector<128xf32>
      %16 = vector.multi_reduction <add>, %15, %cst_13 [0] : vector<128x128xf32> to vector<128xf32>
      %17 = vector.shape_cast %16 : vector<128xf32> to vector<1x128xf32>
      %c0_14 = arith.constant 0 : index
      %c0_15 = arith.constant 0 : index
      %18 = vector.load %arg3[%c0_14, %c0_15] : memref<128x128xf32, #tpu.memory_space<vmem>>, vector<128x128xf32>
      %cst_16 = arith.constant dense<0.000000e+00> : vector<1x128xf32>
      %19 = tpu.matmul %14, %18, %cst_16 {dimension_numbers = #tpu.dot_dimension_numbers<[1], [0], [0], [1], [0, 0, 1, 1], [], []>} : vector<1x128xf32>, vector<128x128xf32>, vector<1x128xf32> -> vector<1x128xf32>
      %c0_17 = arith.constant 0 : index
      %c0_18 = arith.constant 0 : index
      %20 = vector.load %arg3[%c0_17, %c0_18] : memref<128x128xf32, #tpu.memory_space<vmem>>, vector<128x128xf32>
      %cst_19 = arith.constant dense<0.000000e+00> : vector<1x128xf32>
      %21 = tpu.matmul %17, %20, %cst_19 {dimension_numbers = #tpu.dot_dimension_numbers<[1], [0], [0], [1], [0, 0, 1, 1], [], []>} : vector<1x128xf32>, vector<128x128xf32>, vector<1x128xf32> -> vector<1x128xf32>
      %cst_20 = arith.constant 7.812500e-03 : f32
      %22 = vector.broadcast %cst_20 : f32 to vector<1x128xf32>
      %23 = arith.mulf %19, %22 : vector<1x128xf32>
      %cst_21 = arith.constant 7.812500e-03 : f32
      %24 = vector.broadcast %cst_21 : f32 to vector<1x128xf32>
      %25 = arith.mulf %21, %24 : vector<1x128xf32>
      %26 = arith.mulf %23, %23 : vector<1x128xf32>
      %27 = arith.subf %25, %26 : vector<1x128xf32>
      %cst_22 = arith.constant 0.000000e+00 : f32
      %28 = vector.broadcast %cst_22 : f32 to vector<1x128xf32>
      %29 = arith.maximumf %27, %28 : vector<1x128xf32>
      %c0_23 = arith.constant 0 : index
      %c0_24 = arith.constant 0 : index
      %30 = vector.load %arg4[%c0_23, %c0_24] : memref<1x128xf32, #tpu.memory_space<vmem>>, vector<1x128xf32>
      %cst_25 = arith.constant 9.99999974E-6 : f32
      %31 = vector.broadcast %cst_25 : f32 to vector<1x128xf32>
      %32 = arith.addf %29, %31 : vector<1x128xf32>
      %33 = math.sqrt %32 : vector<1x128xf32>
      %34 = arith.divf %30, %33 : vector<1x128xf32>
      %c0_26 = arith.constant 0 : index
      %c0_27 = arith.constant 0 : index
      %35 = vector.load %arg5[%c0_26, %c0_27] : memref<1x128xf32, #tpu.memory_space<vmem>>, vector<1x128xf32>
      %36 = arith.mulf %23, %34 : vector<1x128xf32>
      %37 = arith.subf %35, %36 : vector<1x128xf32>
      %38 = vector.broadcast %34 : vector<1x128xf32> to vector<128x128xf32>
      %39 = arith.mulf %12, %38 : vector<128x128xf32>
      %40 = vector.broadcast %37 : vector<1x128xf32> to vector<128x128xf32>
      %41 = arith.addf %39, %40 : vector<128x128xf32>
      %cst_28 = arith.constant 0.000000e+00 : f32
      %42 = vector.broadcast %cst_28 : f32 to vector<128x128xf32>
      %43 = arith.maximumf %41, %42 : vector<128x128xf32>
      %44 = arith.truncf %43 : vector<128x128xf32> to vector<128x128xbf16>
      %c0_29 = arith.constant 0 : index
      %c0_30 = arith.constant 0 : index
      %45 = vector.load %arg6[%c0_29, %c0_30] : memref<128x128xbf16, #tpu.memory_space<vmem>>, vector<128x128xbf16>
      tpu.vector_store %arg6[%c0_29, %c0_30], %44 {strides = array<i32>} : memref<128x128xbf16, #tpu.memory_space<vmem>>, vector<128x128xbf16>,
    } else {
    }
    return
  }
  func.func @transform_0(%arg0: i32) -> (i32, i32) {
    %c0_i32 = arith.constant 0 : i32
    %c0_i32_0 = arith.constant 0 : i32
    return %c0_i32, %arg0 : i32, i32
  }
  func.func @transform_1(%arg0: i32) -> (i32, i32) {
    %c0_i32 = arith.constant 0 : i32
    %c0_i32_0 = arith.constant 0 : i32
    return %arg0, %c0_i32 : i32, i32
  }
  func.func @transform_2(%arg0: i32) -> (i32, i32) {
    %c0_i32 = arith.constant 0 : i32
    %c0_i32_0 = arith.constant 0 : i32
    %c0_i32_1 = arith.constant 0 : i32
    return %c0_i32, %c0_i32_0 : i32, i32
  }
  func.func @transform_3(%arg0: i32) -> (i32, i32) {
    %c0_i32 = arith.constant 0 : i32
    %c0_i32_0 = arith.constant 0 : i32
    %c0_i32_1 = arith.constant 0 : i32
    return %c0_i32, %c0_i32_0 : i32, i32
  }
  func.func @transform_4(%arg0: i32) -> (i32, i32) {
    %c0_i32 = arith.constant 0 : i32
    %c0_i32_0 = arith.constant 0 : i32
    %c0_i32_1 = arith.constant 0 : i32
    return %c0_i32, %c0_i32_0 : i32, i32
  }
  func.func @transform_5(%arg0: i32) -> (i32, i32) {
    %c0_i32 = arith.constant 0 : i32
    %c0_i32_0 = arith.constant 0 : i32
    %c0_i32_1 = arith.constant 0 : i32
    return %c0_i32, %c0_i32_0 : i32, i32
  }
}

module attributes {stable_mosaic.version = 11 : i64} {
  func.func @_gemm_bn_kernel(%arg0: i32, %arg1: memref<32x256xbf16, #tpu.memory_space<vmem>>, %arg2: memref<256x128xbf16, #tpu.memory_space<vmem>>, %arg3: memref<128x128xf32, #tpu.memory_space<vmem>>, %arg4: memref<1x128xf32, #tpu.memory_space<vmem>>, %arg5: memref<1x128xf32, #tpu.memory_space<vmem>>, %arg6: memref<32x128xbf16, #tpu.memory_space<vmem>>, %arg7: memref<32x128xf32, #tpu.memory_space<vmem>>) attributes {dimension_semantics = [#tpu.dimension_semantics<arbitrary>], iteration_bounds = array<i64: 1>, scalar_prefetch = 0 : i64, scratch_operands = 1 : i64, tpu.core_type = #tpu.core_type<tc>, window_params = [{transform_indices = @transform_0, window_bounds = array<i64: 32, 256>}, {transform_indices = @transform_1, window_bounds = array<i64: 256, 128>}, {pipeline_mode = #tpu.pipeline_mode<synchronous>, transform_indices = @transform_2, window_bounds = array<i64: 128, 128>}, {pipeline_mode = #tpu.pipeline_mode<synchronous>, transform_indices = @transform_3, window_bounds = array<i64: 1, 128>}, {pipeline_mode = #tpu.pipeline_mode<synchronous>, transform_indices = @transform_4, window_bounds = array<i64: 1, 128>}, {pipeline_mode = #tpu.pipeline_mode<synchronous>, transform_indices = @transform_5, window_bounds = array<i64: 32, 128>}]} {
    %c0_i32 = arith.constant 0 : i32
    %0 = arith.cmpi eq, %arg0, %c0_i32 : i32
    %1 = arith.extui %0 : i1 to i32
    %c0_i32_0 = arith.constant 0 : i32
    %2 = arith.cmpi ne, %1, %c0_i32_0 : i32
    scf.if %2 {
      %cst_10 = arith.constant 0.000000e+00 : f32
      %12 = vector.broadcast %cst_10 : f32 to vector<32x128xf32>
      %c0_11 = arith.constant 0 : index
      %c0_12 = arith.constant 0 : index
      %13 = vector.load %arg7[%c0_11, %c0_12] : memref<32x128xf32, #tpu.memory_space<vmem>>, vector<32x128xf32>
      tpu.vector_store %arg7[%c0_11, %c0_12], %12 {strides = array<i32>} : memref<32x128xf32, #tpu.memory_space<vmem>>, vector<32x128xf32>,
    } else {
    }
    %c0 = arith.constant 0 : index
    %c0_1 = arith.constant 0 : index
    %3 = vector.load %arg7[%c0, %c0_1] : memref<32x128xf32, #tpu.memory_space<vmem>>, vector<32x128xf32>
    %c0_2 = arith.constant 0 : index
    %c0_3 = arith.constant 0 : index
    %4 = vector.load %arg1[%c0_2, %c0_3] : memref<32x256xbf16, #tpu.memory_space<vmem>>, vector<32x256xbf16>
    %c0_4 = arith.constant 0 : index
    %c0_5 = arith.constant 0 : index
    %5 = vector.load %arg2[%c0_4, %c0_5] : memref<256x128xbf16, #tpu.memory_space<vmem>>, vector<256x128xbf16>
    %cst = arith.constant dense<0.000000e+00> : vector<32x128xf32>
    %6 = tpu.matmul %4, %5, %cst {dimension_numbers = #tpu.dot_dimension_numbers<[1], [0], [0], [1], [0, 0, 1, 1], [], []>} : vector<32x256xbf16>, vector<256x128xbf16>, vector<32x128xf32> -> vector<32x128xf32>
    %7 = arith.addf %3, %6 : vector<32x128xf32>
    %c0_6 = arith.constant 0 : index
    %c0_7 = arith.constant 0 : index
    %8 = vector.load %arg7[%c0_6, %c0_7] : memref<32x128xf32, #tpu.memory_space<vmem>>, vector<32x128xf32>
    tpu.vector_store %arg7[%c0_6, %c0_7], %7 {strides = array<i32>} : memref<32x128xf32, #tpu.memory_space<vmem>>, vector<32x128xf32>,
    %c0_i32_8 = arith.constant 0 : i32
    %9 = arith.cmpi eq, %arg0, %c0_i32_8 : i32
    %10 = arith.extui %9 : i1 to i32
    %c0_i32_9 = arith.constant 0 : i32
    %11 = arith.cmpi ne, %10, %c0_i32_9 : i32
    scf.if %11 {
      %c0_10 = arith.constant 0 : index
      %c0_11 = arith.constant 0 : index
      %12 = vector.load %arg7[%c0_10, %c0_11] : memref<32x128xf32, #tpu.memory_space<vmem>>, vector<32x128xf32>
      %cst_12 = arith.constant dense<0.000000e+00> : vector<128xf32>
      %13 = vector.multi_reduction <add>, %12, %cst_12 [0] : vector<32x128xf32> to vector<128xf32>
      %14 = vector.shape_cast %13 : vector<128xf32> to vector<1x128xf32>
      %15 = arith.mulf %12, %12 : vector<32x128xf32>
      %cst_13 = arith.constant dense<0.000000e+00> : vector<128xf32>
      %16 = vector.multi_reduction <add>, %15, %cst_13 [0] : vector<32x128xf32> to vector<128xf32>
      %17 = vector.shape_cast %16 : vector<128xf32> to vector<1x128xf32>
      %c0_14 = arith.constant 0 : index
      %c0_15 = arith.constant 0 : index
      %18 = vector.load %arg3[%c0_14, %c0_15] : memref<128x128xf32, #tpu.memory_space<vmem>>, vector<128x128xf32>
      %cst_16 = arith.constant dense<0.000000e+00> : vector<1x128xf32>
      %19 = tpu.matmul %14, %18, %cst_16 {dimension_numbers = #tpu.dot_dimension_numbers<[1], [0], [0], [1], [0, 0, 1, 1], [], []>} : vector<1x128xf32>, vector<128x128xf32>, vector<1x128xf32> -> vector<1x128xf32>
      %c0_17 = arith.constant 0 : index
      %c0_18 = arith.constant 0 : index
      %20 = vector.load %arg3[%c0_17, %c0_18] : memref<128x128xf32, #tpu.memory_space<vmem>>, vector<128x128xf32>
      %cst_19 = arith.constant dense<0.000000e+00> : vector<1x128xf32>
      %21 = tpu.matmul %17, %20, %cst_19 {dimension_numbers = #tpu.dot_dimension_numbers<[1], [0], [0], [1], [0, 0, 1, 1], [], []>} : vector<1x128xf32>, vector<128x128xf32>, vector<1x128xf32> -> vector<1x128xf32>
      %cst_20 = arith.constant 3.125000e-02 : f32
      %22 = vector.broadcast %cst_20 : f32 to vector<1x128xf32>
      %23 = arith.mulf %19, %22 : vector<1x128xf32>
      %cst_21 = arith.constant 3.125000e-02 : f32
      %24 = vector.broadcast %cst_21 : f32 to vector<1x128xf32>
      %25 = arith.mulf %21, %24 : vector<1x128xf32>
      %26 = arith.mulf %23, %23 : vector<1x128xf32>
      %27 = arith.subf %25, %26 : vector<1x128xf32>
      %cst_22 = arith.constant 0.000000e+00 : f32
      %28 = vector.broadcast %cst_22 : f32 to vector<1x128xf32>
      %29 = arith.maximumf %27, %28 : vector<1x128xf32>
      %c0_23 = arith.constant 0 : index
      %c0_24 = arith.constant 0 : index
      %30 = vector.load %arg4[%c0_23, %c0_24] : memref<1x128xf32, #tpu.memory_space<vmem>>, vector<1x128xf32>
      %cst_25 = arith.constant 9.99999974E-6 : f32
      %31 = vector.broadcast %cst_25 : f32 to vector<1x128xf32>
      %32 = arith.addf %29, %31 : vector<1x128xf32>
      %33 = math.sqrt %32 : vector<1x128xf32>
      %34 = arith.divf %30, %33 : vector<1x128xf32>
      %c0_26 = arith.constant 0 : index
      %c0_27 = arith.constant 0 : index
      %35 = vector.load %arg5[%c0_26, %c0_27] : memref<1x128xf32, #tpu.memory_space<vmem>>, vector<1x128xf32>
      %36 = arith.mulf %23, %34 : vector<1x128xf32>
      %37 = arith.subf %35, %36 : vector<1x128xf32>
      %38 = vector.broadcast %34 : vector<1x128xf32> to vector<32x128xf32>
      %39 = arith.mulf %12, %38 : vector<32x128xf32>
      %40 = vector.broadcast %37 : vector<1x128xf32> to vector<32x128xf32>
      %41 = arith.addf %39, %40 : vector<32x128xf32>
      %cst_28 = arith.constant 0.000000e+00 : f32
      %42 = vector.broadcast %cst_28 : f32 to vector<32x128xf32>
      %43 = arith.maximumf %41, %42 : vector<32x128xf32>
      %44 = arith.truncf %43 : vector<32x128xf32> to vector<32x128xbf16>
      %c0_29 = arith.constant 0 : index
      %c0_30 = arith.constant 0 : index
      %45 = vector.load %arg6[%c0_29, %c0_30] : memref<32x128xbf16, #tpu.memory_space<vmem>>, vector<32x128xbf16>
      tpu.vector_store %arg6[%c0_29, %c0_30], %44 {strides = array<i32>} : memref<32x128xbf16, #tpu.memory_space<vmem>>, vector<32x128xbf16>,
    } else {
    }
    return
  }
  func.func @transform_0(%arg0: i32) -> (i32, i32) {
    %c0_i32 = arith.constant 0 : i32
    %c0_i32_0 = arith.constant 0 : i32
    return %c0_i32, %arg0 : i32, i32
  }
  func.func @transform_1(%arg0: i32) -> (i32, i32) {
    %c0_i32 = arith.constant 0 : i32
    %c0_i32_0 = arith.constant 0 : i32
    return %arg0, %c0_i32 : i32, i32
  }
  func.func @transform_2(%arg0: i32) -> (i32, i32) {
    %c0_i32 = arith.constant 0 : i32
    %c0_i32_0 = arith.constant 0 : i32
    %c0_i32_1 = arith.constant 0 : i32
    return %c0_i32, %c0_i32_0 : i32, i32
  }
  func.func @transform_3(%arg0: i32) -> (i32, i32) {
    %c0_i32 = arith.constant 0 : i32
    %c0_i32_0 = arith.constant 0 : i32
    %c0_i32_1 = arith.constant 0 : i32
    return %c0_i32, %c0_i32_0 : i32, i32
  }
  func.func @transform_4(%arg0: i32) -> (i32, i32) {
    %c0_i32 = arith.constant 0 : i32
    %c0_i32_0 = arith.constant 0 : i32
    %c0_i32_1 = arith.constant 0 : i32
    return %c0_i32, %c0_i32_0 : i32, i32
  }
  func.func @transform_5(%arg0: i32) -> (i32, i32) {
    %c0_i32 = arith.constant 0 : i32
    %c0_i32_0 = arith.constant 0 : i32
    %c0_i32_1 = arith.constant 0 : i32
    return %c0_i32, %c0_i32_0 : i32, i32
  }
}

module attributes {stable_mosaic.version = 11 : i64} {
  func.func @_gemm_bn_kernel(%arg0: i32, %arg1: memref<32x384xbf16, #tpu.memory_space<vmem>>, %arg2: memref<384x128xbf16, #tpu.memory_space<vmem>>, %arg3: memref<128x128xf32, #tpu.memory_space<vmem>>, %arg4: memref<1x128xf32, #tpu.memory_space<vmem>>, %arg5: memref<1x128xf32, #tpu.memory_space<vmem>>, %arg6: memref<32x128xbf16, #tpu.memory_space<vmem>>, %arg7: memref<32x128xf32, #tpu.memory_space<vmem>>) attributes {dimension_semantics = [#tpu.dimension_semantics<arbitrary>], iteration_bounds = array<i64: 1>, scalar_prefetch = 0 : i64, scratch_operands = 1 : i64, tpu.core_type = #tpu.core_type<tc>, window_params = [{transform_indices = @transform_0, window_bounds = array<i64: 32, 384>}, {transform_indices = @transform_1, window_bounds = array<i64: 384, 128>}, {pipeline_mode = #tpu.pipeline_mode<synchronous>, transform_indices = @transform_2, window_bounds = array<i64: 128, 128>}, {pipeline_mode = #tpu.pipeline_mode<synchronous>, transform_indices = @transform_3, window_bounds = array<i64: 1, 128>}, {pipeline_mode = #tpu.pipeline_mode<synchronous>, transform_indices = @transform_4, window_bounds = array<i64: 1, 128>}, {pipeline_mode = #tpu.pipeline_mode<synchronous>, transform_indices = @transform_5, window_bounds = array<i64: 32, 128>}]} {
    %c0_i32 = arith.constant 0 : i32
    %0 = arith.cmpi eq, %arg0, %c0_i32 : i32
    %1 = arith.extui %0 : i1 to i32
    %c0_i32_0 = arith.constant 0 : i32
    %2 = arith.cmpi ne, %1, %c0_i32_0 : i32
    scf.if %2 {
      %cst_10 = arith.constant 0.000000e+00 : f32
      %12 = vector.broadcast %cst_10 : f32 to vector<32x128xf32>
      %c0_11 = arith.constant 0 : index
      %c0_12 = arith.constant 0 : index
      %13 = vector.load %arg7[%c0_11, %c0_12] : memref<32x128xf32, #tpu.memory_space<vmem>>, vector<32x128xf32>
      tpu.vector_store %arg7[%c0_11, %c0_12], %12 {strides = array<i32>} : memref<32x128xf32, #tpu.memory_space<vmem>>, vector<32x128xf32>,
    } else {
    }
    %c0 = arith.constant 0 : index
    %c0_1 = arith.constant 0 : index
    %3 = vector.load %arg7[%c0, %c0_1] : memref<32x128xf32, #tpu.memory_space<vmem>>, vector<32x128xf32>
    %c0_2 = arith.constant 0 : index
    %c0_3 = arith.constant 0 : index
    %4 = vector.load %arg1[%c0_2, %c0_3] : memref<32x384xbf16, #tpu.memory_space<vmem>>, vector<32x384xbf16>
    %c0_4 = arith.constant 0 : index
    %c0_5 = arith.constant 0 : index
    %5 = vector.load %arg2[%c0_4, %c0_5] : memref<384x128xbf16, #tpu.memory_space<vmem>>, vector<384x128xbf16>
    %cst = arith.constant dense<0.000000e+00> : vector<32x128xf32>
    %6 = tpu.matmul %4, %5, %cst {dimension_numbers = #tpu.dot_dimension_numbers<[1], [0], [0], [1], [0, 0, 1, 1], [], []>} : vector<32x384xbf16>, vector<384x128xbf16>, vector<32x128xf32> -> vector<32x128xf32>
    %7 = arith.addf %3, %6 : vector<32x128xf32>
    %c0_6 = arith.constant 0 : index
    %c0_7 = arith.constant 0 : index
    %8 = vector.load %arg7[%c0_6, %c0_7] : memref<32x128xf32, #tpu.memory_space<vmem>>, vector<32x128xf32>
    tpu.vector_store %arg7[%c0_6, %c0_7], %7 {strides = array<i32>} : memref<32x128xf32, #tpu.memory_space<vmem>>, vector<32x128xf32>,
    %c0_i32_8 = arith.constant 0 : i32
    %9 = arith.cmpi eq, %arg0, %c0_i32_8 : i32
    %10 = arith.extui %9 : i1 to i32
    %c0_i32_9 = arith.constant 0 : i32
    %11 = arith.cmpi ne, %10, %c0_i32_9 : i32
    scf.if %11 {
      %c0_10 = arith.constant 0 : index
      %c0_11 = arith.constant 0 : index
      %12 = vector.load %arg7[%c0_10, %c0_11] : memref<32x128xf32, #tpu.memory_space<vmem>>, vector<32x128xf32>
      %cst_12 = arith.constant dense<0.000000e+00> : vector<128xf32>
      %13 = vector.multi_reduction <add>, %12, %cst_12 [0] : vector<32x128xf32> to vector<128xf32>
      %14 = vector.shape_cast %13 : vector<128xf32> to vector<1x128xf32>
      %15 = arith.mulf %12, %12 : vector<32x128xf32>
      %cst_13 = arith.constant dense<0.000000e+00> : vector<128xf32>
      %16 = vector.multi_reduction <add>, %15, %cst_13 [0] : vector<32x128xf32> to vector<128xf32>
      %17 = vector.shape_cast %16 : vector<128xf32> to vector<1x128xf32>
      %c0_14 = arith.constant 0 : index
      %c0_15 = arith.constant 0 : index
      %18 = vector.load %arg3[%c0_14, %c0_15] : memref<128x128xf32, #tpu.memory_space<vmem>>, vector<128x128xf32>
      %cst_16 = arith.constant dense<0.000000e+00> : vector<1x128xf32>
      %19 = tpu.matmul %14, %18, %cst_16 {dimension_numbers = #tpu.dot_dimension_numbers<[1], [0], [0], [1], [0, 0, 1, 1], [], []>} : vector<1x128xf32>, vector<128x128xf32>, vector<1x128xf32> -> vector<1x128xf32>
      %c0_17 = arith.constant 0 : index
      %c0_18 = arith.constant 0 : index
      %20 = vector.load %arg3[%c0_17, %c0_18] : memref<128x128xf32, #tpu.memory_space<vmem>>, vector<128x128xf32>
      %cst_19 = arith.constant dense<0.000000e+00> : vector<1x128xf32>
      %21 = tpu.matmul %17, %20, %cst_19 {dimension_numbers = #tpu.dot_dimension_numbers<[1], [0], [0], [1], [0, 0, 1, 1], [], []>} : vector<1x128xf32>, vector<128x128xf32>, vector<1x128xf32> -> vector<1x128xf32>
      %cst_20 = arith.constant 3.125000e-02 : f32
      %22 = vector.broadcast %cst_20 : f32 to vector<1x128xf32>
      %23 = arith.mulf %19, %22 : vector<1x128xf32>
      %cst_21 = arith.constant 3.125000e-02 : f32
      %24 = vector.broadcast %cst_21 : f32 to vector<1x128xf32>
      %25 = arith.mulf %21, %24 : vector<1x128xf32>
      %26 = arith.mulf %23, %23 : vector<1x128xf32>
      %27 = arith.subf %25, %26 : vector<1x128xf32>
      %cst_22 = arith.constant 0.000000e+00 : f32
      %28 = vector.broadcast %cst_22 : f32 to vector<1x128xf32>
      %29 = arith.maximumf %27, %28 : vector<1x128xf32>
      %c0_23 = arith.constant 0 : index
      %c0_24 = arith.constant 0 : index
      %30 = vector.load %arg4[%c0_23, %c0_24] : memref<1x128xf32, #tpu.memory_space<vmem>>, vector<1x128xf32>
      %cst_25 = arith.constant 9.99999974E-6 : f32
      %31 = vector.broadcast %cst_25 : f32 to vector<1x128xf32>
      %32 = arith.addf %29, %31 : vector<1x128xf32>
      %33 = math.sqrt %32 : vector<1x128xf32>
      %34 = arith.divf %30, %33 : vector<1x128xf32>
      %c0_26 = arith.constant 0 : index
      %c0_27 = arith.constant 0 : index
      %35 = vector.load %arg5[%c0_26, %c0_27] : memref<1x128xf32, #tpu.memory_space<vmem>>, vector<1x128xf32>
      %36 = arith.mulf %23, %34 : vector<1x128xf32>
      %37 = arith.subf %35, %36 : vector<1x128xf32>
      %38 = vector.broadcast %34 : vector<1x128xf32> to vector<32x128xf32>
      %39 = arith.mulf %12, %38 : vector<32x128xf32>
      %40 = vector.broadcast %37 : vector<1x128xf32> to vector<32x128xf32>
      %41 = arith.addf %39, %40 : vector<32x128xf32>
      %42 = arith.truncf %41 : vector<32x128xf32> to vector<32x128xbf16>
      %c0_28 = arith.constant 0 : index
      %c0_29 = arith.constant 0 : index
      %43 = vector.load %arg6[%c0_28, %c0_29] : memref<32x128xbf16, #tpu.memory_space<vmem>>, vector<32x128xbf16>
      tpu.vector_store %arg6[%c0_28, %c0_29], %42 {strides = array<i32>} : memref<32x128xbf16, #tpu.memory_space<vmem>>, vector<32x128xbf16>,
    } else {
    }
    return
  }
  func.func @transform_0(%arg0: i32) -> (i32, i32) {
    %c0_i32 = arith.constant 0 : i32
    %c0_i32_0 = arith.constant 0 : i32
    return %c0_i32, %arg0 : i32, i32
  }
  func.func @transform_1(%arg0: i32) -> (i32, i32) {
    %c0_i32 = arith.constant 0 : i32
    %c0_i32_0 = arith.constant 0 : i32
    return %arg0, %c0_i32 : i32, i32
  }
  func.func @transform_2(%arg0: i32) -> (i32, i32) {
    %c0_i32 = arith.constant 0 : i32
    %c0_i32_0 = arith.constant 0 : i32
    %c0_i32_1 = arith.constant 0 : i32
    return %c0_i32, %c0_i32_0 : i32, i32
  }
  func.func @transform_3(%arg0: i32) -> (i32, i32) {
    %c0_i32 = arith.constant 0 : i32
    %c0_i32_0 = arith.constant 0 : i32
    %c0_i32_1 = arith.constant 0 : i32
    return %c0_i32, %c0_i32_0 : i32, i32
  }
  func.func @transform_4(%arg0: i32) -> (i32, i32) {
    %c0_i32 = arith.constant 0 : i32
    %c0_i32_0 = arith.constant 0 : i32
    %c0_i32_1 = arith.constant 0 : i32
    return %c0_i32, %c0_i32_0 : i32, i32
  }
  func.func @transform_5(%arg0: i32) -> (i32, i32) {
    %c0_i32 = arith.constant 0 : i32
    %c0_i32_0 = arith.constant 0 : i32
    %c0_i32_1 = arith.constant 0 : i32
    return %c0_i32, %c0_i32_0 : i32, i32
  }
}

module attributes {stable_mosaic.version = 11 : i64} {
  func.func @_gemm_bn_kernel(%arg0: i32, %arg1: memref<32x384xbf16, #tpu.memory_space<vmem>>, %arg2: memref<384x128xbf16, #tpu.memory_space<vmem>>, %arg3: memref<128x128xf32, #tpu.memory_space<vmem>>, %arg4: memref<1x128xf32, #tpu.memory_space<vmem>>, %arg5: memref<1x128xf32, #tpu.memory_space<vmem>>, %arg6: memref<32x128xbf16, #tpu.memory_space<vmem>>, %arg7: memref<32x128xbf16, #tpu.memory_space<vmem>>, %arg8: memref<32x128xf32, #tpu.memory_space<vmem>>) attributes {dimension_semantics = [#tpu.dimension_semantics<arbitrary>], iteration_bounds = array<i64: 1>, scalar_prefetch = 0 : i64, scratch_operands = 1 : i64, tpu.core_type = #tpu.core_type<tc>, window_params = [{transform_indices = @transform_0, window_bounds = array<i64: 32, 384>}, {transform_indices = @transform_1, window_bounds = array<i64: 384, 128>}, {pipeline_mode = #tpu.pipeline_mode<synchronous>, transform_indices = @transform_2, window_bounds = array<i64: 128, 128>}, {pipeline_mode = #tpu.pipeline_mode<synchronous>, transform_indices = @transform_3, window_bounds = array<i64: 1, 128>}, {pipeline_mode = #tpu.pipeline_mode<synchronous>, transform_indices = @transform_4, window_bounds = array<i64: 1, 128>}, {pipeline_mode = #tpu.pipeline_mode<synchronous>, transform_indices = @transform_5, window_bounds = array<i64: 32, 128>}, {pipeline_mode = #tpu.pipeline_mode<synchronous>, transform_indices = @transform_6, window_bounds = array<i64: 32, 128>}]} {
    %c0_i32 = arith.constant 0 : i32
    %0 = arith.cmpi eq, %arg0, %c0_i32 : i32
    %1 = arith.extui %0 : i1 to i32
    %c0_i32_0 = arith.constant 0 : i32
    %2 = arith.cmpi ne, %1, %c0_i32_0 : i32
    scf.if %2 {
      %cst_10 = arith.constant 0.000000e+00 : f32
      %12 = vector.broadcast %cst_10 : f32 to vector<32x128xf32>
      %c0_11 = arith.constant 0 : index
      %c0_12 = arith.constant 0 : index
      %13 = vector.load %arg8[%c0_11, %c0_12] : memref<32x128xf32, #tpu.memory_space<vmem>>, vector<32x128xf32>
      tpu.vector_store %arg8[%c0_11, %c0_12], %12 {strides = array<i32>} : memref<32x128xf32, #tpu.memory_space<vmem>>, vector<32x128xf32>,
    } else {
    }
    %c0 = arith.constant 0 : index
    %c0_1 = arith.constant 0 : index
    %3 = vector.load %arg8[%c0, %c0_1] : memref<32x128xf32, #tpu.memory_space<vmem>>, vector<32x128xf32>
    %c0_2 = arith.constant 0 : index
    %c0_3 = arith.constant 0 : index
    %4 = vector.load %arg1[%c0_2, %c0_3] : memref<32x384xbf16, #tpu.memory_space<vmem>>, vector<32x384xbf16>
    %c0_4 = arith.constant 0 : index
    %c0_5 = arith.constant 0 : index
    %5 = vector.load %arg2[%c0_4, %c0_5] : memref<384x128xbf16, #tpu.memory_space<vmem>>, vector<384x128xbf16>
    %cst = arith.constant dense<0.000000e+00> : vector<32x128xf32>
    %6 = tpu.matmul %4, %5, %cst {dimension_numbers = #tpu.dot_dimension_numbers<[1], [0], [0], [1], [0, 0, 1, 1], [], []>} : vector<32x384xbf16>, vector<384x128xbf16>, vector<32x128xf32> -> vector<32x128xf32>
    %7 = arith.addf %3, %6 : vector<32x128xf32>
    %c0_6 = arith.constant 0 : index
    %c0_7 = arith.constant 0 : index
    %8 = vector.load %arg8[%c0_6, %c0_7] : memref<32x128xf32, #tpu.memory_space<vmem>>, vector<32x128xf32>
    tpu.vector_store %arg8[%c0_6, %c0_7], %7 {strides = array<i32>} : memref<32x128xf32, #tpu.memory_space<vmem>>, vector<32x128xf32>,
    %c0_i32_8 = arith.constant 0 : i32
    %9 = arith.cmpi eq, %arg0, %c0_i32_8 : i32
    %10 = arith.extui %9 : i1 to i32
    %c0_i32_9 = arith.constant 0 : i32
    %11 = arith.cmpi ne, %10, %c0_i32_9 : i32
    scf.if %11 {
      %c0_10 = arith.constant 0 : index
      %c0_11 = arith.constant 0 : index
      %12 = vector.load %arg8[%c0_10, %c0_11] : memref<32x128xf32, #tpu.memory_space<vmem>>, vector<32x128xf32>
      %cst_12 = arith.constant dense<0.000000e+00> : vector<128xf32>
      %13 = vector.multi_reduction <add>, %12, %cst_12 [0] : vector<32x128xf32> to vector<128xf32>
      %14 = vector.shape_cast %13 : vector<128xf32> to vector<1x128xf32>
      %15 = arith.mulf %12, %12 : vector<32x128xf32>
      %cst_13 = arith.constant dense<0.000000e+00> : vector<128xf32>
      %16 = vector.multi_reduction <add>, %15, %cst_13 [0] : vector<32x128xf32> to vector<128xf32>
      %17 = vector.shape_cast %16 : vector<128xf32> to vector<1x128xf32>
      %c0_14 = arith.constant 0 : index
      %c0_15 = arith.constant 0 : index
      %18 = vector.load %arg3[%c0_14, %c0_15] : memref<128x128xf32, #tpu.memory_space<vmem>>, vector<128x128xf32>
      %cst_16 = arith.constant dense<0.000000e+00> : vector<1x128xf32>
      %19 = tpu.matmul %14, %18, %cst_16 {dimension_numbers = #tpu.dot_dimension_numbers<[1], [0], [0], [1], [0, 0, 1, 1], [], []>} : vector<1x128xf32>, vector<128x128xf32>, vector<1x128xf32> -> vector<1x128xf32>
      %c0_17 = arith.constant 0 : index
      %c0_18 = arith.constant 0 : index
      %20 = vector.load %arg3[%c0_17, %c0_18] : memref<128x128xf32, #tpu.memory_space<vmem>>, vector<128x128xf32>
      %cst_19 = arith.constant dense<0.000000e+00> : vector<1x128xf32>
      %21 = tpu.matmul %17, %20, %cst_19 {dimension_numbers = #tpu.dot_dimension_numbers<[1], [0], [0], [1], [0, 0, 1, 1], [], []>} : vector<1x128xf32>, vector<128x128xf32>, vector<1x128xf32> -> vector<1x128xf32>
      %cst_20 = arith.constant 3.125000e-02 : f32
      %22 = vector.broadcast %cst_20 : f32 to vector<1x128xf32>
      %23 = arith.mulf %19, %22 : vector<1x128xf32>
      %cst_21 = arith.constant 3.125000e-02 : f32
      %24 = vector.broadcast %cst_21 : f32 to vector<1x128xf32>
      %25 = arith.mulf %21, %24 : vector<1x128xf32>
      %26 = arith.mulf %23, %23 : vector<1x128xf32>
      %27 = arith.subf %25, %26 : vector<1x128xf32>
      %cst_22 = arith.constant 0.000000e+00 : f32
      %28 = vector.broadcast %cst_22 : f32 to vector<1x128xf32>
      %29 = arith.maximumf %27, %28 : vector<1x128xf32>
      %c0_23 = arith.constant 0 : index
      %c0_24 = arith.constant 0 : index
      %30 = vector.load %arg4[%c0_23, %c0_24] : memref<1x128xf32, #tpu.memory_space<vmem>>, vector<1x128xf32>
      %cst_25 = arith.constant 9.99999974E-6 : f32
      %31 = vector.broadcast %cst_25 : f32 to vector<1x128xf32>
      %32 = arith.addf %29, %31 : vector<1x128xf32>
      %33 = math.sqrt %32 : vector<1x128xf32>
      %34 = arith.divf %30, %33 : vector<1x128xf32>
      %c0_26 = arith.constant 0 : index
      %c0_27 = arith.constant 0 : index
      %35 = vector.load %arg5[%c0_26, %c0_27] : memref<1x128xf32, #tpu.memory_space<vmem>>, vector<1x128xf32>
      %36 = arith.mulf %23, %34 : vector<1x128xf32>
      %37 = arith.subf %35, %36 : vector<1x128xf32>
      %38 = vector.broadcast %34 : vector<1x128xf32> to vector<32x128xf32>
      %39 = arith.mulf %12, %38 : vector<32x128xf32>
      %40 = vector.broadcast %37 : vector<1x128xf32> to vector<32x128xf32>
      %41 = arith.addf %39, %40 : vector<32x128xf32>
      %c0_28 = arith.constant 0 : index
      %c0_29 = arith.constant 0 : index
      %42 = vector.load %arg6[%c0_28, %c0_29] : memref<32x128xbf16, #tpu.memory_space<vmem>>, vector<32x128xbf16>
      %43 = arith.extf %42 : vector<32x128xbf16> to vector<32x128xf32>
      %44 = arith.addf %41, %43 : vector<32x128xf32>
      %45 = arith.truncf %44 : vector<32x128xf32> to vector<32x128xbf16>
      %c0_30 = arith.constant 0 : index
      %c0_31 = arith.constant 0 : index
      %46 = vector.load %arg7[%c0_30, %c0_31] : memref<32x128xbf16, #tpu.memory_space<vmem>>, vector<32x128xbf16>
      tpu.vector_store %arg7[%c0_30, %c0_31], %45 {strides = array<i32>} : memref<32x128xbf16, #tpu.memory_space<vmem>>, vector<32x128xbf16>,
    } else {
    }
    return
  }
  func.func @transform_0(%arg0: i32) -> (i32, i32) {
    %c0_i32 = arith.constant 0 : i32
    %c0_i32_0 = arith.constant 0 : i32
    return %c0_i32, %arg0 : i32, i32
  }
  func.func @transform_1(%arg0: i32) -> (i32, i32) {
    %c0_i32 = arith.constant 0 : i32
    %c0_i32_0 = arith.constant 0 : i32
    return %arg0, %c0_i32 : i32, i32
  }
  func.func @transform_2(%arg0: i32) -> (i32, i32) {
    %c0_i32 = arith.constant 0 : i32
    %c0_i32_0 = arith.constant 0 : i32
    %c0_i32_1 = arith.constant 0 : i32
    return %c0_i32, %c0_i32_0 : i32, i32
  }
  func.func @transform_3(%arg0: i32) -> (i32, i32) {
    %c0_i32 = arith.constant 0 : i32
    %c0_i32_0 = arith.constant 0 : i32
    %c0_i32_1 = arith.constant 0 : i32
    return %c0_i32, %c0_i32_0 : i32, i32
  }
  func.func @transform_4(%arg0: i32) -> (i32, i32) {
    %c0_i32 = arith.constant 0 : i32
    %c0_i32_0 = arith.constant 0 : i32
    %c0_i32_1 = arith.constant 0 : i32
    return %c0_i32, %c0_i32_0 : i32, i32
  }
  func.func @transform_5(%arg0: i32) -> (i32, i32) {
    %c0_i32 = arith.constant 0 : i32
    %c0_i32_0 = arith.constant 0 : i32
    %c0_i32_1 = arith.constant 0 : i32
    return %c0_i32, %c0_i32_0 : i32, i32
  }
  func.func @transform_6(%arg0: i32) -> (i32, i32) {
    %c0_i32 = arith.constant 0 : i32
    %c0_i32_0 = arith.constant 0 : i32
    %c0_i32_1 = arith.constant 0 : i32
    return %c0_i32, %c0_i32_0 : i32, i32
  }
}

module attributes {stable_mosaic.version = 11 : i64} {
  func.func @_gemm_bn_kernel(%arg0: i32, %arg1: memref<32x128xbf16, #tpu.memory_space<vmem>>, %arg2: memref<128x128xbf16, #tpu.memory_space<vmem>>, %arg3: memref<128x128xf32, #tpu.memory_space<vmem>>, %arg4: memref<1x128xf32, #tpu.memory_space<vmem>>, %arg5: memref<1x128xf32, #tpu.memory_space<vmem>>, %arg6: memref<32x128xbf16, #tpu.memory_space<vmem>>, %arg7: memref<32x128xf32, #tpu.memory_space<vmem>>) attributes {dimension_semantics = [#tpu.dimension_semantics<arbitrary>], iteration_bounds = array<i64: 1>, scalar_prefetch = 0 : i64, scratch_operands = 1 : i64, tpu.core_type = #tpu.core_type<tc>, window_params = [{transform_indices = @transform_0, window_bounds = array<i64: 32, 128>}, {transform_indices = @transform_1, window_bounds = array<i64: 128, 128>}, {pipeline_mode = #tpu.pipeline_mode<synchronous>, transform_indices = @transform_2, window_bounds = array<i64: 128, 128>}, {pipeline_mode = #tpu.pipeline_mode<synchronous>, transform_indices = @transform_3, window_bounds = array<i64: 1, 128>}, {pipeline_mode = #tpu.pipeline_mode<synchronous>, transform_indices = @transform_4, window_bounds = array<i64: 1, 128>}, {pipeline_mode = #tpu.pipeline_mode<synchronous>, transform_indices = @transform_5, window_bounds = array<i64: 32, 128>}]} {
    %c0_i32 = arith.constant 0 : i32
    %0 = arith.cmpi eq, %arg0, %c0_i32 : i32
    %1 = arith.extui %0 : i1 to i32
    %c0_i32_0 = arith.constant 0 : i32
    %2 = arith.cmpi ne, %1, %c0_i32_0 : i32
    scf.if %2 {
      %cst_10 = arith.constant 0.000000e+00 : f32
      %12 = vector.broadcast %cst_10 : f32 to vector<32x128xf32>
      %c0_11 = arith.constant 0 : index
      %c0_12 = arith.constant 0 : index
      %13 = vector.load %arg7[%c0_11, %c0_12] : memref<32x128xf32, #tpu.memory_space<vmem>>, vector<32x128xf32>
      tpu.vector_store %arg7[%c0_11, %c0_12], %12 {strides = array<i32>} : memref<32x128xf32, #tpu.memory_space<vmem>>, vector<32x128xf32>,
    } else {
    }
    %c0 = arith.constant 0 : index
    %c0_1 = arith.constant 0 : index
    %3 = vector.load %arg7[%c0, %c0_1] : memref<32x128xf32, #tpu.memory_space<vmem>>, vector<32x128xf32>
    %c0_2 = arith.constant 0 : index
    %c0_3 = arith.constant 0 : index
    %4 = vector.load %arg1[%c0_2, %c0_3] : memref<32x128xbf16, #tpu.memory_space<vmem>>, vector<32x128xbf16>
    %c0_4 = arith.constant 0 : index
    %c0_5 = arith.constant 0 : index
    %5 = vector.load %arg2[%c0_4, %c0_5] : memref<128x128xbf16, #tpu.memory_space<vmem>>, vector<128x128xbf16>
    %cst = arith.constant dense<0.000000e+00> : vector<32x128xf32>
    %6 = tpu.matmul %4, %5, %cst {dimension_numbers = #tpu.dot_dimension_numbers<[1], [0], [0], [1], [0, 0, 1, 1], [], []>} : vector<32x128xbf16>, vector<128x128xbf16>, vector<32x128xf32> -> vector<32x128xf32>
    %7 = arith.addf %3, %6 : vector<32x128xf32>
    %c0_6 = arith.constant 0 : index
    %c0_7 = arith.constant 0 : index
    %8 = vector.load %arg7[%c0_6, %c0_7] : memref<32x128xf32, #tpu.memory_space<vmem>>, vector<32x128xf32>
    tpu.vector_store %arg7[%c0_6, %c0_7], %7 {strides = array<i32>} : memref<32x128xf32, #tpu.memory_space<vmem>>, vector<32x128xf32>,
    %c0_i32_8 = arith.constant 0 : i32
    %9 = arith.cmpi eq, %arg0, %c0_i32_8 : i32
    %10 = arith.extui %9 : i1 to i32
    %c0_i32_9 = arith.constant 0 : i32
    %11 = arith.cmpi ne, %10, %c0_i32_9 : i32
    scf.if %11 {
      %c0_10 = arith.constant 0 : index
      %c0_11 = arith.constant 0 : index
      %12 = vector.load %arg7[%c0_10, %c0_11] : memref<32x128xf32, #tpu.memory_space<vmem>>, vector<32x128xf32>
      %cst_12 = arith.constant dense<0.000000e+00> : vector<128xf32>
      %13 = vector.multi_reduction <add>, %12, %cst_12 [0] : vector<32x128xf32> to vector<128xf32>
      %14 = vector.shape_cast %13 : vector<128xf32> to vector<1x128xf32>
      %15 = arith.mulf %12, %12 : vector<32x128xf32>
      %cst_13 = arith.constant dense<0.000000e+00> : vector<128xf32>
      %16 = vector.multi_reduction <add>, %15, %cst_13 [0] : vector<32x128xf32> to vector<128xf32>
      %17 = vector.shape_cast %16 : vector<128xf32> to vector<1x128xf32>
      %c0_14 = arith.constant 0 : index
      %c0_15 = arith.constant 0 : index
      %18 = vector.load %arg3[%c0_14, %c0_15] : memref<128x128xf32, #tpu.memory_space<vmem>>, vector<128x128xf32>
      %cst_16 = arith.constant dense<0.000000e+00> : vector<1x128xf32>
      %19 = tpu.matmul %14, %18, %cst_16 {dimension_numbers = #tpu.dot_dimension_numbers<[1], [0], [0], [1], [0, 0, 1, 1], [], []>} : vector<1x128xf32>, vector<128x128xf32>, vector<1x128xf32> -> vector<1x128xf32>
      %c0_17 = arith.constant 0 : index
      %c0_18 = arith.constant 0 : index
      %20 = vector.load %arg3[%c0_17, %c0_18] : memref<128x128xf32, #tpu.memory_space<vmem>>, vector<128x128xf32>
      %cst_19 = arith.constant dense<0.000000e+00> : vector<1x128xf32>
      %21 = tpu.matmul %17, %20, %cst_19 {dimension_numbers = #tpu.dot_dimension_numbers<[1], [0], [0], [1], [0, 0, 1, 1], [], []>} : vector<1x128xf32>, vector<128x128xf32>, vector<1x128xf32> -> vector<1x128xf32>
      %cst_20 = arith.constant 7.812500e-03 : f32
      %22 = vector.broadcast %cst_20 : f32 to vector<1x128xf32>
      %23 = arith.mulf %19, %22 : vector<1x128xf32>
      %cst_21 = arith.constant 7.812500e-03 : f32
      %24 = vector.broadcast %cst_21 : f32 to vector<1x128xf32>
      %25 = arith.mulf %21, %24 : vector<1x128xf32>
      %26 = arith.mulf %23, %23 : vector<1x128xf32>
      %27 = arith.subf %25, %26 : vector<1x128xf32>
      %cst_22 = arith.constant 0.000000e+00 : f32
      %28 = vector.broadcast %cst_22 : f32 to vector<1x128xf32>
      %29 = arith.maximumf %27, %28 : vector<1x128xf32>
      %c0_23 = arith.constant 0 : index
      %c0_24 = arith.constant 0 : index
      %30 = vector.load %arg4[%c0_23, %c0_24] : memref<1x128xf32, #tpu.memory_space<vmem>>, vector<1x128xf32>
      %cst_25 = arith.constant 9.99999974E-6 : f32
      %31 = vector.broadcast %cst_25 : f32 to vector<1x128xf32>
      %32 = arith.addf %29, %31 : vector<1x128xf32>
      %33 = math.sqrt %32 : vector<1x128xf32>
      %34 = arith.divf %30, %33 : vector<1x128xf32>
      %c0_26 = arith.constant 0 : index
      %c0_27 = arith.constant 0 : index
      %35 = vector.load %arg5[%c0_26, %c0_27] : memref<1x128xf32, #tpu.memory_space<vmem>>, vector<1x128xf32>
      %36 = arith.mulf %23, %34 : vector<1x128xf32>
      %37 = arith.subf %35, %36 : vector<1x128xf32>
      %38 = vector.broadcast %34 : vector<1x128xf32> to vector<32x128xf32>
      %39 = arith.mulf %12, %38 : vector<32x128xf32>
      %40 = vector.broadcast %37 : vector<1x128xf32> to vector<32x128xf32>
      %41 = arith.addf %39, %40 : vector<32x128xf32>
      %cst_28 = arith.constant 0.000000e+00 : f32
      %42 = vector.broadcast %cst_28 : f32 to vector<32x128xf32>
      %43 = arith.maximumf %41, %42 : vector<32x128xf32>
      %44 = arith.truncf %43 : vector<32x128xf32> to vector<32x128xbf16>
      %c0_29 = arith.constant 0 : index
      %c0_30 = arith.constant 0 : index
      %45 = vector.load %arg6[%c0_29, %c0_30] : memref<32x128xbf16, #tpu.memory_space<vmem>>, vector<32x128xbf16>
      tpu.vector_store %arg6[%c0_29, %c0_30], %44 {strides = array<i32>} : memref<32x128xbf16, #tpu.memory_space<vmem>>, vector<32x128xbf16>,
    } else {
    }
    return
  }
  func.func @transform_0(%arg0: i32) -> (i32, i32) {
    %c0_i32 = arith.constant 0 : i32
    %c0_i32_0 = arith.constant 0 : i32
    return %c0_i32, %arg0 : i32, i32
  }
  func.func @transform_1(%arg0: i32) -> (i32, i32) {
    %c0_i32 = arith.constant 0 : i32
    %c0_i32_0 = arith.constant 0 : i32
    return %arg0, %c0_i32 : i32, i32
  }
  func.func @transform_2(%arg0: i32) -> (i32, i32) {
    %c0_i32 = arith.constant 0 : i32
    %c0_i32_0 = arith.constant 0 : i32
    %c0_i32_1 = arith.constant 0 : i32
    return %c0_i32, %c0_i32_0 : i32, i32
  }
  func.func @transform_3(%arg0: i32) -> (i32, i32) {
    %c0_i32 = arith.constant 0 : i32
    %c0_i32_0 = arith.constant 0 : i32
    %c0_i32_1 = arith.constant 0 : i32
    return %c0_i32, %c0_i32_0 : i32, i32
  }
  func.func @transform_4(%arg0: i32) -> (i32, i32) {
    %c0_i32 = arith.constant 0 : i32
    %c0_i32_0 = arith.constant 0 : i32
    %c0_i32_1 = arith.constant 0 : i32
    return %c0_i32, %c0_i32_0 : i32, i32
  }
  func.func @transform_5(%arg0: i32) -> (i32, i32) {
    %c0_i32 = arith.constant 0 : i32
    %c0_i32_0 = arith.constant 0 : i32
    %c0_i32_1 = arith.constant 0 : i32
    return %c0_i32, %c0_i32_0 : i32, i32
  }
}

module attributes {stable_mosaic.version = 11 : i64} {
  func.func @_gemm_bn_kernel(%arg0: i32, %arg1: memref<128x128xbf16, #tpu.memory_space<vmem>>, %arg2: memref<128x128xbf16, #tpu.memory_space<vmem>>, %arg3: memref<128x128xf32, #tpu.memory_space<vmem>>, %arg4: memref<1x128xf32, #tpu.memory_space<vmem>>, %arg5: memref<1x128xf32, #tpu.memory_space<vmem>>, %arg6: memref<128x128xbf16, #tpu.memory_space<vmem>>, %arg7: memref<128x128xf32, #tpu.memory_space<vmem>>) attributes {dimension_semantics = [#tpu.dimension_semantics<arbitrary>], iteration_bounds = array<i64: 1>, scalar_prefetch = 0 : i64, scratch_operands = 1 : i64, tpu.core_type = #tpu.core_type<tc>, window_params = [{transform_indices = @transform_0, window_bounds = array<i64: 128, 128>}, {transform_indices = @transform_1, window_bounds = array<i64: 128, 128>}, {pipeline_mode = #tpu.pipeline_mode<synchronous>, transform_indices = @transform_2, window_bounds = array<i64: 128, 128>}, {pipeline_mode = #tpu.pipeline_mode<synchronous>, transform_indices = @transform_3, window_bounds = array<i64: 1, 128>}, {pipeline_mode = #tpu.pipeline_mode<synchronous>, transform_indices = @transform_4, window_bounds = array<i64: 1, 128>}, {pipeline_mode = #tpu.pipeline_mode<synchronous>, transform_indices = @transform_5, window_bounds = array<i64: 128, 128>}]} {
    %c0_i32 = arith.constant 0 : i32
    %0 = arith.cmpi eq, %arg0, %c0_i32 : i32
    %1 = arith.extui %0 : i1 to i32
    %c0_i32_0 = arith.constant 0 : i32
    %2 = arith.cmpi ne, %1, %c0_i32_0 : i32
    scf.if %2 {
      %cst_10 = arith.constant 0.000000e+00 : f32
      %12 = vector.broadcast %cst_10 : f32 to vector<128x128xf32>
      %c0_11 = arith.constant 0 : index
      %c0_12 = arith.constant 0 : index
      %13 = vector.load %arg7[%c0_11, %c0_12] : memref<128x128xf32, #tpu.memory_space<vmem>>, vector<128x128xf32>
      tpu.vector_store %arg7[%c0_11, %c0_12], %12 {strides = array<i32>} : memref<128x128xf32, #tpu.memory_space<vmem>>, vector<128x128xf32>,
    } else {
    }
    %c0 = arith.constant 0 : index
    %c0_1 = arith.constant 0 : index
    %3 = vector.load %arg7[%c0, %c0_1] : memref<128x128xf32, #tpu.memory_space<vmem>>, vector<128x128xf32>
    %c0_2 = arith.constant 0 : index
    %c0_3 = arith.constant 0 : index
    %4 = vector.load %arg1[%c0_2, %c0_3] : memref<128x128xbf16, #tpu.memory_space<vmem>>, vector<128x128xbf16>
    %c0_4 = arith.constant 0 : index
    %c0_5 = arith.constant 0 : index
    %5 = vector.load %arg2[%c0_4, %c0_5] : memref<128x128xbf16, #tpu.memory_space<vmem>>, vector<128x128xbf16>
    %cst = arith.constant dense<0.000000e+00> : vector<128x128xf32>
    %6 = tpu.matmul %4, %5, %cst {dimension_numbers = #tpu.dot_dimension_numbers<[1], [0], [0], [1], [0, 0, 1, 1], [], []>} : vector<128x128xbf16>, vector<128x128xbf16>, vector<128x128xf32> -> vector<128x128xf32>
    %7 = arith.addf %3, %6 : vector<128x128xf32>
    %c0_6 = arith.constant 0 : index
    %c0_7 = arith.constant 0 : index
    %8 = vector.load %arg7[%c0_6, %c0_7] : memref<128x128xf32, #tpu.memory_space<vmem>>, vector<128x128xf32>
    tpu.vector_store %arg7[%c0_6, %c0_7], %7 {strides = array<i32>} : memref<128x128xf32, #tpu.memory_space<vmem>>, vector<128x128xf32>,
    %c0_i32_8 = arith.constant 0 : i32
    %9 = arith.cmpi eq, %arg0, %c0_i32_8 : i32
    %10 = arith.extui %9 : i1 to i32
    %c0_i32_9 = arith.constant 0 : i32
    %11 = arith.cmpi ne, %10, %c0_i32_9 : i32
    scf.if %11 {
      %c0_10 = arith.constant 0 : index
      %c0_11 = arith.constant 0 : index
      %12 = vector.load %arg7[%c0_10, %c0_11] : memref<128x128xf32, #tpu.memory_space<vmem>>, vector<128x128xf32>
      %cst_12 = arith.constant dense<0.000000e+00> : vector<128xf32>
      %13 = vector.multi_reduction <add>, %12, %cst_12 [0] : vector<128x128xf32> to vector<128xf32>
      %14 = vector.shape_cast %13 : vector<128xf32> to vector<1x128xf32>
      %15 = arith.mulf %12, %12 : vector<128x128xf32>
      %cst_13 = arith.constant dense<0.000000e+00> : vector<128xf32>
      %16 = vector.multi_reduction <add>, %15, %cst_13 [0] : vector<128x128xf32> to vector<128xf32>
      %17 = vector.shape_cast %16 : vector<128xf32> to vector<1x128xf32>
      %c0_14 = arith.constant 0 : index
      %c0_15 = arith.constant 0 : index
      %18 = vector.load %arg3[%c0_14, %c0_15] : memref<128x128xf32, #tpu.memory_space<vmem>>, vector<128x128xf32>
      %cst_16 = arith.constant dense<0.000000e+00> : vector<1x128xf32>
      %19 = tpu.matmul %14, %18, %cst_16 {dimension_numbers = #tpu.dot_dimension_numbers<[1], [0], [0], [1], [0, 0, 1, 1], [], []>} : vector<1x128xf32>, vector<128x128xf32>, vector<1x128xf32> -> vector<1x128xf32>
      %c0_17 = arith.constant 0 : index
      %c0_18 = arith.constant 0 : index
      %20 = vector.load %arg3[%c0_17, %c0_18] : memref<128x128xf32, #tpu.memory_space<vmem>>, vector<128x128xf32>
      %cst_19 = arith.constant dense<0.000000e+00> : vector<1x128xf32>
      %21 = tpu.matmul %17, %20, %cst_19 {dimension_numbers = #tpu.dot_dimension_numbers<[1], [0], [0], [1], [0, 0, 1, 1], [], []>} : vector<1x128xf32>, vector<128x128xf32>, vector<1x128xf32> -> vector<1x128xf32>
      %cst_20 = arith.constant 0.001953125 : f32
      %22 = vector.broadcast %cst_20 : f32 to vector<1x128xf32>
      %23 = arith.mulf %19, %22 : vector<1x128xf32>
      %cst_21 = arith.constant 0.001953125 : f32
      %24 = vector.broadcast %cst_21 : f32 to vector<1x128xf32>
      %25 = arith.mulf %21, %24 : vector<1x128xf32>
      %26 = arith.mulf %23, %23 : vector<1x128xf32>
      %27 = arith.subf %25, %26 : vector<1x128xf32>
      %cst_22 = arith.constant 0.000000e+00 : f32
      %28 = vector.broadcast %cst_22 : f32 to vector<1x128xf32>
      %29 = arith.maximumf %27, %28 : vector<1x128xf32>
      %c0_23 = arith.constant 0 : index
      %c0_24 = arith.constant 0 : index
      %30 = vector.load %arg4[%c0_23, %c0_24] : memref<1x128xf32, #tpu.memory_space<vmem>>, vector<1x128xf32>
      %cst_25 = arith.constant 9.99999974E-6 : f32
      %31 = vector.broadcast %cst_25 : f32 to vector<1x128xf32>
      %32 = arith.addf %29, %31 : vector<1x128xf32>
      %33 = math.sqrt %32 : vector<1x128xf32>
      %34 = arith.divf %30, %33 : vector<1x128xf32>
      %c0_26 = arith.constant 0 : index
      %c0_27 = arith.constant 0 : index
      %35 = vector.load %arg5[%c0_26, %c0_27] : memref<1x128xf32, #tpu.memory_space<vmem>>, vector<1x128xf32>
      %36 = arith.mulf %23, %34 : vector<1x128xf32>
      %37 = arith.subf %35, %36 : vector<1x128xf32>
      %38 = vector.broadcast %34 : vector<1x128xf32> to vector<128x128xf32>
      %39 = arith.mulf %12, %38 : vector<128x128xf32>
      %40 = vector.broadcast %37 : vector<1x128xf32> to vector<128x128xf32>
      %41 = arith.addf %39, %40 : vector<128x128xf32>
      %cst_28 = arith.constant 0.000000e+00 : f32
      %42 = vector.broadcast %cst_28 : f32 to vector<128x128xf32>
      %43 = arith.maximumf %41, %42 : vector<128x128xf32>
      %44 = arith.truncf %43 : vector<128x128xf32> to vector<128x128xbf16>
      %c0_29 = arith.constant 0 : index
      %c0_30 = arith.constant 0 : index
      %45 = vector.load %arg6[%c0_29, %c0_30] : memref<128x128xbf16, #tpu.memory_space<vmem>>, vector<128x128xbf16>
      tpu.vector_store %arg6[%c0_29, %c0_30], %44 {strides = array<i32>} : memref<128x128xbf16, #tpu.memory_space<vmem>>, vector<128x128xbf16>,
    } else {
    }
    return
  }
  func.func @transform_0(%arg0: i32) -> (i32, i32) {
    %c0_i32 = arith.constant 0 : i32
    %c0_i32_0 = arith.constant 0 : i32
    return %c0_i32, %arg0 : i32, i32
  }
  func.func @transform_1(%arg0: i32) -> (i32, i32) {
    %c0_i32 = arith.constant 0 : i32
    %c0_i32_0 = arith.constant 0 : i32
    return %arg0, %c0_i32 : i32, i32
  }
  func.func @transform_2(%arg0: i32) -> (i32, i32) {
    %c0_i32 = arith.constant 0 : i32
    %c0_i32_0 = arith.constant 0 : i32
    %c0_i32_1 = arith.constant 0 : i32
    return %c0_i32, %c0_i32_0 : i32, i32
  }
  func.func @transform_3(%arg0: i32) -> (i32, i32) {
    %c0_i32 = arith.constant 0 : i32
    %c0_i32_0 = arith.constant 0 : i32
    %c0_i32_1 = arith.constant 0 : i32
    return %c0_i32, %c0_i32_0 : i32, i32
  }
  func.func @transform_4(%arg0: i32) -> (i32, i32) {
    %c0_i32 = arith.constant 0 : i32
    %c0_i32_0 = arith.constant 0 : i32
    %c0_i32_1 = arith.constant 0 : i32
    return %c0_i32, %c0_i32_0 : i32, i32
  }
  func.func @transform_5(%arg0: i32) -> (i32, i32) {
    %c0_i32 = arith.constant 0 : i32
    %c0_i32_0 = arith.constant 0 : i32
    %c0_i32_1 = arith.constant 0 : i32
    return %c0_i32, %c0_i32_0 : i32, i32
  }
}

module attributes {stable_mosaic.version = 11 : i64} {
  func.func @_gemm_bias_kernel(%arg0: i32, %arg1: memref<512x512xbf16, #tpu.memory_space<vmem>>, %arg2: memref<512x128xbf16, #tpu.memory_space<vmem>>, %arg3: memref<1x128xf32, #tpu.memory_space<vmem>>, %arg4: memref<512x128xf32, #tpu.memory_space<vmem>>, %arg5: memref<512x128xf32, #tpu.memory_space<vmem>>) attributes {dimension_semantics = [#tpu.dimension_semantics<arbitrary>], iteration_bounds = array<i64: 1>, scalar_prefetch = 0 : i64, scratch_operands = 1 : i64, tpu.core_type = #tpu.core_type<tc>, window_params = [{transform_indices = @transform_0, window_bounds = array<i64: 512, 512>}, {transform_indices = @transform_1, window_bounds = array<i64: 512, 128>}, {pipeline_mode = #tpu.pipeline_mode<synchronous>, transform_indices = @transform_2, window_bounds = array<i64: 1, 128>}, {pipeline_mode = #tpu.pipeline_mode<synchronous>, transform_indices = @transform_3, window_bounds = array<i64: 512, 128>}]} {
    %c0_i32 = arith.constant 0 : i32
    %0 = arith.cmpi eq, %arg0, %c0_i32 : i32
    %1 = arith.extui %0 : i1 to i32
    %c0_i32_0 = arith.constant 0 : i32
    %2 = arith.cmpi ne, %1, %c0_i32_0 : i32
    scf.if %2 {
      %cst_10 = arith.constant 0.000000e+00 : f32
      %12 = vector.broadcast %cst_10 : f32 to vector<512x128xf32>
      %c0_11 = arith.constant 0 : index
      %c0_12 = arith.constant 0 : index
      %13 = vector.load %arg5[%c0_11, %c0_12] : memref<512x128xf32, #tpu.memory_space<vmem>>, vector<512x128xf32>
      tpu.vector_store %arg5[%c0_11, %c0_12], %12 {strides = array<i32>} : memref<512x128xf32, #tpu.memory_space<vmem>>, vector<512x128xf32>,
    } else {
    }
    %c0 = arith.constant 0 : index
    %c0_1 = arith.constant 0 : index
    %3 = vector.load %arg5[%c0, %c0_1] : memref<512x128xf32, #tpu.memory_space<vmem>>, vector<512x128xf32>
    %c0_2 = arith.constant 0 : index
    %c0_3 = arith.constant 0 : index
    %4 = vector.load %arg1[%c0_2, %c0_3] : memref<512x512xbf16, #tpu.memory_space<vmem>>, vector<512x512xbf16>
    %c0_4 = arith.constant 0 : index
    %c0_5 = arith.constant 0 : index
    %5 = vector.load %arg2[%c0_4, %c0_5] : memref<512x128xbf16, #tpu.memory_space<vmem>>, vector<512x128xbf16>
    %cst = arith.constant dense<0.000000e+00> : vector<512x128xf32>
    %6 = tpu.matmul %4, %5, %cst {dimension_numbers = #tpu.dot_dimension_numbers<[1], [0], [0], [1], [0, 0, 1, 1], [], []>} : vector<512x512xbf16>, vector<512x128xbf16>, vector<512x128xf32> -> vector<512x128xf32>
    %7 = arith.addf %3, %6 : vector<512x128xf32>
    %c0_6 = arith.constant 0 : index
    %c0_7 = arith.constant 0 : index
    %8 = vector.load %arg5[%c0_6, %c0_7] : memref<512x128xf32, #tpu.memory_space<vmem>>, vector<512x128xf32>
    tpu.vector_store %arg5[%c0_6, %c0_7], %7 {strides = array<i32>} : memref<512x128xf32, #tpu.memory_space<vmem>>, vector<512x128xf32>,
    %c0_i32_8 = arith.constant 0 : i32
    %9 = arith.cmpi eq, %arg0, %c0_i32_8 : i32
    %10 = arith.extui %9 : i1 to i32
    %c0_i32_9 = arith.constant 0 : i32
    %11 = arith.cmpi ne, %10, %c0_i32_9 : i32
    scf.if %11 {
      %c0_10 = arith.constant 0 : index
      %c0_11 = arith.constant 0 : index
      %12 = vector.load %arg5[%c0_10, %c0_11] : memref<512x128xf32, #tpu.memory_space<vmem>>, vector<512x128xf32>
      %c0_12 = arith.constant 0 : index
      %c0_13 = arith.constant 0 : index
      %13 = vector.load %arg3[%c0_12, %c0_13] : memref<1x128xf32, #tpu.memory_space<vmem>>, vector<1x128xf32>
      %14 = vector.broadcast %13 : vector<1x128xf32> to vector<512x128xf32>
      %15 = arith.addf %12, %14 : vector<512x128xf32>
      %16 = math.tanh %15 : vector<512x128xf32>
      %c0_14 = arith.constant 0 : index
      %c0_15 = arith.constant 0 : index
      %17 = vector.load %arg4[%c0_14, %c0_15] : memref<512x128xf32, #tpu.memory_space<vmem>>, vector<512x128xf32>
      tpu.vector_store %arg4[%c0_14, %c0_15], %16 {strides = array<i32>} : memref<512x128xf32, #tpu.memory_space<vmem>>, vector<512x128xf32>,
    } else {
    }
    return
  }
  func.func @transform_0(%arg0: i32) -> (i32, i32) {
    %c0_i32 = arith.constant 0 : i32
    %c0_i32_0 = arith.constant 0 : i32
    return %c0_i32, %arg0 : i32, i32
  }
  func.func @transform_1(%arg0: i32) -> (i32, i32) {
    %c0_i32 = arith.constant 0 : i32
    %c0_i32_0 = arith.constant 0 : i32
    return %arg0, %c0_i32 : i32, i32
  }
  func.func @transform_2(%arg0: i32) -> (i32, i32) {
    %c0_i32 = arith.constant 0 : i32
    %c0_i32_0 = arith.constant 0 : i32
    %c0_i32_1 = arith.constant 0 : i32
    return %c0_i32, %c0_i32_0 : i32, i32
  }
  func.func @transform_3(%arg0: i32) -> (i32, i32) {
    %c0_i32 = arith.constant 0 : i32
    %c0_i32_0 = arith.constant 0 : i32
    %c0_i32_1 = arith.constant 0 : i32
    return %c0_i32, %c0_i32_0 : i32, i32
  }
}

</mosaic_0001>

<bundles_post_ra>
// kernel: resnet_generator.10
= control target key start
LH: loop header
LB: loop body
LE: loop exit
PB: predicated region body
PF: predicated region fallthrough
CT: control target
= control target key end

     0   :  { %v2757_v0 = vmov 0   ;;  %vm2759_vm0 = vmmov 0   ;;  %s4191_s1 = inlined_call_operand.vmem [shape: bf16[256,128], index: 1, kind: input, shape index: {}]   ;;  %s4192_s0 = inlined_call_operand.vmem [shape: bf16[512,256], index: 0, kind: input, shape index: {}]   ;;  %s4193_s2 = inlined_call_operand.vmem [shape: f32[128,128], index: 2, kind: input, shape index: {}]   ;;  %s4194_s3 = inlined_call_operand.vmem [shape: f32[1,128], index: 3, kind: input, shape index: {}]   ;;  %s4195_s4 = inlined_call_operand.vmem [shape: f32[1,128], index: 4, kind: input, shape index: {}]   ;;  %s4196_s5 = inlined_call_operand.vmem [shape: bf16[512,128], index: 5, kind: output, shape index: {}]  }
   0x1   :  { %665 = vmatprep.subr.bf16.mxu0 %v2757_v0  ;;  %v2641_v1 = vld [vmem:[%s4191_s1] sm:$0xff]   ;;  %2605 = vmatprep.subr.bf16.mxu1 %v2757_v0  ;;  %v2642_v2 = vld [vmem:[%s4191_s1 + $0x8] sm:$0xff]   ;;  %v2643_v3 = vld [vmem:[%s4191_s1 + $0x10] sm:$0xff]  }
   0x2   :  { %666 = vmatpush1.bf16.msra.mxu0 %v2641_v1  ;;  %2621 = vmatpush1.bf16.msra.mxu1 %v2641_v1  ;;  %v2644_v4 = vld [vmem:[%s4191_s1 + $0x18] sm:$0xff]   ;;  %v2645_v5 = vld [vmem:[%s4191_s1 + $0x20] sm:$0xff]   ;;  %v2646_v7 = vld [vmem:[%s4191_s1 + $0x28] sm:$0xff]  }
   0x3   :  { %667 = vmatprep.subr.bf16.mxu0 %v2757_v0  ;;  %2606 = vmatprep.subr.bf16.mxu1 %v2757_v0  ;;  %v2659_v6 = vld [vmem:[%s4192_s0 + $0x4] ss:$8 sps:$4 sm:$0xff]   ;;  %v2647_v8 = vld [vmem:[%s4191_s1 + $0x30] sm:$0xff]   ;;  %v2648_v9 = vld [vmem:[%s4191_s1 + $0x38] sm:$0xff]  }
   0x4   :  { %697 = vmatprep.mubr.bf16.mxu0 %v2659_v6  ;;  %v2649_v10 = vld [vmem:[%s4191_s1 + $0x40] sm:$0xff]   ;;  %v2650_v11 = vld [vmem:[%s4191_s1 + $0x48] sm:$0xff]   ;;  %v2698_v12 = vld [vmem:[%s4192_s0 + $0x134] ss:$8 sps:$4 sm:$0xff]  }
   0x5   :  { %v2651_v13 = vld [vmem:[%s4191_s1 + $0x50] sm:$0xff]   ;;  %849 = vmatprep.mubr.bf16.mxu1 %v2698_v12  ;;  %v2652_v14 = vld [vmem:[%s4191_s1 + $0x58] sm:$0xff]   ;;  %v2653_v15 = vld [vmem:[%s4191_s1 + $0x60] sm:$0xff]  }
   0x6   :  { %668 = vmatpush1.bf16.msra.mxu0 %v2642_v2  ;;  %2622 = vmatpush1.bf16.msra.mxu1 %v2642_v2  ;;  %v2654_v16 = vld [vmem:[%s4191_s1 + $0x68] sm:$0xff]   ;;  %v2655_v17 = vld [vmem:[%s4191_s1 + $0x70] sm:$0xff]   ;;  %v2656_v18 = vld [vmem:[%s4191_s1 + $0x78] sm:$0xff]  }
   0x7   :  { %669 = vmatprep.subr.bf16.mxu0 %v2757_v0  ;;  %2607 = vmatprep.subr.bf16.mxu1 %v2757_v0  ;;  %v2657_v19 = vld [vmem:[%s4192_s0] ss:$8 sps:$4 sm:$0xff]   ;;  %v2696_v20 = vld [vmem:[%s4192_s0 + $0x130] ss:$8 sps:$4 sm:$0xff]   ;;  %v2660_v21 = vld [vmem:[%s4192_s0 + $0x14] ss:$8 sps:$4 sm:$0xff]  }
   0x8   :  { %v2702_v22 = vld [vmem:[%s4192_s0 + $0x144] ss:$8 sps:$4 sm:$0xff]   ;;  %v2662_v23 = vld [vmem:[%s4192_s0 + $0x10] ss:$8 sps:$4 sm:$0xff]   ;;  %v2704_v24 = vld [vmem:[%s4192_s0 + $0x140] ss:$8 sps:$4 sm:$0xff]  }
   0x9   :  { %v2663_v25 = vld [vmem:[%s4192_s0 + $0x24] ss:$8 sps:$4 sm:$0xff]   ;;  %v2708_v26 = vld [vmem:[%s4192_s0 + $0x154] ss:$8 sps:$4 sm:$0xff]   ;;  %v2665_v27 = vld [vmem:[%s4192_s0 + $0x20] ss:$8 sps:$4 sm:$0xff]  }
   0xa   :  { %670 = vmatpush1.bf16.msra.mxu0 %v2643_v3  ;;  %2623 = vmatpush1.bf16.msra.mxu1 %v2643_v3  ;;  %v2710_v28 = vld [vmem:[%s4192_s0 + $0x150] ss:$8 sps:$4 sm:$0xff]   ;;  %v2666_v29 = vld [vmem:[%s4192_s0 + $0x34] ss:$8 sps:$4 sm:$0xff]   ;;  %v2714_v30 = vld [vmem:[%s4192_s0 + $0x164] ss:$8 sps:$4 sm:$0xff]  }
   0xb   :  { %671 = vmatprep.subr.bf16.mxu0 %v2757_v0  ;;  %2608 = vmatprep.subr.bf16.mxu1 %v2757_v0  ;;  %v2668_v31 = vld [vmem:[%s4192_s0 + $0x30] ss:$8 sps:$4 sm:$0xff]   ;;  %v2716_v32 = vld [vmem:[%s4192_s0 + $0x160] ss:$8 sps:$4 sm:$0xff]   ;;  %v2669_v33 = vld [vmem:[%s4192_s0 + $0x44] ss:$8 sps:$4 sm:$0xff]  }
   0xc   :  { %v2720_v34 = vld [vmem:[%s4192_s0 + $0x174] ss:$8 sps:$4 sm:$0xff]   ;;  %v2671_v35 = vld [vmem:[%s4192_s0 + $0x40] ss:$8 sps:$4 sm:$0xff]   ;;  %v2722_v36 = vld [vmem:[%s4192_s0 + $0x170] ss:$8 sps:$4 sm:$0xff]  }
   0xd   :  { %v2672_v37 = vld [vmem:[%s4192_s0 + $0x54] ss:$8 sps:$4 sm:$0xff]   ;;  %v2726_v38 = vld [vmem:[%s4192_s0 + $0x184] ss:$8 sps:$4 sm:$0xff]   ;;  %v2674_v39 = vld [vmem:[%s4192_s0 + $0x50] ss:$8 sps:$4 sm:$0xff]  }
   0xe   :  { %672 = vmatpush1.bf16.msra.mxu0 %v2644_v4  ;;  %2624 = vmatpush1.bf16.msra.mxu1 %v2644_v4  ;;  %v2728_v40 = vld [vmem:[%s4192_s0 + $0x180] ss:$8 sps:$4 sm:$0xff]   ;;  %v2675_v41 = vld [vmem:[%s4192_s0 + $0x64] ss:$8 sps:$4 sm:$0xff]   ;;  %v2732_v42 = vld [vmem:[%s4192_s0 + $0x194] ss:$8 sps:$4 sm:$0xff]  }
   0xf   :  { %673 = vmatprep.subr.bf16.mxu0 %v2757_v0  ;;  %2609 = vmatprep.subr.bf16.mxu1 %v2757_v0  ;;  %v2677_v43 = vld [vmem:[%s4192_s0 + $0x60] ss:$8 sps:$4 sm:$0xff]   ;;  %v2734_v44 = vld [vmem:[%s4192_s0 + $0x190] ss:$8 sps:$4 sm:$0xff]   ;;  %v2678_v45 = vld [vmem:[%s4192_s0 + $0x74] ss:$8 sps:$4 sm:$0xff]  }
  0x10   :  { %v2735_v46 = vld [vmem:[%s4192_s0 + $0x1a4] ss:$8 sps:$4 sm:$0xff]   ;;  %v2680_v47 = vld [vmem:[%s4192_s0 + $0x70] ss:$8 sps:$4 sm:$0xff]   ;;  %v2737_v48 = vld [vmem:[%s4192_s0 + $0x1a0] ss:$8 sps:$4 sm:$0xff]  }
  0x11   :  { %v2681_v49 = vld [vmem:[%s4192_s0 + $0x84] ss:$8 sps:$4 sm:$0xff]   ;;  %v2738_v50 = vld [vmem:[%s4192_s0 + $0x1b4] ss:$8 sps:$4 sm:$0xff]   ;;  %v2683_v51 = vld [vmem:[%s4192_s0 + $0x80] ss:$8 sps:$4 sm:$0xff]  }
  0x12   :  { %674 = vmatpush1.bf16.msra.mxu0 %v2645_v5  ;;  %2625 = vmatpush1.bf16.msra.mxu1 %v2645_v5  ;;  %v2740_v52 = vld [vmem:[%s4192_s0 + $0x1b0] ss:$8 sps:$4 sm:$0xff]   ;;  %v2684_v53 = vld [vmem:[%s4192_s0 + $0x94] ss:$8 sps:$4 sm:$0xff]   ;;  %v2741_v54 = vld [vmem:[%s4192_s0 + $0x1c4] ss:$8 sps:$4 sm:$0xff]  }
  0x13   :  { %675 = vmatprep.subr.bf16.mxu0 %v2757_v0  ;;  %2610 = vmatprep.subr.bf16.mxu1 %v2757_v0  ;;  %v2686_v55 = vld [vmem:[%s4192_s0 + $0x90] ss:$8 sps:$4 sm:$0xff]   ;;  %v2743_v56 = vld [vmem:[%s4192_s0 + $0x1c0] ss:$8 sps:$4 sm:$0xff]   ;;  %v2687_v57 = vld [vmem:[%s4192_s0 + $0xa4] ss:$8 sps:$4 sm:$0xff]  }
  0x14   :  { %v2744_v58 = vld [vmem:[%s4192_s0 + $0x1d4] ss:$8 sps:$4 sm:$0xff]   ;;  %v2689_v59 = vld [vmem:[%s4192_s0 + $0xa0] ss:$8 sps:$4 sm:$0xff]   ;;  %v2746_v60 = vld [vmem:[%s4192_s0 + $0x1d0] ss:$8 sps:$4 sm:$0xff]  }
  0x15   :  { %v2690_v61 = vld [vmem:[%s4192_s0 + $0xb4] ss:$8 sps:$4 sm:$0xff]   ;;  %v2747_v62 = vld [vmem:[%s4192_s0 + $0x1e4] ss:$8 sps:$4 sm:$0xff]   ;;  %v2692_v63 = vld [vmem:[%s4192_s0 + $0xb0] ss:$8 sps:$4 sm:$0xff]  }
  0x16   :  { %676 = vmatpush1.bf16.msra.mxu0 %v2646_v7  ;;  %2626 = vmatpush1.bf16.msra.mxu1 %v2646_v7  ;;  %v2693_v1 = vld [vmem:[%s4192_s0 + $0xc4] ss:$8 sps:$4 sm:$0xff]   ;;  %v2750_v2 = vld [vmem:[%s4192_s0 + $0x1f4] ss:$8 sps:$4 sm:$0xff]   ;;  %v2695_v3 = vld [vmem:[%s4192_s0 + $0xc0] ss:$8 sps:$4 sm:$0xff]  }
  0x17   :  { %677 = vmatprep.subr.bf16.mxu0 %v2757_v0  ;;  %2611 = vmatprep.subr.bf16.mxu1 %v2757_v0  ;;  %v2752_v4 = vld [vmem:[%s4192_s0 + $0x1f0] ss:$8 sps:$4 sm:$0xff]   ;;  %v2699_v5 = vld [vmem:[%s4192_s0 + $0xd4] ss:$8 sps:$4 sm:$0xff]   ;;  %v2705_v7 = vld [vmem:[%s4192_s0 + $0xe4] ss:$8 sps:$4 sm:$0xff]  }
  0x18   :  { %v2701_v6 = vld [vmem:[%s4192_s0 + $0xd0] ss:$8 sps:$4 sm:$0xff]   ;;  %v2719_v12 = vld [vmem:[%s4192_s0 + $0x100] ss:$8 sps:$4 sm:$0xff]  }
  0x1a   :  { %678 = vmatpush1.bf16.msra.mxu0 %v2647_v8  ;;  %2627 = vmatpush1.bf16.msra.mxu1 %v2647_v8  ;;  %v2707_v8 = vld [vmem:[%s4192_s0 + $0xe0] ss:$8 sps:$4 sm:$0xff]  }
  0x1b   :  { %679 = vmatprep.subr.bf16.mxu0 %v2757_v0  ;;  %2612 = vmatprep.subr.bf16.mxu1 %v2757_v0 }
  0x1e   :  { %680 = vmatpush1.bf16.msra.mxu0 %v2648_v9  ;;  %2628 = vmatpush1.bf16.msra.mxu1 %v2648_v9  ;;  %v2711_v9 = vld [vmem:[%s4192_s0 + $0xf4] ss:$8 sps:$4 sm:$0xff]  }
  0x1f   :  { %681 = vmatprep.subr.bf16.mxu0 %v2757_v0  ;;  %2613 = vmatprep.subr.bf16.mxu1 %v2757_v0 }
  0x22   :  { %682 = vmatpush1.bf16.msra.mxu0 %v2649_v10  ;;  %2629 = vmatpush1.bf16.msra.mxu1 %v2649_v10  ;;  %v2713_v10 = vld [vmem:[%s4192_s0 + $0xf0] ss:$8 sps:$4 sm:$0xff]  }
  0x23   :  { %683 = vmatprep.subr.bf16.mxu0 %v2757_v0  ;;  %2614 = vmatprep.subr.bf16.mxu1 %v2757_v0 }
  0x26   :  { %684 = vmatpush1.bf16.msra.mxu0 %v2650_v11  ;;  %2630 = vmatpush1.bf16.msra.mxu1 %v2650_v11  ;;  %v2717_v11 = vld [vmem:[%s4192_s0 + $0x104] ss:$8 sps:$4 sm:$0xff]  }
  0x27   :  { %685 = vmatprep.subr.bf16.mxu0 %v2757_v0  ;;  %2615 = vmatprep.subr.bf16.mxu1 %v2757_v0 }
  0x2a   :  { %686 = vmatpush1.bf16.msra.mxu0 %v2651_v13  ;;  %2631 = vmatpush1.bf16.msra.mxu1 %v2651_v13  ;;  %v2723_v13 = vld [vmem:[%s4192_s0 + $0x114] ss:$8 sps:$4 sm:$0xff]  }
  0x2b   :  { %687 = vmatprep.subr.bf16.mxu0 %v2757_v0  ;;  %2616 = vmatprep.subr.bf16.mxu1 %v2757_v0 }
  0x2e   :  { %688 = vmatpush1.bf16.msra.mxu0 %v2652_v14  ;;  %2632 = vmatpush1.bf16.msra.mxu1 %v2652_v14  ;;  %v2725_v14 = vld [vmem:[%s4192_s0 + $0x110] ss:$8 sps:$4 sm:$0xff]  }
  0x2f   :  { %689 = vmatprep.subr.bf16.mxu0 %v2757_v0  ;;  %2617 = vmatprep.subr.bf16.mxu1 %v2757_v0 }
  0x32   :  { %690 = vmatpush1.bf16.msra.mxu0 %v2653_v15  ;;  %2633 = vmatpush1.bf16.msra.mxu1 %v2653_v15  ;;  %v2729_v15 = vld [vmem:[%s4192_s0 + $0x124] ss:$8 sps:$4 sm:$0xff]  }
  0x33   :  { %691 = vmatprep.subr.bf16.mxu0 %v2757_v0  ;;  %2618 = vmatprep.subr.bf16.mxu1 %v2757_v0 }
  0x36   :  { %692 = vmatpush1.bf16.msra.mxu0 %v2654_v16  ;;  %2634 = vmatpush1.bf16.msra.mxu1 %v2654_v16  ;;  %v2731_v16 = vld [vmem:[%s4192_s0 + $0x120] ss:$8 sps:$4 sm:$0xff]  }
  0x37   :  { %693 = vmatprep.subr.bf16.mxu0 %v2757_v0  ;;  %2619 = vmatprep.subr.bf16.mxu1 %v2757_v0 }
  0x3a   :  { %694 = vmatpush1.bf16.msra.mxu0 %v2655_v17  ;;  %2635 = vmatpush1.bf16.msra.mxu1 %v2655_v17  ;;  %v4198_v17 = vmov 0.0|0.0  }
  0x3b   :  { %695 = vmatprep.subr.bf16.mxu0 %v2757_v0  ;;  %2620 = vmatprep.subr.bf16.mxu1 %v2757_v0  ;;  %v2749_v0 = vld [vmem:[%s4192_s0 + $0x1e0] ss:$8 sps:$4 sm:$0xff]  }
  0x3e   :  { %696 = vmatpush1.bf16.msra.mxu0 %v2656_v18  ;;  %2636 = vmatpush1.bf16.msra.mxu1 %v2656_v18  ;;  %v1351_v18 = vld [vmem:[%s4193_s2] sm:$0xff] }
  0x3f   :  { %2557 = vmatprep.subr.bf16.mxu1 %v4198_v17 }
  0x41   :  { %698 = vmatmul.mubr.bf16.vlgmr.msra.gmra.mrb[0].mxu0 %v2657_v19  ;;  %850 = vmatmul.mubr.bf16.vlgmr.msra.gmra.mrb[0].mxu1 %v2696_v20  ;;  %v1352_v19 = vld [vmem:[%s4193_s2 + $0x8] sm:$0xff] }
  0x42   :  { %705 = vmatprep.mubr.bf16.mxu0 %v2660_v21  ;;  %857 = vmatprep.mubr.bf16.mxu1 %v2702_v22  ;;  %v3070_v20 = vpack.c.bf16 %v1352_v19, %v1351_v18  ;;  %v1353_v21 = vld [vmem:[%s4193_s2 + $0x10] sm:$0xff]  ;;  %v1354_v22 = vld [vmem:[%s4193_s2 + $0x18] sm:$0xff] }
  0x44   :  { %2559 = vmatpush3.bf16.msra.mxu1 %v3070_v20 }
  0x45   :  { %2560 = vmatprep.subr.bf16.mxu1 %v4198_v17 }
  0x49   :  { %706 = vmatmul.mubr.bf16.gmra.mrb[4].mxu0 %v2662_v23  ;;  %858 = vmatmul.mubr.bf16.gmra.mrb[4].mxu1 %v2704_v24  ;;  %v3080_v23 = vpack.c.bf16 %v1354_v22, %v1353_v21 }
  0x4a   :  { %713 = vmatprep.mubr.bf16.mxu0 %v2663_v25  ;;  %865 = vmatprep.mubr.bf16.mxu1 %v2708_v26 }
  0x4b   :  { %2562 = vmatpush3.bf16.msra.mxu1 %v3080_v23 }
  0x4c   :  { %2563 = vmatprep.subr.bf16.mxu1 %v4198_v17 }
  0x51   :  { %714 = vmatmul.mubr.bf16.gmra.mrb[8].mxu0 %v2665_v27  ;;  %866 = vmatmul.mubr.bf16.gmra.mrb[8].mxu1 %v2710_v28 }
  0x52   :  { %721 = vmatprep.mubr.bf16.mxu0 %v2666_v29  ;;  %873 = vmatprep.mubr.bf16.mxu1 %v2714_v30 }
  0x59   :  { %722 = vmatmul.mubr.bf16.gmra.mrb[12].mxu0 %v2668_v31  ;;  %874 = vmatmul.mubr.bf16.gmra.mrb[12].mxu1 %v2716_v32 }
  0x5a   :  { %729 = vmatprep.mubr.bf16.mxu0 %v2669_v33  ;;  %881 = vmatprep.mubr.bf16.mxu1 %v2720_v34 }
  0x61   :  { %730 = vmatmul.mubr.bf16.gmra.mrb[16].mxu0 %v2671_v35  ;;  %882 = vmatmul.mubr.bf16.gmra.mrb[16].mxu1 %v2722_v36  ;;  %v1355_v36 = vld [vmem:[%s4193_s2 + $0x20] sm:$0xff] }
  0x62   :  { %737 = vmatprep.mubr.bf16.mxu0 %v2672_v37  ;;  %889 = vmatprep.mubr.bf16.mxu1 %v2726_v38  ;;  %v1356_v37 = vld [vmem:[%s4193_s2 + $0x28] sm:$0xff] }
  0x63   :  { %v3104_v38 = vpack.c.bf16 %v1356_v37, %v1355_v36 }
  0x65   :  { %2565 = vmatpush3.bf16.msra.mxu1 %v3104_v38 }
  0x66   :  { %2566 = vmatprep.subr.bf16.mxu1 %v4198_v17 }
  0x69   :  { %738 = vmatmul.mubr.bf16.gmra.mrb[20].mxu0 %v2674_v39  ;;  %890 = vmatmul.mubr.bf16.gmra.mrb[20].mxu1 %v2728_v40 }
  0x6a   :  { %745 = vmatprep.mubr.bf16.mxu0 %v2675_v41  ;;  %897 = vmatprep.mubr.bf16.mxu1 %v2732_v42 }
  0x71   :  { %746 = vmatmul.mubr.bf16.gmra.mrb[24].mxu0 %v2677_v43  ;;  %898 = vmatmul.mubr.bf16.gmra.mrb[24].mxu1 %v2734_v44 }
  0x72   :  { %753 = vmatprep.mubr.bf16.mxu0 %v2678_v45  ;;  %905 = vmatprep.mubr.bf16.mxu1 %v2735_v46 }
  0x79   :  { %754 = vmatmul.mubr.bf16.gmra.mrb[28].mxu0 %v2680_v47  ;;  %906 = vmatmul.mubr.bf16.gmra.mrb[28].mxu1 %v2737_v48 }
  0x7a   :  { %761 = vmatprep.mubr.bf16.mxu0 %v2681_v49  ;;  %913 = vmatprep.mubr.bf16.mxu1 %v2738_v50 }
  0x81   :  { %762 = vmatmul.mubr.bf16.gmra.mrb[32].mxu0 %v2683_v51  ;;  %914 = vmatmul.mubr.bf16.gmra.mrb[32].mxu1 %v2740_v52 }
  0x82   :  { %769 = vmatprep.mubr.bf16.mxu0 %v2684_v53  ;;  %921 = vmatprep.mubr.bf16.mxu1 %v2741_v54 }
  0x89   :  { %770 = vmatmul.mubr.bf16.gmra.mrb[36].mxu0 %v2686_v55  ;;  %922 = vmatmul.mubr.bf16.gmra.mrb[36].mxu1 %v2743_v56 }
  0x8a   :  { %777 = vmatprep.mubr.bf16.mxu0 %v2687_v57  ;;  %929 = vmatprep.mubr.bf16.mxu1 %v2744_v58 }
  0x91   :  { %778 = vmatmul.mubr.bf16.gmra.mrb[40].mxu0 %v2689_v59  ;;  %930 = vmatmul.mubr.bf16.gmra.mrb[40].mxu1 %v2746_v60 }
  0x92   :  { %785 = vmatprep.mubr.bf16.mxu0 %v2690_v61  ;;  %937 = vmatprep.mubr.bf16.mxu1 %v2747_v62 }
  0x99   :  { %786 = vmatmul.mubr.bf16.gmra.mrb[44].mxu0 %v2692_v63  ;;  %938 = vmatmul.mubr.bf16.gmra.mrb[44].mxu1 %v2749_v0 }
  0x9a   :  { %793 = vmatprep.mubr.bf16.mxu0 %v2693_v1  ;;  %945 = vmatprep.mubr.bf16.mxu1 %v2750_v2 }
  0xa1   :  { %794 = vmatmul.mubr.bf16.gmra.mrb[48].mxu0 %v2695_v3  ;;  %946 = vmatmul.mubr.bf16.gmra.mrb[48].mxu1 %v2752_v4 }
  0xa2   :  { %801 = vmatprep.mubr.bf16.mxu0 %v2699_v5 }
  0xa9   :  { %802 = vmatmul.mubr.bf16.gmra.mrb[52].mxu0 %v2701_v6 }
  0xaa   :  { %809 = vmatprep.mubr.bf16.mxu0 %v2705_v7 }
  0xb1   :  { %810 = vmatmul.mubr.bf16.gmra.mrb[56].mxu0 %v2707_v8 }
  0xb2   :  { %817 = vmatprep.mubr.bf16.mxu0 %v2711_v9 }
  0xb9   :  { %818 = vmatmul.mubr.bf16.gmra.mrb[60].mxu0 %v2713_v10 }
  0xba   :  { %825 = vmatprep.mubr.bf16.mxu0 %v2717_v11 }
  0xc1   :  { %826 = vmatmul.mubr.bf16.gmra.mrb[64].mxu0 %v2719_v12 }
  0xc2   :  { %833 = vmatprep.mubr.bf16.mxu0 %v2723_v13 }
  0xc9   :  { %834 = vmatmul.mubr.bf16.gmra.mrb[68].mxu0 %v2725_v14 }
  0xca   :  { %841 = vmatprep.mubr.bf16.mxu0 %v2729_v15 }
  0xd1   :  { %842 = vmatmul.mubr.bf16.gmra.mrb[72].mxu0 %v2731_v16 }
 0x114   :  { %v3082_v24 = vpop.f32.mrb[0].mxu0  ;;  %v3084_v25 = vpop.f32.mrb[0].mxu1 }
 0x115   :  { %v701_v26 = vpop.f32.mrb[1].mxu0  ;;  %v853_v27 = vpop.f32.mrb[1].mxu1  ;;  %v1218_v30 = vmul.f32 %v3082_v24, %v3082_v24 }
 0x116   :  { %v3088_v28 = vpop.f32.mrb[2].mxu0  ;;  %v3090_v29 = vpop.f32.mrb[2].mxu1 }
 0x117   :  { %v1149_v31 = vadd.f32 %v3088_v28, %v3082_v24  ;;  %v1219_v32 = vmul.f32 %v3088_v28, %v3088_v28  ;;  %v704_v33 = vpop.f32.mrb[3].mxu0  ;;  %v856_v34 = vpop.f32.mrb[3].mxu1 }
 0x119   :  { %v1282_v35 = vadd.f32 %v1219_v32, %v1218_v30 }
 0x11c   :  { %v3106_v39 = vpop.f32.mrb[4].mxu0  ;;  %v3108_v40 = vpop.f32.mrb[4].mxu1 }
 0x11d   :  { %v1150_v41 = vadd.f32 %v1149_v31, %v3106_v39  ;;  %v1220_v42 = vmul.f32 %v3106_v39, %v3106_v39  ;;  %v709_v43 = vpop.f32.mrb[5].mxu0  ;;  %v861_v44 = vpop.f32.mrb[5].mxu1 }
 0x11e   :  { %v3115_v45 = vpop.f32.mrb[6].mxu0  ;;  %v3117_v46 = vpop.f32.mrb[6].mxu1 }
 0x11f   :  { %v1283_v47 = vadd.f32 %v1282_v35, %v1220_v42  ;;  %v1151_v48 = vadd.f32 %v1150_v41, %v3115_v45  ;;  %v1221_v49 = vmul.f32 %v3115_v45, %v3115_v45  ;;  %v712_v50 = vpop.f32.mrb[7].mxu0  ;;  %v864_v51 = vpop.f32.mrb[7].mxu1 }
 0x121   :  { %v1284_v52 = vadd.f32 %v1283_v47, %v1221_v49 }
 0x124   :  { %v3122_v53 = vpop.f32.mrb[8].mxu0  ;;  %v3124_v54 = vpop.f32.mrb[8].mxu1 }
 0x125   :  { %v1152_v55 = vadd.f32 %v1151_v48, %v3122_v53  ;;  %v1222_v56 = vmul.f32 %v3122_v53, %v3122_v53  ;;  %v717_v57 = vpop.f32.mrb[9].mxu0  ;;  %v869_v58 = vpop.f32.mrb[9].mxu1 }
 0x126   :  { %v3129_v59 = vpop.f32.mrb[10].mxu0  ;;  %v3131_v60 = vpop.f32.mrb[10].mxu1 }
 0x127   :  { %v1285_v61 = vadd.f32 %v1284_v52, %v1222_v56  ;;  %v1153_v62 = vadd.f32 %v1152_v55, %v3129_v59  ;;  %v1223_v63 = vmul.f32 %v3129_v59, %v3129_v59  ;;  %v720_v0 = vpop.f32.mrb[11].mxu0  ;;  %v872_v1 = vpop.f32.mrb[11].mxu1 }
 0x129   :  { %v1286_v2 = vadd.f32 %v1285_v61, %v1223_v63 }
 0x12c   :  { %v3136_v3 = vpop.f32.mrb[12].mxu0  ;;  %v3138_v4 = vpop.f32.mrb[12].mxu1 }
 0x12d   :  { %v1154_v5 = vadd.f32 %v1153_v62, %v3136_v3  ;;  %v1224_v6 = vmul.f32 %v3136_v3, %v3136_v3  ;;  %v725_v7 = vpop.f32.mrb[13].mxu0  ;;  %v877_v8 = vpop.f32.mrb[13].mxu1 }
 0x12e   :  { %v3143_v9 = vpop.f32.mrb[14].mxu0  ;;  %v3145_v10 = vpop.f32.mrb[14].mxu1 }
 0x12f   :  { %v1287_v11 = vadd.f32 %v1286_v2, %v1224_v6  ;;  %v1155_v12 = vadd.f32 %v1154_v5, %v3143_v9  ;;  %v1225_v13 = vmul.f32 %v3143_v9, %v3143_v9  ;;  %v728_v14 = vpop.f32.mrb[15].mxu0  ;;  %v880_v15 = vpop.f32.mrb[15].mxu1  ;;  %v1357_v5 = vld [vmem:[%s4193_s2 + $0x30] sm:$0xff]  ;;  %v1358_v6 = vld [vmem:[%s4193_s2 + $0x38] sm:$0xff] }
 0x131   :  { %v1288_v16 = vadd.f32 %v1287_v11, %v1225_v13  ;;  %v3195_v11 = vpack.c.bf16 %v1358_v6, %v1357_v5 }
 0x133   :  { %2568 = vmatpush3.bf16.msra.mxu1 %v3195_v11 }
 0x134   :  { %v3150_v18 = vpop.f32.mrb[16].mxu0  ;;  %v3152_v19 = vpop.f32.mrb[16].mxu1  ;;  %2569 = vmatprep.subr.bf16.mxu1 %v4198_v17 }
 0x135   :  { %v1156_v21 = vadd.f32 %v1155_v12, %v3150_v18  ;;  %v1226_v22 = vmul.f32 %v3150_v18, %v3150_v18  ;;  %v733_v26 = vpop.f32.mrb[17].mxu0  ;;  %v885_v27 = vpop.f32.mrb[17].mxu1 }
 0x136   :  { %v3157_v30 = vpop.f32.mrb[18].mxu0  ;;  %v3159_v31 = vpop.f32.mrb[18].mxu1  ;;  %v1360_v26 = vld [vmem:[%s4193_s2 + $0x48] sm:$0xff] }
 0x137   :  { %v1289_v32 = vadd.f32 %v1288_v16, %v1226_v22  ;;  %v1157_v33 = vadd.f32 %v1156_v21, %v3157_v30  ;;  %v1227_v34 = vmul.f32 %v3157_v30, %v3157_v30  ;;  %v736_v35 = vpop.f32.mrb[19].mxu0  ;;  %v888_v36 = vpop.f32.mrb[19].mxu1  ;;  %v1359_v22 = vld [vmem:[%s4193_s2 + $0x40] sm:$0xff] }
 0x139   :  { %v1290_v37 = vadd.f32 %v1289_v32, %v1227_v34 }
 0x13c   :  { %v3164_v41 = vpop.f32.mrb[20].mxu0  ;;  %v3166_v42 = vpop.f32.mrb[20].mxu1 }
 0x13d   :  { %v1158_v43 = vadd.f32 %v1157_v33, %v3164_v41  ;;  %v1228_v44 = vmul.f32 %v3164_v41, %v3164_v41  ;;  %v741_v47 = vpop.f32.mrb[21].mxu0  ;;  %v893_v48 = vpop.f32.mrb[21].mxu1  ;;  %v3212_v33 = vpack.c.bf16 %v1360_v26, %v1359_v22 }
 0x13e   :  { %v3171_v49 = vpop.f32.mrb[22].mxu0  ;;  %v3173_v50 = vpop.f32.mrb[22].mxu1 }
 0x13f   :  { %v1291_v51 = vadd.f32 %v1290_v37, %v1228_v44  ;;  %v1159_v52 = vadd.f32 %v1158_v43, %v3171_v49  ;;  %v1229_v55 = vmul.f32 %v3171_v49, %v3171_v49  ;;  %v744_v56 = vpop.f32.mrb[23].mxu0  ;;  %v896_v57 = vpop.f32.mrb[23].mxu1  ;;  %2571 = vmatpush3.bf16.msra.mxu1 %v3212_v33 }
 0x140   :  { %2572 = vmatprep.subr.bf16.mxu1 %v4198_v17  ;;  %v1361_v57 = vld [vmem:[%s4193_s2 + $0x50] sm:$0xff] }
 0x141   :  { %v1292_v58 = vadd.f32 %v1291_v51, %v1229_v55 }
 0x144   :  { %v3178_v61 = vpop.f32.mrb[24].mxu0  ;;  %v3180_v62 = vpop.f32.mrb[24].mxu1 }
 0x145   :  { %v1160_v63 = vadd.f32 %v1159_v52, %v3178_v61  ;;  %v1230_v0 = vmul.f32 %v3178_v61, %v3178_v61  ;;  %v749_v1 = vpop.f32.mrb[25].mxu0  ;;  %v901_v2 = vpop.f32.mrb[25].mxu1 }
 0x146   :  { %v3191_v7 = vpop.f32.mrb[26].mxu0  ;;  %v3193_v8 = vpop.f32.mrb[26].mxu1 }
 0x147   :  { %v1293_v12 = vadd.f32 %v1292_v58, %v1230_v0  ;;  %v1161_v13 = vadd.f32 %v1160_v63, %v3191_v7  ;;  %v1231_v14 = vmul.f32 %v3191_v7, %v3191_v7  ;;  %v752_v15 = vpop.f32.mrb[27].mxu0  ;;  %v904_v16 = vpop.f32.mrb[27].mxu1  ;;  %v1362_v58 = vld [vmem:[%s4193_s2 + $0x58] sm:$0xff] }
 0x148   :  { %v3232_v63 = vpack.c.bf16 %v1362_v58, %v1361_v57 }
 0x149   :  { %v1294_v21 = vadd.f32 %v1293_v12, %v1231_v14 }
 0x14a   :  { %2574 = vmatpush3.bf16.msra.mxu1 %v3232_v63 }
 0x14b   :  { %2575 = vmatprep.subr.bf16.mxu1 %v4198_v17 }
 0x14c   :  { %v3208_v27 = vpop.f32.mrb[28].mxu0  ;;  %v3210_v32 = vpop.f32.mrb[28].mxu1 }
 0x14d   :  { %4231 = vst [vmem:[#allocation3_spill] sm:$0xff] %v3208_v27  ;;  %v1162_v34 = vadd.f32 %v1161_v13, %v3208_v27  ;;  %v1232_v35 = vmul.f32 %v3208_v27, %v3208_v27  ;;  %v757_v36 = vpop.f32.mrb[29].mxu0  ;;  %v909_v37 = vpop.f32.mrb[29].mxu1 }
 0x14e   :  { %v3217_v43 = vpop.f32.mrb[30].mxu0  ;;  %v3219_v44 = vpop.f32.mrb[30].mxu1  ;;  %v1364_v36 = vld [vmem:[%s4193_s2 + $0x68] sm:$0xff] }
 0x14f   :  { %4232 = vst [vmem:[#allocation4_spill] sm:$0xff] %v3217_v43  ;;  %v1295_v47 = vadd.f32 %v1294_v21, %v1232_v35  ;;  %v1163_v48 = vadd.f32 %v1162_v34, %v3217_v43  ;;  %v1233_v51 = vmul.f32 %v3217_v43, %v3217_v43  ;;  %v760_v52 = vpop.f32.mrb[31].mxu0  ;;  %v912_v55 = vpop.f32.mrb[31].mxu1  ;;  %v1363_v35 = vld [vmem:[%s4193_s2 + $0x60] sm:$0xff] }
 0x150   :  { %v3256_v37 = vpack.c.bf16 %v1364_v36, %v1363_v35 }
 0x151   :  { %v1296_v56 = vadd.f32 %v1295_v47, %v1233_v51 }
 0x152   :  { %2577 = vmatpush3.bf16.msra.mxu1 %v3256_v37 }
 0x153   :  { %2578 = vmatprep.subr.bf16.mxu1 %v4198_v17 }
 0x154   :  { %v3234_v0 = vpop.f32.mrb[32].mxu0  ;;  %v3236_v1 = vpop.f32.mrb[32].mxu1 }
 0x155   :  { %4233 = vst [vmem:[#allocation5_spill] sm:$0xff] %v3234_v0  ;;  %v1164_v2 = vadd.f32 %v1163_v48, %v3234_v0  ;;  %v1234_v5 = vmul.f32 %v3234_v0, %v3234_v0  ;;  %v765_v6 = vpop.f32.mrb[33].mxu0  ;;  %v917_v12 = vpop.f32.mrb[33].mxu1 }
 0x156   :  { %v3243_v13 = vpop.f32.mrb[34].mxu0  ;;  %v3245_v14 = vpop.f32.mrb[34].mxu1 }
 0x157   :  { %4234 = vst [vmem:[#allocation6_spill] sm:$0xff] %v3243_v13  ;;  %v1297_v15 = vadd.f32 %v1296_v56, %v1234_v5  ;;  %v1165_v16 = vadd.f32 %v1164_v2, %v3243_v13  ;;  %v1235_v21 = vmul.f32 %v3243_v13, %v3243_v13  ;;  %v768_v22 = vpop.f32.mrb[35].mxu0  ;;  %v920_v26 = vpop.f32.mrb[35].mxu1 }
 0x158   :  { %v1366_v22 = vld [vmem:[%s4193_s2 + $0x78] sm:$0xff] }
 0x159   :  { %v1298_v34 = vadd.f32 %v1297_v15, %v1235_v21  ;;  %v1365_v21 = vld [vmem:[%s4193_s2 + $0x70] sm:$0xff] }
 0x15a   :  { %v3280_v26 = vpack.c.bf16 %v1366_v22, %v1365_v21 }
 0x15c   :  { %v3258_v47 = vpop.f32.mrb[36].mxu0  ;;  %v3260_v48 = vpop.f32.mrb[36].mxu1  ;;  %2580 = vmatpush3.bf16.msra.mxu1 %v3280_v26 }
 0x15d   :  { %4235 = vst [vmem:[#allocation7_spill] sm:$0xff] %v3258_v47  ;;  %v1166_v51 = vadd.f32 %v1165_v16, %v3258_v47  ;;  %v1236_v52 = vmul.f32 %v3258_v47, %v3258_v47  ;;  %v773_v55 = vpop.f32.mrb[37].mxu0  ;;  %v925_v56 = vpop.f32.mrb[37].mxu1  ;;  %2581 = vmatprep.subr.bf16.mxu1 %v4198_v17 }
 0x15e   :  { %v3267_v57 = vpop.f32.mrb[38].mxu0  ;;  %v3269_v58 = vpop.f32.mrb[38].mxu1 }
 0x15f   :  { %4236 = vst [vmem:[#allocation8_spill] sm:$0xff] %v3267_v57  ;;  %v1299_v2 = vadd.f32 %v1298_v34, %v1236_v52  ;;  %v1167_v5 = vadd.f32 %v1166_v51, %v3267_v57  ;;  %v1237_v6 = vmul.f32 %v3267_v57, %v3267_v57  ;;  %v776_v12 = vpop.f32.mrb[39].mxu0  ;;  %v928_v15 = vpop.f32.mrb[39].mxu1 }
 0x161   :  { %v1300_v16 = vadd.f32 %v1299_v2, %v1237_v6 }
 0x164   :  { %v3282_v35 = vpop.f32.mrb[40].mxu0  ;;  %v3284_v34 = vpop.f32.mrb[40].mxu1 }
 0x165   :  { %4237 = vst [vmem:[#allocation9_spill] sm:$0xff] %v3282_v35  ;;  %v1168_v36 = vadd.f32 %v1167_v5, %v3282_v35  ;;  %v1238_v51 = vmul.f32 %v3282_v35, %v3282_v35  ;;  %v781_v52 = vpop.f32.mrb[41].mxu0  ;;  %v933_v55 = vpop.f32.mrb[41].mxu1 }
 0x166   :  { %v3290_v56 = vpop.f32.mrb[42].mxu0  ;;  %v3292_v2 = vpop.f32.mrb[42].mxu1  ;;  %v4201_v52 = vmov 0.0  }
 0x167   :  { %4238 = vst [vmem:[#allocation10_spill] sm:$0xff] %v3290_v56  ;;  %v1301_v6 = vadd.f32 %v1300_v16, %v1238_v51  ;;  %v1169_v12 = vadd.f32 %v1168_v36, %v3290_v56  ;;  %v1239_v15 = vmul.f32 %v3290_v56, %v3290_v56  ;;  %v784_v5 = vpop.f32.mrb[43].mxu0  ;;  %v936_v21 = vpop.f32.mrb[43].mxu1  ;;  %2519 = vmatprep.mubr.msk.f32.mxu1 %vm2759_vm0, %v4201_v52 }
 0x169   :  { %v1302_v22 = vadd.f32 %v1301_v6, %v1239_v15 }
 0x16c   :  { %v3300_v55 = vpop.f32.mrb[44].mxu0  ;;  %v3302_v35 = vpop.f32.mrb[44].mxu1 }
 0x16d   :  { %4239 = vst [vmem:[#allocation11_spill] sm:$0xff] %v3300_v55  ;;  %4240 = vst [vmem:[#allocation12_spill] sm:$0xff] %v3302_v35  ;;  %v1170_v17 = vadd.f32 %v1169_v12, %v3300_v55  ;;  %v1240_v16 = vmul.f32 %v3300_v55, %v3300_v55  ;;  %v789_v36 = vpop.f32.mrb[45].mxu0  ;;  %v941_v51 = vpop.f32.mrb[45].mxu1 }
 0x16e   :  { %v3307_v56 = vpop.f32.mrb[46].mxu0  ;;  %v3309_v5 = vpop.f32.mrb[46].mxu1 }
 0x16f   :  { %4241 = vst [vmem:[#allocation13_spill] sm:$0xff] %v3307_v56  ;;  %4242 = vst [vmem:[#allocation14_spill] sm:$0xff] %v3309_v5  ;;  %v1303_v6 = vadd.f32 %v1302_v22, %v1240_v16  ;;  %v1171_v15 = vadd.f32 %v1170_v17, %v3307_v56  ;;  %v1241_v21 = vmul.f32 %v3307_v56, %v3307_v56  ;;  %v792_v52 = vpop.f32.mrb[47].mxu0  ;;  %v944_v57 = vpop.f32.mrb[47].mxu1 }
 0x171   :  { %v1304_v47 = vadd.f32 %v1303_v6, %v1241_v21 }
 0x174   :  { %v3314_v13 = vpop.f32.mrb[48].mxu0  ;;  %v3316_v12 = vpop.f32.mrb[48].mxu1 }
 0x175   :  { %4243 = vst [vmem:[#allocation15_spill] sm:$0xff] %v3314_v13  ;;  %v1172_v36 = vadd.f32 %v1171_v15, %v3314_v13  ;;  %v1242_v51 = vmul.f32 %v3314_v13, %v3314_v13  ;;  %v797_v55 = vpop.f32.mrb[49].mxu0  ;;  %v949_v0 = vpop.f32.mrb[49].mxu1 }
 0x176   :  { %v3321_v22 = vpop.f32.mrb[50].mxu0  ;;  %v3323_v17 = vpop.f32.mrb[50].mxu1 }
 0x177   :  { %v1305_v16 = vadd.f32 %v1304_v47, %v1242_v51  ;;  %v1173_v52 = vadd.f32 %v1172_v36, %v3321_v22  ;;  %v1243_v57 = vmul.f32 %v3321_v22, %v3321_v22  ;;  %v800_v6 = vpop.f32.mrb[51].mxu0  ;;  %v952_v21 = vpop.f32.mrb[51].mxu1 }
 0x179   :  { %v1306_v56 = vadd.f32 %v1305_v16, %v1243_v57 }
 0x17c   :  { %v3328_v43 = vpop.f32.mrb[52].mxu0 }
 0x17d   :  { %4244 = vst [vmem:[#allocation16_spill] sm:$0xff] %v3328_v43  ;;  %v1174_v15 = vadd.f32 %v1173_v52, %v3328_v43  ;;  %v1244_v0 = vmul.f32 %v3328_v43, %v3328_v43  ;;  %v805_v55 = vpop.f32.mrb[53].mxu0 }
 0x17e   :  { %v3333_v13 = vpop.f32.mrb[54].mxu0 }
 0x17f   :  { %4245 = vst [vmem:[#allocation17_spill] sm:$0xff] %v3333_v13  ;;  %v1307_v27 = vadd.f32 %v1306_v56, %v1244_v0  ;;  %v1175_v47 = vadd.f32 %v1174_v15, %v3333_v13  ;;  %v1245_v36 = vmul.f32 %v3333_v13, %v3333_v13  ;;  %v808_v51 = vpop.f32.mrb[55].mxu0 }
 0x181   :  { %v1308_v6 = vadd.f32 %v1307_v27, %v1245_v36 }
 0x184   :  { %v3338_v21 = vpop.f32.mrb[56].mxu0 }
 0x185   :  { %4246 = vst [vmem:[#allocation18_spill] sm:$0xff] %v3338_v21  ;;  %v1176_v16 = vadd.f32 %v1175_v47, %v3338_v21  ;;  %v1246_v52 = vmul.f32 %v3338_v21, %v3338_v21  ;;  %v813_v57 = vpop.f32.mrb[57].mxu0 }
 0x186   :  { %v3343_v43 = vpop.f32.mrb[58].mxu0 }
 0x187   :  { %4247 = vst [vmem:[#allocation19_spill] sm:$0xff] %v3343_v43  ;;  %v1309_v55 = vadd.f32 %v1308_v6, %v1246_v52  ;;  %v1177_v56 = vadd.f32 %v1176_v16, %v3343_v43  ;;  %v1247_v15 = vmul.f32 %v3343_v43, %v3343_v43  ;;  %v816_v0 = vpop.f32.mrb[59].mxu0 }
 0x189   :  { %v1310_v13 = vadd.f32 %v1309_v55, %v1247_v15 }
 0x18c   :  { %v3348_v51 = vpop.f32.mrb[60].mxu0 }
 0x18d   :  { %4248 = vst [vmem:[#allocation20_spill] sm:$0xff] %v3348_v51  ;;  %v1178_v27 = vadd.f32 %v1177_v56, %v3348_v51  ;;  %v1248_v47 = vmul.f32 %v3348_v51, %v3348_v51  ;;  %v821_v36 = vpop.f32.mrb[61].mxu0 }
 0x18e   :  { %v3353_v21 = vpop.f32.mrb[62].mxu0 }
 0x18f   :  { %4249 = vst [vmem:[#allocation21_spill] sm:$0xff] %v3353_v21  ;;  %v1311_v57 = vadd.f32 %v1310_v13, %v1248_v47  ;;  %v1179_v6 = vadd.f32 %v1178_v27, %v3353_v21  ;;  %v1249_v16 = vmul.f32 %v3353_v21, %v3353_v21  ;;  %v824_v52 = vpop.f32.mrb[63].mxu0 }
 0x191   :  { %v1312_v43 = vadd.f32 %v1311_v57, %v1249_v16 }
 0x194   :  { %v3358_v0 = vpop.f32.mrb[64].mxu0 }
 0x195   :  { %4250 = vst [vmem:[#allocation22_spill] sm:$0xff] %v3358_v0  ;;  %v1180_v55 = vadd.f32 %v1179_v6, %v3358_v0  ;;  %v1250_v56 = vmul.f32 %v3358_v0, %v3358_v0  ;;  %v829_v15 = vpop.f32.mrb[65].mxu0 }
 0x196   :  { %v3363_v51 = vpop.f32.mrb[66].mxu0 }
 0x197   :  { %4251 = vst [vmem:[#allocation23_spill] sm:$0xff] %v3363_v51  ;;  %v1313_v36 = vadd.f32 %v1312_v43, %v1250_v56  ;;  %v1181_v13 = vadd.f32 %v1180_v55, %v3363_v51  ;;  %v1251_v27 = vmul.f32 %v3363_v51, %v3363_v51  ;;  %v832_v47 = vpop.f32.mrb[67].mxu0 }
 0x199   :  { %v1314_v21 = vadd.f32 %v1313_v36, %v1251_v27 }
 0x19c   :  { %v3368_v52 = vpop.f32.mrb[68].mxu0 }
 0x19d   :  { %4252 = vst [vmem:[#allocation24_spill] sm:$0xff] %v3368_v52  ;;  %v1182_v57 = vadd.f32 %v1181_v13, %v3368_v52  ;;  %v1252_v6 = vmul.f32 %v3368_v52, %v3368_v52  ;;  %v837_v16 = vpop.f32.mrb[69].mxu0 }
 0x19e   :  { %v3373_v0 = vpop.f32.mrb[70].mxu0 }
 0x19f   :  { %4253 = vst [vmem:[#allocation25_spill] sm:$0xff] %v3373_v0  ;;  %v1315_v15 = vadd.f32 %v1314_v21, %v1252_v6  ;;  %v1183_v43 = vadd.f32 %v1182_v57, %v3373_v0  ;;  %v1253_v55 = vmul.f32 %v3373_v0, %v3373_v0  ;;  %v840_v56 = vpop.f32.mrb[71].mxu0 }
 0x1a1   :  { %v1316_v51 = vadd.f32 %v1315_v15, %v1253_v55  ;;  %v1256_v15 = vmul.f32 %v3084_v25, %v3084_v25 }
 0x1a4   :  { %v3378_v47 = vpop.f32.mrb[72].mxu0 }
 0x1a5   :  { %4254 = vst [vmem:[#allocation26_spill] sm:$0xff] %v3378_v47  ;;  %v1184_v36 = vadd.f32 %v1183_v43, %v3378_v47  ;;  %v1254_v13 = vmul.f32 %v3378_v47, %v3378_v47  ;;  %v845_v27 = vpop.f32.mrb[73].mxu0  ;;  %v1257_v43 = vmul.f32 %v3090_v29, %v3090_v29 }
 0x1a6   :  { %v3383_v52 = vpop.f32.mrb[74].mxu0 }
 0x1a7   :  { %4255 = vst [vmem:[#allocation27_spill] sm:$0xff] %v3383_v52  ;;  %v1317_v16 = vadd.f32 %v1316_v51, %v1254_v13  ;;  %v1185_v21 = vadd.f32 %v1184_v36, %v3383_v52  ;;  %v1255_v57 = vmul.f32 %v3383_v52, %v3383_v52  ;;  %v848_v6 = vpop.f32.mrb[75].mxu0  ;;  %v1258_v51 = vmul.f32 %v3108_v40, %v3108_v40 }
 0x1a8   :  { %v1259_v6 = vmul.f32 %v3117_v46, %v3117_v46 }
 0x1a9   :  { %v1186_v55 = vadd.f32 %v1185_v21, %v3084_v25  ;;  %v1318_v56 = vadd.f32 %v1317_v16, %v1255_v57  ;;  %v1260_v16 = vmul.f32 %v3124_v54, %v3124_v54 }
 0x1ab   :  { %v1187_v27 = vadd.f32 %v1186_v55, %v3090_v29  ;;  %v1319_v47 = vadd.f32 %v1318_v56, %v1256_v15  ;;  %v1261_v15 = vmul.f32 %v3131_v60, %v3131_v60 }
 0x1ad   :  { %v1188_v36 = vadd.f32 %v1187_v27, %v3108_v40  ;;  %v1320_v13 = vadd.f32 %v1319_v47, %v1257_v43  ;;  %v1262_v47 = vmul.f32 %v3138_v4, %v3138_v4 }
 0x1af   :  { %v1189_v52 = vadd.f32 %v1188_v36, %v3117_v46  ;;  %v1321_v0 = vadd.f32 %v1320_v13, %v1258_v51  ;;  %v1263_v51 = vmul.f32 %v3145_v10, %v3145_v10 }
 0x1b1   :  { %v1190_v21 = vadd.f32 %v1189_v52, %v3124_v54  ;;  %v1322_v57 = vadd.f32 %v1321_v0, %v1259_v6  ;;  %v1264_v0 = vmul.f32 %v3152_v19, %v3152_v19 }
 0x1b3   :  { %v1191_v55 = vadd.f32 %v1190_v21, %v3131_v60  ;;  %v1323_v56 = vadd.f32 %v1322_v57, %v1260_v16  ;;  %v1265_v16 = vmul.f32 %v3159_v31, %v3159_v31 }
 0x1b5   :  { %v1324_v43 = vadd.f32 %v1323_v56, %v1261_v15  ;;  %v1192_v27 = vadd.f32 %v1191_v55, %v3138_v4  ;;  %v1266_v15 = vmul.f32 %v3166_v42, %v3166_v42 }
 0x1b7   :  { %v1193_v36 = vadd.f32 %v1192_v27, %v3145_v10  ;;  %v1325_v13 = vadd.f32 %v1324_v43, %v1262_v47  ;;  %v1267_v47 = vmul.f32 %v3173_v50, %v3173_v50 }
 0x1b9   :  { %v1194_v52 = vadd.f32 %v1193_v36, %v3152_v19  ;;  %v1326_v6 = vadd.f32 %v1325_v13, %v1263_v51  ;;  %v1268_v51 = vmul.f32 %v3180_v62, %v3180_v62 }
 0x1bb   :  { %v1195_v21 = vadd.f32 %v1194_v52, %v3159_v31  ;;  %v1327_v57 = vadd.f32 %v1326_v6, %v1264_v0  ;;  %v1269_v52 = vmul.f32 %v3193_v8, %v3193_v8 }
 0x1bd   :  { %v1196_v55 = vadd.f32 %v1195_v21, %v3166_v42  ;;  %v1328_v56 = vadd.f32 %v1327_v57, %v1265_v16  ;;  %v1270_v57 = vmul.f32 %v3210_v32, %v3210_v32 }
 0x1bf   :  { %v1197_v43 = vadd.f32 %v1196_v55, %v3173_v50  ;;  %v1329_v27 = vadd.f32 %v1328_v56, %v1266_v15  ;;  %v1271_v56 = vmul.f32 %v3219_v44, %v3219_v44 }
 0x1c1   :  { %v1198_v36 = vadd.f32 %v1197_v43, %v3180_v62  ;;  %v1330_v13 = vadd.f32 %v1329_v27, %v1267_v47  ;;  %v1272_v27 = vmul.f32 %v3236_v1, %v3236_v1 }
 0x1c3   :  { %v1199_v0 = vadd.f32 %v1198_v36, %v3193_v8  ;;  %v1331_v6 = vadd.f32 %v1330_v13, %v1268_v51  ;;  %v1273_v13 = vmul.f32 %v3245_v14, %v3245_v14 }
 0x1c5   :  { %v1332_v21 = vadd.f32 %v1331_v6, %v1269_v52  ;;  %v1200_v16 = vadd.f32 %v1199_v0, %v3210_v32  ;;  %v1274_v6 = vmul.f32 %v3260_v48, %v3260_v48 }
 0x1c7   :  { %v1333_v55 = vadd.f32 %v1332_v21, %v1270_v57  ;;  %v1201_v15 = vadd.f32 %v1200_v16, %v3219_v44  ;;  %v1275_v57 = vmul.f32 %v3269_v58, %v3269_v58 }
 0x1c9   :  { %v1334_v43 = vadd.f32 %v1333_v55, %v1271_v56  ;;  %v1202_v47 = vadd.f32 %v1201_v15, %v3236_v1  ;;  %v1276_v56 = vmul.f32 %v3284_v34, %v3284_v34 }
 0x1cb   :  { %v1335_v36 = vadd.f32 %v1334_v43, %v1272_v27  ;;  %v1203_v51 = vadd.f32 %v1202_v47, %v3245_v14  ;;  %v1277_v27 = vmul.f32 %v3292_v2, %v3292_v2 }
 0x1cd   :  { %v1336_v0 = vadd.f32 %v1335_v36, %v1273_v13  ;;  %v1204_v52 = vadd.f32 %v1203_v51, %v3260_v48  ;;  %v1278_v13 = vmul.f32 %v3302_v35, %v3302_v35 }
 0x1cf   :  { %v1337_v21 = vadd.f32 %v1336_v0, %v1274_v6  ;;  %v1205_v16 = vadd.f32 %v1204_v52, %v3269_v58  ;;  %v1279_v6 = vmul.f32 %v3309_v5, %v3309_v5 }
 0x1d1   :  { %v1338_v55 = vadd.f32 %v1337_v21, %v1275_v57  ;;  %v1206_v15 = vadd.f32 %v1205_v16, %v3284_v34  ;;  %v1280_v21 = vmul.f32 %v3316_v12, %v3316_v12 }
 0x1d3   :  { %v1339_v43 = vadd.f32 %v1338_v55, %v1276_v56  ;;  %v1207_v47 = vadd.f32 %v1206_v15, %v3292_v2  ;;  %v1281_v56 = vmul.f32 %v3323_v17, %v3323_v17 }
 0x1d5   :  { %v1340_v36 = vadd.f32 %v1339_v43, %v1277_v27  ;;  %v1208_v51 = vadd.f32 %v1207_v47, %v3302_v35 }
 0x1d7   :  { %v1341_v0 = vadd.f32 %v1340_v36, %v1278_v13  ;;  %v1209_v52 = vadd.f32 %v1208_v51, %v3309_v5  ;;  %v4256_v5 = vmov 0.0  }
 0x1d9   :  { %v1342_v16 = vadd.f32 %v1341_v0, %v1279_v6  ;;  %v1210_v57 = vadd.f32 %v1209_v52, %v3316_v12  ;;  %v4257_v0 = vmov 0.0|0.0  }
 0x1db   :  { %v1343_v55 = vadd.f32 %v1342_v16, %v1280_v21  ;;  %v1211_v15 = vadd.f32 %v1210_v57, %v3323_v17 }
 0x1dd   :  { %v1212_v43 = vrot.slane %v1211_v15, 4  ;;  %v1344_v47 = vadd.f32 %v1343_v55, %v1281_v56 }
 0x1df   :  { %v1213_v27 = vadd.f32 %v1212_v43, %v1211_v15  ;;  %v1345_v52 = vrot.slane %v1344_v47, 4 }
 0x1e1   :  { %v1214_v36 = vrot.slane %v1213_v27, 2  ;;  %v1346_v6 = vadd.f32 %v1345_v52, %v1344_v47 }
 0x1e3   :  { %v1215_v51 = vadd.f32 %v1214_v36, %v1213_v27  ;;  %v1527_v36 = vlaneseq }
 0x1e5   :  { %v1216_v13 = vrot.slane %v1215_v51, 1 }
 0x1e7   :  { %v1217_v35 = vadd.f32 %v1216_v13, %v1215_v51  ;;  %v3483_v51 = vshrl.u32 %v1527_v36, 7  ;;  %v1512_v13 = vld [vmem:[%s4194_s3] sm:$0x1] }
 0x1e9   :  { %2520 = vmatmul.mubr.f32.vlgmr.msra.gmra.mrb[52].mxu1 %v1217_v35 }
 0x1ea   :  { %2583 = vmatpush3.bf16.msra.mxu1 %v3070_v20  ;;  %2554 = vmatprep.mubr.msk.f32.mxu1 %vm2759_vm0, %v4256_v5  ;;  %v1347_v20 = vrot.slane %v1346_v6, 2 }
 0x1eb   :  { %2584 = vmatprep.subr.bf16.mxu1 %v4257_v0 }
 0x1ee   :  { %2586 = vmatpush3.bf16.msra.mxu1 %v3080_v23  ;;  %v1348_v23 = vadd.f32 %v1347_v20, %v1346_v6  ;;  %v3492_v20 = vld [vmem:[%s4195_s4] sm:$0x1] }
 0x1ef   :  { %2587 = vmatprep.subr.bf16.mxu1 %v4257_v0 }
 0x1f2   :  { %2589 = vmatpush3.bf16.msra.mxu1 %v3104_v38  ;;  %v1349_v38 = vrot.slane %v1348_v23, 1 }
 0x1f3   :  { %2590 = vmatprep.subr.bf16.mxu1 %v4257_v0 }
 0x1f6   :  { %2592 = vmatpush3.bf16.msra.mxu1 %v3195_v11  ;;  %v1350_v11 = vadd.f32 %v1349_v38, %v1348_v23 }
 0x1f7   :  { %2593 = vmatprep.subr.bf16.mxu1 %v4257_v0 }
 0x1fa   :  { %2595 = vmatpush3.bf16.msra.mxu1 %v3212_v33 }
 0x1fb   :  { %2596 = vmatprep.subr.bf16.mxu1 %v4257_v0 }
 0x1fe   :  { %2598 = vmatpush3.bf16.msra.mxu1 %v3232_v63 }
 0x1ff   :  { %2599 = vmatprep.subr.bf16.mxu1 %v4257_v0 }
 0x202   :  { %2601 = vmatpush3.bf16.msra.mxu1 %v3256_v37 }
 0x203   :  { %2602 = vmatprep.subr.bf16.mxu1 %v4257_v0  ;;  %v4225_v0 = vsub.s32 0, %v3483_v51 }
 0x206   :  { %2604 = vmatpush3.bf16.msra.mxu1 %v3280_v26 }
 0x209   :  { %2555 = vmatmul.mubr.f32.vlgmr.msra.gmra.mrb[54].mxu1 %v1350_v11  ;;  %v4276_v11 = vld [vmem:[#allocation19_spill] sm:$0xff] }
 0x2bc   :  { %v1433_v35 = vpop.f32.mrb[52].mxu1 }
 0x2bd   :  { %v2521_v5 = vpop.f32.mrb[53].mxu1  ;;  %v1507_v33 = vmul.f32 0.001953125, %v1433_v35 }
 0x2bf   :  { %v1509_v16 = vmul.f32 %v1507_v33, %v1507_v33 }
 0x2dc   :  { %v1503_v21 = vpop.f32.mrb[54].mxu1 }
 0x2dd   :  { %v1508_v57 = vmul.f32 0.001953125, %v1503_v21  ;;  %v2556_v55 = vpop.f32.mrb[55].mxu1 }
 0x2de   :  { %v4259_v55 = vld [vmem:[#allocation4_spill] sm:$0xff] }
 0x2df   :  { %v1510_v63 = vsub.f32 %v1508_v57, %v1509_v16  ;;  %v4258_v57 = vld [vmem:[#allocation3_spill] sm:$0xff] }
 0x2e1   :  { %v1511_v15 = vmax.f32 %v1510_v63, 0.0  ;;  %v4260_v63 = vld [vmem:[#allocation5_spill] sm:$0xff] }
 0x2e3   :  { %v1513_v56 = vadd.f32 1e-05, %v1511_v15  ;;  %v4261_v15 = vld [vmem:[#allocation6_spill] sm:$0xff] }
 0x2e5   :  { %2753 = vrsqrt.f32 %v1513_v56  ;;  %vm1516_vm1 = vcmp.eq.f32.partialorder %v1513_v56, inf  ;;  %v1519_v47 = vand.u32 2147483648, %v1513_v56  ;;  %vm1518_vm2 = vcmp.eq.f32.partialorder %v1513_v56, 0.0 }
 0x2ef   :  { %v2754_v43 = vpop.eup %2753 }
 0x2f0   :  { %v1515_v37 = vmul.f32 %v2754_v43, %v1513_v56  ;;  %v4263_v43 = vld [vmem:[#allocation8_spill] sm:$0xff] }
 0x2f2   :  { %v1517_v27 = vsel %vm1516_vm1, %v1513_v56, %v1515_v37  ;;  %v4262_v56 = vld [vmem:[#allocation7_spill] sm:$0xff] }
 0x2f3   :  { %v1520_v26 = vsel %vm1518_vm2, %v1519_v47, %v1517_v27  ;;  %v4264_v47 = vld [vmem:[#allocation9_spill] sm:$0xff] }
 0x2f4   :  { %2755 = vrcp.f32 %v1520_v26  ;;  %v4265_v26 = vld [vmem:[#allocation10_spill] sm:$0xff] }
 0x2fe   :  { %v2756_v52 = vpop.eup %2755 }
 0x2ff   :  { %v1522_v6 = vmul.f32 %v2756_v52, %v1512_v13  ;;  %v4266_v13 = vld [vmem:[#allocation11_spill] sm:$0xff] }
 0x301   :  { %v3494_v23 = vmul.f32 %v1522_v6, %v1507_v33  ;;  %v3498_v38 = vrot.slane %v1522_v6, %v4225_v0  ;;  %v4267_v6 = vld [vmem:[#allocation13_spill] sm:$0xff]  ;;  %v4278_v0 = vld [vmem:[#allocation20_spill] sm:$0xff] }
 0x303   :  { %v3504_v35 = vmul.f32 %v3498_v38, %v3082_v24  ;;  %v3508_v5 = vmul.f32 %v3498_v38, %v3088_v28  ;;  %v3512_v21 = vmul.f32 %v3498_v38, %v3106_v39  ;;  %v3516_v33 = vmul.f32 %v3498_v38, %v3115_v45 }
 0x304   :  { %v3520_v16 = vmul.f32 %v3498_v38, %v3122_v53  ;;  %v3524_v24 = vmul.f32 %v3498_v38, %v3129_v59  ;;  %v3528_v28 = vmul.f32 %v3498_v38, %v3136_v3  ;;  %v3532_v39 = vmul.f32 %v3498_v38, %v3143_v9 }
 0x305   :  { %v3536_v45 = vmul.f32 %v3498_v38, %v3150_v18  ;;  %v3540_v53 = vmul.f32 %v3498_v38, %v3157_v30  ;;  %v3544_v59 = vmul.f32 %v3498_v38, %v3164_v41  ;;  %v3548_v3 = vmul.f32 %v3498_v38, %v3171_v49 }
 0x306   :  { %v3552_v9 = vmul.f32 %v3498_v38, %v3178_v61  ;;  %v3556_v18 = vmul.f32 %v3498_v38, %v3191_v7  ;;  %v3560_v30 = vmul.f32 %v3498_v38, %v4258_v57  ;;  %v3564_v41 = vmul.f32 %v3498_v38, %v4259_v55  ;;  %v4268_v55 = vld [vmem:[#allocation15_spill] sm:$0xff] }
 0x307   :  { %v3568_v49 = vmul.f32 %v3498_v38, %v4260_v63  ;;  %v3572_v61 = vmul.f32 %v3498_v38, %v4261_v15  ;;  %v3576_v7 = vmul.f32 %v3498_v38, %v4262_v56  ;;  %v3580_v37 = vmul.f32 %v3498_v38, %v4263_v43  ;;  %v4270_v56 = vld [vmem:[#allocation16_spill] sm:$0xff] }
 0x308   :  { %v3584_v27 = vmul.f32 %v3498_v38, %v4264_v47  ;;  %v3588_v36 = vmul.f32 %v3498_v38, %v4265_v26  ;;  %v3592_v52 = vmul.f32 %v3498_v38, %v4266_v13  ;;  %v3596_v57 = vmul.f32 %v3498_v38, %v4267_v6  ;;  %v4272_v47 = vld [vmem:[#allocation17_spill] sm:$0xff]  ;;  %v4274_v13 = vld [vmem:[#allocation18_spill] sm:$0xff] }
 0x309   :  { %v3600_v63 = vmul.f32 %v3498_v38, %v4268_v55  ;;  %v3604_v15 = vmul.f32 %v3498_v38, %v3321_v22  ;;  %v3608_v43 = vmul.f32 %v3498_v38, %v4270_v56  ;;  %v3612_v26 = vmul.f32 %v3498_v38, %v4272_v47 }
 0x30a   :  { %v3616_v6 = vmul.f32 %v3498_v38, %v4274_v13  ;;  %v3620_v55 = vmul.f32 %v3498_v38, %v4276_v11  ;;  %v3624_v22 = vmul.f32 %v3498_v38, %v4278_v0 }
 0x30b   :  { %4269 = vst [vmem:[#allocation3_spill] sm:$0xff] %v3604_v15  ;;  %4271 = vst [vmem:[#allocation4_spill] sm:$0xff] %v3608_v43  ;;  %v4280_v15 = vld [vmem:[#allocation21_spill] sm:$0xff]  ;;  %v4282_v43 = vld [vmem:[#allocation22_spill] sm:$0xff] }
 0x30c   :  { %4273 = vst [vmem:[#allocation5_spill] sm:$0xff] %v3612_v26  ;;  %4275 = vst [vmem:[#allocation6_spill] sm:$0xff] %v3616_v6  ;;  %v3628_v56 = vmul.f32 %v3498_v38, %v4280_v15  ;;  %v3632_v47 = vmul.f32 %v3498_v38, %v4282_v43  ;;  %v4283_v26 = vld [vmem:[#allocation23_spill] sm:$0xff]  ;;  %v4284_v6 = vld [vmem:[#allocation24_spill] sm:$0xff] }
 0x30d   :  { %4277 = vst [vmem:[#allocation7_spill] sm:$0xff] %v3620_v55  ;;  %4279 = vst [vmem:[#allocation8_spill] sm:$0xff] %v3624_v22  ;;  %v3636_v13 = vmul.f32 %v3498_v38, %v4283_v26  ;;  %v3640_v11 = vmul.f32 %v3498_v38, %v4284_v6  ;;  %v4285_v55 = vld [vmem:[#allocation25_spill] sm:$0xff]  ;;  %v4286_v22 = vld [vmem:[#allocation26_spill] sm:$0xff]  ;;  %v3656_v26 = vmul.f32 %v3498_v38, %v3084_v25 }
 0x30e   :  { %4281 = vst [vmem:[#allocation9_spill] sm:$0xff] %v3628_v56  ;;  %v3644_v0 = vmul.f32 %v3498_v38, %v4285_v55  ;;  %v3648_v15 = vmul.f32 %v3498_v38, %v4286_v22  ;;  %v4287_v56 = vld [vmem:[#allocation27_spill] sm:$0xff]  ;;  %v3660_v6 = vmul.f32 %v3498_v38, %v3090_v29  ;;  %v3664_v55 = vmul.f32 %v3498_v38, %v3108_v40 }
 0x30f   :  { %v3652_v43 = vmul.f32 %v3498_v38, %v4287_v56  ;;  %v3668_v22 = vmul.f32 %v3498_v38, %v3117_v46  ;;  %v3672_v56 = vmul.f32 %v3498_v38, %v3124_v54  ;;  %v3676_v25 = vmul.f32 %v3498_v38, %v3131_v60 }
 0x310   :  { %v3680_v29 = vmul.f32 %v3498_v38, %v3138_v4  ;;  %v3684_v40 = vmul.f32 %v3498_v38, %v3145_v10  ;;  %v3688_v46 = vmul.f32 %v3498_v38, %v3152_v19  ;;  %v3692_v54 = vmul.f32 %v3498_v38, %v3159_v31 }
 0x311   :  { %v3696_v60 = vmul.f32 %v3498_v38, %v3166_v42  ;;  %v3700_v4 = vmul.f32 %v3498_v38, %v3173_v50  ;;  %v3704_v10 = vmul.f32 %v3498_v38, %v3180_v62  ;;  %v3708_v19 = vmul.f32 %v3498_v38, %v3193_v8 }
 0x312   :  { %v3712_v31 = vmul.f32 %v3498_v38, %v3210_v32  ;;  %v3716_v42 = vmul.f32 %v3498_v38, %v3219_v44  ;;  %v3720_v50 = vmul.f32 %v3498_v38, %v3236_v1  ;;  %v3724_v62 = vmul.f32 %v3498_v38, %v3245_v14 }
 0x313   :  { %v3728_v8 = vmul.f32 %v3498_v38, %v3260_v48  ;;  %v3732_v32 = vmul.f32 %v3498_v38, %v3269_v58  ;;  %v3736_v44 = vmul.f32 %v3498_v38, %v3284_v34  ;;  %v3740_v1 = vmul.f32 %v3498_v38, %v3292_v2 }
 0x314   :  { %4288 = vst [vmem:[#allocation10_spill] sm:$0xff] %v3720_v50  ;;  %4289 = vst [vmem:[#allocation11_spill] sm:$0xff] %v3724_v62  ;;  %v4292_v50 = vld [vmem:[#allocation12_spill] sm:$0xff]  ;;  %v4293_v62 = vld [vmem:[#allocation14_spill] sm:$0xff]  ;;  %v3752_v58 = vmul.f32 %v3498_v38, %v3316_v12  ;;  %v3756_v34 = vmul.f32 %v3498_v38, %v3323_v17  ;;  %v4295_v2 = vsub.f32 %v3492_v20, %v3494_v23 }
 0x315   :  { %4290 = vst [vmem:[#allocation13_spill] sm:$0xff] %v3736_v44  ;;  %4291 = vst [vmem:[#allocation15_spill] sm:$0xff] %v3740_v1  ;;  %v3744_v14 = vmul.f32 %v3498_v38, %v4292_v50  ;;  %v3748_v48 = vmul.f32 %v3498_v38, %v4293_v62  ;;  %v4294_v44 = vsub.s32 0, %v3483_v51 }
 0x317   :  { %v3763_v1 = vrot.slane %v4295_v2, %v4294_v44  ;;  %v4306_v44 = vld [vmem:[#allocation6_spill] sm:$0xff]  ;;  %v4307_v2 = vld [vmem:[#allocation7_spill] sm:$0xff] }
 0x319   :  { %v3767_v50 = vadd.f32 %v3763_v1, %v3504_v35  ;;  %v3771_v62 = vadd.f32 %v3763_v1, %v3508_v5  ;;  %v3775_v12 = vadd.f32 %v3763_v1, %v3512_v21  ;;  %v3779_v17 = vadd.f32 %v3763_v1, %v3516_v33 }
 0x31a   :  { %v3783_v51 = vadd.f32 %v3763_v1, %v3520_v16  ;;  %v3787_v20 = vadd.f32 %v3763_v1, %v3524_v24  ;;  %v3791_v23 = vadd.f32 %v3763_v1, %v3528_v28  ;;  %v3795_v38 = vadd.f32 %v3763_v1, %v3532_v39 }
 0x31b   :  { %4296 = vst [vmem:[#allocation16_spill] sm:$0xff] %v3767_v50  ;;  %4297 = vst [vmem:[#allocation17_spill] sm:$0xff] %v3771_v62  ;;  %v3799_v35 = vadd.f32 %v3763_v1, %v3536_v45  ;;  %v3803_v5 = vadd.f32 %v3763_v1, %v3540_v53  ;;  %v3807_v21 = vadd.f32 %v3763_v1, %v3544_v59 }
 0x31c   :  { %4298 = vst [vmem:[#allocation18_spill] sm:$0xff] %v3775_v12  ;;  %4299 = vst [vmem:[#allocation19_spill] sm:$0xff] %v3779_v17  ;;  %v3811_v33 = vadd.f32 %v3763_v1, %v3548_v3  ;;  %v3815_v16 = vadd.f32 %v3763_v1, %v3552_v9  ;;  %v3819_v24 = vadd.f32 %v3763_v1, %v3556_v18 }
 0x31d   :  { %4300 = vst [vmem:[#allocation20_spill] sm:$0xff] %v3783_v51  ;;  %v3823_v28 = vadd.f32 %v3763_v1, %v3560_v30  ;;  %v3827_v39 = vadd.f32 %v3763_v1, %v3564_v41  ;;  %v3831_v45 = vadd.f32 %v3763_v1, %v3568_v49  ;;  %v3835_v53 = vadd.f32 %v3763_v1, %v3572_v61  ;;  %v4302_v61 = vld [vmem:[#allocation3_spill] sm:$0xff] }
 0x31e   :  { %v3839_v59 = vadd.f32 %v3763_v1, %v3576_v7  ;;  %v3843_v3 = vadd.f32 %v3763_v1, %v3580_v37  ;;  %v3847_v9 = vadd.f32 %v3763_v1, %v3584_v27  ;;  %v3851_v18 = vadd.f32 %v3763_v1, %v3588_v36  ;;  %v4304_v37 = vld [vmem:[#allocation4_spill] sm:$0xff]  ;;  %v4305_v36 = vld [vmem:[#allocation5_spill] sm:$0xff] }
 0x31f   :  { %v3855_v30 = vadd.f32 %v3763_v1, %v3592_v52  ;;  %v3859_v41 = vadd.f32 %v3763_v1, %v3596_v57  ;;  %v3863_v49 = vadd.f32 %v3763_v1, %v3600_v63  ;;  %v3867_v7 = vadd.f32 %v3763_v1, %v4302_v61 }
 0x320   :  { %v3871_v27 = vadd.f32 %v3763_v1, %v4304_v37  ;;  %v3875_v52 = vadd.f32 %v3763_v1, %v4305_v36  ;;  %v3879_v57 = vadd.f32 %v3763_v1, %v4306_v44  ;;  %v3883_v63 = vadd.f32 %v3763_v1, %v4307_v2 }
 0x321   :  { %4301 = vst [vmem:[#allocation21_spill] sm:$0xff] %v3863_v49  ;;  %4303 = vst [vmem:[#allocation22_spill] sm:$0xff] %v3867_v7  ;;  %v4308_v49 = vld [vmem:[#allocation8_spill] sm:$0xff]  ;;  %v4309_v7 = vld [vmem:[#allocation9_spill] sm:$0xff]  ;;  %v3895_v36 = vadd.f32 %v3763_v1, %v3632_v47  ;;  %v3899_v44 = vadd.f32 %v3763_v1, %v3636_v13  ;;  %v3903_v2 = vadd.f32 %v3763_v1, %v3640_v11 }
 0x322   :  { %v3887_v61 = vadd.f32 %v3763_v1, %v4308_v49  ;;  %v3891_v37 = vadd.f32 %v3763_v1, %v4309_v7  ;;  %v3907_v49 = vadd.f32 %v3763_v1, %v3644_v0  ;;  %v3911_v7 = vadd.f32 %v3763_v1, %v3648_v15 }
 0x323   :  { %v3915_v47 = vadd.f32 %v3763_v1, %v3652_v43  ;;  %v3919_v13 = vadd.f32 %v3763_v1, %v3656_v26  ;;  %v3923_v11 = vadd.f32 %v3763_v1, %v3660_v6  ;;  %v3927_v0 = vadd.f32 %v3763_v1, %v3664_v55 }
 0x324   :  { %v3931_v15 = vadd.f32 %v3763_v1, %v3668_v22  ;;  %v3935_v43 = vadd.f32 %v3763_v1, %v3672_v56  ;;  %v3939_v26 = vadd.f32 %v3763_v1, %v3676_v25  ;;  %v3943_v6 = vadd.f32 %v3763_v1, %v3680_v29 }
 0x325   :  { %v3947_v55 = vadd.f32 %v3763_v1, %v3684_v40  ;;  %v3951_v22 = vadd.f32 %v3763_v1, %v3688_v46  ;;  %v3955_v56 = vadd.f32 %v3763_v1, %v3692_v54  ;;  %v3959_v25 = vadd.f32 %v3763_v1, %v3696_v60 }
 0x326   :  { %v3963_v29 = vadd.f32 %v3763_v1, %v3700_v4  ;;  %v3967_v40 = vadd.f32 %v3763_v1, %v3704_v10  ;;  %v3971_v46 = vadd.f32 %v3763_v1, %v3708_v19  ;;  %v3975_v54 = vadd.f32 %v3763_v1, %v3712_v31 }
 0x327   :  { %4310 = vst [vmem:[#allocation23_spill] sm:$0xff] %v3959_v25  ;;  %v3979_v60 = vadd.f32 %v3763_v1, %v3716_v42  ;;  %v4314_v25 = vld [vmem:[#allocation10_spill] sm:$0xff]  ;;  %v3991_v19 = vadd.f32 %v3763_v1, %v3728_v8  ;;  %v3995_v31 = vadd.f32 %v3763_v1, %v3732_v32  ;;  %v4011_v8 = vadd.f32 %v3763_v1, %v3748_v48 }
 0x328   :  { %4311 = vst [vmem:[#allocation24_spill] sm:$0xff] %v3963_v29  ;;  %4312 = vst [vmem:[#allocation25_spill] sm:$0xff] %v3975_v54  ;;  %v3983_v4 = vadd.f32 %v3763_v1, %v4314_v25  ;;  %v4315_v29 = vld [vmem:[#allocation11_spill] sm:$0xff]  ;;  %v4316_v54 = vld [vmem:[#allocation13_spill] sm:$0xff]  ;;  %v4015_v32 = vadd.f32 %v3763_v1, %v3752_v58  ;;  %v1671_v48 = vmax.f32 %v3787_v20, 0.0  ;;  %v1673_v58 = vmax.f32 %v3795_v38, 0.0 }
 0x329   :  { %4313 = vst [vmem:[#allocation26_spill] sm:$0xff] %v3979_v60  ;;  %v3987_v10 = vadd.f32 %v3763_v1, %v4315_v29  ;;  %v3999_v42 = vadd.f32 %v3763_v1, %v4316_v54  ;;  %v4318_v60 = vld [vmem:[#allocation15_spill] sm:$0xff]  ;;  %v4007_v29 = vadd.f32 %v3763_v1, %v3744_v14  ;;  %4321 = vst [vmem:[#allocation3_spill] sm:$0xff] %v4011_v8  ;;  %v1672_v8 = vmax.f32 %v3791_v23, 0.0  ;;  %v4325_v51 = vld [vmem:[#allocation22_spill] sm:$0xff] }
 0x32a   :  { %v4003_v25 = vadd.f32 %v3763_v1, %v4318_v60  ;;  %4322 = vst [vmem:[#allocation4_spill] sm:$0xff] %v4015_v32  ;;  %v4019_v54 = vadd.f32 %v3763_v1, %v3756_v34  ;;  %v1674_v32 = vmax.f32 %v3799_v35, 0.0  ;;  %v1675_v1 = vmax.f32 %v3803_v5, 0.0 }
 0x32b   :  { %4317 = vst [vmem:[#allocation27_spill] sm:$0xff] %v3999_v42  ;;  %4320 = vst [vmem:[#allocation14_spill] sm:$0xff] %v4007_v29  ;;  %v1676_v34 = vmax.f32 %v3807_v21, 0.0  ;;  %v1677_v60 = vmax.f32 %v3811_v33, 0.0  ;;  %v1679_v14 = vmax.f32 %v3819_v24, 0.0  ;;  %v1680_v29 = vmax.f32 %v3823_v28, 0.0 }
 0x32c   :  { %4319 = vst [vmem:[#allocation12_spill] sm:$0xff] %v4003_v25  ;;  %4323 = vst [vmem:[#allocation5_spill] sm:$0xff] %v4019_v54  ;;  %v1678_v25 = vmax.f32 %v3815_v16, 0.0  ;;  %v1681_v20 = vmax.f32 %v3827_v39, 0.0  ;;  %v1682_v23 = vmax.f32 %v3831_v45, 0.0  ;;  %v1683_v38 = vmax.f32 %v3835_v53, 0.0 }
 0x32d   :  { %v1684_v35 = vmax.f32 %v3839_v59, 0.0  ;;  %v1685_v5 = vmax.f32 %v3843_v3, 0.0  ;;  %v1686_v21 = vmax.f32 %v3847_v9, 0.0  ;;  %v1687_v33 = vmax.f32 %v3851_v18, 0.0  ;;  %v4324_v42 = vld [vmem:[#allocation21_spill] sm:$0xff] }
 0x32e   :  { %v1688_v16 = vmax.f32 %v3855_v30, 0.0  ;;  %v1689_v24 = vmax.f32 %v3859_v41, 0.0  ;;  %v1690_v28 = vmax.f32 %v4324_v42, 0.0  ;;  %v1691_v39 = vmax.f32 %v4325_v51, 0.0  ;;  %v4326_v17 = vld [vmem:[#allocation23_spill] sm:$0xff] }
 0x32f   :  { %v1692_v45 = vmax.f32 %v3871_v27, 0.0  ;;  %v1693_v53 = vmax.f32 %v3875_v52, 0.0  ;;  %v1694_v59 = vmax.f32 %v3879_v57, 0.0  ;;  %v1695_v3 = vmax.f32 %v3883_v63, 0.0  ;;  %v4327_v12 = vld [vmem:[#allocation24_spill] sm:$0xff]  ;;  %v4328_v62 = vld [vmem:[#allocation25_spill] sm:$0xff] }
 0x330   :  { %v1696_v9 = vmax.f32 %v3887_v61, 0.0  ;;  %v1697_v18 = vmax.f32 %v3891_v37, 0.0  ;;  %v1698_v30 = vmax.f32 %v3895_v36, 0.0  ;;  %v1699_v41 = vmax.f32 %v3899_v44, 0.0  ;;  %v4329_v50 = vld [vmem:[#allocation26_spill] sm:$0xff] }
 0x331   :  { %v1700_v42 = vmax.f32 %v3903_v2, 0.0  ;;  %v1701_v51 = vmax.f32 %v3907_v49, 0.0  ;;  %v1702_v27 = vmax.f32 %v3911_v7, 0.0  ;;  %v1703_v52 = vmax.f32 %v3915_v47, 0.0 }
 0x332   :  { %v1704_v57 = vmax.f32 %v3919_v13, 0.0  ;;  %v1705_v63 = vmax.f32 %v3923_v11, 0.0  ;;  %v1706_v61 = vmax.f32 %v3927_v0, 0.0  ;;  %v1707_v37 = vmax.f32 %v3931_v15, 0.0  ;;  %v4330_v54 = vld [vmem:[#allocation27_spill] sm:$0xff] }
 0x333   :  { %v1708_v36 = vmax.f32 %v3935_v43, 0.0  ;;  %v1709_v44 = vmax.f32 %v3939_v26, 0.0  ;;  %v1710_v2 = vmax.f32 %v3943_v6, 0.0  ;;  %v1711_v49 = vmax.f32 %v3947_v55, 0.0 }
 0x334   :  { %v1712_v7 = vmax.f32 %v3951_v22, 0.0  ;;  %v1713_v47 = vmax.f32 %v3955_v56, 0.0  ;;  %v1714_v13 = vmax.f32 %v4326_v17, 0.0  ;;  %v1715_v11 = vmax.f32 %v4327_v12, 0.0  ;;  %v4331_v12 = vld [vmem:[#allocation12_spill] sm:$0xff] }
 0x335   :  { %v1716_v0 = vmax.f32 %v3967_v40, 0.0  ;;  %v1717_v15 = vmax.f32 %v3971_v46, 0.0  ;;  %v1718_v43 = vmax.f32 %v4328_v62, 0.0  ;;  %v1719_v26 = vmax.f32 %v4329_v50, 0.0  ;;  %v4332_v46 = vld [vmem:[#allocation14_spill] sm:$0xff]  ;;  %v4333_v50 = vld [vmem:[#allocation3_spill] sm:$0xff] }
 0x336   :  { %v1720_v6 = vmax.f32 %v3983_v4, 0.0  ;;  %v1721_v55 = vmax.f32 %v3987_v10, 0.0  ;;  %v1722_v22 = vmax.f32 %v3991_v19, 0.0  ;;  %v1723_v56 = vmax.f32 %v3995_v31, 0.0  ;;  %v4334_v10 = vld [vmem:[#allocation4_spill] sm:$0xff]  ;;  %v4335_v31 = vld [vmem:[#allocation5_spill] sm:$0xff] }
 0x337   :  { %v1724_v17 = vmax.f32 %v4330_v54, 0.0  ;;  %v1725_v40 = vmax.f32 %v4331_v12, 0.0  ;;  %v1726_v62 = vmax.f32 %v4332_v46, 0.0  ;;  %v1727_v4 = vmax.f32 %v4333_v50, 0.0  ;;  %v4336_v12 = vld [vmem:[#allocation16_spill] sm:$0xff]  ;;  %v4338_v50 = vld [vmem:[#allocation17_spill] sm:$0xff] }
 0x338   :  { %v1728_v19 = vmax.f32 %v4334_v10, 0.0  ;;  %v1729_v54 = vmax.f32 %v4335_v31, 0.0  ;;  %v4337_v46 = vmax.f32 %v4336_v12, 0.0  ;;  %v4339_v10 = vmax.f32 %v4338_v50, 0.0  ;;  %v4340_v12 = vld [vmem:[#allocation18_spill] sm:$0xff] }
 0x339   :  { %v4341_v50 = vmax.f32 %v4340_v12, 0.0 }
 0x33a   :  { %v2265_v31 = vpack.c.bf16 %v4339_v10, %v4337_v46  ;;  %v4342_v10 = vld [vmem:[#allocation19_spill] sm:$0xff] }
 0x33b   :  { %v4343_v46 = vmax.f32 %v4342_v10, 0.0  ;;  %v4344_v10 = vld [vmem:[#allocation20_spill] sm:$0xff] }
 0x33c   :  { %2266 = vst [vmem:[%s4196_s5] sm:$0xff] %v2265_v31  }
 0x33d   :  { %v2270_v12 = vpack.c.bf16 %v4343_v46, %v4341_v50  ;;  %v4345_v46 = vmax.f32 %v4344_v10, 0.0  ;;  %v2280_v10 = vpack.c.bf16 %v1673_v58, %v1672_v8  ;;  %v2295_v8 = vpack.c.bf16 %v1679_v14, %v1678_v25 }
 0x33e   :  { %v2300_v58 = vpack.c.bf16 %v1681_v20, %v1680_v29  ;;  %v2315_v25 = vpack.c.bf16 %v1687_v33, %v1686_v21  ;;  %v2320_v29 = vpack.c.bf16 %v1689_v24, %v1688_v16  ;;  %v2325_v14 = vpack.c.bf16 %v1691_v39, %v1690_v28 }
 0x33f   :  { %v2275_v50 = vpack.c.bf16 %v1671_v48, %v4345_v46  ;;  %v2285_v46 = vpack.c.bf16 %v1675_v1, %v1674_v32  ;;  %v2290_v48 = vpack.c.bf16 %v1677_v60, %v1676_v34  ;;  %2422 = vst [vmem:[%s4196_s5 + $0x8] sm:$0xff] %v2270_v12   ;;  %2424 = vst [vmem:[%s4196_s5 + $0x18] sm:$0xff] %v2280_v10  }
 0x340   :  { %v2305_v32 = vpack.c.bf16 %v1683_v38, %v1682_v23  ;;  %v2310_v60 = vpack.c.bf16 %v1685_v5, %v1684_v35  ;;  %2427 = vst [vmem:[%s4196_s5 + $0x30] sm:$0xff] %v2295_v8   ;;  %2428 = vst [vmem:[%s4196_s5 + $0x38] sm:$0xff] %v2300_v58   ;;  %v2330_v1 = vpack.c.bf16 %v1693_v53, %v1692_v45 }
 0x341   :  { %2423 = vst [vmem:[%s4196_s5 + $0x10] sm:$0xff] %v2275_v50   ;;  %2425 = vst [vmem:[%s4196_s5 + $0x20] sm:$0xff] %v2285_v46   ;;  %v2335_v34 = vpack.c.bf16 %v1695_v3, %v1694_v59  ;;  %v2340_v20 = vpack.c.bf16 %v1697_v18, %v1696_v9  ;;  %v2345_v23 = vpack.c.bf16 %v1699_v41, %v1698_v30 }
 0x342   :  { %2426 = vst [vmem:[%s4196_s5 + $0x28] sm:$0xff] %v2290_v48   ;;  %2429 = vst [vmem:[%s4196_s5 + $0x40] sm:$0xff] %v2305_v32   ;;  %v2350_v38 = vpack.c.bf16 %v1701_v51, %v1700_v42  ;;  %v2355_v35 = vpack.c.bf16 %v1703_v52, %v1702_v27  ;;  %v2360_v5 = vpack.c.bf16 %v1705_v63, %v1704_v57 }
 0x343   :  { %2430 = vst [vmem:[%s4196_s5 + $0x48] sm:$0xff] %v2310_v60   ;;  %2431 = vst [vmem:[%s4196_s5 + $0x50] sm:$0xff] %v2315_v25   ;;  %v2365_v21 = vpack.c.bf16 %v1707_v37, %v1706_v61  ;;  %v2370_v33 = vpack.c.bf16 %v1709_v44, %v1708_v36  ;;  %v2375_v16 = vpack.c.bf16 %v1711_v49, %v1710_v2 }
 0x344   :  { %2432 = vst [vmem:[%s4196_s5 + $0x58] sm:$0xff] %v2320_v29   ;;  %2433 = vst [vmem:[%s4196_s5 + $0x60] sm:$0xff] %v2325_v14   ;;  %v2380_v24 = vpack.c.bf16 %v1713_v47, %v1712_v7  ;;  %v2385_v28 = vpack.c.bf16 %v1715_v11, %v1714_v13  ;;  %v2390_v39 = vpack.c.bf16 %v1717_v15, %v1716_v0 }
 0x345   :  { %2434 = vst [vmem:[%s4196_s5 + $0x68] sm:$0xff] %v2330_v1   ;;  %2435 = vst [vmem:[%s4196_s5 + $0x70] sm:$0xff] %v2335_v34   ;;  %v2395_v45 = vpack.c.bf16 %v1719_v26, %v1718_v43  ;;  %v2400_v53 = vpack.c.bf16 %v1721_v55, %v1720_v6  ;;  %v2405_v59 = vpack.c.bf16 %v1723_v56, %v1722_v22 }
 0x346   :  { %2436 = vst [vmem:[%s4196_s5 + $0x78] sm:$0xff] %v2340_v20   ;;  %2437 = vst [vmem:[%s4196_s5 + $0x80] sm:$0xff] %v2345_v23   ;;  %v2410_v3 = vpack.c.bf16 %v1725_v40, %v1724_v17  ;;  %v2415_v9 = vpack.c.bf16 %v1727_v4, %v1726_v62  ;;  %v2420_v18 = vpack.c.bf16 %v1729_v54, %v1728_v19 }
 0x347   :  { %2438 = vst [vmem:[%s4196_s5 + $0x88] sm:$0xff] %v2350_v38   ;;  %2439 = vst [vmem:[%s4196_s5 + $0x90] sm:$0xff] %v2355_v35  }
 0x348   :  { %2440 = vst [vmem:[%s4196_s5 + $0x98] sm:$0xff] %v2360_v5   ;;  %2441 = vst [vmem:[%s4196_s5 + $0xa0] sm:$0xff] %v2365_v21  }
 0x349   :  { %2442 = vst [vmem:[%s4196_s5 + $0xa8] sm:$0xff] %v2370_v33   ;;  %2443 = vst [vmem:[%s4196_s5 + $0xb0] sm:$0xff] %v2375_v16  }
 0x34a   :  { %2444 = vst [vmem:[%s4196_s5 + $0xb8] sm:$0xff] %v2380_v24   ;;  %2445 = vst [vmem:[%s4196_s5 + $0xc0] sm:$0xff] %v2385_v28  }
 0x34b   :  { %2446 = vst [vmem:[%s4196_s5 + $0xc8] sm:$0xff] %v2390_v39   ;;  %2447 = vst [vmem:[%s4196_s5 + $0xd0] sm:$0xff] %v2395_v45  }
 0x34c   :  { %2448 = vst [vmem:[%s4196_s5 + $0xd8] sm:$0xff] %v2400_v53   ;;  %2449 = vst [vmem:[%s4196_s5 + $0xe0] sm:$0xff] %v2405_v59  }
 0x34d   :  { %2450 = vst [vmem:[%s4196_s5 + $0xe8] sm:$0xff] %v2410_v3   ;;  %2451 = vst [vmem:[%s4196_s5 + $0xf0] sm:$0xff] %v2415_v9  }
 0x34e   :  { %2452 = vst [vmem:[%s4196_s5 + $0xf8] sm:$0xff] %v2420_v18  }

// kernel: resnet_generator.11
= control target key start
LH: loop header
LB: loop body
LE: loop exit
PB: predicated region body
PF: predicated region fallthrough
CT: control target
= control target key end

     0   :  { %v1028_v19 = vmov 0.0|0.0   ;;  %vm1029_vm0 = vmmov 0   ;;  %v1030_v41 = vmov 0.0   ;;  %s1283_s1 = inlined_call_operand.vmem [shape: bf16[128,128], index: 1, kind: input, shape index: {}]   ;;  %s1284_s0 = inlined_call_operand.vmem [shape: bf16[128,128], index: 0, kind: input, shape index: {}]   ;;  %s1285_s2 = inlined_call_operand.vmem [shape: f32[128,128], index: 2, kind: input, shape index: {}]   ;;  %s1286_s3 = inlined_call_operand.vmem [shape: f32[1,128], index: 3, kind: input, shape index: {}]   ;;  %s1287_s4 = inlined_call_operand.vmem [shape: f32[1,128], index: 4, kind: input, shape index: {}]   ;;  %s1288_s5 = inlined_call_operand.vmem [shape: bf16[128,128], index: 5, kind: output, shape index: {}]  }
   0x1   :  { %v1008_v0 = vld [vmem:[%s1283_s1] sm:$0xff]   ;;  %v1009_v1 = vld [vmem:[%s1283_s1 + $0x8] sm:$0xff]   ;;  %v1010_v2 = vld [vmem:[%s1283_s1 + $0x10] sm:$0xff]   ;;  %957 = vmatprep.subr.bf16.mxu1 %v1028_v19  ;;  %919 = vmatprep.mubr.msk.f32.mxu1 %vm1029_vm0, %v1030_v41 }
   0x2   :  { %855 = vmatprep.subr.bf16.mxu0 %v1008_v0  ;;  %v1011_v3 = vld [vmem:[%s1283_s1 + $0x18] sm:$0xff]   ;;  %v1016_v4 = vld [vmem:[%s1284_s0] sm:$0xff]   ;;  %v1013_v6 = vld [vmem:[%s1283_s1 + $0x28] sm:$0xff]  }
   0x3   :  { %856 = vmatpush3.bf16.msra.mxu0 %v1008_v0  ;;  %871 = vmatprep.mubr.bf16.mxu0 %v1016_v4  ;;  %v1012_v5 = vld [vmem:[%s1283_s1 + $0x20] sm:$0xff]   ;;  %v1014_v7 = vld [vmem:[%s1283_s1 + $0x30] sm:$0xff]   ;;  %v1015_v8 = vld [vmem:[%s1283_s1 + $0x38] sm:$0xff]  }
   0x4   :  { %857 = vmatprep.subr.bf16.mxu0 %v1009_v1  ;;  %v1017_v9 = vld [vmem:[%s1284_s0 + $0x8] sm:$0xff]   ;;  %v1018_v10 = vld [vmem:[%s1284_s0 + $0x10] sm:$0xff]   ;;  %v1019_v11 = vld [vmem:[%s1284_s0 + $0x18] sm:$0xff]  }
   0x5   :  { %v1020_v12 = vld [vmem:[%s1284_s0 + $0x20] sm:$0xff]   ;;  %v1021_v13 = vld [vmem:[%s1284_s0 + $0x28] sm:$0xff]   ;;  %v1022_v14 = vld [vmem:[%s1284_s0 + $0x30] sm:$0xff]  }
   0x6   :  { %v1023_v15 = vld [vmem:[%s1284_s0 + $0x38] sm:$0xff]   ;;  %v391_v16 = vld [vmem:[%s1285_s2] sm:$0xff]  ;;  %v392_v17 = vld [vmem:[%s1285_s2 + $0x8] sm:$0xff] }
   0x7   :  { %858 = vmatpush3.bf16.msra.mxu0 %v1009_v1  ;;  %v958_v18 = vpack.c.bf16 %v392_v17, %v391_v16  ;;  %v393_v20 = vld [vmem:[%s1285_s2 + $0x10] sm:$0xff]  ;;  %v394_v21 = vld [vmem:[%s1285_s2 + $0x18] sm:$0xff]  ;;  %v395_v23 = vld [vmem:[%s1285_s2 + $0x20] sm:$0xff] }
   0x8   :  { %859 = vmatprep.subr.bf16.mxu0 %v1010_v2  ;;  %v961_v22 = vpack.c.bf16 %v394_v21, %v393_v20  ;;  %v396_v24 = vld [vmem:[%s1285_s2 + $0x28] sm:$0xff]  ;;  %v397_v26 = vld [vmem:[%s1285_s2 + $0x30] sm:$0xff]  ;;  %v398_v27 = vld [vmem:[%s1285_s2 + $0x38] sm:$0xff] }
   0x9   :  { %959 = vmatpush3.bf16.msra.mxu1 %v958_v18  ;;  %v964_v25 = vpack.c.bf16 %v396_v24, %v395_v23  ;;  %v967_v28 = vpack.c.bf16 %v398_v27, %v397_v26  ;;  %v399_v29 = vld [vmem:[%s1285_s2 + $0x40] sm:$0xff]  ;;  %v400_v30 = vld [vmem:[%s1285_s2 + $0x48] sm:$0xff]  ;;  %v401_v32 = vld [vmem:[%s1285_s2 + $0x50] sm:$0xff] }
   0xa   :  { %960 = vmatprep.subr.bf16.mxu1 %v1028_v19  ;;  %v970_v31 = vpack.c.bf16 %v400_v30, %v399_v29  ;;  %v402_v33 = vld [vmem:[%s1285_s2 + $0x58] sm:$0xff]  ;;  %v403_v35 = vld [vmem:[%s1285_s2 + $0x60] sm:$0xff]  ;;  %v404_v36 = vld [vmem:[%s1285_s2 + $0x68] sm:$0xff] }
   0xb   :  { %860 = vmatpush3.bf16.msra.mxu0 %v1010_v2  ;;  %v973_v34 = vpack.c.bf16 %v402_v33, %v401_v32  ;;  %v976_v37 = vpack.c.bf16 %v404_v36, %v403_v35  ;;  %v405_v38 = vld [vmem:[%s1285_s2 + $0x70] sm:$0xff]  ;;  %v406_v39 = vld [vmem:[%s1285_s2 + $0x78] sm:$0xff] }
   0xc   :  { %861 = vmatprep.subr.bf16.mxu0 %v1011_v3  ;;  %v979_v40 = vpack.c.bf16 %v406_v39, %v405_v38 }
   0xd   :  { %962 = vmatpush3.bf16.msra.mxu1 %v961_v22 }
   0xe   :  { %963 = vmatprep.subr.bf16.mxu1 %v1028_v19 }
   0xf   :  { %862 = vmatpush3.bf16.msra.mxu0 %v1011_v3 }
  0x10   :  { %863 = vmatprep.subr.bf16.mxu0 %v1012_v5 }
  0x11   :  { %965 = vmatpush3.bf16.msra.mxu1 %v964_v25 }
  0x12   :  { %966 = vmatprep.subr.bf16.mxu1 %v1028_v19 }
  0x13   :  { %864 = vmatpush3.bf16.msra.mxu0 %v1012_v5 }
  0x14   :  { %865 = vmatprep.subr.bf16.mxu0 %v1013_v6 }
  0x15   :  { %968 = vmatpush3.bf16.msra.mxu1 %v967_v28 }
  0x16   :  { %969 = vmatprep.subr.bf16.mxu1 %v1028_v19 }
  0x17   :  { %866 = vmatpush3.bf16.msra.mxu0 %v1013_v6 }
  0x18   :  { %867 = vmatprep.subr.bf16.mxu0 %v1014_v7 }
  0x19   :  { %971 = vmatpush3.bf16.msra.mxu1 %v970_v31 }
  0x1a   :  { %972 = vmatprep.subr.bf16.mxu1 %v1028_v19 }
  0x1b   :  { %868 = vmatpush3.bf16.msra.mxu0 %v1014_v7 }
  0x1c   :  { %869 = vmatprep.subr.bf16.mxu0 %v1015_v8 }
  0x1d   :  { %974 = vmatpush3.bf16.msra.mxu1 %v973_v34 }
  0x1e   :  { %975 = vmatprep.subr.bf16.mxu1 %v1028_v19 }
  0x1f   :  { %870 = vmatpush3.bf16.msra.mxu0 %v1015_v8 }
  0x20   :  { %981 = vmatprep.subr.bf16.mxu0 %v1028_v19 }
  0x21   :  { %977 = vmatpush3.bf16.msra.mxu1 %v976_v37 }
  0x22   :  { %872 = vmatmul.mubr.bf16.vlgmr.msra.gmra.mrb[0].mxu0 %v1017_v9  ;;  %978 = vmatprep.subr.bf16.mxu1 %v1028_v19 }
  0x23   :  { %875 = vmatprep.mubr.bf16.mxu0 %v1018_v10  ;;  %983 = vmatpush3.bf16.msra.mxu0 %v958_v18 }
  0x24   :  { %984 = vmatprep.subr.bf16.mxu0 %v1028_v19 }
  0x25   :  { %980 = vmatpush3.bf16.msra.mxu1 %v979_v40 }
  0x27   :  { %986 = vmatpush3.bf16.msra.mxu0 %v961_v22 }
  0x28   :  { %987 = vmatprep.subr.bf16.mxu0 %v1028_v19 }
  0x2a   :  { %876 = vmatmul.mubr.bf16.gmra.mrb[4].mxu0 %v1019_v11 }
  0x2b   :  { %879 = vmatprep.mubr.bf16.mxu0 %v1020_v12  ;;  %989 = vmatpush3.bf16.msra.mxu0 %v964_v25 }
  0x2c   :  { %990 = vmatprep.subr.bf16.mxu0 %v1028_v19 }
  0x2f   :  { %992 = vmatpush3.bf16.msra.mxu0 %v967_v28 }
  0x30   :  { %993 = vmatprep.subr.bf16.mxu0 %v1028_v19 }
  0x32   :  { %880 = vmatmul.mubr.bf16.gmra.mrb[8].mxu0 %v1021_v13 }
  0x33   :  { %883 = vmatprep.mubr.bf16.mxu0 %v1022_v14  ;;  %995 = vmatpush3.bf16.msra.mxu0 %v970_v31 }
  0x34   :  { %996 = vmatprep.subr.bf16.mxu0 %v1028_v19 }
  0x37   :  { %998 = vmatpush3.bf16.msra.mxu0 %v973_v34 }
  0x38   :  { %999 = vmatprep.subr.bf16.mxu0 %v1028_v19 }
  0x3a   :  { %884 = vmatmul.mubr.bf16.gmra.mrb[12].mxu0 %v1023_v15 }
  0x3b   :  { %1001 = vmatpush3.bf16.msra.mxu0 %v976_v37  ;;  %954 = vmatprep.mubr.msk.f32.mxu0 %vm1029_vm0, %v1030_v41 }
  0x3c   :  { %1002 = vmatprep.subr.bf16.mxu0 %v1028_v19 }
  0x3f   :  { %1004 = vmatpush3.bf16.msra.mxu0 %v979_v40 }
  0xf5   :  { %v1157_v42 = vpop.f32.mrb[0].mxu0 }
  0xf6   :  { %v1159_v43 = vpop.f32.mrb[1].mxu0  ;;  %v356_v49 = vmul.f32 %v1157_v42, %v1157_v42 }
  0xf7   :  { %v1161_v44 = vpop.f32.mrb[2].mxu0  ;;  %v354_v46 = vmul.f32 %v1159_v43, %v1159_v43 }
  0xf8   :  { %v1163_v45 = vpop.f32.mrb[3].mxu0  ;;  %v357_v52 = vmul.f32 %v1161_v44, %v1161_v44 }
  0xf9   :  { %v333_v47 = vadd.f32 %v1163_v45, %v1159_v43  ;;  %v355_v48 = vmul.f32 %v1163_v45, %v1163_v45 }
  0xfb   :  { %v334_v50 = vadd.f32 %v1157_v42, %v333_v47  ;;  %v370_v51 = vadd.f32 %v355_v48, %v354_v46 }
  0xfd   :  { %v371_v53 = vadd.f32 %v370_v51, %v356_v49  ;;  %v1176_v54 = vpop.f32.mrb[4].mxu0  ;;  %v335_v55 = vadd.f32 %v1161_v44, %v334_v50 }
  0xfe   :  { %v1179_v56 = vpop.f32.mrb[5].mxu0  ;;  %v360_v1 = vmul.f32 %v1176_v54, %v1176_v54 }
  0xff   :  { %v336_v57 = vadd.f32 %v335_v55, %v1179_v56  ;;  %v358_v58 = vmul.f32 %v1179_v56, %v1179_v56  ;;  %v372_v59 = vadd.f32 %v371_v53, %v357_v52  ;;  %v1184_v60 = vpop.f32.mrb[6].mxu0 }
 0x100   :  { %v1186_v61 = vpop.f32.mrb[7].mxu0  ;;  %v361_v4 = vmul.f32 %v1184_v60, %v1184_v60 }
 0x101   :  { %v373_v62 = vadd.f32 %v372_v59, %v358_v58  ;;  %v337_v63 = vadd.f32 %v336_v57, %v1186_v61  ;;  %v359_v0 = vmul.f32 %v1186_v61, %v1186_v61 }
 0x103   :  { %v338_v2 = vadd.f32 %v1176_v54, %v337_v63  ;;  %v374_v3 = vadd.f32 %v373_v62, %v359_v0 }
 0x105   :  { %v375_v5 = vadd.f32 %v374_v3, %v360_v1  ;;  %v1196_v6 = vpop.f32.mrb[8].mxu0  ;;  %v339_v7 = vadd.f32 %v1184_v60, %v338_v2 }
 0x106   :  { %v1199_v8 = vpop.f32.mrb[9].mxu0  ;;  %v364_v17 = vmul.f32 %v1196_v6, %v1196_v6 }
 0x107   :  { %v340_v9 = vadd.f32 %v339_v7, %v1199_v8  ;;  %v362_v10 = vmul.f32 %v1199_v8, %v1199_v8  ;;  %v376_v11 = vadd.f32 %v375_v5, %v361_v4  ;;  %v1204_v12 = vpop.f32.mrb[10].mxu0 }
 0x108   :  { %v1206_v13 = vpop.f32.mrb[11].mxu0  ;;  %v365_v20 = vmul.f32 %v1204_v12, %v1204_v12 }
 0x109   :  { %v377_v14 = vadd.f32 %v376_v11, %v362_v10  ;;  %v341_v15 = vadd.f32 %v340_v9, %v1206_v13  ;;  %v363_v16 = vmul.f32 %v1206_v13, %v1206_v13 }
 0x10b   :  { %v342_v18 = vadd.f32 %v1196_v6, %v341_v15  ;;  %v378_v19 = vadd.f32 %v377_v14, %v363_v16  ;;  %v567_v15 = vlaneseq }
 0x10d   :  { %v379_v21 = vadd.f32 %v378_v19, %v364_v17  ;;  %v1216_v22 = vpop.f32.mrb[12].mxu0  ;;  %v343_v23 = vadd.f32 %v1204_v12, %v342_v18  ;;  %v568_v16 = vshrl.u32 %v567_v15, 7  ;;  %v552_v17 = vld [vmem:[%s1286_s3] sm:$0x1] }
 0x10e   :  { %v1219_v24 = vpop.f32.mrb[13].mxu0  ;;  %v368_v33 = vmul.f32 %v1216_v22, %v1216_v22 }
 0x10f   :  { %v344_v25 = vadd.f32 %v343_v23, %v1219_v24  ;;  %v366_v26 = vmul.f32 %v1219_v24, %v1219_v24  ;;  %v380_v27 = vadd.f32 %v379_v21, %v365_v20  ;;  %v1224_v28 = vpop.f32.mrb[14].mxu0  ;;  %v569_v18 = vsub.s32 0, %v568_v16  ;;  %v563_v21 = vld [vmem:[%s1287_s4] sm:$0x1] }
 0x110   :  { %v1226_v29 = vpop.f32.mrb[15].mxu0  ;;  %v369_v36 = vmul.f32 %v1224_v28, %v1224_v28 }
 0x111   :  { %v381_v30 = vadd.f32 %v380_v27, %v366_v26  ;;  %v345_v31 = vadd.f32 %v344_v25, %v1226_v29  ;;  %v367_v32 = vmul.f32 %v1226_v29, %v1226_v29 }
 0x113   :  { %v346_v34 = vadd.f32 %v1216_v22, %v345_v31  ;;  %v382_v35 = vadd.f32 %v381_v30, %v367_v32 }
 0x115   :  { %v347_v37 = vadd.f32 %v1224_v28, %v346_v34  ;;  %v383_v38 = vadd.f32 %v382_v35, %v368_v33 }
 0x117   :  { %v348_v39 = vrot.slane %v347_v37, 4  ;;  %v384_v40 = vadd.f32 %v383_v38, %v369_v36 }
 0x119   :  { %v385_v41 = vrot.slane %v384_v40, 4  ;;  %v349_v46 = vadd.f32 %v348_v39, %v347_v37 }
 0x11b   :  { %v386_v47 = vadd.f32 %v385_v41, %v384_v40  ;;  %v350_v48 = vrot.slane %v349_v46, 2 }
 0x11d   :  { %v387_v49 = vrot.slane %v386_v47, 2  ;;  %v351_v50 = vadd.f32 %v350_v48, %v349_v46 }
 0x11f   :  { %v388_v51 = vadd.f32 %v387_v49, %v386_v47  ;;  %v352_v52 = vrot.slane %v351_v50, 1 }
 0x121   :  { %v353_v53 = vadd.f32 %v352_v52, %v351_v50  ;;  %v389_v55 = vrot.slane %v388_v51, 1 }
 0x123   :  { %920 = vmatmul.mubr.f32.vlgmr.msra.gmra.mrb[0].mxu1 %v353_v53  ;;  %v390_v57 = vadd.f32 %v389_v55, %v388_v51 }
 0x125   :  { %955 = vmatmul.mubr.f32.vlgmr.msra.gmra.mrb[16].mxu0 %v390_v57 }
 0x1f6   :  { %v473_v58 = vpop.f32.mrb[0].mxu1 }
 0x1f7   :  { %v547_v59 = vmul.f32 0.0078125, %v473_v58  ;;  %v921_v62 = vpop.f32.mrb[1].mxu1 }
 0x1f8   :  { %v543_v63 = vpop.f32.mrb[16].mxu0 }
 0x1f9   :  { %v549_v0 = vmul.f32 %v547_v59, %v547_v59  ;;  %v548_v1 = vmul.f32 0.0078125, %v543_v63  ;;  %v956_v2 = vpop.f32.mrb[17].mxu0 }
 0x1fb   :  { %v550_v3 = vsub.f32 %v548_v1, %v549_v0 }
 0x1fd   :  { %v551_v4 = vmax.f32 %v550_v3, 0.0 }
 0x1ff   :  { %v553_v5 = vadd.f32 1e-05, %v551_v4 }
 0x201   :  { %1024 = vrsqrt.f32 %v553_v5  ;;  %vm556_vm1 = vcmp.eq.f32.partialorder %v553_v5, inf  ;;  %v559_v10 = vand.u32 2147483648, %v553_v5  ;;  %vm558_vm2 = vcmp.eq.f32.partialorder %v553_v5, 0.0 }
 0x20b   :  { %v1025_v7 = vpop.eup %1024 }
 0x20c   :  { %v555_v9 = vmul.f32 %v1025_v7, %v553_v5 }
 0x20e   :  { %v557_v11 = vsel %vm556_vm1, %v553_v5, %v555_v9 }
 0x20f   :  { %v560_v14 = vsel %vm558_vm2, %v559_v10, %v557_v11 }
 0x210   :  { %1026 = vrcp.f32 %v560_v14 }
 0x21a   :  { %v1027_v19 = vpop.eup %1026 }
 0x21b   :  { %v562_v20 = vmul.f32 %v1027_v19, %v552_v17 }
 0x21d   :  { %v564_v23 = vmul.f32 %v562_v20, %v547_v59  ;;  %v570_v25 = vrot.slane %v562_v20, %v569_v18 }
 0x21f   :  { %v565_v26 = vsub.f32 %v563_v21, %v564_v23  ;;  %v572_v27 = vmul.f32 %v570_v25, %v1159_v43  ;;  %v573_v30 = vmul.f32 %v570_v25, %v1163_v45  ;;  %v574_v31 = vmul.f32 %v1157_v42, %v570_v25 }
 0x220   :  { %v575_v32 = vmul.f32 %v1161_v44, %v570_v25  ;;  %v576_v33 = vmul.f32 %v570_v25, %v1179_v56  ;;  %v577_v34 = vmul.f32 %v570_v25, %v1186_v61  ;;  %v578_v35 = vmul.f32 %v1176_v54, %v570_v25 }
 0x221   :  { %v579_v36 = vmul.f32 %v1184_v60, %v570_v25  ;;  %v580_v37 = vmul.f32 %v570_v25, %v1199_v8  ;;  %v581_v38 = vmul.f32 %v570_v25, %v1206_v13  ;;  %v582_v43 = vmul.f32 %v1196_v6, %v570_v25 }
 0x222   :  { %v583_v45 = vmul.f32 %v1204_v12, %v570_v25  ;;  %v584_v42 = vmul.f32 %v570_v25, %v1219_v24  ;;  %v585_v44 = vmul.f32 %v570_v25, %v1226_v29  ;;  %v586_v56 = vmul.f32 %v1216_v22, %v570_v25 }
 0x223   :  { %v587_v61 = vmul.f32 %v1224_v28, %v570_v25  ;;  %v592_v39 = vrot.slane %v565_v26, %v569_v18 }
 0x225   :  { %v594_v54 = vadd.f32 %v592_v39, %v572_v27  ;;  %v595_v40 = vadd.f32 %v592_v39, %v573_v30  ;;  %v596_v60 = vadd.f32 %v592_v39, %v574_v31  ;;  %v597_v41 = vadd.f32 %v592_v39, %v575_v32 }
 0x226   :  { %v598_v8 = vadd.f32 %v592_v39, %v576_v33  ;;  %v599_v46 = vadd.f32 %v592_v39, %v577_v34  ;;  %v600_v13 = vadd.f32 %v592_v39, %v578_v35  ;;  %v601_v47 = vadd.f32 %v592_v39, %v579_v36 }
 0x227   :  { %v602_v6 = vadd.f32 %v592_v39, %v580_v37  ;;  %v603_v48 = vadd.f32 %v592_v39, %v581_v38  ;;  %v604_v12 = vadd.f32 %v592_v39, %v582_v43  ;;  %v605_v49 = vadd.f32 %v592_v39, %v583_v45 }
 0x228   :  { %v606_v24 = vadd.f32 %v592_v39, %v584_v42  ;;  %v607_v50 = vadd.f32 %v592_v39, %v585_v44  ;;  %v608_v29 = vadd.f32 %v592_v39, %v586_v56  ;;  %v609_v51 = vadd.f32 %v592_v39, %v587_v61 }
 0x229   :  { %v610_v22 = vmax.f32 %v594_v54, 0.0  ;;  %v611_v52 = vmax.f32 %v595_v40, 0.0  ;;  %v612_v28 = vmax.f32 %v596_v60, 0.0  ;;  %v613_v53 = vmax.f32 %v597_v41, 0.0 }
 0x22a   :  { %v614_v55 = vmax.f32 %v598_v8, 0.0  ;;  %v615_v57 = vmax.f32 %v599_v46, 0.0  ;;  %v616_v58 = vmax.f32 %v600_v13, 0.0  ;;  %v617_v59 = vmax.f32 %v601_v47, 0.0 }
 0x22b   :  { %v618_v62 = vmax.f32 %v602_v6, 0.0  ;;  %v619_v63 = vmax.f32 %v603_v48, 0.0  ;;  %v620_v0 = vmax.f32 %v604_v12, 0.0  ;;  %v621_v1 = vmax.f32 %v605_v49, 0.0 }
 0x22c   :  { %v622_v2 = vmax.f32 %v606_v24, 0.0  ;;  %v623_v3 = vmax.f32 %v607_v50, 0.0  ;;  %v624_v4 = vmax.f32 %v608_v29, 0.0  ;;  %v625_v5 = vmax.f32 %v609_v51, 0.0 }
 0x22d   :  { %v761_v7 = vpack.c.bf16 %v611_v52, %v610_v22  ;;  %v766_v9 = vpack.c.bf16 %v613_v53, %v612_v28  ;;  %v771_v10 = vpack.c.bf16 %v615_v57, %v614_v55  ;;  %v776_v11 = vpack.c.bf16 %v617_v59, %v616_v58 }
 0x22e   :  { %v781_v14 = vpack.c.bf16 %v619_v63, %v618_v62  ;;  %v786_v15 = vpack.c.bf16 %v621_v1, %v620_v0  ;;  %v791_v16 = vpack.c.bf16 %v623_v3, %v622_v2  ;;  %v796_v17 = vpack.c.bf16 %v625_v5, %v624_v4 }
 0x22f   :  { %762 = vst [vmem:[%s1288_s5] sm:$0xff] %v761_v7   ;;  %798 = vst [vmem:[%s1288_s5 + $0x8] sm:$0xff] %v766_v9  }
 0x230   :  { %799 = vst [vmem:[%s1288_s5 + $0x10] sm:$0xff] %v771_v10   ;;  %800 = vst [vmem:[%s1288_s5 + $0x18] sm:$0xff] %v776_v11  }
 0x231   :  { %801 = vst [vmem:[%s1288_s5 + $0x20] sm:$0xff] %v781_v14   ;;  %802 = vst [vmem:[%s1288_s5 + $0x28] sm:$0xff] %v786_v15  }
 0x232   :  { %803 = vst [vmem:[%s1288_s5 + $0x30] sm:$0xff] %v791_v16   ;;  %804 = vst [vmem:[%s1288_s5 + $0x38] sm:$0xff] %v796_v17  }

// kernel: resnet_generator.12
= control target key start
LH: loop header
LB: loop body
LE: loop exit
PB: predicated region body
PF: predicated region fallthrough
CT: control target
= control target key end

     0   :  { %v742_v1 = vmov 0.0|0.0   ;;  %vm743_vm0 = vmmov 0   ;;  %v744_v45 = vmov 0.0   ;;  %s923_s1 = inlined_call_operand.vmem [shape: bf16[256,128], index: 1, kind: input, shape index: {}]   ;;  %s924_s0 = inlined_call_operand.vmem [shape: bf16[32,256], index: 0, kind: input, shape index: {}]   ;;  %s925_s2 = inlined_call_operand.vmem [shape: f32[128,128], index: 2, kind: input, shape index: {}]   ;;  %s926_s3 = inlined_call_operand.vmem [shape: f32[1,128], index: 3, kind: input, shape index: {}]   ;;  %s927_s4 = inlined_call_operand.vmem [shape: f32[1,128], index: 4, kind: input, shape index: {}]   ;;  %s928_s5 = inlined_call_operand.vmem [shape: bf16[32,128], index: 5, kind: output, shape index: {}]  }
   0x1   :  { %v716_v0 = vld [vmem:[%s923_s1 + $0x40] sm:$0xff]   ;;  %665 = vmatprep.subr.bf16.mxu1 %v742_v1  ;;  %v718_v3 = vld [vmem:[%s923_s1 + $0x48] sm:$0xff]   ;;  %v720_v5 = vld [vmem:[%s923_s1 + $0x50] sm:$0xff]   ;;  %627 = vmatprep.mubr.msk.f32.mxu1 %vm743_vm0, %v744_v45 }
   0x2   :  { %v717_v2 = vld [vmem:[%s923_s1] sm:$0xff]   ;;  %533 = vmatprep.subr.bf16.mxu0 %v716_v0  ;;  %v719_v4 = vld [vmem:[%s923_s1 + $0x8] sm:$0xff]   ;;  %v721_v6 = vld [vmem:[%s923_s1 + $0x10] sm:$0xff]  }
   0x3   :  { %534 = vmatpush3.bf16.msra.mxu0 %v717_v2  ;;  %v722_v7 = vld [vmem:[%s923_s1 + $0x58] sm:$0xff]   ;;  %v724_v9 = vld [vmem:[%s923_s1 + $0x60] sm:$0xff]   ;;  %v726_v11 = vld [vmem:[%s923_s1 + $0x68] sm:$0xff]  }
   0x4   :  { %535 = vmatprep.subr.bf16.mxu0 %v718_v3  ;;  %v723_v8 = vld [vmem:[%s923_s1 + $0x18] sm:$0xff]   ;;  %v725_v10 = vld [vmem:[%s923_s1 + $0x20] sm:$0xff]   ;;  %v727_v14 = vld [vmem:[%s923_s1 + $0x28] sm:$0xff]  }
   0x5   :  { %v734_v12 = vld [vmem:[%s924_s0 + $0x4] ss:$8 sps:$4 sm:$0xff]   ;;  %v728_v16 = vld [vmem:[%s923_s1 + $0x70] sm:$0xff]   ;;  %v730_v19 = vld [vmem:[%s923_s1 + $0x78] sm:$0xff]  }
   0x6   :  { %v271_v13 = vld [vmem:[%s925_s2] sm:$0xff]  ;;  %217 = vmatprep.mubr.bf16.mxu0 %v734_v12  ;;  %v272_v15 = vld [vmem:[%s925_s2 + $0x8] sm:$0xff]  ;;  %v729_v18 = vld [vmem:[%s923_s1 + $0x30] sm:$0xff]  }
   0x7   :  { %536 = vmatpush3.bf16.msra.mxu0 %v719_v4  ;;  %v666_v17 = vpack.c.bf16 %v272_v15, %v271_v13  ;;  %v731_v20 = vld [vmem:[%s923_s1 + $0x38] sm:$0xff]   ;;  %v732_v21 = vld [vmem:[%s924_s0] ss:$8 sps:$4 sm:$0xff]   ;;  %v273_v24 = vld [vmem:[%s925_s2 + $0x10] sm:$0xff] }
   0x8   :  { %537 = vmatprep.subr.bf16.mxu0 %v720_v5  ;;  %v735_v22 = vld [vmem:[%s924_s0 + $0x14] ss:$8 sps:$4 sm:$0xff]   ;;  %v737_v23 = vld [vmem:[%s924_s0 + $0x10] ss:$8 sps:$4 sm:$0xff]   ;;  %v275_v27 = vld [vmem:[%s925_s2 + $0x20] sm:$0xff] }
   0x9   :  { %667 = vmatpush3.bf16.msra.mxu1 %v666_v17  ;;  %v274_v25 = vld [vmem:[%s925_s2 + $0x18] sm:$0xff]  ;;  %v276_v28 = vld [vmem:[%s925_s2 + $0x28] sm:$0xff]  ;;  %v277_v30 = vld [vmem:[%s925_s2 + $0x30] sm:$0xff] }
   0xa   :  { %668 = vmatprep.subr.bf16.mxu1 %v742_v1  ;;  %v669_v26 = vpack.c.bf16 %v274_v25, %v273_v24  ;;  %v672_v29 = vpack.c.bf16 %v276_v28, %v275_v27  ;;  %v278_v31 = vld [vmem:[%s925_s2 + $0x38] sm:$0xff]  ;;  %v279_v33 = vld [vmem:[%s925_s2 + $0x40] sm:$0xff]  ;;  %v280_v34 = vld [vmem:[%s925_s2 + $0x48] sm:$0xff] }
   0xb   :  { %538 = vmatpush3.bf16.msra.mxu0 %v721_v6  ;;  %v675_v32 = vpack.c.bf16 %v278_v31, %v277_v30  ;;  %v678_v35 = vpack.c.bf16 %v280_v34, %v279_v33  ;;  %v281_v36 = vld [vmem:[%s925_s2 + $0x50] sm:$0xff]  ;;  %v282_v37 = vld [vmem:[%s925_s2 + $0x58] sm:$0xff]  ;;  %v283_v39 = vld [vmem:[%s925_s2 + $0x60] sm:$0xff]  ;;  %v447_v31 = vlaneseq }
   0xc   :  { %539 = vmatprep.subr.bf16.mxu0 %v722_v7  ;;  %v681_v38 = vpack.c.bf16 %v282_v37, %v281_v36  ;;  %v284_v40 = vld [vmem:[%s925_s2 + $0x68] sm:$0xff]  ;;  %v285_v42 = vld [vmem:[%s925_s2 + $0x70] sm:$0xff]  ;;  %v286_v43 = vld [vmem:[%s925_s2 + $0x78] sm:$0xff] }
   0xd   :  { %670 = vmatpush3.bf16.msra.mxu1 %v669_v26  ;;  %v684_v41 = vpack.c.bf16 %v284_v40, %v283_v39  ;;  %v687_v44 = vpack.c.bf16 %v286_v43, %v285_v42  ;;  %v432_v33 = vld [vmem:[%s926_s3] sm:$0x1] }
   0xe   :  { %671 = vmatprep.subr.bf16.mxu1 %v742_v1  ;;  %v443_v37 = vld [vmem:[%s927_s4] sm:$0x1] }
   0xf   :  { %540 = vmatpush3.bf16.msra.mxu0 %v723_v8 }
  0x10   :  { %541 = vmatprep.subr.bf16.mxu0 %v724_v9 }
  0x11   :  { %673 = vmatpush3.bf16.msra.mxu1 %v672_v29 }
  0x12   :  { %674 = vmatprep.subr.bf16.mxu1 %v742_v1 }
  0x13   :  { %542 = vmatpush3.bf16.msra.mxu0 %v725_v10 }
  0x14   :  { %543 = vmatprep.subr.bf16.mxu0 %v726_v11 }
  0x15   :  { %676 = vmatpush3.bf16.msra.mxu1 %v675_v32 }
  0x16   :  { %677 = vmatprep.subr.bf16.mxu1 %v742_v1 }
  0x17   :  { %544 = vmatpush3.bf16.msra.mxu0 %v727_v14 }
  0x18   :  { %545 = vmatprep.subr.bf16.mxu0 %v728_v16 }
  0x19   :  { %679 = vmatpush3.bf16.msra.mxu1 %v678_v35 }
  0x1a   :  { %680 = vmatprep.subr.bf16.mxu1 %v742_v1 }
  0x1b   :  { %546 = vmatpush3.bf16.msra.mxu0 %v729_v18 }
  0x1c   :  { %547 = vmatprep.subr.bf16.mxu0 %v730_v19 }
  0x1d   :  { %682 = vmatpush3.bf16.msra.mxu1 %v681_v38 }
  0x1e   :  { %683 = vmatprep.subr.bf16.mxu1 %v742_v1 }
  0x1f   :  { %548 = vmatpush3.bf16.msra.mxu0 %v731_v20 }
  0x20   :  { %689 = vmatprep.subr.bf16.mxu0 %v742_v1 }
  0x21   :  { %685 = vmatpush3.bf16.msra.mxu1 %v684_v41 }
  0x22   :  { %218 = vmatmul.mubr.bf16.vlgmr.msra.gmra.mrb[0].mxu0 %v732_v21  ;;  %686 = vmatprep.subr.bf16.mxu1 %v742_v1 }
  0x23   :  { %225 = vmatprep.mubr.bf16.mxu0 %v735_v22  ;;  %691 = vmatpush3.bf16.msra.mxu0 %v666_v17 }
  0x24   :  { %692 = vmatprep.subr.bf16.mxu0 %v742_v1 }
  0x25   :  { %688 = vmatpush3.bf16.msra.mxu1 %v687_v44 }
  0x27   :  { %694 = vmatpush3.bf16.msra.mxu0 %v669_v26 }
  0x28   :  { %695 = vmatprep.subr.bf16.mxu0 %v742_v1 }
  0x2a   :  { %226 = vmatmul.mubr.bf16.gmra.mrb[4].mxu0 %v737_v23 }
  0x2b   :  { %697 = vmatpush3.bf16.msra.mxu0 %v672_v29  ;;  %662 = vmatprep.mubr.msk.f32.mxu0 %vm743_vm0, %v744_v45 }
  0x2c   :  { %698 = vmatprep.subr.bf16.mxu0 %v742_v1 }
  0x2f   :  { %700 = vmatpush3.bf16.msra.mxu0 %v675_v32  ;;  %v448_v32 = vshrl.u32 %v447_v31, 7 }
  0x30   :  { %701 = vmatprep.subr.bf16.mxu0 %v742_v1 }
  0x31   :  { %v449_v34 = vsub.s32 0, %v448_v32 }
  0x33   :  { %703 = vmatpush3.bf16.msra.mxu0 %v678_v35 }
  0x34   :  { %704 = vmatprep.subr.bf16.mxu0 %v742_v1 }
  0x37   :  { %706 = vmatpush3.bf16.msra.mxu0 %v681_v38 }
  0x38   :  { %707 = vmatprep.subr.bf16.mxu0 %v742_v1 }
  0x3b   :  { %709 = vmatpush3.bf16.msra.mxu0 %v684_v41 }
  0x3c   :  { %710 = vmatprep.subr.bf16.mxu0 %v742_v1 }
  0x3f   :  { %712 = vmatpush3.bf16.msra.mxu0 %v687_v44 }
  0xf5   :  { %v549_v46 = vpop.f32.mrb[0].mxu0 }
  0xf6   :  { %v550_v47 = vpop.f32.mrb[1].mxu0 }
  0xf7   :  { %v899_v48 = vadd.f32 %v550_v47, %v549_v46  ;;  %v552_v49 = vpop.f32.mrb[2].mxu0 }
  0xf8   :  { %v553_v50 = vpop.f32.mrb[3].mxu0 }
  0xf9   :  { %v901_v51 = vadd.f32 %v553_v50, %v552_v49  ;;  %v258_v55 = vmul.f32 %v899_v48, %v899_v48 }
  0xfb   :  { %v259_v52 = vmul.f32 %v901_v51, %v901_v51  ;;  %v249_v56 = vadd.f32 %v901_v51, %v899_v48 }
  0xfd   :  { %v555_v53 = vpop.f32.mrb[4].mxu0  ;;  %v262_v60 = vadd.f32 %v259_v52, %v258_v55 }
  0xfe   :  { %v556_v54 = vpop.f32.mrb[5].mxu0 }
  0xff   :  { %v557_v57 = vadd.f32 %v556_v54, %v555_v53  ;;  %v558_v58 = vpop.f32.mrb[6].mxu0 }
 0x100   :  { %v559_v59 = vpop.f32.mrb[7].mxu0 }
 0x101   :  { %v250_v61 = vadd.f32 %v557_v57, %v249_v56  ;;  %v260_v62 = vmul.f32 %v557_v57, %v557_v57  ;;  %v560_v63 = vadd.f32 %v559_v59, %v558_v58 }
 0x103   :  { %v263_v0 = vadd.f32 %v262_v60, %v260_v62  ;;  %v251_v1 = vadd.f32 %v560_v63, %v250_v61  ;;  %v261_v2 = vmul.f32 %v560_v63, %v560_v63 }
 0x105   :  { %v252_v3 = vrot.slane %v251_v1, 4  ;;  %v264_v4 = vadd.f32 %v263_v0, %v261_v2 }
 0x107   :  { %v253_v5 = vadd.f32 %v252_v3, %v251_v1  ;;  %v265_v6 = vrot.slane %v264_v4, 4 }
 0x109   :  { %v266_v7 = vadd.f32 %v265_v6, %v264_v4  ;;  %v254_v8 = vrot.slane %v253_v5, 2 }
 0x10b   :  { %v267_v9 = vrot.slane %v266_v7, 2  ;;  %v255_v10 = vadd.f32 %v254_v8, %v253_v5 }
 0x10d   :  { %v268_v11 = vadd.f32 %v267_v9, %v266_v7  ;;  %v256_v12 = vrot.slane %v255_v10, 1 }
 0x10f   :  { %v269_v13 = vrot.slane %v268_v11, 1  ;;  %v257_v14 = vadd.f32 %v256_v12, %v255_v10 }
 0x111   :  { %628 = vmatmul.mubr.f32.vlgmr.msra.gmra.mrb[0].mxu1 %v257_v14  ;;  %v270_v15 = vadd.f32 %v269_v13, %v268_v11 }
 0x113   :  { %663 = vmatmul.mubr.f32.vlgmr.msra.gmra.mrb[8].mxu0 %v270_v15 }
 0x1e4   :  { %v353_v16 = vpop.f32.mrb[0].mxu1 }
 0x1e5   :  { %v427_v17 = vmul.f32 0.03125, %v353_v16  ;;  %v629_v18 = vpop.f32.mrb[1].mxu1 }
 0x1e6   :  { %v423_v19 = vpop.f32.mrb[8].mxu0 }
 0x1e7   :  { %v429_v20 = vmul.f32 %v427_v17, %v427_v17  ;;  %v428_v21 = vmul.f32 0.03125, %v423_v19  ;;  %v664_v22 = vpop.f32.mrb[9].mxu0 }
 0x1e9   :  { %v430_v23 = vsub.f32 %v428_v21, %v429_v20 }
 0x1eb   :  { %v431_v24 = vmax.f32 %v430_v23, 0.0 }
 0x1ed   :  { %v433_v25 = vadd.f32 1e-05, %v431_v24 }
 0x1ef   :  { %738 = vrsqrt.f32 %v433_v25  ;;  %vm436_vm1 = vcmp.eq.f32.partialorder %v433_v25, inf  ;;  %v439_v28 = vand.u32 2147483648, %v433_v25  ;;  %vm438_vm2 = vcmp.eq.f32.partialorder %v433_v25, 0.0 }
 0x1f9   :  { %v739_v26 = vpop.eup %738 }
 0x1fa   :  { %v435_v27 = vmul.f32 %v739_v26, %v433_v25 }
 0x1fc   :  { %v437_v29 = vsel %vm436_vm1, %v433_v25, %v435_v27 }
 0x1fd   :  { %v440_v30 = vsel %vm438_vm2, %v439_v28, %v437_v29 }
 0x1fe   :  { %740 = vrcp.f32 %v440_v30 }
 0x208   :  { %v741_v35 = vpop.eup %740 }
 0x209   :  { %v442_v36 = vmul.f32 %v741_v35, %v432_v33 }
 0x20b   :  { %v444_v38 = vmul.f32 %v442_v36, %v427_v17  ;;  %v450_v39 = vrot.slane %v442_v36, %v449_v34 }
 0x20d   :  { %v445_v40 = vsub.f32 %v443_v37, %v444_v38  ;;  %v452_v41 = vmul.f32 %v899_v48, %v450_v39  ;;  %v453_v42 = vmul.f32 %v901_v51, %v450_v39  ;;  %v454_v43 = vmul.f32 %v557_v57, %v450_v39 }
 0x20e   :  { %v455_v44 = vmul.f32 %v560_v63, %v450_v39 }
 0x20f   :  { %v460_v45 = vrot.slane %v445_v40, %v449_v34 }
 0x211   :  { %v462_v46 = vadd.f32 %v460_v45, %v452_v41  ;;  %v463_v47 = vadd.f32 %v460_v45, %v453_v42  ;;  %v464_v49 = vadd.f32 %v460_v45, %v454_v43  ;;  %v465_v50 = vadd.f32 %v460_v45, %v455_v44 }
 0x213   :  { %v466_v52 = vmax.f32 %v462_v46, 0.0  ;;  %v467_v53 = vmax.f32 %v463_v47, 0.0  ;;  %v468_v54 = vmax.f32 %v464_v49, 0.0  ;;  %v469_v55 = vmax.f32 %v465_v50, 0.0 }
 0x215   :  { %v525_v56 = vpack.c.bf16 %v467_v53, %v466_v52  ;;  %v530_v58 = vpack.c.bf16 %v469_v55, %v468_v54 }
 0x217   :  { %526 = vst [vmem:[%s928_s5] sm:$0xff] %v525_v56   ;;  %532 = vst [vmem:[%s928_s5 + $0x8] sm:$0xff] %v530_v58  }

// kernel: resnet_generator.13
= control target key start
LH: loop header
LB: loop body
LE: loop exit
PB: predicated region body
PF: predicated region fallthrough
CT: control target
= control target key end

     0   :  { %v917_v32 = vmov 0.0|0.0   ;;  %vm918_vm0 = vmmov 0   ;;  %v919_v55 = vmov 0.0   ;;  %s1112_s1 = inlined_call_operand.vmem [shape: bf16[384,128], index: 1, kind: input, shape index: {}]   ;;  %s1113_s0 = inlined_call_operand.vmem [shape: bf16[32,384], index: 0, kind: input, shape index: {}]   ;;  %s1114_s2 = inlined_call_operand.vmem [shape: f32[128,128], index: 2, kind: input, shape index: {}]   ;;  %s1115_s3 = inlined_call_operand.vmem [shape: f32[1,128], index: 3, kind: input, shape index: {}]   ;;  %s1116_s4 = inlined_call_operand.vmem [shape: f32[1,128], index: 4, kind: input, shape index: {}]   ;;  %s1117_s5 = inlined_call_operand.vmem [shape: bf16[32,128], index: 5, kind: output, shape index: {}]  }
   0x1   :  { %v881_v0 = vld [vmem:[%s1112_s1 + $0x40] sm:$0xff]   ;;  %v884_v3 = vld [vmem:[%s1112_s1 + $0x48] sm:$0xff]   ;;  %v887_v6 = vld [vmem:[%s1112_s1 + $0x50] sm:$0xff]  }
   0x2   :  { %v882_v1 = vld [vmem:[%s1112_s1] sm:$0xff]   ;;  %668 = vmatprep.subr.bf16.mxu0 %v881_v0  ;;  %v885_v4 = vld [vmem:[%s1112_s1 + $0x8] sm:$0xff]   ;;  %v888_v7 = vld [vmem:[%s1112_s1 + $0x10] sm:$0xff]  }
   0x3   :  { %v883_v2 = vld [vmem:[%s1112_s1 + $0x80] sm:$0xff]   ;;  %669 = vmatpush3.bf16.msra.mxu0 %v882_v1  ;;  %v886_v5 = vld [vmem:[%s1112_s1 + $0x88] sm:$0xff]   ;;  %v889_v8 = vld [vmem:[%s1112_s1 + $0x90] sm:$0xff]  }
   0x4   :  { %740 = vmatprep.subr.bf16.mxu1 %v883_v2  ;;  %670 = vmatprep.subr.bf16.mxu0 %v884_v3  ;;  %v890_v9 = vld [vmem:[%s1112_s1 + $0x58] sm:$0xff]   ;;  %v893_v12 = vld [vmem:[%s1112_s1 + $0x60] sm:$0xff]   ;;  %v896_v15 = vld [vmem:[%s1112_s1 + $0x68] sm:$0xff]  }
   0x5   :  { %741 = vmatpush3.bf16.msra.mxu1 %v883_v2  ;;  %v891_v10 = vld [vmem:[%s1112_s1 + $0x18] sm:$0xff]   ;;  %v895_v13 = vld [vmem:[%s1112_s1 + $0xa0] sm:$0xff]   ;;  %v898_v16 = vld [vmem:[%s1112_s1 + $0xa8] sm:$0xff]  }
   0x6   :  { %742 = vmatprep.subr.bf16.mxu1 %v886_v5  ;;  %v892_v11 = vld [vmem:[%s1112_s1 + $0x98] sm:$0xff]   ;;  %v894_v14 = vld [vmem:[%s1112_s1 + $0x20] sm:$0xff]   ;;  %v897_v17 = vld [vmem:[%s1112_s1 + $0x28] sm:$0xff]  }
   0x7   :  { %671 = vmatpush3.bf16.msra.mxu0 %v885_v4  ;;  %v899_v18 = vld [vmem:[%s1112_s1 + $0x70] sm:$0xff]   ;;  %v902_v21 = vld [vmem:[%s1112_s1 + $0x78] sm:$0xff]   ;;  %v400_v26 = vld [vmem:[%s1114_s2] sm:$0xff] }
   0x8   :  { %672 = vmatprep.subr.bf16.mxu0 %v887_v6  ;;  %v900_v19 = vld [vmem:[%s1112_s1 + $0x30] sm:$0xff]   ;;  %v904_v22 = vld [vmem:[%s1112_s1 + $0xb8] sm:$0xff]   ;;  %v401_v27 = vld [vmem:[%s1114_s2 + $0x8] sm:$0xff] }
   0x9   :  { %743 = vmatpush3.bf16.msra.mxu1 %v886_v5  ;;  %v901_v20 = vld [vmem:[%s1112_s1 + $0xb0] sm:$0xff]   ;;  %v903_v25 = vld [vmem:[%s1112_s1 + $0x38] sm:$0xff]   ;;  %v905_v28 = vld [vmem:[%s1113_s0] ss:$12 sps:$4 sm:$0xff]   ;;  %v831_v30 = vpack.c.bf16 %v401_v27, %v400_v26 }
   0xa   :  { %744 = vmatprep.subr.bf16.mxu1 %v889_v8  ;;  %v907_v23 = vld [vmem:[%s1113_s0 + $0x4] ss:$12 sps:$4 sm:$0xff]   ;;  %v908_v24 = vld [vmem:[%s1113_s0 + $0x8] ss:$12 sps:$4 sm:$0xff]   ;;  %v909_v31 = vld [vmem:[%s1113_s0 + $0x20] ss:$12 sps:$4 sm:$0xff]  }
   0xb   :  { %673 = vmatpush3.bf16.msra.mxu0 %v888_v7  ;;  %297 = vmatprep.mubr.bf16.mxu0 %v907_v23  ;;  %v910_v29 = vld [vmem:[%s1113_s0 + $0x1c] ss:$12 sps:$4 sm:$0xff]   ;;  %v912_v33 = vld [vmem:[%s1113_s0 + $0x18] ss:$12 sps:$4 sm:$0xff]   ;;  %v402_v34 = vld [vmem:[%s1114_s2 + $0x10] sm:$0xff] }
   0xc   :  { %674 = vmatprep.subr.bf16.mxu0 %v890_v9  ;;  %756 = vmatprep.mubr.bf16.mxu1 %v908_v24  ;;  %v403_v35 = vld [vmem:[%s1114_s2 + $0x18] sm:$0xff]  ;;  %v404_v37 = vld [vmem:[%s1114_s2 + $0x20] sm:$0xff]  ;;  %v405_v38 = vld [vmem:[%s1114_s2 + $0x28] sm:$0xff] }
   0xd   :  { %745 = vmatpush3.bf16.msra.mxu1 %v889_v8  ;;  %v834_v36 = vpack.c.bf16 %v403_v35, %v402_v34  ;;  %v837_v39 = vpack.c.bf16 %v405_v38, %v404_v37  ;;  %v406_v40 = vld [vmem:[%s1114_s2 + $0x30] sm:$0xff]  ;;  %v407_v41 = vld [vmem:[%s1114_s2 + $0x38] sm:$0xff]  ;;  %v408_v43 = vld [vmem:[%s1114_s2 + $0x40] sm:$0xff] }
   0xe   :  { %746 = vmatprep.subr.bf16.mxu1 %v892_v11  ;;  %v840_v42 = vpack.c.bf16 %v407_v41, %v406_v40  ;;  %v409_v44 = vld [vmem:[%s1114_s2 + $0x48] sm:$0xff]  ;;  %v410_v46 = vld [vmem:[%s1114_s2 + $0x50] sm:$0xff]  ;;  %v411_v47 = vld [vmem:[%s1114_s2 + $0x58] sm:$0xff] }
   0xf   :  { %675 = vmatpush3.bf16.msra.mxu0 %v891_v10  ;;  %v843_v45 = vpack.c.bf16 %v409_v44, %v408_v43  ;;  %v846_v48 = vpack.c.bf16 %v411_v47, %v410_v46  ;;  %v412_v49 = vld [vmem:[%s1114_s2 + $0x60] sm:$0xff]  ;;  %v413_v50 = vld [vmem:[%s1114_s2 + $0x68] sm:$0xff]  ;;  %v414_v52 = vld [vmem:[%s1114_s2 + $0x70] sm:$0xff] }
  0x10   :  { %676 = vmatprep.subr.bf16.mxu0 %v893_v12  ;;  %v849_v51 = vpack.c.bf16 %v413_v50, %v412_v49  ;;  %v415_v53 = vld [vmem:[%s1114_s2 + $0x78] sm:$0xff]  ;;  %v576_v49 = vlaneseq }
  0x11   :  { %747 = vmatpush3.bf16.msra.mxu1 %v892_v11  ;;  %v852_v54 = vpack.c.bf16 %v415_v53, %v414_v52 }
  0x12   :  { %748 = vmatprep.subr.bf16.mxu1 %v895_v13  ;;  %v577_v50 = vshrl.u32 %v576_v49, 7 }
  0x13   :  { %677 = vmatpush3.bf16.msra.mxu0 %v894_v14 }
  0x14   :  { %678 = vmatprep.subr.bf16.mxu0 %v896_v15  ;;  %v578_v52 = vsub.s32 0, %v577_v50 }
  0x15   :  { %749 = vmatpush3.bf16.msra.mxu1 %v895_v13 }
  0x16   :  { %750 = vmatprep.subr.bf16.mxu1 %v898_v16 }
  0x17   :  { %679 = vmatpush3.bf16.msra.mxu0 %v897_v17 }
  0x18   :  { %680 = vmatprep.subr.bf16.mxu0 %v899_v18 }
  0x19   :  { %751 = vmatpush3.bf16.msra.mxu1 %v898_v16 }
  0x1a   :  { %752 = vmatprep.subr.bf16.mxu1 %v901_v20 }
  0x1b   :  { %681 = vmatpush3.bf16.msra.mxu0 %v900_v19 }
  0x1c   :  { %682 = vmatprep.subr.bf16.mxu0 %v902_v21 }
  0x1d   :  { %753 = vmatpush3.bf16.msra.mxu1 %v901_v20 }
  0x1e   :  { %754 = vmatprep.subr.bf16.mxu1 %v904_v22 }
  0x1f   :  { %683 = vmatpush3.bf16.msra.mxu0 %v903_v25 }
  0x20   :  { %830 = vmatprep.subr.bf16.mxu0 %v917_v32 }
  0x21   :  { %755 = vmatpush3.bf16.msra.mxu1 %v904_v22 }
  0x22   :  { %298 = vmatmul.mubr.bf16.vlgmr.msra.gmra.mrb[0].mxu0 %v905_v28  ;;  %854 = vmatprep.subr.bf16.mxu1 %v917_v32 }
  0x23   :  { %305 = vmatprep.mubr.bf16.mxu0 %v910_v29  ;;  %832 = vmatpush3.bf16.msra.mxu0 %v831_v30 }
  0x24   :  { %757 = vmatmul.mubr.bf16.vlgmr.msra.gmra.mrb[0].mxu1 %v909_v31  ;;  %833 = vmatprep.subr.bf16.mxu0 %v917_v32 }
  0x25   :  { %856 = vmatpush3.bf16.msra.mxu1 %v831_v30  ;;  %827 = vmatprep.mubr.msk.f32.mxu1 %vm918_vm0, %v919_v55 }
  0x26   :  { %857 = vmatprep.subr.bf16.mxu1 %v917_v32 }
  0x27   :  { %835 = vmatpush3.bf16.msra.mxu0 %v834_v36 }
  0x28   :  { %836 = vmatprep.subr.bf16.mxu0 %v917_v32 }
  0x29   :  { %859 = vmatpush3.bf16.msra.mxu1 %v834_v36 }
  0x2a   :  { %306 = vmatmul.mubr.bf16.gmra.mrb[4].mxu0 %v912_v33  ;;  %860 = vmatprep.subr.bf16.mxu1 %v917_v32 }
  0x2b   :  { %838 = vmatpush3.bf16.msra.mxu0 %v837_v39  ;;  %792 = vmatprep.mubr.msk.f32.mxu0 %vm918_vm0, %v919_v55  ;;  %v572_v55 = vld [vmem:[%s1116_s4] sm:$0x1] }
  0x2c   :  { %839 = vmatprep.subr.bf16.mxu0 %v917_v32 }
  0x2d   :  { %862 = vmatpush3.bf16.msra.mxu1 %v837_v39 }
  0x2e   :  { %863 = vmatprep.subr.bf16.mxu1 %v917_v32 }
  0x2f   :  { %841 = vmatpush3.bf16.msra.mxu0 %v840_v42 }
  0x30   :  { %842 = vmatprep.subr.bf16.mxu0 %v917_v32 }
  0x31   :  { %865 = vmatpush3.bf16.msra.mxu1 %v840_v42 }
  0x32   :  { %866 = vmatprep.subr.bf16.mxu1 %v917_v32 }
  0x33   :  { %844 = vmatpush3.bf16.msra.mxu0 %v843_v45 }
  0x34   :  { %845 = vmatprep.subr.bf16.mxu0 %v917_v32 }
  0x35   :  { %868 = vmatpush3.bf16.msra.mxu1 %v843_v45 }
  0x36   :  { %869 = vmatprep.subr.bf16.mxu1 %v917_v32 }
  0x37   :  { %847 = vmatpush3.bf16.msra.mxu0 %v846_v48 }
  0x38   :  { %848 = vmatprep.subr.bf16.mxu0 %v917_v32 }
  0x39   :  { %871 = vmatpush3.bf16.msra.mxu1 %v846_v48 }
  0x3a   :  { %872 = vmatprep.subr.bf16.mxu1 %v917_v32 }
  0x3b   :  { %850 = vmatpush3.bf16.msra.mxu0 %v849_v51 }
  0x3c   :  { %851 = vmatprep.subr.bf16.mxu0 %v917_v32 }
  0x3d   :  { %874 = vmatpush3.bf16.msra.mxu1 %v849_v51  ;;  %v561_v51 = vld [vmem:[%s1115_s3] sm:$0x1] }
  0x3e   :  { %875 = vmatprep.subr.bf16.mxu1 %v917_v32 }
  0x3f   :  { %853 = vmatpush3.bf16.msra.mxu0 %v852_v54 }
  0x41   :  { %877 = vmatpush3.bf16.msra.mxu1 %v852_v54 }
  0xf5   :  { %v684_v56 = vpop.f32.mrb[0].mxu0 }
  0xf6   :  { %v685_v57 = vpop.f32.mrb[1].mxu0 }
  0xf7   :  { %v686_v58 = vadd.f32 %v685_v57, %v684_v56  ;;  %v687_v59 = vpop.f32.mrb[2].mxu0  ;;  %v758_v60 = vpop.f32.mrb[0].mxu1 }
  0xf8   :  { %v688_v61 = vpop.f32.mrb[3].mxu0  ;;  %v348_v62 = vpop.f32.mrb[1].mxu1 }
  0xf9   :  { %v689_v63 = vadd.f32 %v688_v61, %v687_v59  ;;  %v1088_v0 = vadd.f32 %v686_v58, %v348_v62  ;;  %v759_v1 = vpop.f32.mrb[2].mxu1 }
  0xfa   :  { %v351_v2 = vpop.f32.mrb[3].mxu1 }
  0xfb   :  { %v1090_v3 = vadd.f32 %v689_v63, %v351_v2  ;;  %v387_v10 = vmul.f32 %v1088_v0, %v1088_v0 }
  0xfd   :  { %v690_v4 = vpop.f32.mrb[4].mxu0  ;;  %v388_v6 = vmul.f32 %v1090_v3, %v1090_v3  ;;  %v378_v11 = vadd.f32 %v1090_v3, %v1088_v0 }
  0xfe   :  { %v691_v5 = vpop.f32.mrb[5].mxu0 }
  0xff   :  { %v692_v7 = vadd.f32 %v691_v5, %v690_v4  ;;  %v693_v8 = vpop.f32.mrb[6].mxu0  ;;  %v391_v14 = vadd.f32 %v388_v6, %v387_v10 }
 0x100   :  { %v694_v9 = vpop.f32.mrb[7].mxu0 }
 0x101   :  { %v357_v12 = vadd.f32 %v758_v60, %v692_v7  ;;  %v695_v13 = vadd.f32 %v694_v9, %v693_v8 }
 0x103   :  { %v379_v15 = vadd.f32 %v378_v11, %v357_v12  ;;  %v389_v16 = vmul.f32 %v357_v12, %v357_v12  ;;  %v360_v17 = vadd.f32 %v759_v1, %v695_v13 }
 0x105   :  { %v392_v18 = vadd.f32 %v391_v14, %v389_v16  ;;  %v380_v19 = vadd.f32 %v379_v15, %v360_v17  ;;  %v390_v20 = vmul.f32 %v360_v17, %v360_v17 }
 0x107   :  { %v381_v21 = vrot.slane %v380_v19, 4  ;;  %v393_v22 = vadd.f32 %v392_v18, %v390_v20 }
 0x109   :  { %v382_v23 = vadd.f32 %v381_v21, %v380_v19  ;;  %v394_v24 = vrot.slane %v393_v22, 4 }
 0x10b   :  { %v383_v25 = vrot.slane %v382_v23, 2  ;;  %v395_v26 = vadd.f32 %v394_v24, %v393_v22 }
 0x10d   :  { %v384_v27 = vadd.f32 %v383_v25, %v382_v23  ;;  %v396_v28 = vrot.slane %v395_v26, 2 }
 0x10f   :  { %v385_v29 = vrot.slane %v384_v27, 1  ;;  %v397_v30 = vadd.f32 %v396_v28, %v395_v26 }
 0x111   :  { %v386_v31 = vadd.f32 %v385_v29, %v384_v27  ;;  %v398_v32 = vrot.slane %v397_v30, 1 }
 0x113   :  { %793 = vmatmul.mubr.f32.vlgmr.msra.gmra.mrb[8].mxu0 %v386_v31  ;;  %v399_v33 = vadd.f32 %v398_v32, %v397_v30 }
 0x115   :  { %828 = vmatmul.mubr.f32.vlgmr.msra.gmra.mrb[4].mxu1 %v399_v33 }
 0x1e6   :  { %v482_v34 = vpop.f32.mrb[8].mxu0 }
 0x1e7   :  { %v556_v35 = vmul.f32 0.03125, %v482_v34  ;;  %v794_v36 = vpop.f32.mrb[9].mxu0 }
 0x1e8   :  { %v552_v37 = vpop.f32.mrb[4].mxu1 }
 0x1e9   :  { %v558_v38 = vmul.f32 %v556_v35, %v556_v35  ;;  %v557_v39 = vmul.f32 0.03125, %v552_v37  ;;  %v829_v40 = vpop.f32.mrb[5].mxu1 }
 0x1eb   :  { %v559_v41 = vsub.f32 %v557_v39, %v558_v38 }
 0x1ed   :  { %v560_v42 = vmax.f32 %v559_v41, 0.0 }
 0x1ef   :  { %v562_v43 = vadd.f32 1e-05, %v560_v42 }
 0x1f1   :  { %913 = vrsqrt.f32 %v562_v43  ;;  %vm565_vm1 = vcmp.eq.f32.partialorder %v562_v43, inf  ;;  %v568_v46 = vand.u32 2147483648, %v562_v43  ;;  %vm567_vm2 = vcmp.eq.f32.partialorder %v562_v43, 0.0 }
 0x1fb   :  { %v914_v44 = vpop.eup %913 }
 0x1fc   :  { %v564_v45 = vmul.f32 %v914_v44, %v562_v43 }
 0x1fe   :  { %v566_v47 = vsel %vm565_vm1, %v562_v43, %v564_v45 }
 0x1ff   :  { %v569_v48 = vsel %vm567_vm2, %v568_v46, %v566_v47 }
 0x200   :  { %915 = vrcp.f32 %v569_v48 }
 0x20a   :  { %v916_v53 = vpop.eup %915 }
 0x20b   :  { %v571_v54 = vmul.f32 %v916_v53, %v561_v51 }
 0x20d   :  { %v573_v56 = vmul.f32 %v571_v54, %v556_v35  ;;  %v579_v57 = vrot.slane %v571_v54, %v578_v52 }
 0x20f   :  { %v574_v58 = vsub.f32 %v572_v55, %v573_v56  ;;  %v581_v59 = vmul.f32 %v579_v57, %v1088_v0  ;;  %v582_v60 = vmul.f32 %v579_v57, %v1090_v3  ;;  %v583_v61 = vmul.f32 %v579_v57, %v357_v12 }
 0x210   :  { %v584_v62 = vmul.f32 %v579_v57, %v360_v17 }
 0x211   :  { %v589_v63 = vrot.slane %v574_v58, %v578_v52 }
 0x213   :  { %v591_v1 = vadd.f32 %v589_v63, %v581_v59  ;;  %v592_v2 = vadd.f32 %v589_v63, %v582_v60  ;;  %v593_v4 = vadd.f32 %v589_v63, %v583_v61  ;;  %v594_v5 = vadd.f32 %v589_v63, %v584_v62 }
 0x215   :  { %v660_v6 = vpack.c.bf16 %v592_v2, %v591_v1  ;;  %v665_v7 = vpack.c.bf16 %v594_v5, %v593_v4 }
 0x217   :  { %661 = vst [vmem:[%s1117_s5] sm:$0xff] %v660_v6   ;;  %667 = vst [vmem:[%s1117_s5 + $0x8] sm:$0xff] %v665_v7  }

// kernel: resnet_generator.14
= control target key start
LH: loop header
LB: loop body
LE: loop exit
PB: predicated region body
PF: predicated region fallthrough
CT: control target
= control target key end

     0   :  { %v941_v32 = vmov 0.0|0.0   ;;  %vm942_vm0 = vmmov 0   ;;  %v943_v55 = vmov 0.0   ;;  %s1153_s1 = inlined_call_operand.vmem [shape: bf16[384,128], index: 1, kind: input, shape index: {}]   ;;  %s1154_s0 = inlined_call_operand.vmem [shape: bf16[32,384], index: 0, kind: input, shape index: {}]   ;;  %s1155_s2 = inlined_call_operand.vmem [shape: f32[128,128], index: 2, kind: input, shape index: {}]   ;;  %s1156_s3 = inlined_call_operand.vmem [shape: f32[1,128], index: 3, kind: input, shape index: {}]   ;;  %s1157_s4 = inlined_call_operand.vmem [shape: f32[1,128], index: 4, kind: input, shape index: {}]   ;;  %s1158_s5 = inlined_call_operand.vmem [shape: bf16[32,128], index: 5, kind: input, shape index: {}]   ;;  %s1159_s6 = inlined_call_operand.vmem [shape: bf16[32,128], index: 6, kind: output, shape index: {}]  }
   0x1   :  { %v905_v0 = vld [vmem:[%s1153_s1 + $0x40] sm:$0xff]   ;;  %v908_v3 = vld [vmem:[%s1153_s1 + $0x48] sm:$0xff]   ;;  %v911_v6 = vld [vmem:[%s1153_s1 + $0x50] sm:$0xff]  }
   0x2   :  { %v906_v1 = vld [vmem:[%s1153_s1] sm:$0xff]   ;;  %692 = vmatprep.subr.bf16.mxu0 %v905_v0  ;;  %v909_v4 = vld [vmem:[%s1153_s1 + $0x8] sm:$0xff]   ;;  %v912_v7 = vld [vmem:[%s1153_s1 + $0x10] sm:$0xff]  }
   0x3   :  { %v907_v2 = vld [vmem:[%s1153_s1 + $0x80] sm:$0xff]   ;;  %693 = vmatpush3.bf16.msra.mxu0 %v906_v1  ;;  %v910_v5 = vld [vmem:[%s1153_s1 + $0x88] sm:$0xff]   ;;  %v913_v8 = vld [vmem:[%s1153_s1 + $0x90] sm:$0xff]  }
   0x4   :  { %764 = vmatprep.subr.bf16.mxu1 %v907_v2  ;;  %694 = vmatprep.subr.bf16.mxu0 %v908_v3  ;;  %v914_v9 = vld [vmem:[%s1153_s1 + $0x58] sm:$0xff]   ;;  %v917_v12 = vld [vmem:[%s1153_s1 + $0x60] sm:$0xff]   ;;  %v920_v15 = vld [vmem:[%s1153_s1 + $0x68] sm:$0xff]  }
   0x5   :  { %765 = vmatpush3.bf16.msra.mxu1 %v907_v2  ;;  %v915_v10 = vld [vmem:[%s1153_s1 + $0x18] sm:$0xff]   ;;  %v919_v13 = vld [vmem:[%s1153_s1 + $0xa0] sm:$0xff]   ;;  %v922_v16 = vld [vmem:[%s1153_s1 + $0xa8] sm:$0xff]  }
   0x6   :  { %766 = vmatprep.subr.bf16.mxu1 %v910_v5  ;;  %v916_v11 = vld [vmem:[%s1153_s1 + $0x98] sm:$0xff]   ;;  %v918_v14 = vld [vmem:[%s1153_s1 + $0x20] sm:$0xff]   ;;  %v921_v17 = vld [vmem:[%s1153_s1 + $0x28] sm:$0xff]  }
   0x7   :  { %695 = vmatpush3.bf16.msra.mxu0 %v909_v4  ;;  %v923_v18 = vld [vmem:[%s1153_s1 + $0x70] sm:$0xff]   ;;  %v926_v21 = vld [vmem:[%s1153_s1 + $0x78] sm:$0xff]   ;;  %v403_v26 = vld [vmem:[%s1155_s2] sm:$0xff] }
   0x8   :  { %696 = vmatprep.subr.bf16.mxu0 %v911_v6  ;;  %v924_v19 = vld [vmem:[%s1153_s1 + $0x30] sm:$0xff]   ;;  %v928_v22 = vld [vmem:[%s1153_s1 + $0xb8] sm:$0xff]   ;;  %v404_v27 = vld [vmem:[%s1155_s2 + $0x8] sm:$0xff] }
   0x9   :  { %767 = vmatpush3.bf16.msra.mxu1 %v910_v5  ;;  %v925_v20 = vld [vmem:[%s1153_s1 + $0xb0] sm:$0xff]   ;;  %v927_v25 = vld [vmem:[%s1153_s1 + $0x38] sm:$0xff]   ;;  %v929_v28 = vld [vmem:[%s1154_s0] ss:$12 sps:$4 sm:$0xff]   ;;  %v855_v30 = vpack.c.bf16 %v404_v27, %v403_v26 }
   0xa   :  { %768 = vmatprep.subr.bf16.mxu1 %v913_v8  ;;  %v931_v23 = vld [vmem:[%s1154_s0 + $0x4] ss:$12 sps:$4 sm:$0xff]   ;;  %v932_v24 = vld [vmem:[%s1154_s0 + $0x8] ss:$12 sps:$4 sm:$0xff]   ;;  %v933_v31 = vld [vmem:[%s1154_s0 + $0x20] ss:$12 sps:$4 sm:$0xff]  }
   0xb   :  { %697 = vmatpush3.bf16.msra.mxu0 %v912_v7  ;;  %300 = vmatprep.mubr.bf16.mxu0 %v931_v23  ;;  %v934_v29 = vld [vmem:[%s1154_s0 + $0x1c] ss:$12 sps:$4 sm:$0xff]   ;;  %v936_v33 = vld [vmem:[%s1154_s0 + $0x18] ss:$12 sps:$4 sm:$0xff]   ;;  %v405_v34 = vld [vmem:[%s1155_s2 + $0x10] sm:$0xff] }
   0xc   :  { %698 = vmatprep.subr.bf16.mxu0 %v914_v9  ;;  %780 = vmatprep.mubr.bf16.mxu1 %v932_v24  ;;  %v406_v35 = vld [vmem:[%s1155_s2 + $0x18] sm:$0xff]  ;;  %v407_v37 = vld [vmem:[%s1155_s2 + $0x20] sm:$0xff]  ;;  %v408_v38 = vld [vmem:[%s1155_s2 + $0x28] sm:$0xff] }
   0xd   :  { %769 = vmatpush3.bf16.msra.mxu1 %v913_v8  ;;  %v858_v36 = vpack.c.bf16 %v406_v35, %v405_v34  ;;  %v861_v39 = vpack.c.bf16 %v408_v38, %v407_v37  ;;  %v409_v40 = vld [vmem:[%s1155_s2 + $0x30] sm:$0xff]  ;;  %v410_v41 = vld [vmem:[%s1155_s2 + $0x38] sm:$0xff]  ;;  %v411_v43 = vld [vmem:[%s1155_s2 + $0x40] sm:$0xff] }
   0xe   :  { %770 = vmatprep.subr.bf16.mxu1 %v916_v11  ;;  %v864_v42 = vpack.c.bf16 %v410_v41, %v409_v40  ;;  %v412_v44 = vld [vmem:[%s1155_s2 + $0x48] sm:$0xff]  ;;  %v413_v46 = vld [vmem:[%s1155_s2 + $0x50] sm:$0xff]  ;;  %v414_v47 = vld [vmem:[%s1155_s2 + $0x58] sm:$0xff] }
   0xf   :  { %699 = vmatpush3.bf16.msra.mxu0 %v915_v10  ;;  %v867_v45 = vpack.c.bf16 %v412_v44, %v411_v43  ;;  %v870_v48 = vpack.c.bf16 %v414_v47, %v413_v46  ;;  %v415_v49 = vld [vmem:[%s1155_s2 + $0x60] sm:$0xff]  ;;  %v416_v50 = vld [vmem:[%s1155_s2 + $0x68] sm:$0xff]  ;;  %v417_v52 = vld [vmem:[%s1155_s2 + $0x70] sm:$0xff] }
  0x10   :  { %700 = vmatprep.subr.bf16.mxu0 %v917_v12  ;;  %v873_v51 = vpack.c.bf16 %v416_v50, %v415_v49  ;;  %v418_v53 = vld [vmem:[%s1155_s2 + $0x78] sm:$0xff]  ;;  %v579_v49 = vlaneseq }
  0x11   :  { %771 = vmatpush3.bf16.msra.mxu1 %v916_v11  ;;  %v876_v54 = vpack.c.bf16 %v418_v53, %v417_v52 }
  0x12   :  { %772 = vmatprep.subr.bf16.mxu1 %v919_v13  ;;  %v580_v50 = vshrl.u32 %v579_v49, 7 }
  0x13   :  { %701 = vmatpush3.bf16.msra.mxu0 %v918_v14 }
  0x14   :  { %702 = vmatprep.subr.bf16.mxu0 %v920_v15  ;;  %v581_v52 = vsub.s32 0, %v580_v50 }
  0x15   :  { %773 = vmatpush3.bf16.msra.mxu1 %v919_v13 }
  0x16   :  { %774 = vmatprep.subr.bf16.mxu1 %v922_v16 }
  0x17   :  { %703 = vmatpush3.bf16.msra.mxu0 %v921_v17 }
  0x18   :  { %704 = vmatprep.subr.bf16.mxu0 %v923_v18 }
  0x19   :  { %775 = vmatpush3.bf16.msra.mxu1 %v922_v16 }
  0x1a   :  { %776 = vmatprep.subr.bf16.mxu1 %v925_v20 }
  0x1b   :  { %705 = vmatpush3.bf16.msra.mxu0 %v924_v19 }
  0x1c   :  { %706 = vmatprep.subr.bf16.mxu0 %v926_v21 }
  0x1d   :  { %777 = vmatpush3.bf16.msra.mxu1 %v925_v20 }
  0x1e   :  { %778 = vmatprep.subr.bf16.mxu1 %v928_v22 }
  0x1f   :  { %707 = vmatpush3.bf16.msra.mxu0 %v927_v25 }
  0x20   :  { %854 = vmatprep.subr.bf16.mxu0 %v941_v32 }
  0x21   :  { %779 = vmatpush3.bf16.msra.mxu1 %v928_v22 }
  0x22   :  { %301 = vmatmul.mubr.bf16.vlgmr.msra.gmra.mrb[0].mxu0 %v929_v28  ;;  %878 = vmatprep.subr.bf16.mxu1 %v941_v32 }
  0x23   :  { %308 = vmatprep.mubr.bf16.mxu0 %v934_v29  ;;  %856 = vmatpush3.bf16.msra.mxu0 %v855_v30 }
  0x24   :  { %781 = vmatmul.mubr.bf16.vlgmr.msra.gmra.mrb[0].mxu1 %v933_v31  ;;  %857 = vmatprep.subr.bf16.mxu0 %v941_v32 }
  0x25   :  { %880 = vmatpush3.bf16.msra.mxu1 %v855_v30  ;;  %851 = vmatprep.mubr.msk.f32.mxu1 %vm942_vm0, %v943_v55 }
  0x26   :  { %881 = vmatprep.subr.bf16.mxu1 %v941_v32 }
  0x27   :  { %859 = vmatpush3.bf16.msra.mxu0 %v858_v36 }
  0x28   :  { %860 = vmatprep.subr.bf16.mxu0 %v941_v32 }
  0x29   :  { %883 = vmatpush3.bf16.msra.mxu1 %v858_v36 }
  0x2a   :  { %309 = vmatmul.mubr.bf16.gmra.mrb[4].mxu0 %v936_v33  ;;  %884 = vmatprep.subr.bf16.mxu1 %v941_v32 }
  0x2b   :  { %862 = vmatpush3.bf16.msra.mxu0 %v861_v39  ;;  %816 = vmatprep.mubr.msk.f32.mxu0 %vm942_vm0, %v943_v55  ;;  %v575_v55 = vld [vmem:[%s1157_s4] sm:$0x1] }
  0x2c   :  { %863 = vmatprep.subr.bf16.mxu0 %v941_v32 }
  0x2d   :  { %886 = vmatpush3.bf16.msra.mxu1 %v861_v39 }
  0x2e   :  { %887 = vmatprep.subr.bf16.mxu1 %v941_v32 }
  0x2f   :  { %865 = vmatpush3.bf16.msra.mxu0 %v864_v42 }
  0x30   :  { %866 = vmatprep.subr.bf16.mxu0 %v941_v32 }
  0x31   :  { %889 = vmatpush3.bf16.msra.mxu1 %v864_v42 }
  0x32   :  { %890 = vmatprep.subr.bf16.mxu1 %v941_v32 }
  0x33   :  { %868 = vmatpush3.bf16.msra.mxu0 %v867_v45 }
  0x34   :  { %869 = vmatprep.subr.bf16.mxu0 %v941_v32 }
  0x35   :  { %892 = vmatpush3.bf16.msra.mxu1 %v867_v45 }
  0x36   :  { %893 = vmatprep.subr.bf16.mxu1 %v941_v32 }
  0x37   :  { %871 = vmatpush3.bf16.msra.mxu0 %v870_v48 }
  0x38   :  { %872 = vmatprep.subr.bf16.mxu0 %v941_v32 }
  0x39   :  { %895 = vmatpush3.bf16.msra.mxu1 %v870_v48 }
  0x3a   :  { %896 = vmatprep.subr.bf16.mxu1 %v941_v32 }
  0x3b   :  { %874 = vmatpush3.bf16.msra.mxu0 %v873_v51 }
  0x3c   :  { %875 = vmatprep.subr.bf16.mxu0 %v941_v32 }
  0x3d   :  { %898 = vmatpush3.bf16.msra.mxu1 %v873_v51  ;;  %v564_v51 = vld [vmem:[%s1156_s3] sm:$0x1] }
  0x3e   :  { %899 = vmatprep.subr.bf16.mxu1 %v941_v32 }
  0x3f   :  { %877 = vmatpush3.bf16.msra.mxu0 %v876_v54 }
  0x41   :  { %901 = vmatpush3.bf16.msra.mxu1 %v876_v54 }
  0xf5   :  { %v708_v56 = vpop.f32.mrb[0].mxu0 }
  0xf6   :  { %v709_v57 = vpop.f32.mrb[1].mxu0 }
  0xf7   :  { %v710_v58 = vadd.f32 %v709_v57, %v708_v56  ;;  %v711_v59 = vpop.f32.mrb[2].mxu0  ;;  %v782_v60 = vpop.f32.mrb[0].mxu1  ;;  %v673_v56 = vld [vmem:[%s1158_s5] sm:$0xff]  }
  0xf8   :  { %v712_v61 = vpop.f32.mrb[3].mxu0  ;;  %v351_v62 = vpop.f32.mrb[1].mxu1 }
  0xf9   :  { %v713_v63 = vadd.f32 %v712_v61, %v711_v59  ;;  %v1117_v0 = vadd.f32 %v710_v58, %v351_v62  ;;  %v783_v1 = vpop.f32.mrb[2].mxu1  ;;  %v690_v59 = vld [vmem:[%s1158_s5 + $0x8] sm:$0xff]   ;;  %v674_v61 = vunpack.c.l.bf16 %v673_v56 }
  0xfa   :  { %v354_v2 = vpop.f32.mrb[3].mxu1 }
  0xfb   :  { %v1119_v3 = vadd.f32 %v713_v63, %v354_v2  ;;  %v390_v10 = vmul.f32 %v1117_v0, %v1117_v0  ;;  %v675_v63 = vunpack.c.h.bf16 %v673_v56  ;;  %v679_v2 = vunpack.c.h.bf16 %v690_v59 }
  0xfd   :  { %v714_v4 = vpop.f32.mrb[4].mxu0  ;;  %v391_v6 = vmul.f32 %v1119_v3, %v1119_v3  ;;  %v381_v11 = vadd.f32 %v1119_v3, %v1117_v0 }
  0xfe   :  { %v715_v5 = vpop.f32.mrb[5].mxu0 }
  0xff   :  { %v716_v7 = vadd.f32 %v715_v5, %v714_v4  ;;  %v717_v8 = vpop.f32.mrb[6].mxu0  ;;  %v394_v14 = vadd.f32 %v391_v6, %v390_v10 }
 0x100   :  { %v718_v9 = vpop.f32.mrb[7].mxu0 }
 0x101   :  { %v1127_v12 = vadd.f32 %v782_v60, %v716_v7  ;;  %v719_v13 = vadd.f32 %v718_v9, %v717_v8 }
 0x103   :  { %v382_v15 = vadd.f32 %v381_v11, %v1127_v12  ;;  %v392_v16 = vmul.f32 %v1127_v12, %v1127_v12  ;;  %v363_v17 = vadd.f32 %v783_v1, %v719_v13  ;;  %v678_v1 = vunpack.c.l.bf16 %v690_v59 }
 0x105   :  { %v395_v18 = vadd.f32 %v394_v14, %v392_v16  ;;  %v383_v19 = vadd.f32 %v382_v15, %v363_v17  ;;  %v393_v20 = vmul.f32 %v363_v17, %v363_v17 }
 0x107   :  { %v384_v21 = vrot.slane %v383_v19, 4  ;;  %v396_v22 = vadd.f32 %v395_v18, %v393_v20 }
 0x109   :  { %v385_v23 = vadd.f32 %v384_v21, %v383_v19  ;;  %v397_v24 = vrot.slane %v396_v22, 4 }
 0x10b   :  { %v386_v25 = vrot.slane %v385_v23, 2  ;;  %v398_v26 = vadd.f32 %v397_v24, %v396_v22 }
 0x10d   :  { %v387_v27 = vadd.f32 %v386_v25, %v385_v23  ;;  %v399_v28 = vrot.slane %v398_v26, 2 }
 0x10f   :  { %v388_v29 = vrot.slane %v387_v27, 1  ;;  %v400_v30 = vadd.f32 %v399_v28, %v398_v26 }
 0x111   :  { %v389_v31 = vadd.f32 %v388_v29, %v387_v27  ;;  %v401_v32 = vrot.slane %v400_v30, 1 }
 0x113   :  { %817 = vmatmul.mubr.f32.vlgmr.msra.gmra.mrb[8].mxu0 %v389_v31  ;;  %v402_v33 = vadd.f32 %v401_v32, %v400_v30 }
 0x115   :  { %852 = vmatmul.mubr.f32.vlgmr.msra.gmra.mrb[4].mxu1 %v402_v33 }
 0x1e6   :  { %v485_v34 = vpop.f32.mrb[8].mxu0 }
 0x1e7   :  { %v559_v35 = vmul.f32 0.03125, %v485_v34  ;;  %v818_v36 = vpop.f32.mrb[9].mxu0 }
 0x1e8   :  { %v555_v37 = vpop.f32.mrb[4].mxu1 }
 0x1e9   :  { %v561_v38 = vmul.f32 %v559_v35, %v559_v35  ;;  %v560_v39 = vmul.f32 0.03125, %v555_v37  ;;  %v853_v40 = vpop.f32.mrb[5].mxu1 }
 0x1eb   :  { %v562_v41 = vsub.f32 %v560_v39, %v561_v38 }
 0x1ed   :  { %v563_v42 = vmax.f32 %v562_v41, 0.0 }
 0x1ef   :  { %v565_v43 = vadd.f32 1e-05, %v563_v42 }
 0x1f1   :  { %937 = vrsqrt.f32 %v565_v43  ;;  %vm568_vm1 = vcmp.eq.f32.partialorder %v565_v43, inf  ;;  %v571_v46 = vand.u32 2147483648, %v565_v43  ;;  %vm570_vm2 = vcmp.eq.f32.partialorder %v565_v43, 0.0 }
 0x1fb   :  { %v938_v44 = vpop.eup %937 }
 0x1fc   :  { %v567_v45 = vmul.f32 %v938_v44, %v565_v43 }
 0x1fe   :  { %v569_v47 = vsel %vm568_vm1, %v565_v43, %v567_v45 }
 0x1ff   :  { %v572_v48 = vsel %vm570_vm2, %v571_v46, %v569_v47 }
 0x200   :  { %939 = vrcp.f32 %v572_v48 }
 0x20a   :  { %v940_v53 = vpop.eup %939 }
 0x20b   :  { %v574_v54 = vmul.f32 %v940_v53, %v564_v51 }
 0x20d   :  { %v576_v57 = vmul.f32 %v574_v54, %v559_v35  ;;  %v582_v58 = vrot.slane %v574_v54, %v581_v52 }
 0x20f   :  { %v577_v60 = vsub.f32 %v575_v55, %v576_v57  ;;  %v584_v62 = vmul.f32 %v582_v58, %v1117_v0  ;;  %v585_v4 = vmul.f32 %v582_v58, %v1119_v3  ;;  %v586_v5 = vmul.f32 %v582_v58, %v1127_v12 }
 0x210   :  { %v587_v6 = vmul.f32 %v582_v58, %v363_v17 }
 0x211   :  { %v592_v7 = vrot.slane %v577_v60, %v581_v52 }
 0x213   :  { %v594_v8 = vadd.f32 %v592_v7, %v584_v62  ;;  %v595_v9 = vadd.f32 %v592_v7, %v585_v4  ;;  %v596_v10 = vadd.f32 %v592_v7, %v586_v5  ;;  %v597_v11 = vadd.f32 %v592_v7, %v587_v6 }
 0x215   :  { %v606_v13 = vadd.f32 %v674_v61, %v594_v8  ;;  %v607_v14 = vadd.f32 %v675_v63, %v595_v9  ;;  %v608_v15 = vadd.f32 %v678_v1, %v596_v10  ;;  %v609_v16 = vadd.f32 %v679_v2, %v597_v11 }
 0x217   :  { %v683_v18 = vpack.c.bf16 %v607_v14, %v606_v13  ;;  %v688_v19 = vpack.c.bf16 %v609_v16, %v608_v15 }
 0x219   :  { %684 = vst [vmem:[%s1159_s6] sm:$0xff] %v683_v18   ;;  %691 = vst [vmem:[%s1159_s6 + $0x8] sm:$0xff] %v688_v19  }

// kernel: resnet_generator.17
= control target key start
LH: loop header
LB: loop body
LE: loop exit
PB: predicated region body
PF: predicated region fallthrough
CT: control target
= control target key end

     0   :  { %v650_v1 = vmov 0.0|0.0   ;;  %vm651_vm0 = vmmov 0   ;;  %v652_v34 = vmov 0.0   ;;  %s789_s1 = inlined_call_operand.vmem [shape: bf16[128,128], index: 1, kind: input, shape index: {}]   ;;  %s790_s0 = inlined_call_operand.vmem [shape: bf16[32,128], index: 0, kind: input, shape index: {}]   ;;  %s791_s2 = inlined_call_operand.vmem [shape: f32[128,128], index: 2, kind: input, shape index: {}]   ;;  %s792_s3 = inlined_call_operand.vmem [shape: f32[1,128], index: 3, kind: input, shape index: {}]   ;;  %s793_s4 = inlined_call_operand.vmem [shape: f32[1,128], index: 4, kind: input, shape index: {}]   ;;  %s794_s5 = inlined_call_operand.vmem [shape: bf16[32,128], index: 5, kind: output, shape index: {}]  }
   0x1   :  { %v636_v0 = vld [vmem:[%s789_s1] sm:$0xff]   ;;  %585 = vmatprep.subr.bf16.mxu1 %v650_v1  ;;  %v637_v2 = vld [vmem:[%s789_s1 + $0x8] sm:$0xff]   ;;  %v638_v3 = vld [vmem:[%s789_s1 + $0x10] sm:$0xff]   ;;  %547 = vmatprep.mubr.msk.f32.mxu1 %vm651_vm0, %v652_v34 }
   0x2   :  { %495 = vmatprep.subr.bf16.mxu0 %v636_v0  ;;  %v639_v4 = vld [vmem:[%s789_s1 + $0x18] sm:$0xff]   ;;  %v644_v5 = vld [vmem:[%s790_s0] sm:$0xff]   ;;  %v200_v7 = vld [vmem:[%s791_s2 + $0x8] sm:$0xff] }
   0x3   :  { %496 = vmatpush3.bf16.msra.mxu0 %v636_v0  ;;  %511 = vmatprep.mubr.bf16.mxu0 %v644_v5  ;;  %v199_v6 = vld [vmem:[%s791_s2] sm:$0xff]  ;;  %v201_v8 = vld [vmem:[%s791_s2 + $0x10] sm:$0xff]  ;;  %v202_v10 = vld [vmem:[%s791_s2 + $0x18] sm:$0xff] }
   0x4   :  { %497 = vmatprep.subr.bf16.mxu0 %v637_v2  ;;  %v586_v9 = vpack.c.bf16 %v200_v7, %v199_v6  ;;  %v640_v11 = vld [vmem:[%s789_s1 + $0x20] sm:$0xff]   ;;  %v589_v12 = vpack.c.bf16 %v202_v10, %v201_v8  ;;  %v204_v14 = vld [vmem:[%s791_s2 + $0x28] sm:$0xff]  ;;  %v642_v17 = vld [vmem:[%s789_s1 + $0x30] sm:$0xff]  }
   0x5   :  { %v203_v13 = vld [vmem:[%s791_s2 + $0x20] sm:$0xff]  ;;  %v641_v15 = vld [vmem:[%s789_s1 + $0x28] sm:$0xff]   ;;  %v643_v18 = vld [vmem:[%s789_s1 + $0x38] sm:$0xff]  }
   0x6   :  { %587 = vmatpush3.bf16.msra.mxu1 %v586_v9  ;;  %v592_v16 = vpack.c.bf16 %v204_v14, %v203_v13  ;;  %v645_v19 = vld [vmem:[%s790_s0 + $0x8] sm:$0xff]   ;;  %v205_v20 = vld [vmem:[%s791_s2 + $0x30] sm:$0xff]  ;;  %v206_v21 = vld [vmem:[%s791_s2 + $0x38] sm:$0xff]  ;;  %v375_v13 = vlaneseq }
   0x7   :  { %498 = vmatpush3.bf16.msra.mxu0 %v637_v2  ;;  %588 = vmatprep.subr.bf16.mxu1 %v650_v1  ;;  %v595_v22 = vpack.c.bf16 %v206_v21, %v205_v20  ;;  %v207_v23 = vld [vmem:[%s791_s2 + $0x40] sm:$0xff]  ;;  %v208_v24 = vld [vmem:[%s791_s2 + $0x48] sm:$0xff]  ;;  %v209_v26 = vld [vmem:[%s791_s2 + $0x50] sm:$0xff] }
   0x8   :  { %499 = vmatprep.subr.bf16.mxu0 %v638_v3  ;;  %v598_v25 = vpack.c.bf16 %v208_v24, %v207_v23  ;;  %v210_v27 = vld [vmem:[%s791_s2 + $0x58] sm:$0xff]  ;;  %v211_v29 = vld [vmem:[%s791_s2 + $0x60] sm:$0xff]  ;;  %v212_v30 = vld [vmem:[%s791_s2 + $0x68] sm:$0xff]  ;;  %v376_v14 = vshrl.u32 %v375_v13, 7 }
   0x9   :  { %v601_v28 = vpack.c.bf16 %v210_v27, %v209_v26  ;;  %v213_v31 = vld [vmem:[%s791_s2 + $0x70] sm:$0xff]  ;;  %v604_v32 = vpack.c.bf16 %v212_v30, %v211_v29  ;;  %v214_v33 = vld [vmem:[%s791_s2 + $0x78] sm:$0xff] }
   0xa   :  { %590 = vmatpush3.bf16.msra.mxu1 %v589_v12  ;;  %v607_v35 = vpack.c.bf16 %v214_v33, %v213_v31 }
   0xb   :  { %500 = vmatpush3.bf16.msra.mxu0 %v638_v3  ;;  %591 = vmatprep.subr.bf16.mxu1 %v650_v1 }
   0xc   :  { %501 = vmatprep.subr.bf16.mxu0 %v639_v4 }
   0xe   :  { %593 = vmatpush3.bf16.msra.mxu1 %v592_v16 }
   0xf   :  { %502 = vmatpush3.bf16.msra.mxu0 %v639_v4  ;;  %594 = vmatprep.subr.bf16.mxu1 %v650_v1 }
  0x10   :  { %503 = vmatprep.subr.bf16.mxu0 %v640_v11 }
  0x12   :  { %596 = vmatpush3.bf16.msra.mxu1 %v595_v22 }
  0x13   :  { %504 = vmatpush3.bf16.msra.mxu0 %v640_v11  ;;  %597 = vmatprep.subr.bf16.mxu1 %v650_v1 }
  0x14   :  { %505 = vmatprep.subr.bf16.mxu0 %v641_v15 }
  0x16   :  { %599 = vmatpush3.bf16.msra.mxu1 %v598_v25 }
  0x17   :  { %506 = vmatpush3.bf16.msra.mxu0 %v641_v15  ;;  %600 = vmatprep.subr.bf16.mxu1 %v650_v1  ;;  %v360_v15 = vld [vmem:[%s792_s3] sm:$0x1] }
  0x18   :  { %507 = vmatprep.subr.bf16.mxu0 %v642_v17 }
  0x1a   :  { %602 = vmatpush3.bf16.msra.mxu1 %v601_v28 }
  0x1b   :  { %508 = vmatpush3.bf16.msra.mxu0 %v642_v17  ;;  %603 = vmatprep.subr.bf16.mxu1 %v650_v1 }
  0x1c   :  { %509 = vmatprep.subr.bf16.mxu0 %v643_v18 }
  0x1e   :  { %605 = vmatpush3.bf16.msra.mxu1 %v604_v32 }
  0x1f   :  { %510 = vmatpush3.bf16.msra.mxu0 %v643_v18  ;;  %606 = vmatprep.subr.bf16.mxu1 %v650_v1 }
  0x20   :  { %609 = vmatprep.subr.bf16.mxu0 %v650_v1 }
  0x22   :  { %512 = vmatmul.mubr.bf16.vlgmr.msra.gmra.mrb[0].mxu0 %v645_v19  ;;  %608 = vmatpush3.bf16.msra.mxu1 %v607_v35  ;;  %v371_v19 = vld [vmem:[%s793_s4] sm:$0x1] }
  0x23   :  { %611 = vmatpush3.bf16.msra.mxu0 %v586_v9  ;;  %582 = vmatprep.mubr.msk.f32.mxu0 %vm651_vm0, %v652_v34 }
  0x24   :  { %612 = vmatprep.subr.bf16.mxu0 %v650_v1 }
  0x27   :  { %614 = vmatpush3.bf16.msra.mxu0 %v589_v12 }
  0x28   :  { %615 = vmatprep.subr.bf16.mxu0 %v650_v1 }
  0x2b   :  { %617 = vmatpush3.bf16.msra.mxu0 %v592_v16  ;;  %v377_v16 = vsub.s32 0, %v376_v14 }
  0x2c   :  { %618 = vmatprep.subr.bf16.mxu0 %v650_v1 }
  0x2f   :  { %620 = vmatpush3.bf16.msra.mxu0 %v595_v22 }
  0x30   :  { %621 = vmatprep.subr.bf16.mxu0 %v650_v1 }
  0x33   :  { %623 = vmatpush3.bf16.msra.mxu0 %v598_v25 }
  0x34   :  { %624 = vmatprep.subr.bf16.mxu0 %v650_v1 }
  0x37   :  { %626 = vmatpush3.bf16.msra.mxu0 %v601_v28 }
  0x38   :  { %627 = vmatprep.subr.bf16.mxu0 %v650_v1 }
  0x3b   :  { %629 = vmatpush3.bf16.msra.mxu0 %v604_v32 }
  0x3c   :  { %630 = vmatprep.subr.bf16.mxu0 %v650_v1 }
  0x3f   :  { %632 = vmatpush3.bf16.msra.mxu0 %v607_v35 }
  0xf5   :  { %v513_v36 = vpop.f32.mrb[0].mxu0 }
  0xf6   :  { %v147_v37 = vpop.f32.mrb[1].mxu0  ;;  %v188_v43 = vmul.f32 %v513_v36, %v513_v36 }
  0xf7   :  { %v514_v38 = vpop.f32.mrb[2].mxu0  ;;  %v186_v40 = vmul.f32 %v147_v37, %v147_v37 }
  0xf8   :  { %v150_v39 = vpop.f32.mrb[3].mxu0  ;;  %v189_v46 = vmul.f32 %v514_v38, %v514_v38 }
  0xf9   :  { %v177_v41 = vadd.f32 %v150_v39, %v147_v37  ;;  %v187_v42 = vmul.f32 %v150_v39, %v150_v39 }
  0xfb   :  { %v178_v44 = vadd.f32 %v513_v36, %v177_v41  ;;  %v190_v45 = vadd.f32 %v187_v42, %v186_v40 }
  0xfd   :  { %v179_v47 = vadd.f32 %v514_v38, %v178_v44  ;;  %v191_v48 = vadd.f32 %v190_v45, %v188_v43 }
  0xff   :  { %v180_v49 = vrot.slane %v179_v47, 4  ;;  %v192_v50 = vadd.f32 %v191_v48, %v189_v46 }
 0x101   :  { %v193_v51 = vrot.slane %v192_v50, 4  ;;  %v181_v52 = vadd.f32 %v180_v49, %v179_v47 }
 0x103   :  { %v182_v53 = vrot.slane %v181_v52, 2  ;;  %v194_v54 = vadd.f32 %v193_v51, %v192_v50 }
 0x105   :  { %v183_v55 = vadd.f32 %v182_v53, %v181_v52  ;;  %v195_v56 = vrot.slane %v194_v54, 2 }
 0x107   :  { %v184_v57 = vrot.slane %v183_v55, 1  ;;  %v196_v58 = vadd.f32 %v195_v56, %v194_v54 }
 0x109   :  { %v185_v59 = vadd.f32 %v184_v57, %v183_v55  ;;  %v197_v60 = vrot.slane %v196_v58, 1 }
 0x10b   :  { %548 = vmatmul.mubr.f32.vlgmr.msra.gmra.mrb[0].mxu1 %v185_v59  ;;  %v198_v61 = vadd.f32 %v197_v60, %v196_v58 }
 0x10d   :  { %583 = vmatmul.mubr.f32.vlgmr.msra.gmra.mrb[4].mxu0 %v198_v61 }
 0x1de   :  { %v281_v62 = vpop.f32.mrb[0].mxu1 }
 0x1df   :  { %v355_v63 = vmul.f32 0.0078125, %v281_v62  ;;  %v549_v0 = vpop.f32.mrb[1].mxu1 }
 0x1e0   :  { %v351_v1 = vpop.f32.mrb[4].mxu0 }
 0x1e1   :  { %v357_v2 = vmul.f32 %v355_v63, %v355_v63  ;;  %v356_v3 = vmul.f32 0.0078125, %v351_v1  ;;  %v584_v4 = vpop.f32.mrb[5].mxu0 }
 0x1e3   :  { %v358_v5 = vsub.f32 %v356_v3, %v357_v2 }
 0x1e5   :  { %v359_v6 = vmax.f32 %v358_v5, 0.0 }
 0x1e7   :  { %v361_v7 = vadd.f32 1e-05, %v359_v6 }
 0x1e9   :  { %646 = vrsqrt.f32 %v361_v7  ;;  %vm364_vm1 = vcmp.eq.f32.partialorder %v361_v7, inf  ;;  %v367_v10 = vand.u32 2147483648, %v361_v7  ;;  %vm366_vm2 = vcmp.eq.f32.partialorder %v361_v7, 0.0 }
 0x1f3   :  { %v647_v8 = vpop.eup %646 }
 0x1f4   :  { %v363_v9 = vmul.f32 %v647_v8, %v361_v7 }
 0x1f6   :  { %v365_v11 = vsel %vm364_vm1, %v361_v7, %v363_v9 }
 0x1f7   :  { %v368_v12 = vsel %vm366_vm2, %v367_v10, %v365_v11 }
 0x1f8   :  { %648 = vrcp.f32 %v368_v12 }
 0x202   :  { %v649_v17 = vpop.eup %648 }
 0x203   :  { %v370_v18 = vmul.f32 %v649_v17, %v360_v15 }
 0x205   :  { %v372_v20 = vmul.f32 %v370_v18, %v355_v63  ;;  %v378_v21 = vrot.slane %v370_v18, %v377_v16 }
 0x207   :  { %v373_v22 = vsub.f32 %v371_v19, %v372_v20  ;;  %v380_v23 = vmul.f32 %v378_v21, %v147_v37  ;;  %v381_v24 = vmul.f32 %v378_v21, %v150_v39  ;;  %v382_v25 = vmul.f32 %v513_v36, %v378_v21 }
 0x208   :  { %v383_v26 = vmul.f32 %v514_v38, %v378_v21 }
 0x209   :  { %v388_v27 = vrot.slane %v373_v22, %v377_v16 }
 0x20b   :  { %v390_v28 = vadd.f32 %v388_v27, %v380_v23  ;;  %v391_v29 = vadd.f32 %v388_v27, %v381_v24  ;;  %v392_v30 = vadd.f32 %v388_v27, %v382_v25  ;;  %v393_v31 = vadd.f32 %v388_v27, %v383_v26 }
 0x20d   :  { %v394_v32 = vmax.f32 %v390_v28, 0.0  ;;  %v395_v33 = vmax.f32 %v391_v29, 0.0  ;;  %v396_v34 = vmax.f32 %v392_v30, 0.0  ;;  %v397_v35 = vmax.f32 %v393_v31, 0.0 }
 0x20f   :  { %v443_v40 = vpack.c.bf16 %v395_v33, %v394_v32  ;;  %v448_v41 = vpack.c.bf16 %v397_v35, %v396_v34 }
 0x211   :  { %444 = vst [vmem:[%s794_s5] sm:$0xff] %v443_v40   ;;  %450 = vst [vmem:[%s794_s5 + $0x8] sm:$0xff] %v448_v41  }

// kernel: resnet_generator.18
= control target key start
LH: loop header
LB: loop body
LE: loop exit
PB: predicated region body
PF: predicated region fallthrough
CT: control target
= control target key end

     0   :  { %v1028_v19 = vmov 0.0|0.0   ;;  %vm1029_vm0 = vmmov 0   ;;  %v1030_v41 = vmov 0.0   ;;  %s1283_s1 = inlined_call_operand.vmem [shape: bf16[128,128], index: 1, kind: input, shape index: {}]   ;;  %s1284_s0 = inlined_call_operand.vmem [shape: bf16[128,128], index: 0, kind: input, shape index: {}]   ;;  %s1285_s2 = inlined_call_operand.vmem [shape: f32[128,128], index: 2, kind: input, shape index: {}]   ;;  %s1286_s3 = inlined_call_operand.vmem [shape: f32[1,128], index: 3, kind: input, shape index: {}]   ;;  %s1287_s4 = inlined_call_operand.vmem [shape: f32[1,128], index: 4, kind: input, shape index: {}]   ;;  %s1288_s5 = inlined_call_operand.vmem [shape: bf16[128,128], index: 5, kind: output, shape index: {}]  }
   0x1   :  { %v1008_v0 = vld [vmem:[%s1283_s1] sm:$0xff]   ;;  %v1009_v1 = vld [vmem:[%s1283_s1 + $0x8] sm:$0xff]   ;;  %v1010_v2 = vld [vmem:[%s1283_s1 + $0x10] sm:$0xff]   ;;  %957 = vmatprep.subr.bf16.mxu1 %v1028_v19  ;;  %919 = vmatprep.mubr.msk.f32.mxu1 %vm1029_vm0, %v1030_v41 }
   0x2   :  { %855 = vmatprep.subr.bf16.mxu0 %v1008_v0  ;;  %v1011_v3 = vld [vmem:[%s1283_s1 + $0x18] sm:$0xff]   ;;  %v1016_v4 = vld [vmem:[%s1284_s0] sm:$0xff]   ;;  %v1013_v6 = vld [vmem:[%s1283_s1 + $0x28] sm:$0xff]  }
   0x3   :  { %856 = vmatpush3.bf16.msra.mxu0 %v1008_v0  ;;  %871 = vmatprep.mubr.bf16.mxu0 %v1016_v4  ;;  %v1012_v5 = vld [vmem:[%s1283_s1 + $0x20] sm:$0xff]   ;;  %v1014_v7 = vld [vmem:[%s1283_s1 + $0x30] sm:$0xff]   ;;  %v1015_v8 = vld [vmem:[%s1283_s1 + $0x38] sm:$0xff]  }
   0x4   :  { %857 = vmatprep.subr.bf16.mxu0 %v1009_v1  ;;  %v1017_v9 = vld [vmem:[%s1284_s0 + $0x8] sm:$0xff]   ;;  %v1018_v10 = vld [vmem:[%s1284_s0 + $0x10] sm:$0xff]   ;;  %v1019_v11 = vld [vmem:[%s1284_s0 + $0x18] sm:$0xff]  }
   0x5   :  { %v1020_v12 = vld [vmem:[%s1284_s0 + $0x20] sm:$0xff]   ;;  %v1021_v13 = vld [vmem:[%s1284_s0 + $0x28] sm:$0xff]   ;;  %v1022_v14 = vld [vmem:[%s1284_s0 + $0x30] sm:$0xff]  }
   0x6   :  { %v1023_v15 = vld [vmem:[%s1284_s0 + $0x38] sm:$0xff]   ;;  %v391_v16 = vld [vmem:[%s1285_s2] sm:$0xff]  ;;  %v392_v17 = vld [vmem:[%s1285_s2 + $0x8] sm:$0xff] }
   0x7   :  { %858 = vmatpush3.bf16.msra.mxu0 %v1009_v1  ;;  %v958_v18 = vpack.c.bf16 %v392_v17, %v391_v16  ;;  %v393_v20 = vld [vmem:[%s1285_s2 + $0x10] sm:$0xff]  ;;  %v394_v21 = vld [vmem:[%s1285_s2 + $0x18] sm:$0xff]  ;;  %v395_v23 = vld [vmem:[%s1285_s2 + $0x20] sm:$0xff] }
   0x8   :  { %859 = vmatprep.subr.bf16.mxu0 %v1010_v2  ;;  %v961_v22 = vpack.c.bf16 %v394_v21, %v393_v20  ;;  %v396_v24 = vld [vmem:[%s1285_s2 + $0x28] sm:$0xff]  ;;  %v397_v26 = vld [vmem:[%s1285_s2 + $0x30] sm:$0xff]  ;;  %v398_v27 = vld [vmem:[%s1285_s2 + $0x38] sm:$0xff] }
   0x9   :  { %959 = vmatpush3.bf16.msra.mxu1 %v958_v18  ;;  %v964_v25 = vpack.c.bf16 %v396_v24, %v395_v23  ;;  %v967_v28 = vpack.c.bf16 %v398_v27, %v397_v26  ;;  %v399_v29 = vld [vmem:[%s1285_s2 + $0x40] sm:$0xff]  ;;  %v400_v30 = vld [vmem:[%s1285_s2 + $0x48] sm:$0xff]  ;;  %v401_v32 = vld [vmem:[%s1285_s2 + $0x50] sm:$0xff] }
   0xa   :  { %960 = vmatprep.subr.bf16.mxu1 %v1028_v19  ;;  %v970_v31 = vpack.c.bf16 %v400_v30, %v399_v29  ;;  %v402_v33 = vld [vmem:[%s1285_s2 + $0x58] sm:$0xff]  ;;  %v403_v35 = vld [vmem:[%s1285_s2 + $0x60] sm:$0xff]  ;;  %v404_v36 = vld [vmem:[%s1285_s2 + $0x68] sm:$0xff] }
   0xb   :  { %860 = vmatpush3.bf16.msra.mxu0 %v1010_v2  ;;  %v973_v34 = vpack.c.bf16 %v402_v33, %v401_v32  ;;  %v976_v37 = vpack.c.bf16 %v404_v36, %v403_v35  ;;  %v405_v38 = vld [vmem:[%s1285_s2 + $0x70] sm:$0xff]  ;;  %v406_v39 = vld [vmem:[%s1285_s2 + $0x78] sm:$0xff] }
   0xc   :  { %861 = vmatprep.subr.bf16.mxu0 %v1011_v3  ;;  %v979_v40 = vpack.c.bf16 %v406_v39, %v405_v38 }
   0xd   :  { %962 = vmatpush3.bf16.msra.mxu1 %v961_v22 }
   0xe   :  { %963 = vmatprep.subr.bf16.mxu1 %v1028_v19 }
   0xf   :  { %862 = vmatpush3.bf16.msra.mxu0 %v1011_v3 }
  0x10   :  { %863 = vmatprep.subr.bf16.mxu0 %v1012_v5 }
  0x11   :  { %965 = vmatpush3.bf16.msra.mxu1 %v964_v25 }
  0x12   :  { %966 = vmatprep.subr.bf16.mxu1 %v1028_v19 }
  0x13   :  { %864 = vmatpush3.bf16.msra.mxu0 %v1012_v5 }
  0x14   :  { %865 = vmatprep.subr.bf16.mxu0 %v1013_v6 }
  0x15   :  { %968 = vmatpush3.bf16.msra.mxu1 %v967_v28 }
  0x16   :  { %969 = vmatprep.subr.bf16.mxu1 %v1028_v19 }
  0x17   :  { %866 = vmatpush3.bf16.msra.mxu0 %v1013_v6 }
  0x18   :  { %867 = vmatprep.subr.bf16.mxu0 %v1014_v7 }
  0x19   :  { %971 = vmatpush3.bf16.msra.mxu1 %v970_v31 }
  0x1a   :  { %972 = vmatprep.subr.bf16.mxu1 %v1028_v19 }
  0x1b   :  { %868 = vmatpush3.bf16.msra.mxu0 %v1014_v7 }
  0x1c   :  { %869 = vmatprep.subr.bf16.mxu0 %v1015_v8 }
  0x1d   :  { %974 = vmatpush3.bf16.msra.mxu1 %v973_v34 }
  0x1e   :  { %975 = vmatprep.subr.bf16.mxu1 %v1028_v19 }
  0x1f   :  { %870 = vmatpush3.bf16.msra.mxu0 %v1015_v8 }
  0x20   :  { %981 = vmatprep.subr.bf16.mxu0 %v1028_v19 }
  0x21   :  { %977 = vmatpush3.bf16.msra.mxu1 %v976_v37 }
  0x22   :  { %872 = vmatmul.mubr.bf16.vlgmr.msra.gmra.mrb[0].mxu0 %v1017_v9  ;;  %978 = vmatprep.subr.bf16.mxu1 %v1028_v19 }
  0x23   :  { %875 = vmatprep.mubr.bf16.mxu0 %v1018_v10  ;;  %983 = vmatpush3.bf16.msra.mxu0 %v958_v18 }
  0x24   :  { %984 = vmatprep.subr.bf16.mxu0 %v1028_v19 }
  0x25   :  { %980 = vmatpush3.bf16.msra.mxu1 %v979_v40 }
  0x27   :  { %986 = vmatpush3.bf16.msra.mxu0 %v961_v22 }
  0x28   :  { %987 = vmatprep.subr.bf16.mxu0 %v1028_v19 }
  0x2a   :  { %876 = vmatmul.mubr.bf16.gmra.mrb[4].mxu0 %v1019_v11 }
  0x2b   :  { %879 = vmatprep.mubr.bf16.mxu0 %v1020_v12  ;;  %989 = vmatpush3.bf16.msra.mxu0 %v964_v25 }
  0x2c   :  { %990 = vmatprep.subr.bf16.mxu0 %v1028_v19 }
  0x2f   :  { %992 = vmatpush3.bf16.msra.mxu0 %v967_v28 }
  0x30   :  { %993 = vmatprep.subr.bf16.mxu0 %v1028_v19 }
  0x32   :  { %880 = vmatmul.mubr.bf16.gmra.mrb[8].mxu0 %v1021_v13 }
  0x33   :  { %883 = vmatprep.mubr.bf16.mxu0 %v1022_v14  ;;  %995 = vmatpush3.bf16.msra.mxu0 %v970_v31 }
  0x34   :  { %996 = vmatprep.subr.bf16.mxu0 %v1028_v19 }
  0x37   :  { %998 = vmatpush3.bf16.msra.mxu0 %v973_v34 }
  0x38   :  { %999 = vmatprep.subr.bf16.mxu0 %v1028_v19 }
  0x3a   :  { %884 = vmatmul.mubr.bf16.gmra.mrb[12].mxu0 %v1023_v15 }
  0x3b   :  { %1001 = vmatpush3.bf16.msra.mxu0 %v976_v37  ;;  %954 = vmatprep.mubr.msk.f32.mxu0 %vm1029_vm0, %v1030_v41 }
  0x3c   :  { %1002 = vmatprep.subr.bf16.mxu0 %v1028_v19 }
  0x3f   :  { %1004 = vmatpush3.bf16.msra.mxu0 %v979_v40 }
  0xf5   :  { %v1157_v42 = vpop.f32.mrb[0].mxu0 }
  0xf6   :  { %v1159_v43 = vpop.f32.mrb[1].mxu0  ;;  %v356_v49 = vmul.f32 %v1157_v42, %v1157_v42 }
  0xf7   :  { %v1161_v44 = vpop.f32.mrb[2].mxu0  ;;  %v354_v46 = vmul.f32 %v1159_v43, %v1159_v43 }
  0xf8   :  { %v1163_v45 = vpop.f32.mrb[3].mxu0  ;;  %v357_v52 = vmul.f32 %v1161_v44, %v1161_v44 }
  0xf9   :  { %v333_v47 = vadd.f32 %v1163_v45, %v1159_v43  ;;  %v355_v48 = vmul.f32 %v1163_v45, %v1163_v45 }
  0xfb   :  { %v334_v50 = vadd.f32 %v1157_v42, %v333_v47  ;;  %v370_v51 = vadd.f32 %v355_v48, %v354_v46 }
  0xfd   :  { %v371_v53 = vadd.f32 %v370_v51, %v356_v49  ;;  %v1176_v54 = vpop.f32.mrb[4].mxu0  ;;  %v335_v55 = vadd.f32 %v1161_v44, %v334_v50 }
  0xfe   :  { %v1179_v56 = vpop.f32.mrb[5].mxu0  ;;  %v360_v1 = vmul.f32 %v1176_v54, %v1176_v54 }
  0xff   :  { %v336_v57 = vadd.f32 %v335_v55, %v1179_v56  ;;  %v358_v58 = vmul.f32 %v1179_v56, %v1179_v56  ;;  %v372_v59 = vadd.f32 %v371_v53, %v357_v52  ;;  %v1184_v60 = vpop.f32.mrb[6].mxu0 }
 0x100   :  { %v1186_v61 = vpop.f32.mrb[7].mxu0  ;;  %v361_v4 = vmul.f32 %v1184_v60, %v1184_v60 }
 0x101   :  { %v373_v62 = vadd.f32 %v372_v59, %v358_v58  ;;  %v337_v63 = vadd.f32 %v336_v57, %v1186_v61  ;;  %v359_v0 = vmul.f32 %v1186_v61, %v1186_v61 }
 0x103   :  { %v338_v2 = vadd.f32 %v1176_v54, %v337_v63  ;;  %v374_v3 = vadd.f32 %v373_v62, %v359_v0 }
 0x105   :  { %v375_v5 = vadd.f32 %v374_v3, %v360_v1  ;;  %v1196_v6 = vpop.f32.mrb[8].mxu0  ;;  %v339_v7 = vadd.f32 %v1184_v60, %v338_v2 }
 0x106   :  { %v1199_v8 = vpop.f32.mrb[9].mxu0  ;;  %v364_v17 = vmul.f32 %v1196_v6, %v1196_v6 }
 0x107   :  { %v340_v9 = vadd.f32 %v339_v7, %v1199_v8  ;;  %v362_v10 = vmul.f32 %v1199_v8, %v1199_v8  ;;  %v376_v11 = vadd.f32 %v375_v5, %v361_v4  ;;  %v1204_v12 = vpop.f32.mrb[10].mxu0 }
 0x108   :  { %v1206_v13 = vpop.f32.mrb[11].mxu0  ;;  %v365_v20 = vmul.f32 %v1204_v12, %v1204_v12 }
 0x109   :  { %v377_v14 = vadd.f32 %v376_v11, %v362_v10  ;;  %v341_v15 = vadd.f32 %v340_v9, %v1206_v13  ;;  %v363_v16 = vmul.f32 %v1206_v13, %v1206_v13 }
 0x10b   :  { %v342_v18 = vadd.f32 %v1196_v6, %v341_v15  ;;  %v378_v19 = vadd.f32 %v377_v14, %v363_v16  ;;  %v567_v15 = vlaneseq }
 0x10d   :  { %v379_v21 = vadd.f32 %v378_v19, %v364_v17  ;;  %v1216_v22 = vpop.f32.mrb[12].mxu0  ;;  %v343_v23 = vadd.f32 %v1204_v12, %v342_v18  ;;  %v568_v16 = vshrl.u32 %v567_v15, 7  ;;  %v552_v17 = vld [vmem:[%s1286_s3] sm:$0x1] }
 0x10e   :  { %v1219_v24 = vpop.f32.mrb[13].mxu0  ;;  %v368_v33 = vmul.f32 %v1216_v22, %v1216_v22 }
 0x10f   :  { %v344_v25 = vadd.f32 %v343_v23, %v1219_v24  ;;  %v366_v26 = vmul.f32 %v1219_v24, %v1219_v24  ;;  %v380_v27 = vadd.f32 %v379_v21, %v365_v20  ;;  %v1224_v28 = vpop.f32.mrb[14].mxu0  ;;  %v569_v18 = vsub.s32 0, %v568_v16  ;;  %v563_v21 = vld [vmem:[%s1287_s4] sm:$0x1] }
 0x110   :  { %v1226_v29 = vpop.f32.mrb[15].mxu0  ;;  %v369_v36 = vmul.f32 %v1224_v28, %v1224_v28 }
 0x111   :  { %v381_v30 = vadd.f32 %v380_v27, %v366_v26  ;;  %v345_v31 = vadd.f32 %v344_v25, %v1226_v29  ;;  %v367_v32 = vmul.f32 %v1226_v29, %v1226_v29 }
 0x113   :  { %v346_v34 = vadd.f32 %v1216_v22, %v345_v31  ;;  %v382_v35 = vadd.f32 %v381_v30, %v367_v32 }
 0x115   :  { %v347_v37 = vadd.f32 %v1224_v28, %v346_v34  ;;  %v383_v38 = vadd.f32 %v382_v35, %v368_v33 }
 0x117   :  { %v348_v39 = vrot.slane %v347_v37, 4  ;;  %v384_v40 = vadd.f32 %v383_v38, %v369_v36 }
 0x119   :  { %v385_v41 = vrot.slane %v384_v40, 4  ;;  %v349_v46 = vadd.f32 %v348_v39, %v347_v37 }
 0x11b   :  { %v386_v47 = vadd.f32 %v385_v41, %v384_v40  ;;  %v350_v48 = vrot.slane %v349_v46, 2 }
 0x11d   :  { %v387_v49 = vrot.slane %v386_v47, 2  ;;  %v351_v50 = vadd.f32 %v350_v48, %v349_v46 }
 0x11f   :  { %v388_v51 = vadd.f32 %v387_v49, %v386_v47  ;;  %v352_v52 = vrot.slane %v351_v50, 1 }
 0x121   :  { %v353_v53 = vadd.f32 %v352_v52, %v351_v50  ;;  %v389_v55 = vrot.slane %v388_v51, 1 }
 0x123   :  { %920 = vmatmul.mubr.f32.vlgmr.msra.gmra.mrb[0].mxu1 %v353_v53  ;;  %v390_v57 = vadd.f32 %v389_v55, %v388_v51 }
 0x125   :  { %955 = vmatmul.mubr.f32.vlgmr.msra.gmra.mrb[16].mxu0 %v390_v57 }
 0x1f6   :  { %v473_v58 = vpop.f32.mrb[0].mxu1 }
 0x1f7   :  { %v547_v59 = vmul.f32 0.001953125, %v473_v58  ;;  %v921_v62 = vpop.f32.mrb[1].mxu1 }
 0x1f8   :  { %v543_v63 = vpop.f32.mrb[16].mxu0 }
 0x1f9   :  { %v549_v0 = vmul.f32 %v547_v59, %v547_v59  ;;  %v548_v1 = vmul.f32 0.001953125, %v543_v63  ;;  %v956_v2 = vpop.f32.mrb[17].mxu0 }
 0x1fb   :  { %v550_v3 = vsub.f32 %v548_v1, %v549_v0 }
 0x1fd   :  { %v551_v4 = vmax.f32 %v550_v3, 0.0 }
 0x1ff   :  { %v553_v5 = vadd.f32 1e-05, %v551_v4 }
 0x201   :  { %1024 = vrsqrt.f32 %v553_v5  ;;  %vm556_vm1 = vcmp.eq.f32.partialorder %v553_v5, inf  ;;  %v559_v10 = vand.u32 2147483648, %v553_v5  ;;  %vm558_vm2 = vcmp.eq.f32.partialorder %v553_v5, 0.0 }
 0x20b   :  { %v1025_v7 = vpop.eup %1024 }
 0x20c   :  { %v555_v9 = vmul.f32 %v1025_v7, %v553_v5 }
 0x20e   :  { %v557_v11 = vsel %vm556_vm1, %v553_v5, %v555_v9 }
 0x20f   :  { %v560_v14 = vsel %vm558_vm2, %v559_v10, %v557_v11 }
 0x210   :  { %1026 = vrcp.f32 %v560_v14 }
 0x21a   :  { %v1027_v19 = vpop.eup %1026 }
 0x21b   :  { %v562_v20 = vmul.f32 %v1027_v19, %v552_v17 }
 0x21d   :  { %v564_v23 = vmul.f32 %v562_v20, %v547_v59  ;;  %v570_v25 = vrot.slane %v562_v20, %v569_v18 }
 0x21f   :  { %v565_v26 = vsub.f32 %v563_v21, %v564_v23  ;;  %v572_v27 = vmul.f32 %v570_v25, %v1159_v43  ;;  %v573_v30 = vmul.f32 %v570_v25, %v1163_v45  ;;  %v574_v31 = vmul.f32 %v1157_v42, %v570_v25 }
 0x220   :  { %v575_v32 = vmul.f32 %v1161_v44, %v570_v25  ;;  %v576_v33 = vmul.f32 %v570_v25, %v1179_v56  ;;  %v577_v34 = vmul.f32 %v570_v25, %v1186_v61  ;;  %v578_v35 = vmul.f32 %v1176_v54, %v570_v25 }
 0x221   :  { %v579_v36 = vmul.f32 %v1184_v60, %v570_v25  ;;  %v580_v37 = vmul.f32 %v570_v25, %v1199_v8  ;;  %v581_v38 = vmul.f32 %v570_v25, %v1206_v13  ;;  %v582_v43 = vmul.f32 %v1196_v6, %v570_v25 }
 0x222   :  { %v583_v45 = vmul.f32 %v1204_v12, %v570_v25  ;;  %v584_v42 = vmul.f32 %v570_v25, %v1219_v24  ;;  %v585_v44 = vmul.f32 %v570_v25, %v1226_v29  ;;  %v586_v56 = vmul.f32 %v1216_v22, %v570_v25 }
 0x223   :  { %v587_v61 = vmul.f32 %v1224_v28, %v570_v25  ;;  %v592_v39 = vrot.slane %v565_v26, %v569_v18 }
 0x225   :  { %v594_v54 = vadd.f32 %v592_v39, %v572_v27  ;;  %v595_v40 = vadd.f32 %v592_v39, %v573_v30  ;;  %v596_v60 = vadd.f32 %v592_v39, %v574_v31  ;;  %v597_v41 = vadd.f32 %v592_v39, %v575_v32 }
 0x226   :  { %v598_v8 = vadd.f32 %v592_v39, %v576_v33  ;;  %v599_v46 = vadd.f32 %v592_v39, %v577_v34  ;;  %v600_v13 = vadd.f32 %v592_v39, %v578_v35  ;;  %v601_v47 = vadd.f32 %v592_v39, %v579_v36 }
 0x227   :  { %v602_v6 = vadd.f32 %v592_v39, %v580_v37  ;;  %v603_v48 = vadd.f32 %v592_v39, %v581_v38  ;;  %v604_v12 = vadd.f32 %v592_v39, %v582_v43  ;;  %v605_v49 = vadd.f32 %v592_v39, %v583_v45 }
 0x228   :  { %v606_v24 = vadd.f32 %v592_v39, %v584_v42  ;;  %v607_v50 = vadd.f32 %v592_v39, %v585_v44  ;;  %v608_v29 = vadd.f32 %v592_v39, %v586_v56  ;;  %v609_v51 = vadd.f32 %v592_v39, %v587_v61 }
 0x229   :  { %v610_v22 = vmax.f32 %v594_v54, 0.0  ;;  %v611_v52 = vmax.f32 %v595_v40, 0.0  ;;  %v612_v28 = vmax.f32 %v596_v60, 0.0  ;;  %v613_v53 = vmax.f32 %v597_v41, 0.0 }
 0x22a   :  { %v614_v55 = vmax.f32 %v598_v8, 0.0  ;;  %v615_v57 = vmax.f32 %v599_v46, 0.0  ;;  %v616_v58 = vmax.f32 %v600_v13, 0.0  ;;  %v617_v59 = vmax.f32 %v601_v47, 0.0 }
 0x22b   :  { %v618_v62 = vmax.f32 %v602_v6, 0.0  ;;  %v619_v63 = vmax.f32 %v603_v48, 0.0  ;;  %v620_v0 = vmax.f32 %v604_v12, 0.0  ;;  %v621_v1 = vmax.f32 %v605_v49, 0.0 }
 0x22c   :  { %v622_v2 = vmax.f32 %v606_v24, 0.0  ;;  %v623_v3 = vmax.f32 %v607_v50, 0.0  ;;  %v624_v4 = vmax.f32 %v608_v29, 0.0  ;;  %v625_v5 = vmax.f32 %v609_v51, 0.0 }
 0x22d   :  { %v761_v7 = vpack.c.bf16 %v611_v52, %v610_v22  ;;  %v766_v9 = vpack.c.bf16 %v613_v53, %v612_v28  ;;  %v771_v10 = vpack.c.bf16 %v615_v57, %v614_v55  ;;  %v776_v11 = vpack.c.bf16 %v617_v59, %v616_v58 }
 0x22e   :  { %v781_v14 = vpack.c.bf16 %v619_v63, %v618_v62  ;;  %v786_v15 = vpack.c.bf16 %v621_v1, %v620_v0  ;;  %v791_v16 = vpack.c.bf16 %v623_v3, %v622_v2  ;;  %v796_v17 = vpack.c.bf16 %v625_v5, %v624_v4 }
 0x22f   :  { %762 = vst [vmem:[%s1288_s5] sm:$0xff] %v761_v7   ;;  %798 = vst [vmem:[%s1288_s5 + $0x8] sm:$0xff] %v766_v9  }
 0x230   :  { %799 = vst [vmem:[%s1288_s5 + $0x10] sm:$0xff] %v771_v10   ;;  %800 = vst [vmem:[%s1288_s5 + $0x18] sm:$0xff] %v776_v11  }
 0x231   :  { %801 = vst [vmem:[%s1288_s5 + $0x20] sm:$0xff] %v781_v14   ;;  %802 = vst [vmem:[%s1288_s5 + $0x28] sm:$0xff] %v786_v15  }
 0x232   :  { %803 = vst [vmem:[%s1288_s5 + $0x30] sm:$0xff] %v791_v16   ;;  %804 = vst [vmem:[%s1288_s5 + $0x38] sm:$0xff] %v796_v17  }

// kernel: resnet_generator.19
= control target key start
LH: loop header
LB: loop body
LE: loop exit
PB: predicated region body
PF: predicated region fallthrough
CT: control target
= control target key end

     0   :  { %v2662_v0 = vmov 0   ;;  %s3461_s1 = inlined_call_operand.vmem [shape: bf16[512,128], index: 1, kind: input, shape index: {}]   ;;  %s3462_s0 = inlined_call_operand.vmem [shape: bf16[512,512], index: 0, kind: input, shape index: {}]   ;;  %s3463_s2 = inlined_call_operand.vmem [shape: f32[1,128], index: 2, kind: input, shape index: {}]   ;;  %s3464_s3 = inlined_call_operand.vmem [shape: f32[512,128], index: 3, kind: output, shape index: {}]  }
   0x1   :  { %1171 = vmatprep.subr.bf16.mxu0 %v2662_v0  ;;  %1460 = vmatprep.subr.bf16.mxu1 %v2662_v0  ;;  %v2309_v1 = vld [vmem:[%s3461_s1] sm:$0xff]   ;;  %v2311_v3 = vld [vmem:[%s3461_s1 + $0x8] sm:$0xff]   ;;  %v2313_v5 = vld [vmem:[%s3461_s1 + $0x10] sm:$0xff]  }
   0x2   :  { %v2310_v2 = vld [vmem:[%s3461_s1 + $0x80] sm:$0xff]   ;;  %1172 = vmatpush1.bf16.msra.mxu0 %v2309_v1  ;;  %v2312_v4 = vld [vmem:[%s3461_s1 + $0x88] sm:$0xff]   ;;  %v2314_v6 = vld [vmem:[%s3461_s1 + $0x90] sm:$0xff]  }
   0x3   :  { %1461 = vmatpush1.bf16.msra.mxu1 %v2310_v2  ;;  %1173 = vmatprep.subr.bf16.mxu0 %v2662_v0  ;;  %v2315_v7 = vld [vmem:[%s3461_s1 + $0x18] sm:$0xff]   ;;  %v2317_v9 = vld [vmem:[%s3461_s1 + $0x20] sm:$0xff]   ;;  %v2319_v11 = vld [vmem:[%s3461_s1 + $0x28] sm:$0xff]  }
   0x4   :  { %1462 = vmatprep.subr.bf16.mxu1 %v2662_v0  ;;  %v2316_v8 = vld [vmem:[%s3461_s1 + $0x98] sm:$0xff]   ;;  %v2318_v10 = vld [vmem:[%s3461_s1 + $0xa0] sm:$0xff]   ;;  %v2320_v12 = vld [vmem:[%s3461_s1 + $0xa8] sm:$0xff]  }
   0x5   :  { %v2321_v13 = vld [vmem:[%s3461_s1 + $0x30] sm:$0xff]   ;;  %v2323_v15 = vld [vmem:[%s3461_s1 + $0x38] sm:$0xff]   ;;  %v2325_v17 = vld [vmem:[%s3461_s1 + $0x40] sm:$0xff]  }
   0x6   :  { %1174 = vmatpush1.bf16.msra.mxu0 %v2311_v3  ;;  %v2322_v14 = vld [vmem:[%s3461_s1 + $0xb0] sm:$0xff]   ;;  %v2324_v16 = vld [vmem:[%s3461_s1 + $0xb8] sm:$0xff]   ;;  %v2326_v18 = vld [vmem:[%s3461_s1 + $0xc0] sm:$0xff]  }
   0x7   :  { %1463 = vmatpush1.bf16.msra.mxu1 %v2312_v4  ;;  %1175 = vmatprep.subr.bf16.mxu0 %v2662_v0  ;;  %v2343_v19 = vld [vmem:[%s3462_s0 + $0x4] ss:$16 sps:$4 sm:$0xff]   ;;  %v2327_v20 = vld [vmem:[%s3461_s1 + $0x48] sm:$0xff]   ;;  %v2331_v25 = vld [vmem:[%s3461_s1 + $0x58] sm:$0xff]  }
   0x8   :  { %1464 = vmatprep.subr.bf16.mxu1 %v2662_v0  ;;  %v2346_v21 = vld [vmem:[%s3462_s0 + $0xc] ss:$16 sps:$4 sm:$0xff]   ;;  %1203 = vmatprep.mubr.bf16.mxu0 %v2343_v19  ;;  %v2329_v23 = vld [vmem:[%s3461_s1 + $0x50] sm:$0xff]   ;;  %v2333_v27 = vld [vmem:[%s3461_s1 + $0x60] sm:$0xff]  }
   0x9   :  { %v2328_v22 = vld [vmem:[%s3461_s1 + $0xc8] sm:$0xff]   ;;  %1492 = vmatprep.mubr.bf16.mxu1 %v2346_v21  ;;  %v2330_v24 = vld [vmem:[%s3461_s1 + $0xd0] sm:$0xff]   ;;  %v2332_v26 = vld [vmem:[%s3461_s1 + $0xd8] sm:$0xff]  }
   0xa   :  { %1176 = vmatpush1.bf16.msra.mxu0 %v2313_v5  ;;  %v2334_v28 = vld [vmem:[%s3461_s1 + $0xe0] sm:$0xff]   ;;  %v2335_v29 = vld [vmem:[%s3461_s1 + $0x68] sm:$0xff]   ;;  %v2337_v31 = vld [vmem:[%s3461_s1 + $0x70] sm:$0xff]  }
   0xb   :  { %1465 = vmatpush1.bf16.msra.mxu1 %v2314_v6  ;;  %1177 = vmatprep.subr.bf16.mxu0 %v2662_v0  ;;  %v2336_v30 = vld [vmem:[%s3461_s1 + $0xe8] sm:$0xff]   ;;  %v2338_v32 = vld [vmem:[%s3461_s1 + $0xf0] sm:$0xff]   ;;  %v2339_v33 = vld [vmem:[%s3461_s1 + $0x78] sm:$0xff]  }
   0xc   :  { %1466 = vmatprep.subr.bf16.mxu1 %v2662_v0  ;;  %v2340_v34 = vld [vmem:[%s3461_s1 + $0xf8] sm:$0xff]   ;;  %v2341_v35 = vld [vmem:[%s3462_s0] ss:$16 sps:$4 sm:$0xff]   ;;  %v2347_v37 = vld [vmem:[%s3462_s0 + $0x24] ss:$16 sps:$4 sm:$0xff]  }
   0xd   :  { %v2344_v36 = vld [vmem:[%s3462_s0 + $0x8] ss:$16 sps:$4 sm:$0xff]   ;;  %v2349_v38 = vld [vmem:[%s3462_s0 + $0x2c] ss:$16 sps:$4 sm:$0xff]   ;;  %v2351_v39 = vld [vmem:[%s3462_s0 + $0x20] ss:$16 sps:$4 sm:$0xff]  }
   0xe   :  { %1178 = vmatpush1.bf16.msra.mxu0 %v2315_v7  ;;  %v2352_v40 = vld [vmem:[%s3462_s0 + $0x28] ss:$16 sps:$4 sm:$0xff]   ;;  %v2353_v41 = vld [vmem:[%s3462_s0 + $0x44] ss:$16 sps:$4 sm:$0xff]   ;;  %v2355_v42 = vld [vmem:[%s3462_s0 + $0x4c] ss:$16 sps:$4 sm:$0xff]  }
   0xf   :  { %1467 = vmatpush1.bf16.msra.mxu1 %v2316_v8  ;;  %1179 = vmatprep.subr.bf16.mxu0 %v2662_v0  ;;  %v2357_v43 = vld [vmem:[%s3462_s0 + $0x40] ss:$16 sps:$4 sm:$0xff]   ;;  %v2358_v44 = vld [vmem:[%s3462_s0 + $0x48] ss:$16 sps:$4 sm:$0xff]   ;;  %v2359_v45 = vld [vmem:[%s3462_s0 + $0x64] ss:$16 sps:$4 sm:$0xff]  }
  0x10   :  { %1468 = vmatprep.subr.bf16.mxu1 %v2662_v0  ;;  %v2361_v46 = vld [vmem:[%s3462_s0 + $0x6c] ss:$16 sps:$4 sm:$0xff]   ;;  %v2363_v47 = vld [vmem:[%s3462_s0 + $0x60] ss:$16 sps:$4 sm:$0xff]   ;;  %v2364_v48 = vld [vmem:[%s3462_s0 + $0x68] ss:$16 sps:$4 sm:$0xff]  }
  0x11   :  { %v2365_v49 = vld [vmem:[%s3462_s0 + $0x84] ss:$16 sps:$4 sm:$0xff]   ;;  %v2367_v50 = vld [vmem:[%s3462_s0 + $0x8c] ss:$16 sps:$4 sm:$0xff]   ;;  %v2369_v51 = vld [vmem:[%s3462_s0 + $0x80] ss:$16 sps:$4 sm:$0xff]  }
  0x12   :  { %1180 = vmatpush1.bf16.msra.mxu0 %v2317_v9  ;;  %v2370_v52 = vld [vmem:[%s3462_s0 + $0x88] ss:$16 sps:$4 sm:$0xff]   ;;  %v2371_v53 = vld [vmem:[%s3462_s0 + $0xa4] ss:$16 sps:$4 sm:$0xff]   ;;  %v2373_v54 = vld [vmem:[%s3462_s0 + $0xac] ss:$16 sps:$4 sm:$0xff]  }
  0x13   :  { %1469 = vmatpush1.bf16.msra.mxu1 %v2318_v10  ;;  %1181 = vmatprep.subr.bf16.mxu0 %v2662_v0  ;;  %v2375_v55 = vld [vmem:[%s3462_s0 + $0xa0] ss:$16 sps:$4 sm:$0xff]   ;;  %v2376_v56 = vld [vmem:[%s3462_s0 + $0xa8] ss:$16 sps:$4 sm:$0xff]   ;;  %v2377_v57 = vld [vmem:[%s3462_s0 + $0xc4] ss:$16 sps:$4 sm:$0xff]  }
  0x14   :  { %1470 = vmatprep.subr.bf16.mxu1 %v2662_v0  ;;  %v2379_v58 = vld [vmem:[%s3462_s0 + $0xcc] ss:$16 sps:$4 sm:$0xff]   ;;  %v2381_v59 = vld [vmem:[%s3462_s0 + $0xc0] ss:$16 sps:$4 sm:$0xff]   ;;  %v2382_v60 = vld [vmem:[%s3462_s0 + $0xc8] ss:$16 sps:$4 sm:$0xff]  }
  0x15   :  { %v2383_v61 = vld [vmem:[%s3462_s0 + $0xe4] ss:$16 sps:$4 sm:$0xff]   ;;  %v2385_v62 = vld [vmem:[%s3462_s0 + $0xec] ss:$16 sps:$4 sm:$0xff]   ;;  %v2387_v63 = vld [vmem:[%s3462_s0 + $0xe0] ss:$16 sps:$4 sm:$0xff]  }
  0x16   :  { %1182 = vmatpush1.bf16.msra.mxu0 %v2319_v11  ;;  %v2389_v1 = vld [vmem:[%s3462_s0 + $0x104] ss:$16 sps:$4 sm:$0xff]   ;;  %v2391_v2 = vld [vmem:[%s3462_s0 + $0x10c] ss:$16 sps:$4 sm:$0xff]   ;;  %v2393_v3 = vld [vmem:[%s3462_s0 + $0x100] ss:$16 sps:$4 sm:$0xff]  }
  0x17   :  { %1471 = vmatpush1.bf16.msra.mxu1 %v2320_v12  ;;  %1183 = vmatprep.subr.bf16.mxu0 %v2662_v0  ;;  %v2394_v4 = vld [vmem:[%s3462_s0 + $0x108] ss:$16 sps:$4 sm:$0xff]   ;;  %v2395_v5 = vld [vmem:[%s3462_s0 + $0x124] ss:$16 sps:$4 sm:$0xff]   ;;  %v2397_v6 = vld [vmem:[%s3462_s0 + $0x12c] ss:$16 sps:$4 sm:$0xff]  }
  0x18   :  { %1472 = vmatprep.subr.bf16.mxu1 %v2662_v0  ;;  %v2399_v7 = vld [vmem:[%s3462_s0 + $0x120] ss:$16 sps:$4 sm:$0xff]   ;;  %v2400_v8 = vld [vmem:[%s3462_s0 + $0x128] ss:$16 sps:$4 sm:$0xff]   ;;  %v2401_v9 = vld [vmem:[%s3462_s0 + $0x144] ss:$16 sps:$4 sm:$0xff]  }
  0x19   :  { %v2403_v10 = vld [vmem:[%s3462_s0 + $0x14c] ss:$16 sps:$4 sm:$0xff]   ;;  %v2405_v11 = vld [vmem:[%s3462_s0 + $0x140] ss:$16 sps:$4 sm:$0xff]   ;;  %v2406_v12 = vld [vmem:[%s3462_s0 + $0x148] ss:$16 sps:$4 sm:$0xff]  }
  0x1a   :  { %1184 = vmatpush1.bf16.msra.mxu0 %v2321_v13  ;;  %v2407_v13 = vld [vmem:[%s3462_s0 + $0x164] ss:$16 sps:$4 sm:$0xff]   ;;  %v2417_v19 = vld [vmem:[%s3462_s0 + $0x180] ss:$16 sps:$4 sm:$0xff]  }
  0x1b   :  { %1473 = vmatpush1.bf16.msra.mxu1 %v2322_v14  ;;  %1185 = vmatprep.subr.bf16.mxu0 %v2662_v0  ;;  %v2409_v14 = vld [vmem:[%s3462_s0 + $0x16c] ss:$16 sps:$4 sm:$0xff]   ;;  %v2419_v21 = vld [vmem:[%s3462_s0 + $0x1a4] ss:$16 sps:$4 sm:$0xff]  }
  0x1c   :  { %1474 = vmatprep.subr.bf16.mxu1 %v2662_v0 }
  0x1e   :  { %1186 = vmatpush1.bf16.msra.mxu0 %v2323_v15  ;;  %v2411_v15 = vld [vmem:[%s3462_s0 + $0x160] ss:$16 sps:$4 sm:$0xff]  }
  0x1f   :  { %1475 = vmatpush1.bf16.msra.mxu1 %v2324_v16  ;;  %1187 = vmatprep.subr.bf16.mxu0 %v2662_v0  ;;  %v2412_v16 = vld [vmem:[%s3462_s0 + $0x168] ss:$16 sps:$4 sm:$0xff]  }
  0x20   :  { %1476 = vmatprep.subr.bf16.mxu1 %v2662_v0 }
  0x22   :  { %1188 = vmatpush1.bf16.msra.mxu0 %v2325_v17  ;;  %v2413_v17 = vld [vmem:[%s3462_s0 + $0x184] ss:$16 sps:$4 sm:$0xff]  }
  0x23   :  { %1477 = vmatpush1.bf16.msra.mxu1 %v2326_v18  ;;  %1189 = vmatprep.subr.bf16.mxu0 %v2662_v0  ;;  %v2415_v18 = vld [vmem:[%s3462_s0 + $0x18c] ss:$16 sps:$4 sm:$0xff]  }
  0x24   :  { %1478 = vmatprep.subr.bf16.mxu1 %v2662_v0 }
  0x26   :  { %1190 = vmatpush1.bf16.msra.mxu0 %v2327_v20  ;;  %v2418_v20 = vld [vmem:[%s3462_s0 + $0x188] ss:$16 sps:$4 sm:$0xff]  }
  0x27   :  { %1479 = vmatpush1.bf16.msra.mxu1 %v2328_v22  ;;  %1191 = vmatprep.subr.bf16.mxu0 %v2662_v0  ;;  %v2421_v22 = vld [vmem:[%s3462_s0 + $0x1ac] ss:$16 sps:$4 sm:$0xff]  }
  0x28   :  { %1480 = vmatprep.subr.bf16.mxu1 %v2662_v0 }
  0x2a   :  { %1192 = vmatpush1.bf16.msra.mxu0 %v2329_v23  ;;  %v2423_v23 = vld [vmem:[%s3462_s0 + $0x1a0] ss:$16 sps:$4 sm:$0xff]  }
  0x2b   :  { %1481 = vmatpush1.bf16.msra.mxu1 %v2330_v24  ;;  %1193 = vmatprep.subr.bf16.mxu0 %v2662_v0  ;;  %v2424_v24 = vld [vmem:[%s3462_s0 + $0x1a8] ss:$16 sps:$4 sm:$0xff]  }
  0x2c   :  { %1482 = vmatprep.subr.bf16.mxu1 %v2662_v0 }
  0x2e   :  { %1194 = vmatpush1.bf16.msra.mxu0 %v2331_v25  ;;  %v2425_v25 = vld [vmem:[%s3462_s0 + $0x1c4] ss:$16 sps:$4 sm:$0xff]  }
  0x2f   :  { %1483 = vmatpush1.bf16.msra.mxu1 %v2332_v26  ;;  %1195 = vmatprep.subr.bf16.mxu0 %v2662_v0  ;;  %v2427_v26 = vld [vmem:[%s3462_s0 + $0x1cc] ss:$16 sps:$4 sm:$0xff]  }
  0x30   :  { %1484 = vmatprep.subr.bf16.mxu1 %v2662_v0 }
  0x32   :  { %1196 = vmatpush1.bf16.msra.mxu0 %v2333_v27  ;;  %v2429_v27 = vld [vmem:[%s3462_s0 + $0x1c0] ss:$16 sps:$4 sm:$0xff]  }
  0x33   :  { %1485 = vmatpush1.bf16.msra.mxu1 %v2334_v28  ;;  %1197 = vmatprep.subr.bf16.mxu0 %v2662_v0  ;;  %v2430_v28 = vld [vmem:[%s3462_s0 + $0x1c8] ss:$16 sps:$4 sm:$0xff]  }
  0x34   :  { %1486 = vmatprep.subr.bf16.mxu1 %v2662_v0 }
  0x36   :  { %1198 = vmatpush1.bf16.msra.mxu0 %v2335_v29  ;;  %v2431_v29 = vld [vmem:[%s3462_s0 + $0x1e4] ss:$16 sps:$4 sm:$0xff]  }
  0x37   :  { %1487 = vmatpush1.bf16.msra.mxu1 %v2336_v30  ;;  %1199 = vmatprep.subr.bf16.mxu0 %v2662_v0  ;;  %v2433_v30 = vld [vmem:[%s3462_s0 + $0x1ec] ss:$16 sps:$4 sm:$0xff]  }
  0x38   :  { %1488 = vmatprep.subr.bf16.mxu1 %v2662_v0 }
  0x3a   :  { %1200 = vmatpush1.bf16.msra.mxu0 %v2337_v31  ;;  %v2435_v31 = vld [vmem:[%s3462_s0 + $0x1e0] ss:$16 sps:$4 sm:$0xff]  }
  0x3b   :  { %1489 = vmatpush1.bf16.msra.mxu1 %v2338_v32  ;;  %1201 = vmatprep.subr.bf16.mxu0 %v2662_v0  ;;  %v2436_v32 = vld [vmem:[%s3462_s0 + $0x1e8] ss:$16 sps:$4 sm:$0xff]  }
  0x3c   :  { %1490 = vmatprep.subr.bf16.mxu1 %v2662_v0  ;;  %v2388_v0 = vld [vmem:[%s3462_s0 + $0xe8] ss:$16 sps:$4 sm:$0xff]  }
  0x3e   :  { %1202 = vmatpush1.bf16.msra.mxu0 %v2339_v33  ;;  %v2437_v33 = vld [vmem:[%s3462_s0 + $0x204] ss:$16 sps:$4 sm:$0xff]  }
  0x3f   :  { %1491 = vmatpush1.bf16.msra.mxu1 %v2340_v34  ;;  %v2439_v34 = vld [vmem:[%s3462_s0 + $0x20c] ss:$16 sps:$4 sm:$0xff]  }
  0x41   :  { %1204 = vmatmul.mubr.bf16.vlgmr.msra.gmra.mrb[0].mxu0 %v2341_v35  ;;  %v2441_v35 = vld [vmem:[%s3462_s0 + $0x200] ss:$16 sps:$4 sm:$0xff]  }
  0x42   :  { %1493 = vmatmul.mubr.bf16.vlgmr.msra.gmra.mrb[0].mxu1 %v2344_v36  ;;  %1211 = vmatprep.mubr.bf16.mxu0 %v2347_v37  ;;  %v2442_v36 = vld [vmem:[%s3462_s0 + $0x208] ss:$16 sps:$4 sm:$0xff]   ;;  %v2443_v37 = vld [vmem:[%s3462_s0 + $0x224] ss:$16 sps:$4 sm:$0xff]  }
  0x43   :  { %1500 = vmatprep.mubr.bf16.mxu1 %v2349_v38  ;;  %v2445_v38 = vld [vmem:[%s3462_s0 + $0x22c] ss:$16 sps:$4 sm:$0xff]  }
  0x49   :  { %1212 = vmatmul.mubr.bf16.gmra.mrb[4].mxu0 %v2351_v39  ;;  %v2447_v39 = vld [vmem:[%s3462_s0 + $0x220] ss:$16 sps:$4 sm:$0xff]  }
  0x4a   :  { %1501 = vmatmul.mubr.bf16.gmra.mrb[4].mxu1 %v2352_v40  ;;  %1219 = vmatprep.mubr.bf16.mxu0 %v2353_v41  ;;  %v2448_v40 = vld [vmem:[%s3462_s0 + $0x228] ss:$16 sps:$4 sm:$0xff]   ;;  %v2449_v41 = vld [vmem:[%s3462_s0 + $0x244] ss:$16 sps:$4 sm:$0xff]  }
  0x4b   :  { %1508 = vmatprep.mubr.bf16.mxu1 %v2355_v42  ;;  %v2451_v42 = vld [vmem:[%s3462_s0 + $0x24c] ss:$16 sps:$4 sm:$0xff]  }
  0x51   :  { %1220 = vmatmul.mubr.bf16.gmra.mrb[8].mxu0 %v2357_v43  ;;  %v2453_v43 = vld [vmem:[%s3462_s0 + $0x240] ss:$16 sps:$4 sm:$0xff]  }
  0x52   :  { %1509 = vmatmul.mubr.bf16.gmra.mrb[8].mxu1 %v2358_v44  ;;  %1227 = vmatprep.mubr.bf16.mxu0 %v2359_v45  ;;  %v2454_v44 = vld [vmem:[%s3462_s0 + $0x248] ss:$16 sps:$4 sm:$0xff]   ;;  %v2455_v45 = vld [vmem:[%s3462_s0 + $0x264] ss:$16 sps:$4 sm:$0xff]  }
  0x53   :  { %1516 = vmatprep.mubr.bf16.mxu1 %v2361_v46  ;;  %v2457_v46 = vld [vmem:[%s3462_s0 + $0x26c] ss:$16 sps:$4 sm:$0xff]  }
  0x59   :  { %1228 = vmatmul.mubr.bf16.gmra.mrb[12].mxu0 %v2363_v47  ;;  %v2459_v47 = vld [vmem:[%s3462_s0 + $0x260] ss:$16 sps:$4 sm:$0xff]  }
  0x5a   :  { %1517 = vmatmul.mubr.bf16.gmra.mrb[12].mxu1 %v2364_v48  ;;  %1235 = vmatprep.mubr.bf16.mxu0 %v2365_v49  ;;  %v2460_v48 = vld [vmem:[%s3462_s0 + $0x268] ss:$16 sps:$4 sm:$0xff]   ;;  %v2461_v49 = vld [vmem:[%s3462_s0 + $0x284] ss:$16 sps:$4 sm:$0xff]  }
  0x5b   :  { %1524 = vmatprep.mubr.bf16.mxu1 %v2367_v50  ;;  %v2463_v50 = vld [vmem:[%s3462_s0 + $0x28c] ss:$16 sps:$4 sm:$0xff]  }
  0x61   :  { %1236 = vmatmul.mubr.bf16.gmra.mrb[16].mxu0 %v2369_v51  ;;  %v2465_v51 = vld [vmem:[%s3462_s0 + $0x280] ss:$16 sps:$4 sm:$0xff]  }
  0x62   :  { %1525 = vmatmul.mubr.bf16.gmra.mrb[16].mxu1 %v2370_v52  ;;  %1243 = vmatprep.mubr.bf16.mxu0 %v2371_v53  ;;  %v2466_v52 = vld [vmem:[%s3462_s0 + $0x288] ss:$16 sps:$4 sm:$0xff]   ;;  %v2467_v53 = vld [vmem:[%s3462_s0 + $0x2a4] ss:$16 sps:$4 sm:$0xff]  }
  0x63   :  { %1532 = vmatprep.mubr.bf16.mxu1 %v2373_v54  ;;  %v2469_v54 = vld [vmem:[%s3462_s0 + $0x2ac] ss:$16 sps:$4 sm:$0xff]  }
  0x69   :  { %1244 = vmatmul.mubr.bf16.gmra.mrb[20].mxu0 %v2375_v55  ;;  %v2471_v55 = vld [vmem:[%s3462_s0 + $0x2a0] ss:$16 sps:$4 sm:$0xff]  }
  0x6a   :  { %1533 = vmatmul.mubr.bf16.gmra.mrb[20].mxu1 %v2376_v56  ;;  %1251 = vmatprep.mubr.bf16.mxu0 %v2377_v57  ;;  %v2472_v56 = vld [vmem:[%s3462_s0 + $0x2a8] ss:$16 sps:$4 sm:$0xff]   ;;  %v2473_v57 = vld [vmem:[%s3462_s0 + $0x2c4] ss:$16 sps:$4 sm:$0xff]  }
  0x6b   :  { %1540 = vmatprep.mubr.bf16.mxu1 %v2379_v58  ;;  %v2475_v58 = vld [vmem:[%s3462_s0 + $0x2cc] ss:$16 sps:$4 sm:$0xff]  }
  0x71   :  { %1252 = vmatmul.mubr.bf16.gmra.mrb[24].mxu0 %v2381_v59  ;;  %v2477_v59 = vld [vmem:[%s3462_s0 + $0x2c0] ss:$16 sps:$4 sm:$0xff]  }
  0x72   :  { %1541 = vmatmul.mubr.bf16.gmra.mrb[24].mxu1 %v2382_v60  ;;  %1259 = vmatprep.mubr.bf16.mxu0 %v2383_v61  ;;  %v2478_v60 = vld [vmem:[%s3462_s0 + $0x2c8] ss:$16 sps:$4 sm:$0xff]   ;;  %v2479_v61 = vld [vmem:[%s3462_s0 + $0x2e4] ss:$16 sps:$4 sm:$0xff]  }
  0x73   :  { %1548 = vmatprep.mubr.bf16.mxu1 %v2385_v62  ;;  %v2481_v62 = vld [vmem:[%s3462_s0 + $0x2ec] ss:$16 sps:$4 sm:$0xff]  }
  0x79   :  { %1260 = vmatmul.mubr.bf16.gmra.mrb[28].mxu0 %v2387_v63  ;;  %v2483_v63 = vld [vmem:[%s3462_s0 + $0x2e0] ss:$16 sps:$4 sm:$0xff]  }
  0x7a   :  { %1549 = vmatmul.mubr.bf16.gmra.mrb[28].mxu1 %v2388_v0  ;;  %1267 = vmatprep.mubr.bf16.mxu0 %v2389_v1  ;;  %v2484_v0 = vld [vmem:[%s3462_s0 + $0x2e8] ss:$16 sps:$4 sm:$0xff]   ;;  %v2485_v1 = vld [vmem:[%s3462_s0 + $0x304] ss:$16 sps:$4 sm:$0xff]  }
  0x7b   :  { %1556 = vmatprep.mubr.bf16.mxu1 %v2391_v2  ;;  %v2487_v2 = vld [vmem:[%s3462_s0 + $0x30c] ss:$16 sps:$4 sm:$0xff]  }
  0x81   :  { %1268 = vmatmul.mubr.bf16.gmra.mrb[32].mxu0 %v2393_v3  ;;  %v2489_v3 = vld [vmem:[%s3462_s0 + $0x300] ss:$16 sps:$4 sm:$0xff]  }
  0x82   :  { %1557 = vmatmul.mubr.bf16.gmra.mrb[32].mxu1 %v2394_v4  ;;  %1275 = vmatprep.mubr.bf16.mxu0 %v2395_v5  ;;  %v2490_v4 = vld [vmem:[%s3462_s0 + $0x308] ss:$16 sps:$4 sm:$0xff]   ;;  %v2491_v5 = vld [vmem:[%s3462_s0 + $0x324] ss:$16 sps:$4 sm:$0xff]  }
  0x83   :  { %1564 = vmatprep.mubr.bf16.mxu1 %v2397_v6  ;;  %v2493_v6 = vld [vmem:[%s3462_s0 + $0x32c] ss:$16 sps:$4 sm:$0xff]  }
  0x89   :  { %1276 = vmatmul.mubr.bf16.gmra.mrb[36].mxu0 %v2399_v7  ;;  %v2495_v7 = vld [vmem:[%s3462_s0 + $0x320] ss:$16 sps:$4 sm:$0xff]  }
  0x8a   :  { %1565 = vmatmul.mubr.bf16.gmra.mrb[36].mxu1 %v2400_v8  ;;  %1283 = vmatprep.mubr.bf16.mxu0 %v2401_v9  ;;  %v2496_v8 = vld [vmem:[%s3462_s0 + $0x328] ss:$16 sps:$4 sm:$0xff]   ;;  %v2497_v9 = vld [vmem:[%s3462_s0 + $0x344] ss:$16 sps:$4 sm:$0xff]  }
  0x8b   :  { %1572 = vmatprep.mubr.bf16.mxu1 %v2403_v10  ;;  %v2499_v10 = vld [vmem:[%s3462_s0 + $0x34c] ss:$16 sps:$4 sm:$0xff]  }
  0x91   :  { %1284 = vmatmul.mubr.bf16.gmra.mrb[40].mxu0 %v2405_v11  ;;  %v2501_v11 = vld [vmem:[%s3462_s0 + $0x340] ss:$16 sps:$4 sm:$0xff]  }
  0x92   :  { %1573 = vmatmul.mubr.bf16.gmra.mrb[40].mxu1 %v2406_v12  ;;  %1291 = vmatprep.mubr.bf16.mxu0 %v2407_v13  ;;  %v2502_v12 = vld [vmem:[%s3462_s0 + $0x348] ss:$16 sps:$4 sm:$0xff]   ;;  %v2503_v13 = vld [vmem:[%s3462_s0 + $0x364] ss:$16 sps:$4 sm:$0xff]  }
  0x93   :  { %1580 = vmatprep.mubr.bf16.mxu1 %v2409_v14  ;;  %v2505_v14 = vld [vmem:[%s3462_s0 + $0x36c] ss:$16 sps:$4 sm:$0xff]  }
  0x99   :  { %1292 = vmatmul.mubr.bf16.gmra.mrb[44].mxu0 %v2411_v15 }
  0x9a   :  { %1581 = vmatmul.mubr.bf16.gmra.mrb[44].mxu1 %v2412_v16  ;;  %1299 = vmatprep.mubr.bf16.mxu0 %v2413_v17  ;;  %v3144_v17 = vld [vmem:[%s3463_s2] ss:$0 sm:$0xff] }
  0x9b   :  { %1588 = vmatprep.mubr.bf16.mxu1 %v2415_v18 }
  0xa1   :  { %1300 = vmatmul.mubr.bf16.gmra.mrb[48].mxu0 %v2417_v19  ;;  %v2507_v19 = vld [vmem:[%s3462_s0 + $0x360] ss:$16 sps:$4 sm:$0xff]  }
  0xa2   :  { %1589 = vmatmul.mubr.bf16.gmra.mrb[48].mxu1 %v2418_v20  ;;  %1307 = vmatprep.mubr.bf16.mxu0 %v2419_v21 }
  0xa3   :  { %1596 = vmatprep.mubr.bf16.mxu1 %v2421_v22 }
  0xa9   :  { %1308 = vmatmul.mubr.bf16.gmra.mrb[52].mxu0 %v2423_v23  ;;  %v2508_v23 = vld [vmem:[%s3462_s0 + $0x368] ss:$16 sps:$4 sm:$0xff]  }
  0xaa   :  { %1597 = vmatmul.mubr.bf16.gmra.mrb[52].mxu1 %v2424_v24  ;;  %1315 = vmatprep.mubr.bf16.mxu0 %v2425_v25  ;;  %v2509_v24 = vld [vmem:[%s3462_s0 + $0x384] ss:$16 sps:$4 sm:$0xff]  }
  0xab   :  { %1604 = vmatprep.mubr.bf16.mxu1 %v2427_v26 }
  0xb1   :  { %1316 = vmatmul.mubr.bf16.gmra.mrb[56].mxu0 %v2429_v27  ;;  %v2511_v27 = vld [vmem:[%s3462_s0 + $0x38c] ss:$16 sps:$4 sm:$0xff]  }
  0xb2   :  { %1605 = vmatmul.mubr.bf16.gmra.mrb[56].mxu1 %v2430_v28  ;;  %1323 = vmatprep.mubr.bf16.mxu0 %v2431_v29 }
  0xb3   :  { %1612 = vmatprep.mubr.bf16.mxu1 %v2433_v30 }
  0xb9   :  { %1324 = vmatmul.mubr.bf16.gmra.mrb[60].mxu0 %v2435_v31 }
  0xba   :  { %1613 = vmatmul.mubr.bf16.gmra.mrb[60].mxu1 %v2436_v32  ;;  %1331 = vmatprep.mubr.bf16.mxu0 %v2437_v33 }
  0xbb   :  { %1620 = vmatprep.mubr.bf16.mxu1 %v2439_v34 }
  0xc1   :  { %1332 = vmatmul.mubr.bf16.gmra.mrb[64].mxu0 %v2441_v35  ;;  %v2513_v35 = vld [vmem:[%s3462_s0 + $0x380] ss:$16 sps:$4 sm:$0xff]  }
  0xc2   :  { %1621 = vmatmul.mubr.bf16.gmra.mrb[64].mxu1 %v2442_v36  ;;  %1339 = vmatprep.mubr.bf16.mxu0 %v2443_v37 }
  0xc3   :  { %1628 = vmatprep.mubr.bf16.mxu1 %v2445_v38 }
  0xc9   :  { %1340 = vmatmul.mubr.bf16.gmra.mrb[68].mxu0 %v2447_v39  ;;  %v2514_v39 = vld [vmem:[%s3462_s0 + $0x388] ss:$16 sps:$4 sm:$0xff]  }
  0xca   :  { %1629 = vmatmul.mubr.bf16.gmra.mrb[68].mxu1 %v2448_v40  ;;  %1347 = vmatprep.mubr.bf16.mxu0 %v2449_v41  ;;  %v2515_v40 = vld [vmem:[%s3462_s0 + $0x3a4] ss:$16 sps:$4 sm:$0xff]  }
  0xcb   :  { %1636 = vmatprep.mubr.bf16.mxu1 %v2451_v42 }
  0xd1   :  { %1348 = vmatmul.mubr.bf16.gmra.mrb[72].mxu0 %v2453_v43  ;;  %v2517_v43 = vld [vmem:[%s3462_s0 + $0x3ac] ss:$16 sps:$4 sm:$0xff]  }
  0xd2   :  { %1637 = vmatmul.mubr.bf16.gmra.mrb[72].mxu1 %v2454_v44  ;;  %1355 = vmatprep.mubr.bf16.mxu0 %v2455_v45 }
  0xd3   :  { %1644 = vmatprep.mubr.bf16.mxu1 %v2457_v46 }
  0xd9   :  { %1356 = vmatmul.mubr.bf16.gmra.mrb[76].mxu0 %v2459_v47 }
  0xda   :  { %1645 = vmatmul.mubr.bf16.gmra.mrb[76].mxu1 %v2460_v48  ;;  %1363 = vmatprep.mubr.bf16.mxu0 %v2461_v49 }
  0xdb   :  { %1652 = vmatprep.mubr.bf16.mxu1 %v2463_v50 }
  0xe1   :  { %1364 = vmatmul.mubr.bf16.gmra.mrb[80].mxu0 %v2465_v51 }
  0xe2   :  { %1653 = vmatmul.mubr.bf16.gmra.mrb[80].mxu1 %v2466_v52  ;;  %1371 = vmatprep.mubr.bf16.mxu0 %v2467_v53  ;;  %v2519_v52 = vld [vmem:[%s3462_s0 + $0x3a0] ss:$16 sps:$4 sm:$0xff]  }
  0xe3   :  { %1660 = vmatprep.mubr.bf16.mxu1 %v2469_v54 }
  0xe9   :  { %1372 = vmatmul.mubr.bf16.gmra.mrb[84].mxu0 %v2471_v55 }
  0xea   :  { %1661 = vmatmul.mubr.bf16.gmra.mrb[84].mxu1 %v2472_v56  ;;  %1379 = vmatprep.mubr.bf16.mxu0 %v2473_v57  ;;  %v2520_v57 = vld [vmem:[%s3462_s0 + $0x3a8] ss:$16 sps:$4 sm:$0xff]  }
  0xeb   :  { %1668 = vmatprep.mubr.bf16.mxu1 %v2475_v58  ;;  %v2521_v58 = vld [vmem:[%s3462_s0 + $0x3c4] ss:$16 sps:$4 sm:$0xff]  }
  0xf1   :  { %1380 = vmatmul.mubr.bf16.gmra.mrb[88].mxu0 %v2477_v59 }
  0xf2   :  { %1669 = vmatmul.mubr.bf16.gmra.mrb[88].mxu1 %v2478_v60  ;;  %1387 = vmatprep.mubr.bf16.mxu0 %v2479_v61  ;;  %v2523_v61 = vld [vmem:[%s3462_s0 + $0x3cc] ss:$16 sps:$4 sm:$0xff]  }
  0xf3   :  { %1676 = vmatprep.mubr.bf16.mxu1 %v2481_v62 }
  0xf9   :  { %1388 = vmatmul.mubr.bf16.gmra.mrb[92].mxu0 %v2483_v63 }
  0xfa   :  { %1677 = vmatmul.mubr.bf16.gmra.mrb[92].mxu1 %v2484_v0  ;;  %1395 = vmatprep.mubr.bf16.mxu0 %v2485_v1 }
  0xfb   :  { %1684 = vmatprep.mubr.bf16.mxu1 %v2487_v2 }
 0x101   :  { %1396 = vmatmul.mubr.bf16.gmra.mrb[96].mxu0 %v2489_v3 }
 0x102   :  { %1685 = vmatmul.mubr.bf16.gmra.mrb[96].mxu1 %v2490_v4  ;;  %1403 = vmatprep.mubr.bf16.mxu0 %v2491_v5 }
 0x103   :  { %1692 = vmatprep.mubr.bf16.mxu1 %v2493_v6  ;;  %v2525_v6 = vld [vmem:[%s3462_s0 + $0x3c0] ss:$16 sps:$4 sm:$0xff]  }
 0x109   :  { %1404 = vmatmul.mubr.bf16.gmra.mrb[100].mxu0 %v2495_v7 }
 0x10a   :  { %1693 = vmatmul.mubr.bf16.gmra.mrb[100].mxu1 %v2496_v8  ;;  %1411 = vmatprep.mubr.bf16.mxu0 %v2497_v9 }
 0x10b   :  { %1700 = vmatprep.mubr.bf16.mxu1 %v2499_v10 }
 0x111   :  { %1412 = vmatmul.mubr.bf16.gmra.mrb[104].mxu0 %v2501_v11  ;;  %v2526_v11 = vld [vmem:[%s3462_s0 + $0x3c8] ss:$16 sps:$4 sm:$0xff]  }
 0x112   :  { %1701 = vmatmul.mubr.bf16.gmra.mrb[104].mxu1 %v2502_v12  ;;  %1419 = vmatprep.mubr.bf16.mxu0 %v2503_v13  ;;  %v2527_v12 = vld [vmem:[%s3462_s0 + $0x3e4] ss:$16 sps:$4 sm:$0xff]  }
 0x113   :  { %1708 = vmatprep.mubr.bf16.mxu1 %v2505_v14 }
 0x114   :  { %v1205_v15 = vpop.f32.mrb[0].mxu0 }
 0x115   :  { %v1494_v16 = vpop.f32.mrb[0].mxu1  ;;  %v1207_v18 = vpop.f32.mrb[1].mxu0 }
 0x116   :  { %v1495_v20 = vadd.f32 %v1494_v16, %v1205_v15  ;;  %v1496_v21 = vpop.f32.mrb[1].mxu1  ;;  %v1208_v22 = vpop.f32.mrb[2].mxu0  ;;  %v2529_v15 = vld [vmem:[%s3462_s0 + $0x3ec] ss:$16 sps:$4 sm:$0xff]  }
 0x117   :  { %v1497_v25 = vpop.f32.mrb[2].mxu1  ;;  %v1210_v26 = vpop.f32.mrb[3].mxu0 }
 0x118   :  { %v1951_v28 = vadd.f32 %v3144_v17, %v1495_v20  ;;  %v1498_v29 = vadd.f32 %v1497_v25, %v1208_v22  ;;  %v1499_v30 = vpop.f32.mrb[3].mxu1  ;;  %v2531_v25 = vld [vmem:[%s3462_s0 + $0x3e0] ss:$16 sps:$4 sm:$0xff]  }
 0x119   :  { %1420 = vmatmul.mubr.bf16.gmra.mrb[108].mxu0 %v2507_v19  ;;  %v2532_v30 = vld [vmem:[%s3462_s0 + $0x3e8] ss:$16 sps:$4 sm:$0xff]  }
 0x11a   :  { %2533 = vtanh.f32 %v1951_v28  ;;  %v1952_v31 = vadd.f32 %v3144_v17, %v1498_v29  ;;  %1709 = vmatmul.mubr.bf16.gmra.mrb[108].mxu1 %v2508_v23  ;;  %1427 = vmatprep.mubr.bf16.mxu0 %v2509_v24 }
 0x11b   :  { %1716 = vmatprep.mubr.bf16.mxu1 %v2511_v27 }
 0x11c   :  { %2535 = vtanh.f32 %v1952_v31  ;;  %v1213_v32 = vpop.f32.mrb[4].mxu0 }
 0x11d   :  { %v1502_v33 = vpop.f32.mrb[4].mxu1  ;;  %v1215_v34 = vpop.f32.mrb[5].mxu0 }
 0x11e   :  { %v1503_v36 = vadd.f32 %v1502_v33, %v1213_v32  ;;  %v1504_v37 = vpop.f32.mrb[5].mxu1  ;;  %v1216_v38 = vpop.f32.mrb[6].mxu0 }
 0x11f   :  { %v1505_v41 = vpop.f32.mrb[6].mxu1  ;;  %v1218_v42 = vpop.f32.mrb[7].mxu0 }
 0x120   :  { %v1953_v44 = vadd.f32 %v3144_v17, %v1503_v36  ;;  %v1506_v45 = vadd.f32 %v1505_v41, %v1216_v38  ;;  %v1507_v46 = vpop.f32.mrb[7].mxu1 }
 0x121   :  { %1428 = vmatmul.mubr.bf16.gmra.mrb[112].mxu0 %v2513_v35 }
 0x122   :  { %2537 = vtanh.f32 %v1953_v44  ;;  %v1954_v47 = vadd.f32 %v3144_v17, %v1506_v45  ;;  %1717 = vmatmul.mubr.bf16.gmra.mrb[112].mxu1 %v2514_v39  ;;  %1435 = vmatprep.mubr.bf16.mxu0 %v2515_v40 }
 0x123   :  { %1724 = vmatprep.mubr.bf16.mxu1 %v2517_v43 }
 0x124   :  { %v2534_v48 = vpop.eup %2533  ;;  %2539 = vtanh.f32 %v1954_v47  ;;  %v1221_v49 = vpop.f32.mrb[8].mxu0 }
 0x125   :  { %2079 = vst [vmem:[%s3464_s3] sm:$0xff] %v2534_v48  ;;  %v1510_v50 = vpop.f32.mrb[8].mxu1  ;;  %v1223_v51 = vpop.f32.mrb[9].mxu0 }
 0x126   :  { %v2536_v53 = vpop.eup %2535  ;;  %v1511_v54 = vadd.f32 %v1510_v50, %v1221_v49  ;;  %v1512_v55 = vpop.f32.mrb[9].mxu1 }
 0x127   :  { %v1224_v56 = vpop.f32.mrb[10].mxu0  ;;  %2080 = vst [vmem:[%s3464_s3 + $0x8] sm:$0xff] %v2536_v53  ;;  %v1513_v59 = vpop.f32.mrb[10].mxu1 }
 0x128   :  { %v1226_v60 = vpop.f32.mrb[11].mxu0  ;;  %v1955_v62 = vadd.f32 %v3144_v17, %v1511_v54  ;;  %v1514_v63 = vadd.f32 %v1513_v59, %v1224_v56  ;;  %v1515_v0 = vpop.f32.mrb[11].mxu1 }
 0x129   :  { %1436 = vmatmul.mubr.bf16.gmra.mrb[116].mxu0 %v2519_v52 }
 0x12a   :  { %2541 = vtanh.f32 %v1955_v62  ;;  %v1956_v1 = vadd.f32 %v3144_v17, %v1514_v63  ;;  %1725 = vmatmul.mubr.bf16.gmra.mrb[116].mxu1 %v2520_v57  ;;  %1443 = vmatprep.mubr.bf16.mxu0 %v2521_v58 }
 0x12b   :  { %1732 = vmatprep.mubr.bf16.mxu1 %v2523_v61 }
 0x12c   :  { %v2538_v2 = vpop.eup %2537  ;;  %2543 = vtanh.f32 %v1956_v1  ;;  %v1229_v3 = vpop.f32.mrb[12].mxu0 }
 0x12d   :  { %2081 = vst [vmem:[%s3464_s3 + $0x10] sm:$0xff] %v2538_v2  ;;  %v1518_v4 = vpop.f32.mrb[12].mxu1  ;;  %v1231_v5 = vpop.f32.mrb[13].mxu0 }
 0x12e   :  { %v2540_v7 = vpop.eup %2539  ;;  %v1519_v8 = vadd.f32 %v1518_v4, %v1229_v3  ;;  %v1520_v9 = vpop.f32.mrb[13].mxu1 }
 0x12f   :  { %v1232_v10 = vpop.f32.mrb[14].mxu0  ;;  %2082 = vst [vmem:[%s3464_s3 + $0x18] sm:$0xff] %v2540_v7  ;;  %v1521_v13 = vpop.f32.mrb[14].mxu1 }
 0x130   :  { %v1234_v14 = vpop.f32.mrb[15].mxu0  ;;  %v1957_v16 = vadd.f32 %v3144_v17, %v1519_v8  ;;  %v1522_v18 = vadd.f32 %v1521_v13, %v1232_v10  ;;  %v1523_v19 = vpop.f32.mrb[15].mxu1 }
 0x131   :  { %1444 = vmatmul.mubr.bf16.gmra.mrb[120].mxu0 %v2525_v6 }
 0x132   :  { %2545 = vtanh.f32 %v1957_v16  ;;  %v1958_v20 = vadd.f32 %v3144_v17, %v1522_v18  ;;  %1733 = vmatmul.mubr.bf16.gmra.mrb[120].mxu1 %v2526_v11  ;;  %1451 = vmatprep.mubr.bf16.mxu0 %v2527_v12 }
 0x133   :  { %1740 = vmatprep.mubr.bf16.mxu1 %v2529_v15 }
 0x134   :  { %v2542_v21 = vpop.eup %2541  ;;  %2547 = vtanh.f32 %v1958_v20  ;;  %v1237_v22 = vpop.f32.mrb[16].mxu0 }
 0x135   :  { %2083 = vst [vmem:[%s3464_s3 + $0x20] sm:$0xff] %v2542_v21  ;;  %v1526_v23 = vpop.f32.mrb[16].mxu1  ;;  %v1239_v24 = vpop.f32.mrb[17].mxu0 }
 0x136   :  { %v2544_v26 = vpop.eup %2543  ;;  %v1527_v27 = vadd.f32 %v1526_v23, %v1237_v22  ;;  %v1528_v28 = vpop.f32.mrb[17].mxu1 }
 0x137   :  { %v1240_v29 = vpop.f32.mrb[18].mxu0  ;;  %2084 = vst [vmem:[%s3464_s3 + $0x28] sm:$0xff] %v2544_v26  ;;  %v1529_v31 = vpop.f32.mrb[18].mxu1 }
 0x138   :  { %v1242_v32 = vpop.f32.mrb[19].mxu0  ;;  %v1959_v33 = vadd.f32 %v3144_v17, %v1527_v27  ;;  %v1530_v34 = vadd.f32 %v1529_v31, %v1240_v29  ;;  %v1531_v35 = vpop.f32.mrb[19].mxu1 }
 0x139   :  { %1452 = vmatmul.mubr.bf16.gmra.mrb[124].mxu0 %v2531_v25 }
 0x13a   :  { %2549 = vtanh.f32 %v1959_v33  ;;  %v1960_v36 = vadd.f32 %v3144_v17, %v1530_v34  ;;  %1741 = vmatmul.mubr.bf16.gmra.mrb[124].mxu1 %v2532_v30 }
 0x13c   :  { %v2546_v37 = vpop.eup %2545  ;;  %2551 = vtanh.f32 %v1960_v36  ;;  %v1245_v38 = vpop.f32.mrb[20].mxu0 }
 0x13d   :  { %2085 = vst [vmem:[%s3464_s3 + $0x30] sm:$0xff] %v2546_v37  ;;  %v1534_v39 = vpop.f32.mrb[20].mxu1  ;;  %v1247_v40 = vpop.f32.mrb[21].mxu0 }
 0x13e   :  { %v2548_v41 = vpop.eup %2547  ;;  %v1535_v42 = vadd.f32 %v1534_v39, %v1245_v38  ;;  %v1536_v43 = vpop.f32.mrb[21].mxu1 }
 0x13f   :  { %v1248_v44 = vpop.f32.mrb[22].mxu0  ;;  %2086 = vst [vmem:[%s3464_s3 + $0x38] sm:$0xff] %v2548_v41  ;;  %v1537_v45 = vpop.f32.mrb[22].mxu1 }
 0x140   :  { %v1250_v46 = vpop.f32.mrb[23].mxu0  ;;  %v1961_v47 = vadd.f32 %v3144_v17, %v1535_v42  ;;  %v1538_v48 = vadd.f32 %v1537_v45, %v1248_v44  ;;  %v1539_v49 = vpop.f32.mrb[23].mxu1 }
 0x142   :  { %2553 = vtanh.f32 %v1961_v47  ;;  %v1962_v50 = vadd.f32 %v3144_v17, %v1538_v48 }
 0x144   :  { %v2550_v51 = vpop.eup %2549  ;;  %2555 = vtanh.f32 %v1962_v50  ;;  %v1253_v52 = vpop.f32.mrb[24].mxu0 }
 0x145   :  { %2087 = vst [vmem:[%s3464_s3 + $0x40] sm:$0xff] %v2550_v51  ;;  %v1542_v53 = vpop.f32.mrb[24].mxu1  ;;  %v1255_v54 = vpop.f32.mrb[25].mxu0 }
 0x146   :  { %v2552_v55 = vpop.eup %2551  ;;  %v1543_v56 = vadd.f32 %v1542_v53, %v1253_v52  ;;  %v1544_v57 = vpop.f32.mrb[25].mxu1 }
 0x147   :  { %v1256_v58 = vpop.f32.mrb[26].mxu0  ;;  %2088 = vst [vmem:[%s3464_s3 + $0x48] sm:$0xff] %v2552_v55  ;;  %v1545_v59 = vpop.f32.mrb[26].mxu1 }
 0x148   :  { %v1258_v60 = vpop.f32.mrb[27].mxu0  ;;  %v1963_v61 = vadd.f32 %v3144_v17, %v1543_v56  ;;  %v1546_v62 = vadd.f32 %v1545_v59, %v1256_v58  ;;  %v1547_v63 = vpop.f32.mrb[27].mxu1 }
 0x14a   :  { %2557 = vtanh.f32 %v1963_v61  ;;  %v1964_v0 = vadd.f32 %v3144_v17, %v1546_v62 }
 0x14c   :  { %v2554_v1 = vpop.eup %2553  ;;  %2559 = vtanh.f32 %v1964_v0  ;;  %v1261_v2 = vpop.f32.mrb[28].mxu0 }
 0x14d   :  { %2089 = vst [vmem:[%s3464_s3 + $0x50] sm:$0xff] %v2554_v1  ;;  %v1550_v3 = vpop.f32.mrb[28].mxu1  ;;  %v1263_v4 = vpop.f32.mrb[29].mxu0 }
 0x14e   :  { %v2556_v5 = vpop.eup %2555  ;;  %v1551_v6 = vadd.f32 %v1550_v3, %v1261_v2  ;;  %v1552_v7 = vpop.f32.mrb[29].mxu1 }
 0x14f   :  { %v1264_v8 = vpop.f32.mrb[30].mxu0  ;;  %2090 = vst [vmem:[%s3464_s3 + $0x58] sm:$0xff] %v2556_v5  ;;  %v1553_v9 = vpop.f32.mrb[30].mxu1 }
 0x150   :  { %v1266_v10 = vpop.f32.mrb[31].mxu0  ;;  %v1965_v11 = vadd.f32 %v3144_v17, %v1551_v6  ;;  %v1554_v12 = vadd.f32 %v1553_v9, %v1264_v8  ;;  %v1555_v13 = vpop.f32.mrb[31].mxu1 }
 0x152   :  { %2561 = vtanh.f32 %v1965_v11  ;;  %v1966_v14 = vadd.f32 %v3144_v17, %v1554_v12 }
 0x154   :  { %v2558_v15 = vpop.eup %2557  ;;  %2563 = vtanh.f32 %v1966_v14  ;;  %v1269_v16 = vpop.f32.mrb[32].mxu0 }
 0x155   :  { %2091 = vst [vmem:[%s3464_s3 + $0x60] sm:$0xff] %v2558_v15  ;;  %v1558_v18 = vpop.f32.mrb[32].mxu1  ;;  %v1271_v19 = vpop.f32.mrb[33].mxu0 }
 0x156   :  { %v2560_v20 = vpop.eup %2559  ;;  %v1559_v21 = vadd.f32 %v1558_v18, %v1269_v16  ;;  %v1560_v22 = vpop.f32.mrb[33].mxu1 }
 0x157   :  { %v1272_v23 = vpop.f32.mrb[34].mxu0  ;;  %2092 = vst [vmem:[%s3464_s3 + $0x68] sm:$0xff] %v2560_v20  ;;  %v1561_v24 = vpop.f32.mrb[34].mxu1 }
 0x158   :  { %v1274_v25 = vpop.f32.mrb[35].mxu0  ;;  %v1967_v26 = vadd.f32 %v3144_v17, %v1559_v21  ;;  %v1562_v27 = vadd.f32 %v1561_v24, %v1272_v23  ;;  %v1563_v28 = vpop.f32.mrb[35].mxu1 }
 0x15a   :  { %2565 = vtanh.f32 %v1967_v26  ;;  %v1968_v29 = vadd.f32 %v3144_v17, %v1562_v27 }
 0x15c   :  { %v2562_v30 = vpop.eup %2561  ;;  %2567 = vtanh.f32 %v1968_v29  ;;  %v1277_v31 = vpop.f32.mrb[36].mxu0 }
 0x15d   :  { %2093 = vst [vmem:[%s3464_s3 + $0x70] sm:$0xff] %v2562_v30  ;;  %v1566_v32 = vpop.f32.mrb[36].mxu1  ;;  %v1279_v33 = vpop.f32.mrb[37].mxu0 }
 0x15e   :  { %v2564_v34 = vpop.eup %2563  ;;  %v1567_v35 = vadd.f32 %v1566_v32, %v1277_v31  ;;  %v1568_v36 = vpop.f32.mrb[37].mxu1 }
 0x15f   :  { %v1280_v37 = vpop.f32.mrb[38].mxu0  ;;  %2094 = vst [vmem:[%s3464_s3 + $0x78] sm:$0xff] %v2564_v34  ;;  %v1569_v38 = vpop.f32.mrb[38].mxu1 }
 0x160   :  { %v1282_v39 = vpop.f32.mrb[39].mxu0  ;;  %v1969_v40 = vadd.f32 %v3144_v17, %v1567_v35  ;;  %v1570_v41 = vadd.f32 %v1569_v38, %v1280_v37  ;;  %v1571_v42 = vpop.f32.mrb[39].mxu1 }
 0x162   :  { %2569 = vtanh.f32 %v1969_v40  ;;  %v1970_v43 = vadd.f32 %v3144_v17, %v1570_v41 }
 0x164   :  { %v2566_v44 = vpop.eup %2565  ;;  %2571 = vtanh.f32 %v1970_v43  ;;  %v1285_v45 = vpop.f32.mrb[40].mxu0 }
 0x165   :  { %2095 = vst [vmem:[%s3464_s3 + $0x80] sm:$0xff] %v2566_v44  ;;  %v1574_v46 = vpop.f32.mrb[40].mxu1  ;;  %v1287_v47 = vpop.f32.mrb[41].mxu0 }
 0x166   :  { %v2568_v48 = vpop.eup %2567  ;;  %v1575_v49 = vadd.f32 %v1574_v46, %v1285_v45  ;;  %v1576_v50 = vpop.f32.mrb[41].mxu1 }
 0x167   :  { %v1288_v51 = vpop.f32.mrb[42].mxu0  ;;  %2096 = vst [vmem:[%s3464_s3 + $0x88] sm:$0xff] %v2568_v48  ;;  %v1577_v52 = vpop.f32.mrb[42].mxu1 }
 0x168   :  { %v1290_v53 = vpop.f32.mrb[43].mxu0  ;;  %v1971_v54 = vadd.f32 %v3144_v17, %v1575_v49  ;;  %v1578_v55 = vadd.f32 %v1577_v52, %v1288_v51  ;;  %v1579_v56 = vpop.f32.mrb[43].mxu1 }
 0x16a   :  { %2573 = vtanh.f32 %v1971_v54  ;;  %v1972_v57 = vadd.f32 %v3144_v17, %v1578_v55 }
 0x16c   :  { %v2570_v58 = vpop.eup %2569  ;;  %2575 = vtanh.f32 %v1972_v57  ;;  %v1293_v59 = vpop.f32.mrb[44].mxu0 }
 0x16d   :  { %2097 = vst [vmem:[%s3464_s3 + $0x90] sm:$0xff] %v2570_v58  ;;  %v1582_v60 = vpop.f32.mrb[44].mxu1  ;;  %v1295_v61 = vpop.f32.mrb[45].mxu0 }
 0x16e   :  { %v2572_v62 = vpop.eup %2571  ;;  %v1583_v63 = vadd.f32 %v1582_v60, %v1293_v59  ;;  %v1584_v0 = vpop.f32.mrb[45].mxu1 }
 0x16f   :  { %v1296_v1 = vpop.f32.mrb[46].mxu0  ;;  %2098 = vst [vmem:[%s3464_s3 + $0x98] sm:$0xff] %v2572_v62  ;;  %v1585_v2 = vpop.f32.mrb[46].mxu1 }
 0x170   :  { %v1298_v3 = vpop.f32.mrb[47].mxu0  ;;  %v1973_v4 = vadd.f32 %v3144_v17, %v1583_v63  ;;  %v1586_v5 = vadd.f32 %v1585_v2, %v1296_v1  ;;  %v1587_v6 = vpop.f32.mrb[47].mxu1 }
 0x172   :  { %2577 = vtanh.f32 %v1973_v4  ;;  %v1974_v7 = vadd.f32 %v3144_v17, %v1586_v5 }
 0x174   :  { %v2574_v8 = vpop.eup %2573  ;;  %2579 = vtanh.f32 %v1974_v7  ;;  %v1301_v9 = vpop.f32.mrb[48].mxu0 }
 0x175   :  { %2099 = vst [vmem:[%s3464_s3 + $0xa0] sm:$0xff] %v2574_v8  ;;  %v1590_v10 = vpop.f32.mrb[48].mxu1  ;;  %v1303_v11 = vpop.f32.mrb[49].mxu0 }
 0x176   :  { %v2576_v12 = vpop.eup %2575  ;;  %v1591_v13 = vadd.f32 %v1590_v10, %v1301_v9  ;;  %v1592_v14 = vpop.f32.mrb[49].mxu1 }
 0x177   :  { %v1304_v15 = vpop.f32.mrb[50].mxu0  ;;  %2100 = vst [vmem:[%s3464_s3 + $0xa8] sm:$0xff] %v2576_v12  ;;  %v1593_v16 = vpop.f32.mrb[50].mxu1 }
 0x178   :  { %v1306_v18 = vpop.f32.mrb[51].mxu0  ;;  %v1975_v19 = vadd.f32 %v3144_v17, %v1591_v13  ;;  %v1594_v20 = vadd.f32 %v1593_v16, %v1304_v15  ;;  %v1595_v21 = vpop.f32.mrb[51].mxu1 }
 0x17a   :  { %2581 = vtanh.f32 %v1975_v19  ;;  %v1976_v22 = vadd.f32 %v3144_v17, %v1594_v20 }
 0x17c   :  { %v2578_v23 = vpop.eup %2577  ;;  %2583 = vtanh.f32 %v1976_v22  ;;  %v1309_v24 = vpop.f32.mrb[52].mxu0 }
 0x17d   :  { %2101 = vst [vmem:[%s3464_s3 + $0xb0] sm:$0xff] %v2578_v23  ;;  %v1598_v25 = vpop.f32.mrb[52].mxu1  ;;  %v1311_v26 = vpop.f32.mrb[53].mxu0 }
 0x17e   :  { %v2580_v27 = vpop.eup %2579  ;;  %v1599_v28 = vadd.f32 %v1598_v25, %v1309_v24  ;;  %v1600_v29 = vpop.f32.mrb[53].mxu1 }
 0x17f   :  { %v1312_v30 = vpop.f32.mrb[54].mxu0  ;;  %2102 = vst [vmem:[%s3464_s3 + $0xb8] sm:$0xff] %v2580_v27  ;;  %v1601_v31 = vpop.f32.mrb[54].mxu1 }
 0x180   :  { %v1314_v32 = vpop.f32.mrb[55].mxu0  ;;  %v1977_v33 = vadd.f32 %v3144_v17, %v1599_v28  ;;  %v1602_v34 = vadd.f32 %v1601_v31, %v1312_v30  ;;  %v1603_v35 = vpop.f32.mrb[55].mxu1 }
 0x182   :  { %2585 = vtanh.f32 %v1977_v33  ;;  %v1978_v36 = vadd.f32 %v3144_v17, %v1602_v34 }
 0x184   :  { %v2582_v37 = vpop.eup %2581  ;;  %2587 = vtanh.f32 %v1978_v36  ;;  %v1317_v38 = vpop.f32.mrb[56].mxu0 }
 0x185   :  { %2103 = vst [vmem:[%s3464_s3 + $0xc0] sm:$0xff] %v2582_v37  ;;  %v1606_v39 = vpop.f32.mrb[56].mxu1  ;;  %v1319_v40 = vpop.f32.mrb[57].mxu0 }
 0x186   :  { %v2584_v41 = vpop.eup %2583  ;;  %v1607_v42 = vadd.f32 %v1606_v39, %v1317_v38  ;;  %v1608_v43 = vpop.f32.mrb[57].mxu1 }
 0x187   :  { %v1320_v44 = vpop.f32.mrb[58].mxu0  ;;  %2104 = vst [vmem:[%s3464_s3 + $0xc8] sm:$0xff] %v2584_v41  ;;  %v1609_v45 = vpop.f32.mrb[58].mxu1 }
 0x188   :  { %v1322_v46 = vpop.f32.mrb[59].mxu0  ;;  %v1979_v47 = vadd.f32 %v3144_v17, %v1607_v42  ;;  %v1610_v48 = vadd.f32 %v1609_v45, %v1320_v44  ;;  %v1611_v49 = vpop.f32.mrb[59].mxu1 }
 0x18a   :  { %2589 = vtanh.f32 %v1979_v47  ;;  %v1980_v50 = vadd.f32 %v3144_v17, %v1610_v48 }
 0x18c   :  { %v2586_v51 = vpop.eup %2585  ;;  %2591 = vtanh.f32 %v1980_v50  ;;  %v1325_v52 = vpop.f32.mrb[60].mxu0 }
 0x18d   :  { %2105 = vst [vmem:[%s3464_s3 + $0xd0] sm:$0xff] %v2586_v51  ;;  %v1614_v53 = vpop.f32.mrb[60].mxu1  ;;  %v1327_v54 = vpop.f32.mrb[61].mxu0 }
 0x18e   :  { %v2588_v55 = vpop.eup %2587  ;;  %v1615_v56 = vadd.f32 %v1614_v53, %v1325_v52  ;;  %v1616_v57 = vpop.f32.mrb[61].mxu1 }
 0x18f   :  { %v1328_v58 = vpop.f32.mrb[62].mxu0  ;;  %2106 = vst [vmem:[%s3464_s3 + $0xd8] sm:$0xff] %v2588_v55  ;;  %v1617_v59 = vpop.f32.mrb[62].mxu1 }
 0x190   :  { %v1330_v60 = vpop.f32.mrb[63].mxu0  ;;  %v1981_v61 = vadd.f32 %v3144_v17, %v1615_v56  ;;  %v1618_v62 = vadd.f32 %v1617_v59, %v1328_v58  ;;  %v1619_v63 = vpop.f32.mrb[63].mxu1 }
 0x192   :  { %2593 = vtanh.f32 %v1981_v61  ;;  %v1982_v0 = vadd.f32 %v3144_v17, %v1618_v62 }
 0x194   :  { %v2590_v1 = vpop.eup %2589  ;;  %2595 = vtanh.f32 %v1982_v0  ;;  %v1333_v2 = vpop.f32.mrb[64].mxu0 }
 0x195   :  { %2107 = vst [vmem:[%s3464_s3 + $0xe0] sm:$0xff] %v2590_v1  ;;  %v1622_v3 = vpop.f32.mrb[64].mxu1  ;;  %v1335_v4 = vpop.f32.mrb[65].mxu0 }
 0x196   :  { %v2592_v5 = vpop.eup %2591  ;;  %v1623_v6 = vadd.f32 %v1622_v3, %v1333_v2  ;;  %v1624_v7 = vpop.f32.mrb[65].mxu1 }
 0x197   :  { %v1336_v8 = vpop.f32.mrb[66].mxu0  ;;  %2108 = vst [vmem:[%s3464_s3 + $0xe8] sm:$0xff] %v2592_v5  ;;  %v1625_v9 = vpop.f32.mrb[66].mxu1 }
 0x198   :  { %v1338_v10 = vpop.f32.mrb[67].mxu0  ;;  %v1983_v11 = vadd.f32 %v3144_v17, %v1623_v6  ;;  %v1626_v12 = vadd.f32 %v1625_v9, %v1336_v8  ;;  %v1627_v13 = vpop.f32.mrb[67].mxu1 }
 0x19a   :  { %2597 = vtanh.f32 %v1983_v11  ;;  %v1984_v14 = vadd.f32 %v3144_v17, %v1626_v12 }
 0x19c   :  { %v2594_v15 = vpop.eup %2593  ;;  %2599 = vtanh.f32 %v1984_v14  ;;  %v1341_v16 = vpop.f32.mrb[68].mxu0 }
 0x19d   :  { %2109 = vst [vmem:[%s3464_s3 + $0xf0] sm:$0xff] %v2594_v15  ;;  %v1630_v18 = vpop.f32.mrb[68].mxu1  ;;  %v1343_v19 = vpop.f32.mrb[69].mxu0 }
 0x19e   :  { %v2596_v20 = vpop.eup %2595  ;;  %v1631_v21 = vadd.f32 %v1630_v18, %v1341_v16  ;;  %v1632_v22 = vpop.f32.mrb[69].mxu1 }
 0x19f   :  { %v1344_v23 = vpop.f32.mrb[70].mxu0  ;;  %2110 = vst [vmem:[%s3464_s3 + $0xf8] sm:$0xff] %v2596_v20  ;;  %v1633_v24 = vpop.f32.mrb[70].mxu1 }
 0x1a0   :  { %v1346_v25 = vpop.f32.mrb[71].mxu0  ;;  %v1985_v26 = vadd.f32 %v3144_v17, %v1631_v21  ;;  %v1634_v27 = vadd.f32 %v1633_v24, %v1344_v23  ;;  %v1635_v28 = vpop.f32.mrb[71].mxu1 }
 0x1a2   :  { %2601 = vtanh.f32 %v1985_v26  ;;  %v1986_v29 = vadd.f32 %v3144_v17, %v1634_v27 }
 0x1a4   :  { %v2598_v30 = vpop.eup %2597  ;;  %2603 = vtanh.f32 %v1986_v29  ;;  %v1349_v31 = vpop.f32.mrb[72].mxu0 }
 0x1a5   :  { %2111 = vst [vmem:[%s3464_s3 + $0x100] sm:$0xff] %v2598_v30  ;;  %v1638_v32 = vpop.f32.mrb[72].mxu1  ;;  %v1351_v33 = vpop.f32.mrb[73].mxu0 }
 0x1a6   :  { %v2600_v34 = vpop.eup %2599  ;;  %v1639_v35 = vadd.f32 %v1638_v32, %v1349_v31  ;;  %v1640_v36 = vpop.f32.mrb[73].mxu1 }
 0x1a7   :  { %v1352_v37 = vpop.f32.mrb[74].mxu0  ;;  %2112 = vst [vmem:[%s3464_s3 + $0x108] sm:$0xff] %v2600_v34  ;;  %v1641_v38 = vpop.f32.mrb[74].mxu1 }
 0x1a8   :  { %v1354_v39 = vpop.f32.mrb[75].mxu0  ;;  %v1987_v40 = vadd.f32 %v3144_v17, %v1639_v35  ;;  %v1642_v41 = vadd.f32 %v1641_v38, %v1352_v37  ;;  %v1643_v42 = vpop.f32.mrb[75].mxu1 }
 0x1aa   :  { %2605 = vtanh.f32 %v1987_v40  ;;  %v1988_v43 = vadd.f32 %v3144_v17, %v1642_v41 }
 0x1ac   :  { %v2602_v44 = vpop.eup %2601  ;;  %2607 = vtanh.f32 %v1988_v43  ;;  %v1357_v45 = vpop.f32.mrb[76].mxu0 }
 0x1ad   :  { %2113 = vst [vmem:[%s3464_s3 + $0x110] sm:$0xff] %v2602_v44  ;;  %v1646_v46 = vpop.f32.mrb[76].mxu1  ;;  %v1359_v47 = vpop.f32.mrb[77].mxu0 }
 0x1ae   :  { %v2604_v48 = vpop.eup %2603  ;;  %v1647_v49 = vadd.f32 %v1646_v46, %v1357_v45  ;;  %v1648_v50 = vpop.f32.mrb[77].mxu1 }
 0x1af   :  { %v1360_v51 = vpop.f32.mrb[78].mxu0  ;;  %2114 = vst [vmem:[%s3464_s3 + $0x118] sm:$0xff] %v2604_v48  ;;  %v1649_v52 = vpop.f32.mrb[78].mxu1 }
 0x1b0   :  { %v1362_v53 = vpop.f32.mrb[79].mxu0  ;;  %v1989_v54 = vadd.f32 %v3144_v17, %v1647_v49  ;;  %v1650_v55 = vadd.f32 %v1649_v52, %v1360_v51  ;;  %v1651_v56 = vpop.f32.mrb[79].mxu1 }
 0x1b2   :  { %2609 = vtanh.f32 %v1989_v54  ;;  %v1990_v57 = vadd.f32 %v3144_v17, %v1650_v55 }
 0x1b4   :  { %v2606_v58 = vpop.eup %2605  ;;  %2611 = vtanh.f32 %v1990_v57  ;;  %v1365_v59 = vpop.f32.mrb[80].mxu0 }
 0x1b5   :  { %2115 = vst [vmem:[%s3464_s3 + $0x120] sm:$0xff] %v2606_v58  ;;  %v1654_v60 = vpop.f32.mrb[80].mxu1  ;;  %v1367_v61 = vpop.f32.mrb[81].mxu0 }
 0x1b6   :  { %v2608_v62 = vpop.eup %2607  ;;  %v1655_v63 = vadd.f32 %v1654_v60, %v1365_v59  ;;  %v1656_v0 = vpop.f32.mrb[81].mxu1 }
 0x1b7   :  { %v1368_v1 = vpop.f32.mrb[82].mxu0  ;;  %2116 = vst [vmem:[%s3464_s3 + $0x128] sm:$0xff] %v2608_v62  ;;  %v1657_v2 = vpop.f32.mrb[82].mxu1 }
 0x1b8   :  { %v1370_v3 = vpop.f32.mrb[83].mxu0  ;;  %v1991_v4 = vadd.f32 %v3144_v17, %v1655_v63  ;;  %v1658_v5 = vadd.f32 %v1657_v2, %v1368_v1  ;;  %v1659_v6 = vpop.f32.mrb[83].mxu1 }
 0x1ba   :  { %2613 = vtanh.f32 %v1991_v4  ;;  %v1992_v7 = vadd.f32 %v3144_v17, %v1658_v5 }
 0x1bc   :  { %v2610_v8 = vpop.eup %2609  ;;  %2615 = vtanh.f32 %v1992_v7  ;;  %v1373_v9 = vpop.f32.mrb[84].mxu0 }
 0x1bd   :  { %2117 = vst [vmem:[%s3464_s3 + $0x130] sm:$0xff] %v2610_v8  ;;  %v1662_v10 = vpop.f32.mrb[84].mxu1  ;;  %v1375_v11 = vpop.f32.mrb[85].mxu0 }
 0x1be   :  { %v2612_v12 = vpop.eup %2611  ;;  %v1663_v13 = vadd.f32 %v1662_v10, %v1373_v9  ;;  %v1664_v14 = vpop.f32.mrb[85].mxu1 }
 0x1bf   :  { %v1376_v15 = vpop.f32.mrb[86].mxu0  ;;  %2118 = vst [vmem:[%s3464_s3 + $0x138] sm:$0xff] %v2612_v12  ;;  %v1665_v16 = vpop.f32.mrb[86].mxu1 }
 0x1c0   :  { %v1378_v18 = vpop.f32.mrb[87].mxu0  ;;  %v1993_v19 = vadd.f32 %v3144_v17, %v1663_v13  ;;  %v1666_v20 = vadd.f32 %v1665_v16, %v1376_v15  ;;  %v1667_v21 = vpop.f32.mrb[87].mxu1 }
 0x1c2   :  { %2617 = vtanh.f32 %v1993_v19  ;;  %v1994_v22 = vadd.f32 %v3144_v17, %v1666_v20 }
 0x1c4   :  { %v2614_v23 = vpop.eup %2613  ;;  %2619 = vtanh.f32 %v1994_v22  ;;  %v1381_v24 = vpop.f32.mrb[88].mxu0 }
 0x1c5   :  { %2119 = vst [vmem:[%s3464_s3 + $0x140] sm:$0xff] %v2614_v23  ;;  %v1670_v25 = vpop.f32.mrb[88].mxu1  ;;  %v1383_v26 = vpop.f32.mrb[89].mxu0 }
 0x1c6   :  { %v2616_v27 = vpop.eup %2615  ;;  %v1671_v28 = vadd.f32 %v1670_v25, %v1381_v24  ;;  %v1672_v29 = vpop.f32.mrb[89].mxu1 }
 0x1c7   :  { %v1384_v30 = vpop.f32.mrb[90].mxu0  ;;  %2120 = vst [vmem:[%s3464_s3 + $0x148] sm:$0xff] %v2616_v27  ;;  %v1673_v31 = vpop.f32.mrb[90].mxu1  ;;  %v3406_v29 = vld [vmem:[%s3463_s2] ss:$0 sm:$0xff] }
 0x1c8   :  { %v1386_v32 = vpop.f32.mrb[91].mxu0  ;;  %v1995_v33 = vadd.f32 %v3144_v17, %v1671_v28  ;;  %v1674_v34 = vadd.f32 %v1673_v31, %v1384_v30  ;;  %v1675_v35 = vpop.f32.mrb[91].mxu1 }
 0x1ca   :  { %2621 = vtanh.f32 %v1995_v33  ;;  %v1996_v36 = vadd.f32 %v3144_v17, %v1674_v34 }
 0x1cc   :  { %v2618_v37 = vpop.eup %2617  ;;  %2623 = vtanh.f32 %v1996_v36  ;;  %v1389_v38 = vpop.f32.mrb[92].mxu0 }
 0x1cd   :  { %2121 = vst [vmem:[%s3464_s3 + $0x150] sm:$0xff] %v2618_v37  ;;  %v1678_v39 = vpop.f32.mrb[92].mxu1  ;;  %v1391_v40 = vpop.f32.mrb[93].mxu0 }
 0x1ce   :  { %v2620_v41 = vpop.eup %2619  ;;  %v1679_v42 = vadd.f32 %v1678_v39, %v1389_v38  ;;  %v1680_v43 = vpop.f32.mrb[93].mxu1 }
 0x1cf   :  { %v1392_v44 = vpop.f32.mrb[94].mxu0  ;;  %2122 = vst [vmem:[%s3464_s3 + $0x158] sm:$0xff] %v2620_v41  ;;  %v1681_v45 = vpop.f32.mrb[94].mxu1 }
 0x1d0   :  { %v1394_v46 = vpop.f32.mrb[95].mxu0  ;;  %v1997_v47 = vadd.f32 %v3144_v17, %v1679_v42  ;;  %v1682_v48 = vadd.f32 %v1681_v45, %v1392_v44  ;;  %v1683_v49 = vpop.f32.mrb[95].mxu1 }
 0x1d2   :  { %2625 = vtanh.f32 %v1997_v47  ;;  %v1998_v50 = vadd.f32 %v3144_v17, %v1682_v48 }
 0x1d4   :  { %v2622_v51 = vpop.eup %2621  ;;  %2627 = vtanh.f32 %v1998_v50  ;;  %v1397_v52 = vpop.f32.mrb[96].mxu0 }
 0x1d5   :  { %2123 = vst [vmem:[%s3464_s3 + $0x160] sm:$0xff] %v2622_v51  ;;  %v1686_v53 = vpop.f32.mrb[96].mxu1  ;;  %v1399_v54 = vpop.f32.mrb[97].mxu0 }
 0x1d6   :  { %v2624_v55 = vpop.eup %2623  ;;  %v1687_v56 = vadd.f32 %v1686_v53, %v1397_v52  ;;  %v1688_v57 = vpop.f32.mrb[97].mxu1 }
 0x1d7   :  { %v1400_v58 = vpop.f32.mrb[98].mxu0  ;;  %2124 = vst [vmem:[%s3464_s3 + $0x168] sm:$0xff] %v2624_v55  ;;  %v1689_v59 = vpop.f32.mrb[98].mxu1 }
 0x1d8   :  { %v1402_v60 = vpop.f32.mrb[99].mxu0  ;;  %v1999_v61 = vadd.f32 %v3144_v17, %v1687_v56  ;;  %v1690_v62 = vadd.f32 %v1689_v59, %v1400_v58  ;;  %v1691_v63 = vpop.f32.mrb[99].mxu1 }
 0x1da   :  { %2629 = vtanh.f32 %v1999_v61  ;;  %v2000_v0 = vadd.f32 %v3144_v17, %v1690_v62 }
 0x1dc   :  { %v2626_v1 = vpop.eup %2625  ;;  %2631 = vtanh.f32 %v2000_v0  ;;  %v1405_v2 = vpop.f32.mrb[100].mxu0 }
 0x1dd   :  { %2125 = vst [vmem:[%s3464_s3 + $0x170] sm:$0xff] %v2626_v1  ;;  %v1694_v3 = vpop.f32.mrb[100].mxu1  ;;  %v1407_v4 = vpop.f32.mrb[101].mxu0 }
 0x1de   :  { %v2628_v5 = vpop.eup %2627  ;;  %v1695_v6 = vadd.f32 %v1694_v3, %v1405_v2  ;;  %v1696_v7 = vpop.f32.mrb[101].mxu1 }
 0x1df   :  { %v1408_v8 = vpop.f32.mrb[102].mxu0  ;;  %2126 = vst [vmem:[%s3464_s3 + $0x178] sm:$0xff] %v2628_v5  ;;  %v1697_v9 = vpop.f32.mrb[102].mxu1 }
 0x1e0   :  { %v1410_v10 = vpop.f32.mrb[103].mxu0  ;;  %v2001_v11 = vadd.f32 %v3144_v17, %v1695_v6  ;;  %v1698_v12 = vadd.f32 %v1697_v9, %v1408_v8  ;;  %v1699_v13 = vpop.f32.mrb[103].mxu1 }
 0x1e2   :  { %2633 = vtanh.f32 %v2001_v11  ;;  %v2002_v14 = vadd.f32 %v3144_v17, %v1698_v12 }
 0x1e4   :  { %v2630_v15 = vpop.eup %2629  ;;  %2635 = vtanh.f32 %v2002_v14  ;;  %v1413_v16 = vpop.f32.mrb[104].mxu0 }
 0x1e5   :  { %2127 = vst [vmem:[%s3464_s3 + $0x180] sm:$0xff] %v2630_v15  ;;  %v1702_v18 = vpop.f32.mrb[104].mxu1  ;;  %v1415_v19 = vpop.f32.mrb[105].mxu0 }
 0x1e6   :  { %v2632_v20 = vpop.eup %2631  ;;  %v1703_v21 = vadd.f32 %v1702_v18, %v1413_v16  ;;  %v1704_v22 = vpop.f32.mrb[105].mxu1 }
 0x1e7   :  { %v1416_v23 = vpop.f32.mrb[106].mxu0  ;;  %2128 = vst [vmem:[%s3464_s3 + $0x188] sm:$0xff] %v2632_v20  ;;  %v1705_v24 = vpop.f32.mrb[106].mxu1 }
 0x1e8   :  { %v1418_v25 = vpop.f32.mrb[107].mxu0  ;;  %v2003_v26 = vadd.f32 %v3144_v17, %v1703_v21  ;;  %v1706_v27 = vadd.f32 %v1705_v24, %v1416_v23  ;;  %v1707_v28 = vpop.f32.mrb[107].mxu1 }
 0x1ea   :  { %2637 = vtanh.f32 %v2003_v26  ;;  %v2004_v30 = vadd.f32 %v3406_v29, %v1706_v27 }
 0x1ec   :  { %v2634_v31 = vpop.eup %2633  ;;  %2639 = vtanh.f32 %v2004_v30  ;;  %v1421_v32 = vpop.f32.mrb[108].mxu0 }
 0x1ed   :  { %2129 = vst [vmem:[%s3464_s3 + $0x190] sm:$0xff] %v2634_v31  ;;  %v1710_v33 = vpop.f32.mrb[108].mxu1  ;;  %v1423_v34 = vpop.f32.mrb[109].mxu0 }
 0x1ee   :  { %v2636_v17 = vpop.eup %2635  ;;  %v1711_v35 = vadd.f32 %v1710_v33, %v1421_v32  ;;  %v1712_v36 = vpop.f32.mrb[109].mxu1 }
 0x1ef   :  { %v1424_v37 = vpop.f32.mrb[110].mxu0  ;;  %2130 = vst [vmem:[%s3464_s3 + $0x198] sm:$0xff] %v2636_v17  ;;  %v1713_v38 = vpop.f32.mrb[110].mxu1 }
 0x1f0   :  { %v1426_v39 = vpop.f32.mrb[111].mxu0  ;;  %v2005_v40 = vadd.f32 %v3406_v29, %v1711_v35  ;;  %v1714_v41 = vadd.f32 %v1713_v38, %v1424_v37  ;;  %v1715_v42 = vpop.f32.mrb[111].mxu1 }
 0x1f2   :  { %2641 = vtanh.f32 %v2005_v40  ;;  %v2006_v43 = vadd.f32 %v3406_v29, %v1714_v41 }
 0x1f4   :  { %v2638_v44 = vpop.eup %2637  ;;  %2643 = vtanh.f32 %v2006_v43  ;;  %v1429_v45 = vpop.f32.mrb[112].mxu0 }
 0x1f5   :  { %2131 = vst [vmem:[%s3464_s3 + $0x1a0] sm:$0xff] %v2638_v44  ;;  %v1718_v46 = vpop.f32.mrb[112].mxu1  ;;  %v1431_v47 = vpop.f32.mrb[113].mxu0 }
 0x1f6   :  { %v2640_v48 = vpop.eup %2639  ;;  %v1719_v49 = vadd.f32 %v1718_v46, %v1429_v45  ;;  %v1720_v50 = vpop.f32.mrb[113].mxu1 }
 0x1f7   :  { %v1432_v51 = vpop.f32.mrb[114].mxu0  ;;  %2132 = vst [vmem:[%s3464_s3 + $0x1a8] sm:$0xff] %v2640_v48  ;;  %v1721_v52 = vpop.f32.mrb[114].mxu1 }
 0x1f8   :  { %v1434_v53 = vpop.f32.mrb[115].mxu0  ;;  %v2007_v54 = vadd.f32 %v3406_v29, %v1719_v49  ;;  %v1722_v55 = vadd.f32 %v1721_v52, %v1432_v51  ;;  %v1723_v56 = vpop.f32.mrb[115].mxu1 }
 0x1fa   :  { %2645 = vtanh.f32 %v2007_v54  ;;  %v2008_v57 = vadd.f32 %v3406_v29, %v1722_v55 }
 0x1fc   :  { %v2642_v58 = vpop.eup %2641  ;;  %2647 = vtanh.f32 %v2008_v57  ;;  %v1437_v59 = vpop.f32.mrb[116].mxu0 }
 0x1fd   :  { %2133 = vst [vmem:[%s3464_s3 + $0x1b0] sm:$0xff] %v2642_v58  ;;  %v1726_v60 = vpop.f32.mrb[116].mxu1  ;;  %v1439_v61 = vpop.f32.mrb[117].mxu0 }
 0x1fe   :  { %v2644_v62 = vpop.eup %2643  ;;  %v1727_v63 = vadd.f32 %v1726_v60, %v1437_v59  ;;  %v1728_v0 = vpop.f32.mrb[117].mxu1 }
 0x1ff   :  { %v1440_v1 = vpop.f32.mrb[118].mxu0  ;;  %2134 = vst [vmem:[%s3464_s3 + $0x1b8] sm:$0xff] %v2644_v62  ;;  %v1729_v2 = vpop.f32.mrb[118].mxu1 }
 0x200   :  { %v1442_v3 = vpop.f32.mrb[119].mxu0  ;;  %v2009_v4 = vadd.f32 %v3406_v29, %v1727_v63  ;;  %v1730_v5 = vadd.f32 %v1729_v2, %v1440_v1  ;;  %v1731_v6 = vpop.f32.mrb[119].mxu1 }
 0x202   :  { %2649 = vtanh.f32 %v2009_v4  ;;  %v2010_v7 = vadd.f32 %v3406_v29, %v1730_v5 }
 0x204   :  { %v2646_v8 = vpop.eup %2645  ;;  %2651 = vtanh.f32 %v2010_v7  ;;  %v1445_v9 = vpop.f32.mrb[120].mxu0 }
 0x205   :  { %2135 = vst [vmem:[%s3464_s3 + $0x1c0] sm:$0xff] %v2646_v8  ;;  %v1734_v10 = vpop.f32.mrb[120].mxu1  ;;  %v1447_v11 = vpop.f32.mrb[121].mxu0 }
 0x206   :  { %v2648_v12 = vpop.eup %2647  ;;  %v1735_v13 = vadd.f32 %v1734_v10, %v1445_v9  ;;  %v1736_v14 = vpop.f32.mrb[121].mxu1 }
 0x207   :  { %v1448_v15 = vpop.f32.mrb[122].mxu0  ;;  %2136 = vst [vmem:[%s3464_s3 + $0x1c8] sm:$0xff] %v2648_v12  ;;  %v1737_v16 = vpop.f32.mrb[122].mxu1 }
 0x208   :  { %v1450_v18 = vpop.f32.mrb[123].mxu0  ;;  %v2011_v19 = vadd.f32 %v3406_v29, %v1735_v13  ;;  %v1738_v20 = vadd.f32 %v1737_v16, %v1448_v15  ;;  %v1739_v21 = vpop.f32.mrb[123].mxu1 }
 0x20a   :  { %2653 = vtanh.f32 %v2011_v19  ;;  %v2012_v22 = vadd.f32 %v3406_v29, %v1738_v20 }
 0x20c   :  { %v2650_v23 = vpop.eup %2649  ;;  %2655 = vtanh.f32 %v2012_v22  ;;  %v1453_v24 = vpop.f32.mrb[124].mxu0 }
 0x20d   :  { %2137 = vst [vmem:[%s3464_s3 + $0x1d0] sm:$0xff] %v2650_v23  ;;  %v1742_v25 = vpop.f32.mrb[124].mxu1  ;;  %v1455_v26 = vpop.f32.mrb[125].mxu0 }
 0x20e   :  { %v2652_v27 = vpop.eup %2651  ;;  %v1743_v28 = vadd.f32 %v1742_v25, %v1453_v24  ;;  %v1744_v30 = vpop.f32.mrb[125].mxu1 }
 0x20f   :  { %v1456_v31 = vpop.f32.mrb[126].mxu0  ;;  %2138 = vst [vmem:[%s3464_s3 + $0x1d8] sm:$0xff] %v2652_v27  ;;  %v1745_v32 = vpop.f32.mrb[126].mxu1 }
 0x210   :  { %v1458_v33 = vpop.f32.mrb[127].mxu0  ;;  %v2013_v34 = vadd.f32 %v3406_v29, %v1743_v28  ;;  %v1746_v17 = vadd.f32 %v1745_v32, %v1456_v31  ;;  %v1747_v35 = vpop.f32.mrb[127].mxu1 }
 0x212   :  { %2657 = vtanh.f32 %v2013_v34  ;;  %v2014_v36 = vadd.f32 %v3406_v29, %v1746_v17 }
 0x214   :  { %v2654_v37 = vpop.eup %2653  ;;  %2659 = vtanh.f32 %v2014_v36 }
 0x215   :  { %2139 = vst [vmem:[%s3464_s3 + $0x1e0] sm:$0xff] %v2654_v37 }
 0x216   :  { %v2656_v38 = vpop.eup %2655 }
 0x217   :  { %2140 = vst [vmem:[%s3464_s3 + $0x1e8] sm:$0xff] %v2656_v38 }
 0x21c   :  { %v2658_v39 = vpop.eup %2657 }
 0x21d   :  { %2141 = vst [vmem:[%s3464_s3 + $0x1f0] sm:$0xff] %v2658_v39 }
 0x21e   :  { %v2660_v40 = vpop.eup %2659 }
 0x21f   :  { %2142 = vst [vmem:[%s3464_s3 + $0x1f8] sm:$0xff] %v2660_v40 }

</bundles_post_ra>
